<compile_context>
chip_gen: v7x
topology: tpu7x:2x2x1
jax: 0.10.0
libtpu: 0.0.40
codegen_flags: <defaults>
</compile_context>

<pallas_src>
import jax
import jax.numpy as jnp
from jax.experimental import pallas as pl
from jax.experimental.pallas import tpu as pltpu


# ----------------------------------------------------------------------------
# Fused Pallas kernel: one grid step = one batch element, everything in VMEM.
# ----------------------------------------------------------------------------
def _basic_up_block_kernel(xp_ref, w1_ref, b1_ref, w2_ref, b2_ref,
                           wu0_ref, wu1_ref, bu_ref, o_ref, pad_ref):
    _, hp2, wp2, cin = xp_ref.shape
    H, W = hp2 - 2, wp2 - 2
    cmid = w1_ref.shape[1]

    # ---- conv1 (3x3, stride 1, pad 1) + bias + ReLU ------------------------
    # 9-tap shift-and-accumulate: each tap is an in-VMEM shifted slice of the
    # padded input feeding a bf16 MXU GEMM with an f32 accumulator.
    acc = jnp.zeros((H * W, cmid), jnp.float32)
    for dy in range(3):
        for dx in range(3):
            k = 3 * dy + dx
            tap = xp_ref[0, dy:dy + H, dx:dx + W, :].reshape(H * W, cin)
            acc = acc + jnp.dot(tap, w1_ref[k * cin:(k + 1) * cin, :],
                                preferred_element_type=jnp.float32)
    y1 = jnp.maximum(acc + b1_ref[...], 0.0).astype(jnp.bfloat16)

    # ---- zero-padded conv1 activation kept in a VMEM scratch ---------------
    # (feeds conv2 without any HBM round trip)
    pad_ref[...] = jnp.zeros_like(pad_ref)
    pad_ref[1:H + 1, 1:W + 1, :] = y1.reshape(H, W, cmid)

    # ---- conv2 (3x3, stride 1, pad 1) + bias + ReLU ------------------------
    acc = jnp.zeros((H * W, cmid), jnp.float32)
    for dy in range(3):
        for dx in range(3):
            k = 3 * dy + dx
            tap = pad_ref[dy:dy + H, dx:dx + W, :].reshape(H * W, cmid)
            acc = acc + jnp.dot(tap, w2_ref[k * cmid:(k + 1) * cmid, :],
                                preferred_element_type=jnp.float32)
    y2 = jnp.maximum(acc + b2_ref[...], 0.0).astype(jnp.bfloat16)

    # ---- ConvTranspose2d(kernel=2, stride=2) -------------------------------
    # One GEMM per output-row parity dy; weight columns are ordered (dx, cup)
    # so each store is a full, lane-dense (H, W, 2*Cup) block and the HBM
    # array (N, H, 2, W, 2*Cup) reshapes to (N, 2H, 2W, Cup) with no transpose.
    for dy, wu_ref in ((0, wu0_ref), (1, wu1_ref)):
        up = jnp.dot(y2, wu_ref[...], preferred_element_type=jnp.float32)
        up = up + bu_ref[...]
        o_ref[0, :, dy, :, :] = up.reshape(H, W, wu_ref.shape[1]).astype(o_ref.dtype)


# ----------------------------------------------------------------------------
# Wrapper: NCHW boundary, weight re-layout, pallas_call plumbing.
# ----------------------------------------------------------------------------
def basic_up_block(params, x_nchw):
    w1, b1 = params["w1"], params["b1"]        # (3,3,Cin,Cmid), (Cmid,)
    w2, b2 = params["w2"], params["b2"]        # (3,3,Cmid,Cmid), (Cmid,)
    wu, bu = params["wu"], params["bu"]        # (Cmid,Cup,2,2) torch layout, (Cup,)

    N, Cin, H, W = x_nchw.shape
    Cmid = w1.shape[-1]
    Cup = wu.shape[1]

    # NCHW -> NHWC, pad once for conv1 (conv2's padding is handled in-kernel).
    x = jnp.transpose(x_nchw, (0, 2, 3, 1)).astype(jnp.float32)
    xp = jnp.pad(x, ((0, 0), (1, 1), (1, 1), (0, 0))).astype(jnp.bfloat16)

    # GEMM weight layouts (bf16 for the MXU, f32 biases).
    w1g = w1.reshape(9 * Cin, Cmid).astype(jnp.bfloat16)        # rows ordered (dy,dx,cin)
    w2g = w2.reshape(9 * Cmid, Cmid).astype(jnp.bfloat16)
    wu0 = jnp.transpose(wu[:, :, 0, :], (0, 2, 1)).reshape(Cmid, 2 * Cup).astype(jnp.bfloat16)
    wu1 = jnp.transpose(wu[:, :, 1, :], (0, 2, 1)).reshape(Cmid, 2 * Cup).astype(jnp.bfloat16)
    b1r = b1.reshape(1, Cmid).astype(jnp.float32)
    b2r = b2.reshape(1, Cmid).astype(jnp.float32)
    bur = jnp.tile(bu, 2).reshape(1, 2 * Cup).astype(jnp.float32)

    flops = int(2 * N * H * W * (9 * Cin * Cmid + 9 * Cmid * Cmid + 4 * Cmid * Cup))
    bytes_accessed = int(
        xp.size * 2 + w1g.size * 2 + w2g.size * 2 + (wu0.size + wu1.size) * 2
        + (b1r.size + b2r.size + bur.size) * 4
        + N * H * W * 4 * Cup * 4)

    out = pl.pallas_call(
        _basic_up_block_kernel,
        out_shape=jax.ShapeDtypeStruct((N, H, 2, W, 2 * Cup), jnp.float32),
        grid=(N,),
        in_specs=[
            pl.BlockSpec((1, H + 2, W + 2, Cin), lambda n: (n, 0, 0, 0)),
            pl.BlockSpec((9 * Cin, Cmid), lambda n: (0, 0)),
            pl.BlockSpec((1, Cmid), lambda n: (0, 0)),
            pl.BlockSpec((9 * Cmid, Cmid), lambda n: (0, 0)),
            pl.BlockSpec((1, Cmid), lambda n: (0, 0)),
            pl.BlockSpec((Cmid, 2 * Cup), lambda n: (0, 0)),
            pl.BlockSpec((Cmid, 2 * Cup), lambda n: (0, 0)),
            pl.BlockSpec((1, 2 * Cup), lambda n: (0, 0)),
        ],
        out_specs=pl.BlockSpec((1, H, 2, W, 2 * Cup), lambda n: (n, 0, 0, 0, 0)),
        scratch_shapes=[pltpu.VMEM((H + 2, W + 2, Cmid), jnp.bfloat16)],
        compiler_params=pltpu.CompilerParams(dimension_semantics=("parallel",)),
        cost_estimate=pl.CostEstimate(flops=flops, transcendentals=0,
                                      bytes_accessed=bytes_accessed),
    )(xp, w1g, b1r, w2g, b2r, wu0, wu1, bur)

    # Free row-major reshape: (N, H, 2, W, 2*Cup) -> (N, 2H, 2W, Cup).
    up = out.reshape(N, 2 * H, 2 * W, Cup)
    # TODO(synk): nn.Dropout(0.5) is identity at inference; training-mode stochastic
    # masking (pltpu.prng_random_bits) is not implemented here.
    return jnp.transpose(up, (0, 3, 1, 2))   # back to NCHW


# ----------------------------------------------------------------------------
# Parameter init (matches the module's init recipe) and a pure-JAX reference.
# ----------------------------------------------------------------------------
def init_params(key, inplanes, planes):
    ks = jax.random.split(key, 6)
    cup = planes // 2
    std12 = (2.0 / (3 * 3 * planes)) ** 0.5
    stdu = (2.0 / (3 * 3 * cup)) ** 0.5
    return {
        "w1": jax.random.normal(ks[0], (3, 3, inplanes, planes), jnp.float32) * std12,
        "b1": jax.random.normal(ks[1], (planes,), jnp.float32) * 0.01,
        "w2": jax.random.normal(ks[2], (3, 3, planes, planes), jnp.float32) * std12,
        "b2": jax.random.normal(ks[3], (planes,), jnp.float32) * 0.01,
        "wu": jax.random.normal(ks[4], (planes, cup, 2, 2), jnp.float32) * stdu,
        "bu": jax.random.normal(ks[5], (cup,), jnp.float32) * 0.01,
    }


def _ref_forward(params, x_nchw):
    # Pure-JAX reference with matched bf16 rounding of GEMM operands.
    bf = lambda t: t.astype(jnp.bfloat16).astype(jnp.float32)
    dn = ("NHWC", "HWIO", "NHWC")
    hi = jax.lax.Precision.HIGHEST
    x = jnp.transpose(x_nchw, (0, 2, 3, 1)).astype(jnp.float32)
    y = jax.lax.conv_general_dilated(bf(x), bf(params["w1"]), (1, 1), "SAME",
                                     dimension_numbers=dn, precision=hi)
    y = bf(jnp.maximum(y + params["b1"], 0.0))
    y = jax.lax.conv_general_dilated(y, bf(params["w2"]), (1, 1), "SAME",
                                     dimension_numbers=dn, precision=hi)
    y = bf(jnp.maximum(y + params["b2"], 0.0))
    N, H, W, _ = y.shape
    Cup = params["wu"].shape[1]
    up = jnp.einsum("nhwc,cuyx->nhywxu", y, bf(params["wu"]), precision=hi)
    up = up.reshape(N, 2 * H, 2 * W, Cup) + params["bu"]
    return jnp.transpose(up, (0, 3, 1, 2))


if __name__ == "__main__":
    key = jax.random.PRNGKey(0)
    pkey, xkey = jax.random.split(key)

    N, inplanes, planes, H, W = 2, 64, 128, 16, 16
    params = init_params(pkey, inplanes, planes)
    x = jax.random.normal(xkey, (N, inplanes, H, W), jnp.float32)

    fwd = jax.jit(basic_up_block)
    out = jax.block_until_ready(fwd(params, x))

    assert out.shape == (N, planes // 2, 2 * H, 2 * W), out.shape
    assert bool(jnp.all(jnp.isfinite(out)))

    ref = jax.block_until_ready(jax.jit(_ref_forward)(params, x))
    max_err = float(jnp.max(jnp.abs(out - ref)))
    assert max_err < 5e-2, f"max abs err vs reference: {max_err}"

    print("KERNEL_OK")
</pallas_src>

<mosaic_0001>
module attributes {stable_mosaic.version = 11 : i64} {
  func.func @_basic_up_block_kernel(%arg0: i32, %arg1: memref<1x18x18x64xbf16, #tpu.memory_space<vmem>>, %arg2: memref<576x128xbf16, #tpu.memory_space<vmem>>, %arg3: memref<1x128xf32, #tpu.memory_space<vmem>>, %arg4: memref<1152x128xbf16, #tpu.memory_space<vmem>>, %arg5: memref<1x128xf32, #tpu.memory_space<vmem>>, %arg6: memref<128x128xbf16, #tpu.memory_space<vmem>>, %arg7: memref<128x128xbf16, #tpu.memory_space<vmem>>, %arg8: memref<1x128xf32, #tpu.memory_space<vmem>>, %arg9: memref<1x16x2x16x128xf32, #tpu.memory_space<vmem>>, %arg10: memref<18x18x128xbf16, #tpu.memory_space<vmem>>) attributes {dimension_semantics = [#tpu.dimension_semantics<parallel>], iteration_bounds = array<i64: 2>, scalar_prefetch = 0 : i64, scratch_operands = 1 : i64, tpu.core_type = #tpu.core_type<tc>, window_params = [{transform_indices = @transform_0, window_bounds = array<i64: 1, 18, 18, 64>}, {pipeline_mode = #tpu.pipeline_mode<synchronous>, transform_indices = @transform_1, window_bounds = array<i64: 576, 128>}, {pipeline_mode = #tpu.pipeline_mode<synchronous>, transform_indices = @transform_2, window_bounds = array<i64: 1, 128>}, {pipeline_mode = #tpu.pipeline_mode<synchronous>, transform_indices = @transform_3, window_bounds = array<i64: 1152, 128>}, {pipeline_mode = #tpu.pipeline_mode<synchronous>, transform_indices = @transform_4, window_bounds = array<i64: 1, 128>}, {pipeline_mode = #tpu.pipeline_mode<synchronous>, transform_indices = @transform_5, window_bounds = array<i64: 128, 128>}, {pipeline_mode = #tpu.pipeline_mode<synchronous>, transform_indices = @transform_6, window_bounds = array<i64: 128, 128>}, {pipeline_mode = #tpu.pipeline_mode<synchronous>, transform_indices = @transform_7, window_bounds = array<i64: 1, 128>}, {transform_indices = @transform_8, window_bounds = array<i64: 1, 16, 2, 16, 128>}]} {
    %cst = arith.constant 0.000000e+00 : f32
    %0 = vector.broadcast %cst : f32 to vector<256x128xf32>
    %c0 = arith.constant 0 : index
    %c0_0 = arith.constant 0 : index
    %c0_1 = arith.constant 0 : index
    %c0_2 = arith.constant 0 : index
    %1 = vector.load %arg1[%c0, %c0_0, %c0_1, %c0_2] : memref<1x18x18x64xbf16, #tpu.memory_space<vmem>>, vector<1x16x16x64xbf16>
    %2 = vector.shape_cast %1 : vector<1x16x16x64xbf16> to vector<16x16x64xbf16>
    %3 = vector.shape_cast %2 : vector<16x16x64xbf16> to vector<256x64xbf16>
    %c0_3 = arith.constant 0 : index
    %c0_4 = arith.constant 0 : index
    %4 = vector.load %arg2[%c0_3, %c0_4] : memref<576x128xbf16, #tpu.memory_space<vmem>>, vector<64x128xbf16>
    %cst_5 = arith.constant dense<0.000000e+00> : vector<256x128xf32>
    %5 = tpu.matmul %3, %4, %cst_5 {dimension_numbers = #tpu.dot_dimension_numbers<[1], [0], [0], [1], [0, 0, 1, 1], [], []>} : vector<256x64xbf16>, vector<64x128xbf16>, vector<256x128xf32> -> vector<256x128xf32>
    %6 = arith.addf %0, %5 : vector<256x128xf32>
    %c0_6 = arith.constant 0 : index
    %c0_7 = arith.constant 0 : index
    %c1 = arith.constant 1 : index
    %c0_8 = arith.constant 0 : index
    %7 = vector.load %arg1[%c0_6, %c0_7, %c1, %c0_8] : memref<1x18x18x64xbf16, #tpu.memory_space<vmem>>, vector<1x16x16x64xbf16>
    %8 = vector.shape_cast %7 : vector<1x16x16x64xbf16> to vector<16x16x64xbf16>
    %9 = vector.shape_cast %8 : vector<16x16x64xbf16> to vector<256x64xbf16>
    %c64 = arith.constant 64 : index
    %c0_9 = arith.constant 0 : index
    %10 = vector.load %arg2[%c64, %c0_9] : memref<576x128xbf16, #tpu.memory_space<vmem>>, vector<64x128xbf16>
    %cst_10 = arith.constant dense<0.000000e+00> : vector<256x128xf32>
    %11 = tpu.matmul %9, %10, %cst_10 {dimension_numbers = #tpu.dot_dimension_numbers<[1], [0], [0], [1], [0, 0, 1, 1], [], []>} : vector<256x64xbf16>, vector<64x128xbf16>, vector<256x128xf32> -> vector<256x128xf32>
    %12 = arith.addf %6, %11 : vector<256x128xf32>
    %c0_11 = arith.constant 0 : index
    %c0_12 = arith.constant 0 : index
    %c2 = arith.constant 2 : index
    %c0_13 = arith.constant 0 : index
    %13 = vector.load %arg1[%c0_11, %c0_12, %c2, %c0_13] : memref<1x18x18x64xbf16, #tpu.memory_space<vmem>>, vector<1x16x16x64xbf16>
    %14 = vector.shape_cast %13 : vector<1x16x16x64xbf16> to vector<16x16x64xbf16>
    %15 = vector.shape_cast %14 : vector<16x16x64xbf16> to vector<256x64xbf16>
    %c128 = arith.constant 128 : index
    %c0_14 = arith.constant 0 : index
    %16 = vector.load %arg2[%c128, %c0_14] : memref<576x128xbf16, #tpu.memory_space<vmem>>, vector<64x128xbf16>
    %cst_15 = arith.constant dense<0.000000e+00> : vector<256x128xf32>
    %17 = tpu.matmul %15, %16, %cst_15 {dimension_numbers = #tpu.dot_dimension_numbers<[1], [0], [0], [1], [0, 0, 1, 1], [], []>} : vector<256x64xbf16>, vector<64x128xbf16>, vector<256x128xf32> -> vector<256x128xf32>
    %18 = arith.addf %12, %17 : vector<256x128xf32>
    %c0_16 = arith.constant 0 : index
    %c1_17 = arith.constant 1 : index
    %c0_18 = arith.constant 0 : index
    %c0_19 = arith.constant 0 : index
    %19 = vector.load %arg1[%c0_16, %c1_17, %c0_18, %c0_19] : memref<1x18x18x64xbf16, #tpu.memory_space<vmem>>, vector<1x16x16x64xbf16>
    %20 = vector.shape_cast %19 : vector<1x16x16x64xbf16> to vector<16x16x64xbf16>
    %21 = vector.shape_cast %20 : vector<16x16x64xbf16> to vector<256x64xbf16>
    %c192 = arith.constant 192 : index
    %c0_20 = arith.constant 0 : index
    %22 = vector.load %arg2[%c192, %c0_20] : memref<576x128xbf16, #tpu.memory_space<vmem>>, vector<64x128xbf16>
    %cst_21 = arith.constant dense<0.000000e+00> : vector<256x128xf32>
    %23 = tpu.matmul %21, %22, %cst_21 {dimension_numbers = #tpu.dot_dimension_numbers<[1], [0], [0], [1], [0, 0, 1, 1], [], []>} : vector<256x64xbf16>, vector<64x128xbf16>, vector<256x128xf32> -> vector<256x128xf32>
    %24 = arith.addf %18, %23 : vector<256x128xf32>
    %c0_22 = arith.constant 0 : index
    %c1_23 = arith.constant 1 : index
    %c1_24 = arith.constant 1 : index
    %c0_25 = arith.constant 0 : index
    %25 = vector.load %arg1[%c0_22, %c1_23, %c1_24, %c0_25] : memref<1x18x18x64xbf16, #tpu.memory_space<vmem>>, vector<1x16x16x64xbf16>
    %26 = vector.shape_cast %25 : vector<1x16x16x64xbf16> to vector<16x16x64xbf16>
    %27 = vector.shape_cast %26 : vector<16x16x64xbf16> to vector<256x64xbf16>
    %c256 = arith.constant 256 : index
    %c0_26 = arith.constant 0 : index
    %28 = vector.load %arg2[%c256, %c0_26] : memref<576x128xbf16, #tpu.memory_space<vmem>>, vector<64x128xbf16>
    %cst_27 = arith.constant dense<0.000000e+00> : vector<256x128xf32>
    %29 = tpu.matmul %27, %28, %cst_27 {dimension_numbers = #tpu.dot_dimension_numbers<[1], [0], [0], [1], [0, 0, 1, 1], [], []>} : vector<256x64xbf16>, vector<64x128xbf16>, vector<256x128xf32> -> vector<256x128xf32>
    %30 = arith.addf %24, %29 : vector<256x128xf32>
    %c0_28 = arith.constant 0 : index
    %c1_29 = arith.constant 1 : index
    %c2_30 = arith.constant 2 : index
    %c0_31 = arith.constant 0 : index
    %31 = vector.load %arg1[%c0_28, %c1_29, %c2_30, %c0_31] : memref<1x18x18x64xbf16, #tpu.memory_space<vmem>>, vector<1x16x16x64xbf16>
    %32 = vector.shape_cast %31 : vector<1x16x16x64xbf16> to vector<16x16x64xbf16>
    %33 = vector.shape_cast %32 : vector<16x16x64xbf16> to vector<256x64xbf16>
    %c320 = arith.constant 320 : index
    %c0_32 = arith.constant 0 : index
    %34 = vector.load %arg2[%c320, %c0_32] : memref<576x128xbf16, #tpu.memory_space<vmem>>, vector<64x128xbf16>
    %cst_33 = arith.constant dense<0.000000e+00> : vector<256x128xf32>
    %35 = tpu.matmul %33, %34, %cst_33 {dimension_numbers = #tpu.dot_dimension_numbers<[1], [0], [0], [1], [0, 0, 1, 1], [], []>} : vector<256x64xbf16>, vector<64x128xbf16>, vector<256x128xf32> -> vector<256x128xf32>
    %36 = arith.addf %30, %35 : vector<256x128xf32>
    %c0_34 = arith.constant 0 : index
    %c2_35 = arith.constant 2 : index
    %c0_36 = arith.constant 0 : index
    %c0_37 = arith.constant 0 : index
    %37 = vector.load %arg1[%c0_34, %c2_35, %c0_36, %c0_37] : memref<1x18x18x64xbf16, #tpu.memory_space<vmem>>, vector<1x16x16x64xbf16>
    %38 = vector.shape_cast %37 : vector<1x16x16x64xbf16> to vector<16x16x64xbf16>
    %39 = vector.shape_cast %38 : vector<16x16x64xbf16> to vector<256x64xbf16>
    %c384 = arith.constant 384 : index
    %c0_38 = arith.constant 0 : index
    %40 = vector.load %arg2[%c384, %c0_38] : memref<576x128xbf16, #tpu.memory_space<vmem>>, vector<64x128xbf16>
    %cst_39 = arith.constant dense<0.000000e+00> : vector<256x128xf32>
    %41 = tpu.matmul %39, %40, %cst_39 {dimension_numbers = #tpu.dot_dimension_numbers<[1], [0], [0], [1], [0, 0, 1, 1], [], []>} : vector<256x64xbf16>, vector<64x128xbf16>, vector<256x128xf32> -> vector<256x128xf32>
    %42 = arith.addf %36, %41 : vector<256x128xf32>
    %c0_40 = arith.constant 0 : index
    %c2_41 = arith.constant 2 : index
    %c1_42 = arith.constant 1 : index
    %c0_43 = arith.constant 0 : index
    %43 = vector.load %arg1[%c0_40, %c2_41, %c1_42, %c0_43] : memref<1x18x18x64xbf16, #tpu.memory_space<vmem>>, vector<1x16x16x64xbf16>
    %44 = vector.shape_cast %43 : vector<1x16x16x64xbf16> to vector<16x16x64xbf16>
    %45 = vector.shape_cast %44 : vector<16x16x64xbf16> to vector<256x64xbf16>
    %c448 = arith.constant 448 : index
    %c0_44 = arith.constant 0 : index
    %46 = vector.load %arg2[%c448, %c0_44] : memref<576x128xbf16, #tpu.memory_space<vmem>>, vector<64x128xbf16>
    %cst_45 = arith.constant dense<0.000000e+00> : vector<256x128xf32>
    %47 = tpu.matmul %45, %46, %cst_45 {dimension_numbers = #tpu.dot_dimension_numbers<[1], [0], [0], [1], [0, 0, 1, 1], [], []>} : vector<256x64xbf16>, vector<64x128xbf16>, vector<256x128xf32> -> vector<256x128xf32>
    %48 = arith.addf %42, %47 : vector<256x128xf32>
    %c0_46 = arith.constant 0 : index
    %c2_47 = arith.constant 2 : index
    %c2_48 = arith.constant 2 : index
    %c0_49 = arith.constant 0 : index
    %49 = vector.load %arg1[%c0_46, %c2_47, %c2_48, %c0_49] : memref<1x18x18x64xbf16, #tpu.memory_space<vmem>>, vector<1x16x16x64xbf16>
    %50 = vector.shape_cast %49 : vector<1x16x16x64xbf16> to vector<16x16x64xbf16>
    %51 = vector.shape_cast %50 : vector<16x16x64xbf16> to vector<256x64xbf16>
    %c512 = arith.constant 512 : index
    %c0_50 = arith.constant 0 : index
    %52 = vector.load %arg2[%c512, %c0_50] : memref<576x128xbf16, #tpu.memory_space<vmem>>, vector<64x128xbf16>
    %cst_51 = arith.constant dense<0.000000e+00> : vector<256x128xf32>
    %53 = tpu.matmul %51, %52, %cst_51 {dimension_numbers = #tpu.dot_dimension_numbers<[1], [0], [0], [1], [0, 0, 1, 1], [], []>} : vector<256x64xbf16>, vector<64x128xbf16>, vector<256x128xf32> -> vector<256x128xf32>
    %54 = arith.addf %48, %53 : vector<256x128xf32>
    %c0_52 = arith.constant 0 : index
    %c0_53 = arith.constant 0 : index
    %55 = vector.load %arg3[%c0_52, %c0_53] : memref<1x128xf32, #tpu.memory_space<vmem>>, vector<1x128xf32>
    %56 = vector.broadcast %55 : vector<1x128xf32> to vector<256x128xf32>
    %57 = arith.addf %54, %56 : vector<256x128xf32>
    %cst_54 = arith.constant 0.000000e+00 : f32
    %58 = vector.broadcast %cst_54 : f32 to vector<256x128xf32>
    %59 = arith.maximumf %57, %58 : vector<256x128xf32>
    %60 = arith.truncf %59 : vector<256x128xf32> to vector<256x128xbf16>
    %cst_55 = arith.constant 0.000000e+00 : bf16
    %61 = vector.broadcast %cst_55 : bf16 to vector<18x18x128xbf16>
    %c0_56 = arith.constant 0 : index
    %c0_57 = arith.constant 0 : index
    %c0_58 = arith.constant 0 : index
    %62 = vector.load %arg10[%c0_56, %c0_57, %c0_58] : memref<18x18x128xbf16, #tpu.memory_space<vmem>>, vector<18x18x128xbf16>
    tpu.vector_store %arg10[%c0_56, %c0_57, %c0_58], %61 {strides = array<i32>} : memref<18x18x128xbf16, #tpu.memory_space<vmem>>, vector<18x18x128xbf16>,
    %63 = vector.shape_cast %60 : vector<256x128xbf16> to vector<16x16x128xbf16>
    %c1_59 = arith.constant 1 : index
    %c1_60 = arith.constant 1 : index
    %c0_61 = arith.constant 0 : index
    %64 = vector.load %arg10[%c1_59, %c1_60, %c0_61] : memref<18x18x128xbf16, #tpu.memory_space<vmem>>, vector<16x16x128xbf16>
    tpu.vector_store %arg10[%c1_59, %c1_60, %c0_61], %63 {strides = array<i32>} : memref<18x18x128xbf16, #tpu.memory_space<vmem>>, vector<16x16x128xbf16>,
    %cst_62 = arith.constant 0.000000e+00 : f32
    %65 = vector.broadcast %cst_62 : f32 to vector<256x128xf32>
    %c0_63 = arith.constant 0 : index
    %c0_64 = arith.constant 0 : index
    %c0_65 = arith.constant 0 : index
    %66 = vector.load %arg10[%c0_63, %c0_64, %c0_65] : memref<18x18x128xbf16, #tpu.memory_space<vmem>>, vector<16x16x128xbf16>
    %67 = vector.shape_cast %66 : vector<16x16x128xbf16> to vector<256x128xbf16>
    %c0_66 = arith.constant 0 : index
    %c0_67 = arith.constant 0 : index
    %68 = vector.load %arg4[%c0_66, %c0_67] : memref<1152x128xbf16, #tpu.memory_space<vmem>>, vector<128x128xbf16>
    %cst_68 = arith.constant dense<0.000000e+00> : vector<256x128xf32>
    %69 = tpu.matmul %67, %68, %cst_68 {dimension_numbers = #tpu.dot_dimension_numbers<[1], [0], [0], [1], [0, 0, 1, 1], [], []>} : vector<256x128xbf16>, vector<128x128xbf16>, vector<256x128xf32> -> vector<256x128xf32>
    %70 = arith.addf %65, %69 : vector<256x128xf32>
    %c0_69 = arith.constant 0 : index
    %c1_70 = arith.constant 1 : index
    %c0_71 = arith.constant 0 : index
    %71 = vector.load %arg10[%c0_69, %c1_70, %c0_71] : memref<18x18x128xbf16, #tpu.memory_space<vmem>>, vector<16x16x128xbf16>
    %72 = vector.shape_cast %71 : vector<16x16x128xbf16> to vector<256x128xbf16>
    %c128_72 = arith.constant 128 : index
    %c0_73 = arith.constant 0 : index
    %73 = vector.load %arg4[%c128_72, %c0_73] : memref<1152x128xbf16, #tpu.memory_space<vmem>>, vector<128x128xbf16>
    %cst_74 = arith.constant dense<0.000000e+00> : vector<256x128xf32>
    %74 = tpu.matmul %72, %73, %cst_74 {dimension_numbers = #tpu.dot_dimension_numbers<[1], [0], [0], [1], [0, 0, 1, 1], [], []>} : vector<256x128xbf16>, vector<128x128xbf16>, vector<256x128xf32> -> vector<256x128xf32>
    %75 = arith.addf %70, %74 : vector<256x128xf32>
    %c0_75 = arith.constant 0 : index
    %c2_76 = arith.constant 2 : index
    %c0_77 = arith.constant 0 : index
    %76 = vector.load %arg10[%c0_75, %c2_76, %c0_77] : memref<18x18x128xbf16, #tpu.memory_space<vmem>>, vector<16x16x128xbf16>
    %77 = vector.shape_cast %76 : vector<16x16x128xbf16> to vector<256x128xbf16>
    %c256_78 = arith.constant 256 : index
    %c0_79 = arith.constant 0 : index
    %78 = vector.load %arg4[%c256_78, %c0_79] : memref<1152x128xbf16, #tpu.memory_space<vmem>>, vector<128x128xbf16>
    %cst_80 = arith.constant dense<0.000000e+00> : vector<256x128xf32>
    %79 = tpu.matmul %77, %78, %cst_80 {dimension_numbers = #tpu.dot_dimension_numbers<[1], [0], [0], [1], [0, 0, 1, 1], [], []>} : vector<256x128xbf16>, vector<128x128xbf16>, vector<256x128xf32> -> vector<256x128xf32>
    %80 = arith.addf %75, %79 : vector<256x128xf32>
    %c1_81 = arith.constant 1 : index
    %c0_82 = arith.constant 0 : index
    %c0_83 = arith.constant 0 : index
    %81 = vector.load %arg10[%c1_81, %c0_82, %c0_83] : memref<18x18x128xbf16, #tpu.memory_space<vmem>>, vector<16x16x128xbf16>
    %82 = vector.shape_cast %81 : vector<16x16x128xbf16> to vector<256x128xbf16>
    %c384_84 = arith.constant 384 : index
    %c0_85 = arith.constant 0 : index
    %83 = vector.load %arg4[%c384_84, %c0_85] : memref<1152x128xbf16, #tpu.memory_space<vmem>>, vector<128x128xbf16>
    %cst_86 = arith.constant dense<0.000000e+00> : vector<256x128xf32>
    %84 = tpu.matmul %82, %83, %cst_86 {dimension_numbers = #tpu.dot_dimension_numbers<[1], [0], [0], [1], [0, 0, 1, 1], [], []>} : vector<256x128xbf16>, vector<128x128xbf16>, vector<256x128xf32> -> vector<256x128xf32>
    %85 = arith.addf %80, %84 : vector<256x128xf32>
    %c1_87 = arith.constant 1 : index
    %c1_88 = arith.constant 1 : index
    %c0_89 = arith.constant 0 : index
    %86 = vector.load %arg10[%c1_87, %c1_88, %c0_89] : memref<18x18x128xbf16, #tpu.memory_space<vmem>>, vector<16x16x128xbf16>
    %87 = vector.shape_cast %86 : vector<16x16x128xbf16> to vector<256x128xbf16>
    %c512_90 = arith.constant 512 : index
    %c0_91 = arith.constant 0 : index
    %88 = vector.load %arg4[%c512_90, %c0_91] : memref<1152x128xbf16, #tpu.memory_space<vmem>>, vector<128x128xbf16>
    %cst_92 = arith.constant dense<0.000000e+00> : vector<256x128xf32>
    %89 = tpu.matmul %87, %88, %cst_92 {dimension_numbers = #tpu.dot_dimension_numbers<[1], [0], [0], [1], [0, 0, 1, 1], [], []>} : vector<256x128xbf16>, vector<128x128xbf16>, vector<256x128xf32> -> vector<256x128xf32>
    %90 = arith.addf %85, %89 : vector<256x128xf32>
    %c1_93 = arith.constant 1 : index
    %c2_94 = arith.constant 2 : index
    %c0_95 = arith.constant 0 : index
    %91 = vector.load %arg10[%c1_93, %c2_94, %c0_95] : memref<18x18x128xbf16, #tpu.memory_space<vmem>>, vector<16x16x128xbf16>
    %92 = vector.shape_cast %91 : vector<16x16x128xbf16> to vector<256x128xbf16>
    %c640 = arith.constant 640 : index
    %c0_96 = arith.constant 0 : index
    %93 = vector.load %arg4[%c640, %c0_96] : memref<1152x128xbf16, #tpu.memory_space<vmem>>, vector<128x128xbf16>
    %cst_97 = arith.constant dense<0.000000e+00> : vector<256x128xf32>
    %94 = tpu.matmul %92, %93, %cst_97 {dimension_numbers = #tpu.dot_dimension_numbers<[1], [0], [0], [1], [0, 0, 1, 1], [], []>} : vector<256x128xbf16>, vector<128x128xbf16>, vector<256x128xf32> -> vector<256x128xf32>
    %95 = arith.addf %90, %94 : vector<256x128xf32>
    %c2_98 = arith.constant 2 : index
    %c0_99 = arith.constant 0 : index
    %c0_100 = arith.constant 0 : index
    %96 = vector.load %arg10[%c2_98, %c0_99, %c0_100] : memref<18x18x128xbf16, #tpu.memory_space<vmem>>, vector<16x16x128xbf16>
    %97 = vector.shape_cast %96 : vector<16x16x128xbf16> to vector<256x128xbf16>
    %c768 = arith.constant 768 : index
    %c0_101 = arith.constant 0 : index
    %98 = vector.load %arg4[%c768, %c0_101] : memref<1152x128xbf16, #tpu.memory_space<vmem>>, vector<128x128xbf16>
    %cst_102 = arith.constant dense<0.000000e+00> : vector<256x128xf32>
    %99 = tpu.matmul %97, %98, %cst_102 {dimension_numbers = #tpu.dot_dimension_numbers<[1], [0], [0], [1], [0, 0, 1, 1], [], []>} : vector<256x128xbf16>, vector<128x128xbf16>, vector<256x128xf32> -> vector<256x128xf32>
    %100 = arith.addf %95, %99 : vector<256x128xf32>
    %c2_103 = arith.constant 2 : index
    %c1_104 = arith.constant 1 : index
    %c0_105 = arith.constant 0 : index
    %101 = vector.load %arg10[%c2_103, %c1_104, %c0_105] : memref<18x18x128xbf16, #tpu.memory_space<vmem>>, vector<16x16x128xbf16>
    %102 = vector.shape_cast %101 : vector<16x16x128xbf16> to vector<256x128xbf16>
    %c896 = arith.constant 896 : index
    %c0_106 = arith.constant 0 : index
    %103 = vector.load %arg4[%c896, %c0_106] : memref<1152x128xbf16, #tpu.memory_space<vmem>>, vector<128x128xbf16>
    %cst_107 = arith.constant dense<0.000000e+00> : vector<256x128xf32>
    %104 = tpu.matmul %102, %103, %cst_107 {dimension_numbers = #tpu.dot_dimension_numbers<[1], [0], [0], [1], [0, 0, 1, 1], [], []>} : vector<256x128xbf16>, vector<128x128xbf16>, vector<256x128xf32> -> vector<256x128xf32>
    %105 = arith.addf %100, %104 : vector<256x128xf32>
    %c2_108 = arith.constant 2 : index
    %c2_109 = arith.constant 2 : index
    %c0_110 = arith.constant 0 : index
    %106 = vector.load %arg10[%c2_108, %c2_109, %c0_110] : memref<18x18x128xbf16, #tpu.memory_space<vmem>>, vector<16x16x128xbf16>
    %107 = vector.shape_cast %106 : vector<16x16x128xbf16> to vector<256x128xbf16>
    %c1024 = arith.constant 1024 : index
    %c0_111 = arith.constant 0 : index
    %108 = vector.load %arg4[%c1024, %c0_111] : memref<1152x128xbf16, #tpu.memory_space<vmem>>, vector<128x128xbf16>
    %cst_112 = arith.constant dense<0.000000e+00> : vector<256x128xf32>
    %109 = tpu.matmul %107, %108, %cst_112 {dimension_numbers = #tpu.dot_dimension_numbers<[1], [0], [0], [1], [0, 0, 1, 1], [], []>} : vector<256x128xbf16>, vector<128x128xbf16>, vector<256x128xf32> -> vector<256x128xf32>
    %110 = arith.addf %105, %109 : vector<256x128xf32>
    %c0_113 = arith.constant 0 : index
    %c0_114 = arith.constant 0 : index
    %111 = vector.load %arg5[%c0_113, %c0_114] : memref<1x128xf32, #tpu.memory_space<vmem>>, vector<1x128xf32>
    %112 = vector.broadcast %111 : vector<1x128xf32> to vector<256x128xf32>
    %113 = arith.addf %110, %112 : vector<256x128xf32>
    %cst_115 = arith.constant 0.000000e+00 : f32
    %114 = vector.broadcast %cst_115 : f32 to vector<256x128xf32>
    %115 = arith.maximumf %113, %114 : vector<256x128xf32>
    %116 = arith.truncf %115 : vector<256x128xf32> to vector<256x128xbf16>
    %c0_116 = arith.constant 0 : index
    %c0_117 = arith.constant 0 : index
    %117 = vector.load %arg6[%c0_116, %c0_117] : memref<128x128xbf16, #tpu.memory_space<vmem>>, vector<128x128xbf16>
    %cst_118 = arith.constant dense<0.000000e+00> : vector<256x128xf32>
    %118 = tpu.matmul %116, %117, %cst_118 {dimension_numbers = #tpu.dot_dimension_numbers<[1], [0], [0], [1], [0, 0, 1, 1], [], []>} : vector<256x128xbf16>, vector<128x128xbf16>, vector<256x128xf32> -> vector<256x128xf32>
    %c0_119 = arith.constant 0 : index
    %c0_120 = arith.constant 0 : index
    %119 = vector.load %arg8[%c0_119, %c0_120] : memref<1x128xf32, #tpu.memory_space<vmem>>, vector<1x128xf32>
    %120 = vector.broadcast %119 : vector<1x128xf32> to vector<256x128xf32>
    %121 = arith.addf %118, %120 : vector<256x128xf32>
    %122 = vector.shape_cast %121 : vector<256x128xf32> to vector<16x16x128xf32>
    %c0_121 = arith.constant 0 : index
    %c0_122 = arith.constant 0 : index
    %c0_123 = arith.constant 0 : index
    %c0_124 = arith.constant 0 : index
    %c0_125 = arith.constant 0 : index
    %123 = vector.load %arg9[%c0_121, %c0_122, %c0_123, %c0_124, %c0_125] : memref<1x16x2x16x128xf32, #tpu.memory_space<vmem>>, vector<1x16x1x16x128xf32>
    %124 = vector.shape_cast %123 : vector<1x16x1x16x128xf32> to vector<16x16x128xf32>
    %125 = vector.shape_cast %122 : vector<16x16x128xf32> to vector<1x16x1x16x128xf32>
    tpu.vector_store %arg9[%c0_121, %c0_122, %c0_123, %c0_124, %c0_125], %125 {strides = array<i32>} : memref<1x16x2x16x128xf32, #tpu.memory_space<vmem>>, vector<1x16x1x16x128xf32>,
    %c0_126 = arith.constant 0 : index
    %c0_127 = arith.constant 0 : index
    %126 = vector.load %arg7[%c0_126, %c0_127] : memref<128x128xbf16, #tpu.memory_space<vmem>>, vector<128x128xbf16>
    %cst_128 = arith.constant dense<0.000000e+00> : vector<256x128xf32>
    %127 = tpu.matmul %116, %126, %cst_128 {dimension_numbers = #tpu.dot_dimension_numbers<[1], [0], [0], [1], [0, 0, 1, 1], [], []>} : vector<256x128xbf16>, vector<128x128xbf16>, vector<256x128xf32> -> vector<256x128xf32>
    %c0_129 = arith.constant 0 : index
    %c0_130 = arith.constant 0 : index
    %128 = vector.load %arg8[%c0_129, %c0_130] : memref<1x128xf32, #tpu.memory_space<vmem>>, vector<1x128xf32>
    %129 = vector.broadcast %128 : vector<1x128xf32> to vector<256x128xf32>
    %130 = arith.addf %127, %129 : vector<256x128xf32>
    %131 = vector.shape_cast %130 : vector<256x128xf32> to vector<16x16x128xf32>
    %c0_131 = arith.constant 0 : index
    %c0_132 = arith.constant 0 : index
    %c1_133 = arith.constant 1 : index
    %c0_134 = arith.constant 0 : index
    %c0_135 = arith.constant 0 : index
    %132 = vector.load %arg9[%c0_131, %c0_132, %c1_133, %c0_134, %c0_135] : memref<1x16x2x16x128xf32, #tpu.memory_space<vmem>>, vector<1x16x1x16x128xf32>
    %133 = vector.shape_cast %132 : vector<1x16x1x16x128xf32> to vector<16x16x128xf32>
    %134 = vector.shape_cast %131 : vector<16x16x128xf32> to vector<1x16x1x16x128xf32>
    tpu.vector_store %arg9[%c0_131, %c0_132, %c1_133, %c0_134, %c0_135], %134 {strides = array<i32>} : memref<1x16x2x16x128xf32, #tpu.memory_space<vmem>>, vector<1x16x1x16x128xf32>,
    return
  }
  func.func @transform_0(%arg0: i32) -> (i32, i32, i32, i32) {
    %c0_i32 = arith.constant 0 : i32
    %c0_i32_0 = arith.constant 0 : i32
    %c0_i32_1 = arith.constant 0 : i32
    %c0_i32_2 = arith.constant 0 : i32
    return %arg0, %c0_i32, %c0_i32_0, %c0_i32_1 : i32, i32, i32, i32
  }
  func.func @transform_1(%arg0: i32) -> (i32, i32) {
    %c0_i32 = arith.constant 0 : i32
    %c0_i32_0 = arith.constant 0 : i32
    %c0_i32_1 = arith.constant 0 : i32
    return %c0_i32, %c0_i32_0 : i32, i32
  }
  func.func @transform_2(%arg0: i32) -> (i32, i32) {
    %c0_i32 = arith.constant 0 : i32
    %c0_i32_0 = arith.constant 0 : i32
    %c0_i32_1 = arith.constant 0 : i32
    return %c0_i32, %c0_i32_0 : i32, i32
  }
  func.func @transform_3(%arg0: i32) -> (i32, i32) {
    %c0_i32 = arith.constant 0 : i32
    %c0_i32_0 = arith.constant 0 : i32
    %c0_i32_1 = arith.constant 0 : i32
    return %c0_i32, %c0_i32_0 : i32, i32
  }
  func.func @transform_4(%arg0: i32) -> (i32, i32) {
    %c0_i32 = arith.constant 0 : i32
    %c0_i32_0 = arith.constant 0 : i32
    %c0_i32_1 = arith.constant 0 : i32
    return %c0_i32, %c0_i32_0 : i32, i32
  }
  func.func @transform_5(%arg0: i32) -> (i32, i32) {
    %c0_i32 = arith.constant 0 : i32
    %c0_i32_0 = arith.constant 0 : i32
    %c0_i32_1 = arith.constant 0 : i32
    return %c0_i32, %c0_i32_0 : i32, i32
  }
  func.func @transform_6(%arg0: i32) -> (i32, i32) {
    %c0_i32 = arith.constant 0 : i32
    %c0_i32_0 = arith.constant 0 : i32
    %c0_i32_1 = arith.constant 0 : i32
    return %c0_i32, %c0_i32_0 : i32, i32
  }
  func.func @transform_7(%arg0: i32) -> (i32, i32) {
    %c0_i32 = arith.constant 0 : i32
    %c0_i32_0 = arith.constant 0 : i32
    %c0_i32_1 = arith.constant 0 : i32
    return %c0_i32, %c0_i32_0 : i32, i32
  }
  func.func @transform_8(%arg0: i32) -> (i32, i32, i32, i32, i32) {
    %c0_i32 = arith.constant 0 : i32
    %c0_i32_0 = arith.constant 0 : i32
    %c0_i32_1 = arith.constant 0 : i32
    %c0_i32_2 = arith.constant 0 : i32
    %c0_i32_3 = arith.constant 0 : i32
    return %arg0, %c0_i32, %c0_i32_0, %c0_i32_1, %c0_i32_2 : i32, i32, i32, i32, i32
  }
}

</mosaic_0001>

<bundles_post_ra>
// kernel: tile.9
= control target key start
LH: loop header
LB: loop body
LE: loop exit
PB: predicated region body
PF: predicated region fallthrough
CT: control target
= control target key end

     0   :  { %vm7_vm0 = vcmask 523264   ;;  %vm13_vm1 = vcmask 1048064   ;;  %s39_s0 = inlined_call_operand.vmem [shape: f32[2,64], index: 0, kind: input, shape index: {}]   ;;  %s40_s1 = inlined_call_operand.vmem [shape: f32[1,128], index: 1, kind: output, shape index: {}]  }
   0x1   :  { %v4_v0 = vld [vmem:[%s39_s0] sm:$0x3]  ;;  %s22_s0 = smov 64  }
   0x2   :  { %5 = vst [vmem:[#allocation1] sm:$0x3] %v4_v0 }
   0x9   :  { %v10_v1 = vld [vmem:[#allocation1 + $0x1] sm:$0x1]   ;;  %v6_v2 = vld [vmem:[#allocation1] sm:$0x1]  }
   0xa   :  { %11 = vrot.lane.b32.xlu0 %v10_v1, %s22_s0  ;;  %8 = vst.msk [vmem:[#allocation0] sm:$0x1] %vm7_vm0, %v6_v2  }
  0x7c   :  { %v12_v3 = vpop.permute.xlu0 %11  }
  0x7d   :  { %14 = vst.msk [vmem:[#allocation0] sm:$0x1] %vm13_vm1, %v12_v3  }
  0x84   :  { %v18_v4 = vld [vmem:[#allocation0] sm:$0x1] }
  0x85   :  { %20 = vst [vmem:[%s40_s1] sm:$0x1] %v18_v4 }

// kernel: tile.8
= control target key start
LH: loop header
LB: loop body
LE: loop exit
PB: predicated region body
PF: predicated region fallthrough
CT: control target
= control target key end

     0   :  { %2 = vsyncpa [#allocation1], 0  ;;  %s44_s6 = smov [#allocation0]   ;;  %s70_s0 = inlined_call_operand.hbm [shape: f32[64], index: 0, kind: input, shape index: {}]   ;;  %s71_s1 = inlined_call_operand.vmem [shape: f32[2,64], index: 1, kind: output, shape index: {}]  }
   0x1   :  { %s9_s7 = sshll.u32 %s44_s6, 4  ;;  %s20_s10 = scalar_lea.hbm %s70_s0, 16  ;;  %s10_s7 = int_to_ptr.vmem [resolvable:$true] %s9_s7 }
   0x2   :  { %p21_p0 = scmp.ne.s32.totalorder %s70_s0, %s20_s10  ;;  %p24_p1 = scmp.lt.u32.totalorder %s20_s10, %s70_s0 }
   0x4   :  { %p26_p2 = pnand %p24_p1, %p21_p0 }
   0x6   :  { %29 = shalt.err (!%p26_p2)
}
   0x7   :  { %s30_s15 = scalar_lea.vmem %s10_s7, 16  ;;  %s34_s16 = scalar_lea.vmem %s10_s7, 32 }
   0x8   :  { %p31_p3 = scmp.ne.s32.totalorder %s10_s7, %s30_s15  ;;  %p35_p4 = scmp.lt.s32.totalorder %s10_s7, %s10_s7 }
   0x9   :  { %p36_p5 = scmp.lt.s32.totalorder %s34_s16, %s30_s15 }
   0xb   :  { %p37_p6 = por %p36_p5, %p35_p4 }
   0xd   :  { %p38_p7 = pnand %p37_p6, %p31_p3 }
   0xf   :  { %41 = shalt.err (!%p38_p7)
}
  0x10   :  { %12 = dma.hbm_to_vmem [thread:$0]  %s70_s0, 16, %s10_s7, [#allocation1]  }
  0x11   :  { %42 = dma.done.wait [#allocation1], 16  }
  0x12   :  { %43 = vsyncadd [#allocation1], 4294967280  ;;  %v16_v0 = vld [vmem:[#allocation0] ss:$0 sm:$0xff] }
  0x13   :  { %17 = vst [vmem:[%s71_s1] sm:$0x3] %v16_v0 }
  0x14   :  { %18 = vsyncpa [#allocation1], 1 }

// kernel: basic_up_block.1
= control target key start
LH: loop header
LB: loop body
LE: loop exit
PB: predicated region body
PF: predicated region fallthrough
CT: control target
= control target key end

     0   :  { %s14385_s27 = smov 0   ;;  %s18245_s0 = inlined_call_operand.vmem [shape: bf16[2,18,18,64], index: 0, kind: input, shape index: {}]   ;;  %s18246_s1 = inlined_call_operand.vmem [shape: bf16[576,128], index: 1, kind: input, shape index: {}]   ;;  %s18247_s2 = inlined_call_operand.vmem [shape: f32[1,128], index: 2, kind: input, shape index: {}]   ;;  %s18248_s3 = inlined_call_operand.vmem [shape: bf16[1152,128], index: 3, kind: input, shape index: {}]   ;;  %s18249_s4 = inlined_call_operand.vmem [shape: f32[1,128], index: 4, kind: input, shape index: {}]   ;;  %s18250_s5 = inlined_call_operand.vmem [shape: bf16[128,128], index: 5, kind: input, shape index: {}]   ;;  %s18251_s6 = inlined_call_operand.vmem [shape: bf16[128,128], index: 6, kind: input, shape index: {}]   ;;  %s18252_s7 = inlined_call_operand.vmem [shape: f32[1,128], index: 7, kind: input, shape index: {}]   ;;  %s18253_s8 = inlined_call_operand.vmem [shape: f32[2,16,2,16,128], index: 8, kind: output, shape index: {}]  }
   0x1 LB: > { %s11236_s28 = sadd.s32 4294967295, %s14337_s27   ;;  %p11240_p0 = scmp.ge.s32.totalorder %s14337_s27, 1  ;;  %s14337_s27 = sphi %s14385_s27, %s18_s27  }
   0x2   : > { %p262_p1 = scmp.lt.s32.totalorder %s14337_s27, 3 }
   0x4   : > { %p263_p2 = pnand %p11240_p0, %p262_p1 }
   0x6   : > { %266 = sbr.rel (%p263_p2) target bundleno = 1873 (0x751), region = 52 }
   0xd   : > { %v14061_v0 = vld [vmem:[%s18246_s1 + $0x20] sm:$0xff]   ;;  %p296_p3 = scmp.lt.s32.totalorder %s11236_s28, 1  ;;  %v14062_v1 = vld [vmem:[%s18246_s1 + $0x28] sm:$0xff]   ;;  %v14063_v2 = vld [vmem:[%s18246_s1 + $0x30] sm:$0xff]   ;;  %vm363_vm0 = vsmask.f32 3328 }
   0xe   : > { %12635 = vmatprep.subr.bf16.mxu0 %v14061_v0  ;;  %v14064_v3 = vld [vmem:[%s18246_s1 + $0x38] sm:$0xff]   ;;  %vm364_vm1 = vsmask.f32 7440  ;;  %v14065_v25 = vld [vmem:[%s18246_s1] sm:$0xff]   ;;  %vm830_vm3 = vcmask 523264   ;;  %vm1401_vm4 = vcmask 1042432  }
   0xf   : > { %s18566_s28 = smov (!%p296_p3, %s11236_s28), 1  ;;  %12636 = vmatpush3.bf16.msra.mxu0 %v14061_v0  ;;  %vm14446_vm2 = vmor %vm363_vm0, %vm364_vm1  ;;  %vm1402_vm5 = vcmask 1046532   ;;  %vm5654_vm7 = vcmask 1043456   ;;  %vm5655_vm8 = vsmask.f32 7938  ;;  %vm5661_vm11 = vcmask 1040384  }
  0x10   : > { %12637 = vmatprep.subr.bf16.mxu0 %v14062_v1  ;;  %s14051_s13 = smul.u32 216, %s18566_s28  ;;  %vm14762_vm6 = vmor %vm1401_vm4, %vm1402_vm5  ;;  %vm5330_vm9 = vsmask.f32 256  ;;  %vm5331_vm10 = vsmask.f32 4368  ;;  %v17960_v29 = vld [vmem:[%s18251_s6 + $0x10] sm:$0xff]  }
  0x11   : > { %vm16270_vm12 = vmand %vm5654_vm7, %vm5655_vm8  ;;  %s12158_s29 = sshll.u32 %s18566_s28, 9 }
  0x12   : > { %s14411_s18 = scalar_lea.vmem %s18245_s0, %s14051_s13  ;;  %vm16277_vm13 = vmor %vm5330_vm9, %vm5331_vm10  ;;  %s18112_s12 = scalar_lea.vmem %s18253_s8, %s12158_s29 }
  0x13   : > { %12638 = vmatpush3.bf16.msra.mxu0 %v14062_v1  ;;  %v14414_v4 = vld [vmem:[%s14411_s18] sm:$0xf]  ;;  %v14417_v5 = vld [vmem:[%s14411_s18 + $0x4] sm:$0xf]  ;;  %v347_v6 = vld [vmem:[%s14411_s18 + $0x8] sm:$0x1] }
  0x14   : > { %12639 = vmatprep.subr.bf16.mxu0 %v14063_v2  ;;  %v367_v7 = vshrl.u32 %v14414_v4, 16  ;;  %v370_v8 = vshll.u32 %v14414_v4, 16  ;;  %v376_v9 = vshll.u32 %v14417_v5, 16  ;;  %v380_v10 = vshrl.u32 %v14417_v5, 16  ;;  %v14425_v11 = vld [vmem:[%s14411_s18 + $0xc] sm:$0xf]  ;;  %vm16283_vm14 = vmand %vm5661_vm11, %vm5330_vm9 }
  0x15   : > { %v386_v12 = vshll.u32 %v347_v6, 16  ;;  %v14428_v13 = vld [vmem:[%s14411_s18 + $0x10] sm:$0xf]  ;;  %v14431_v14 = vld [vmem:[%s14411_s18 + $0x14] sm:$0x1]  ;;  %v391_v20 = vshrl.u32 %v14425_v11, 16 }
  0x16   : > { %v369_v15 = vrot.slane %v367_v7, 4  ;;  %v372_v16 = vrot.slane %v370_v8, 5  ;;  %v378_v17 = vrot.slane %v376_v9, 5  ;;  %v382_v18 = vrot.slane %v380_v10, 4  ;;  %v14442_v28 = vld [vmem:[%s14411_s18 + $0x18] sm:$0xf] }
  0x17   : > { %12640 = vmatpush3.bf16.msra.mxu0 %v14063_v2  ;;  %v388_v19 = vrot.slane %v386_v12, 5  ;;  %v394_v21 = vshll.u32 %v14425_v11, 16  ;;  %v400_v22 = vshll.u32 %v14428_v13, 16  ;;  %v404_v26 = vshrl.u32 %v14428_v13, 16  ;;  %v14451_v33 = vld [vmem:[%s14411_s18 + $0x1c] sm:$0xf] }
  0x18   : > { %12641 = vmatprep.subr.bf16.mxu0 %v14064_v3  ;;  %v373_v23 = vor.u32 %v372_v16, %v369_v15  ;;  %v383_v24 = vor.u32 %v382_v18, %v378_v17  ;;  %v410_v27 = vshll.u32 %v14431_v14, 16  ;;  %v393_v30 = vrot.slane %v391_v20, 4  ;;  %v349_v40 = vld [vmem:[%s14411_s18 + $0x20] sm:$0x1]  ;;  %v14464_v47 = vld [vmem:[%s14411_s18 + $0x24] sm:$0xf] }
  0x19   : > { %v396_v31 = vrot.slane %v394_v21, 5  ;;  %v402_v32 = vrot.slane %v400_v22, 5  ;;  %v406_v36 = vrot.slane %v404_v26, 4  ;;  %v415_v41 = vshrl.u32 %v14442_v28, 16  ;;  %v14467_v52 = vld [vmem:[%s14411_s18 + $0x28] sm:$0xf] }
  0x1a   : > { %v374_v34 = vrot.slane %v373_v23, 4  ;;  %v384_v35 = vrot.slane %v383_v24, 4  ;;  %v412_v39 = vrot.slane %v410_v27, 5  ;;  %v418_v42 = vshll.u32 %v14442_v28, 16  ;;  %v350_v59 = vld [vmem:[%s14411_s18 + $0x2c] sm:$0x1] }
  0x1b   : > { %12642 = vmatpush3.bf16.msra.mxu0 %v14064_v3  ;;  %v397_v38 = vor.u32 %v396_v31, %v393_v30  ;;  %v407_v45 = vor.u32 %v406_v36, %v402_v32  ;;  %v424_v46 = vshll.u32 %v14451_v33, 16  ;;  %v417_v50 = vrot.slane %v415_v41, 4  ;;  %v14480_v2 = vld [vmem:[%s14411_s18 + $0x30] sm:$0xf]  ;;  %v14483_v9 = vld [vmem:[%s14411_s18 + $0x34] sm:$0xf] }
  0x1c   : > { %v379_v43 = vsel %vm14446_vm2, %v374_v34, %v378_v17  ;;  %v389_v44 = vsel %vm14446_vm2, %v384_v35, %v388_v19  ;;  %12675 = vmatprep.subr.bf16.mxu0 %v14065_v25  ;;  %v420_v51 = vrot.slane %v418_v42, 5  ;;  %v428_v55 = vshrl.u32 %v14451_v33, 16  ;;  %v14066_v10 = vld [vmem:[%s18246_s1 + $0x8] sm:$0xff]   ;;  %v14493_v20 = vld [vmem:[%s14411_s18 + $0x38] sm:$0x1]  ;;  %v14067_v30 = vld [vmem:[%s18246_s1 + $0x10] sm:$0xff]  }
  0x1d   : > { %v11244_v48 = vcombine.low %v379_v43, %v389_v44  ;;  %v398_v49 = vrot.slane %v397_v38, 4  ;;  %v408_v53 = vrot.slane %v407_v45, 4  ;;  %v426_v54 = vrot.slane %v424_v46, 5  ;;  %v14503_v36 = vld [vmem:[%s14411_s18 + $0x3c] sm:$0xf] }
  0x1e   : > { %v434_v56 = vshll.u32 %v349_v40, 16  ;;  %v421_v58 = vor.u32 %v420_v51, %v417_v50  ;;  %v439_v60 = vshrl.u32 %v14464_v47, 16  ;;  %v442_v61 = vshll.u32 %v14464_v47, 16  ;;  %v14509_v41 = vld [vmem:[%s14411_s18 + $0x40] sm:$0xf] }
  0x1f   : > { %12643 = vmatprep.mubr.msk.bf16.mxu0 %vm830_vm3, %v11244_v48  ;;  %v403_v57 = vsel %vm14446_vm2, %v398_v49, %v402_v32  ;;  %v413_v62 = vsel %vm14446_vm2, %v408_v53, %v412_v39  ;;  %v430_v63 = vrot.slane %v428_v55, 4  ;;  %v448_v1 = vshll.u32 %v14467_v52, 16  ;;  %v14514_v46 = vld [vmem:[%s14411_s18 + $0x44] sm:$0x1] }
  0x20   : > { %v436_v0 = vrot.slane %v434_v56, 5  ;;  %v11245_v3 = vcombine.low %v403_v57, %v413_v62  ;;  %v422_v6 = vrot.slane %v421_v58, 4  ;;  %v441_v7 = vrot.slane %v439_v60, 4  ;;  %v14522_v57 = vld [vmem:[%s14411_s18 + $0x48] sm:$0xf]  ;;  %v14068_v58 = vld [vmem:[%s18246_s1 + $0x18] sm:$0xff]  }
  0x21   : > { %v444_v8 = vrot.slane %v442_v61, 5  ;;  %v431_v12 = vor.u32 %v430_v63, %v426_v54  ;;  %v450_v15 = vrot.slane %v448_v1, 5  ;;  %v452_v16 = vshrl.u32 %v14467_v52, 16  ;;  %v14531_v63 = vld [vmem:[%s14411_s18 + $0x4c] sm:$0xf] }
  0x22   : > { %v458_v17 = vshll.u32 %v350_v59, 16  ;;  %12644 = vmatmul.mubr.msk.bf16.vlgmr.msra.gmra.mrb[0].mxu0 %vm830_vm3, %v11245_v3  ;;  %v427_v18 = vsel %vm14446_vm2, %v422_v6, %v426_v54  ;;  %v463_v21 = vshrl.u32 %v14480_v2, 16  ;;  %v466_v22 = vshll.u32 %v14480_v2, 16 }
  0x23   : > { %v445_v19 = vor.u32 %v444_v8, %v441_v7  ;;  %12676 = vmatpush3.bf16.msra.mxu0 %v14065_v25  ;;  %v432_v23 = vrot.slane %v431_v12, 4  ;;  %v454_v24 = vrot.slane %v452_v16, 4  ;;  %v472_v27 = vshll.u32 %v14483_v9, 16  ;;  %v14536_v12 = vld [vmem:[%s14411_s18 + $0x50] sm:$0x1] }
  0x24   : > { %v460_v26 = vrot.slane %v458_v17, 5  ;;  %v465_v32 = vrot.slane %v463_v21, 4  ;;  %v468_v34 = vrot.slane %v466_v22, 5  ;;  %v476_v35 = vshrl.u32 %v14483_v9, 16  ;;  %12677 = vmatprep.subr.bf16.mxu0 %v14066_v10  ;;  %v14546_v21 = vld [vmem:[%s14411_s18 + $0x54] sm:$0xf] }
  0x25   : > { %v446_v31 = vrot.slane %v445_v19, 4  ;;  %v437_v25 = vsel %vm14446_vm2, %v432_v23, %v436_v0  ;;  %v455_v38 = vor.u32 %v454_v24, %v450_v15  ;;  %v474_v39 = vrot.slane %v472_v27, 5  ;;  %v14551_v22 = vld [vmem:[%s18246_s1 + $0x40] sm:$0xff]  }
  0x26   : > { %v482_v40 = vshll.u32 %v14493_v20, 16  ;;  %v11246_v42 = vcombine.low %v427_v18, %v437_v25  ;;  %v469_v44 = vor.u32 %v468_v34, %v465_v32  ;;  %v478_v45 = vrot.slane %v476_v35, 4  ;;  %v14558_v25 = vld [vmem:[%s14411_s18 + $0x5c] sm:$0x1] }
  0x27   : > { %v451_v43 = vsel %vm14446_vm2, %v446_v31, %v450_v15  ;;  %v456_v48 = vrot.slane %v455_v38, 4  ;;  %v487_v50 = vshrl.u32 %v14503_v36, 16  ;;  %v490_v51 = vshll.u32 %v14503_v36, 16  ;;  %12678 = vmatpush3.bf16.msra.mxu0 %v14066_v10 }
  0x28   : > { %v484_v49 = vrot.slane %v482_v40, 5  ;;  %12647 = vmatprep.mubr.msk.bf16.mxu0 %vm830_vm3, %v11246_v42  ;;  %v470_v53 = vrot.slane %v469_v44, 4  ;;  %v479_v54 = vor.u32 %v478_v45, %v474_v39  ;;  %v496_v55 = vshll.u32 %v14509_v41, 16  ;;  %12679 = vmatprep.subr.bf16.mxu0 %v14067_v30 }
  0x29   : > { %v500_v56 = vshrl.u32 %v14509_v41, 16  ;;  %v461_v59 = vsel %vm14446_vm2, %v456_v48, %v460_v26  ;;  %v489_v60 = vrot.slane %v487_v50, 4  ;;  %v492_v61 = vrot.slane %v490_v51, 5 }
  0x2a   : > { %v506_v62 = vshll.u32 %v14514_v46, 16  ;;  %v11247_v0 = vcombine.low %v451_v43, %v461_v59  ;;  %v475_v1 = vsel %vm14446_vm2, %v470_v53, %v474_v39  ;;  %v480_v3 = vrot.slane %v479_v54, 4  ;;  %v14566_v43 = vld [vmem:[%s14411_s18 + $0x60] sm:$0xf] }
  0x2b   : > { %v498_v6 = vrot.slane %v496_v55, 5  ;;  %v493_v7 = vor.u32 %v492_v61, %v489_v60  ;;  %v502_v8 = vrot.slane %v500_v56, 4  ;;  %v511_v15 = vshrl.u32 %v14522_v57, 16  ;;  %12680 = vmatpush3.bf16.msra.mxu0 %v14067_v30  ;;  %v14554_v30 = vld [vmem:[%s14411_s18 + $0x58] sm:$0xf] }
  0x2c   : > { %v508_v10 = vrot.slane %v506_v62, 5  ;;  %12648 = vmatmul.mubr.msk.bf16.gmra.mrb[4].mxu0 %vm830_vm3, %v11247_v0  ;;  %v485_v16 = vsel %vm14446_vm2, %v480_v3, %v484_v49  ;;  %v514_v17 = vshll.u32 %v14522_v57, 16  ;;  %v520_v18 = vshll.u32 %v14531_v63, 16  ;;  %12681 = vmatprep.subr.bf16.mxu0 %v14068_v58  ;;  %v14574_v55 = vld [vmem:[%s14411_s18 + $0x64] sm:$0xf] }
  0x2d   : > { %v524_v19 = vshrl.u32 %v14531_v63, 16  ;;  %v11248_v23 = vcombine.low %v475_v1, %v485_v16  ;;  %v494_v24 = vrot.slane %v493_v7, 4  ;;  %v503_v26 = vor.u32 %v502_v8, %v498_v6  ;;  %v14584_v7 = vld [vmem:[%s14411_s18 + $0x68] sm:$0x1] }
  0x2e   : > { %v513_v27 = vrot.slane %v511_v15, 4  ;;  %v516_v31 = vrot.slane %v514_v17, 5  ;;  %v522_v32 = vrot.slane %v520_v18, 5  ;;  %v530_v35 = vshll.u32 %v14536_v12, 16  ;;  %18335 = vst [vmem:[#allocation3_spill] sm:$0xff] %v14584_v7 }
  0x2f   : > { %v526_v34 = vrot.slane %v524_v19, 4  ;;  %12651 = vmatprep.mubr.msk.bf16.mxu0 %vm830_vm3, %v11248_v23  ;;  %v499_v38 = vsel %vm14446_vm2, %v494_v24, %v498_v6  ;;  %v504_v39 = vrot.slane %v503_v26, 4  ;;  %v535_v40 = vshrl.u32 %v14546_v21, 16  ;;  %12682 = vmatpush3.bf16.msra.mxu0 %v14068_v58  ;;  %v14589_v15 = vld [vmem:[%s14411_s18 + $0x6c] sm:$0xf] }
  0x30   : > { %v538_v42 = vshll.u32 %v14546_v21, 16  ;;  %v517_v44 = vor.u32 %v516_v31, %v513_v27  ;;  %v532_v48 = vrot.slane %v530_v35, 5  ;;  %v544_v49 = vshll.u32 %v14554_v30, 16  ;;  %12715 = vmatprep.subr.bf16.mxu0 %v14551_v22  ;;  %v14592_v23 = vld [vmem:[%s14411_s18 + $0x70] sm:$0xf] }
  0x31   : > { %v527_v45 = vor.u32 %v526_v34, %v522_v32  ;;  %v509_v50 = vsel %vm14446_vm2, %v504_v39, %v508_v10  ;;  %v537_v51 = vrot.slane %v535_v40, 4  ;;  %v548_v54 = vshrl.u32 %v14554_v30, 16  ;;  %v14604_v40 = vld [vmem:[%s14411_s18 + $0x78] sm:$0xf] }
  0x32   : > { %v540_v53 = vrot.slane %v538_v42, 5  ;;  %v11249_v56 = vcombine.low %v499_v38, %v509_v50  ;;  %v518_v58 = vrot.slane %v517_v44, 4  ;;  %v546_v60 = vrot.slane %v544_v49, 5  ;;  %v14609_v49 = vld [vmem:[%s14411_s18 + $0x7c] sm:$0xf] }
  0x33   : > { %v528_v59 = vrot.slane %v527_v45, 4  ;;  %v550_v62 = vrot.slane %v548_v54, 4  ;;  %v554_v0 = vshll.u32 %v14558_v25, 16  ;;  %v559_v1 = vshrl.u32 %v14566_v43, 16 }
  0x34   : > { %v541_v61 = vor.u32 %v540_v53, %v537_v51  ;;  %12652 = vmatmul.mubr.msk.bf16.gmra.mrb[8].mxu0 %vm830_vm3, %v11249_v56  ;;  %v523_v3 = vsel %vm14446_vm2, %v518_v58, %v522_v32  ;;  %v562_v8 = vshll.u32 %v14566_v43, 16  ;;  %v568_v10 = vshll.u32 %v14574_v55, 16  ;;  %v14596_v32 = vld [vmem:[%s14411_s18 + $0x74] sm:$0x1] }
  0x35   : > { %v533_v6 = vsel %vm14446_vm2, %v528_v59, %v532_v48  ;;  %v551_v18 = vor.u32 %v550_v62, %v546_v60  ;;  %v556_v19 = vrot.slane %v554_v0, 5  ;;  %v561_v24 = vrot.slane %v559_v1, 4  ;;  %18336 = vst [vmem:[#allocation4_spill] sm:$0xff] %v14596_v32 }
  0x36   : > { %v11250_v16 = vcombine.low %v523_v3, %v533_v6  ;;  %v542_v17 = vrot.slane %v541_v61, 4  ;;  %v564_v26 = vrot.slane %v562_v8, 5  ;;  %v570_v27 = vrot.slane %v568_v10, 5  ;;  %v14615_v61 = vld [vmem:[%s14411_s18 + $0x80] sm:$0x1] }
  0x37   : > { %v572_v31 = vshrl.u32 %v14574_v55, 16  ;;  %v552_v35 = vrot.slane %v551_v18, 4  ;;  %v578_v38 = vshll.u32 %v14584_v7, 16  ;;  %v583_v39 = vshrl.u32 %v14589_v15, 16  ;;  %18337 = vst [vmem:[#allocation5_spill] sm:$0xff] %v14615_v61 }
  0x38   : > { %12655 = vmatprep.mubr.msk.bf16.mxu0 %vm830_vm3, %v11250_v16  ;;  %v547_v34 = vsel %vm14446_vm2, %v542_v17, %v546_v60  ;;  %v565_v42 = vor.u32 %v564_v26, %v561_v24  ;;  %v586_v45 = vshll.u32 %v14589_v15, 16  ;;  %v592_v48 = vshll.u32 %v14592_v23, 16  ;;  %v14620_v6 = vld [vmem:[%s14411_s18 + $0x84] sm:$0xf] }
  0x39   : > { %v574_v44 = vrot.slane %v572_v31, 4  ;;  %v557_v50 = vsel %vm14446_vm2, %v552_v35, %v556_v19  ;;  %v580_v51 = vrot.slane %v578_v38, 5  ;;  %v585_v53 = vrot.slane %v583_v39, 4  ;;  %v14631_v39 = vld [vmem:[%s14411_s18 + $0x88] sm:$0xf] }
  0x3a   : > { %v596_v54 = vshrl.u32 %v14592_v23, 16  ;;  %v11251_v56 = vcombine.low %v547_v34, %v557_v50  ;;  %v566_v58 = vrot.slane %v565_v42, 4  ;;  %v588_v60 = vrot.slane %v586_v45, 5 }
  0x3b   : > { %v575_v59 = vor.u32 %v574_v44, %v570_v27  ;;  %v594_v62 = vrot.slane %v592_v48, 5  ;;  %v602_v1 = vshll.u32 %v14596_v32, 16  ;;  %v607_v3 = vshrl.u32 %v14604_v40, 16 }
  0x3c   : > { %v598_v0 = vrot.slane %v596_v54, 4  ;;  %12656 = vmatmul.mubr.msk.bf16.gmra.mrb[12].mxu0 %vm830_vm3, %v11251_v56  ;;  %v571_v8 = vsel %vm14446_vm2, %v566_v58, %v570_v27  ;;  %v589_v16 = vor.u32 %v588_v60, %v585_v53  ;;  %v610_v17 = vshll.u32 %v14604_v40, 16  ;;  %v14637_v54 = vld [vmem:[%s14411_s18 + $0x8c] sm:$0x1] }
  0x3d   : > { %v576_v10 = vrot.slane %v575_v59, 4  ;;  %v604_v19 = vrot.slane %v602_v1, 5  ;;  %v609_v24 = vrot.slane %v607_v3, 4  ;;  %v616_v26 = vshll.u32 %v14609_v49, 16  ;;  %18338 = vst [vmem:[#allocation6_spill] sm:$0xff] %v14637_v54 }
  0x3e   : > { %v599_v18 = vor.u32 %v598_v0, %v594_v62  ;;  %v590_v34 = vrot.slane %v589_v16, 4  ;;  %v612_v35 = vrot.slane %v610_v17, 5  ;;  %v620_v38 = vshrl.u32 %v14609_v49, 16  ;;  %v14646_v0 = vld [vmem:[%s14411_s18 + $0x90] sm:$0xf] }
  0x3f   : > { %v581_v31 = vsel %vm14446_vm2, %v576_v10, %v580_v51  ;;  %v618_v44 = vrot.slane %v616_v26, 5  ;;  %v626_v45 = vshll.u32 %v14615_v61, 16  ;;  %v631_v51 = vshrl.u32 %v14620_v6, 16  ;;  %v14649_v10 = vld [vmem:[%s14411_s18 + $0x94] sm:$0xf] }
  0x40   : > { %v11252_v27 = vcombine.low %v571_v8, %v581_v31  ;;  %v600_v42 = vrot.slane %v599_v18, 4  ;;  %v595_v48 = vsel %vm14446_vm2, %v590_v34, %v594_v62  ;;  %v613_v50 = vor.u32 %v612_v35, %v609_v24  ;;  %v14654_v24 = vld [vmem:[%s14411_s18 + $0x98] sm:$0x1]  ;;  %v14711_v61 = vld [vmem:[%s14411_s18 + $0xbc] sm:$0x1] }
  0x41   : > { %v622_v53 = vrot.slane %v620_v38, 4  ;;  %v628_v58 = vrot.slane %v626_v45, 5  ;;  %v634_v59 = vshll.u32 %v14620_v6, 16  ;;  %v640_v60 = vshll.u32 %v14631_v39, 16  ;;  %18339 = vst [vmem:[#allocation7_spill] sm:$0xff] %v14654_v24 }
  0x42   : > { %12659 = vmatprep.mubr.msk.bf16.mxu0 %vm830_vm3, %v11252_v27  ;;  %v605_v56 = vsel %vm14446_vm2, %v600_v42, %v604_v19  ;;  %v614_v1 = vrot.slane %v613_v50, 4  ;;  %v633_v8 = vrot.slane %v631_v51, 4  ;;  %v644_v18 = vshrl.u32 %v14631_v39, 16 }
  0x43   : > { %v11253_v62 = vcombine.low %v595_v48, %v605_v56  ;;  %v623_v3 = vor.u32 %v622_v53, %v618_v44  ;;  %v636_v16 = vrot.slane %v634_v59, 5  ;;  %v642_v17 = vrot.slane %v640_v60, 5  ;;  %v14663_v48 = vld [vmem:[%s14411_s18 + $0x9c] sm:$0xf]  ;;  %v14669_v56 = vld [vmem:[%s14411_s18 + $0xa0] sm:$0xf] }
  0x44   : > { %v650_v19 = vshll.u32 %v14637_v54, 16  ;;  %v619_v26 = vsel %vm14446_vm2, %v614_v1, %v618_v44  ;;  %v655_v34 = vshrl.u32 %v14646_v0, 16  ;;  %v658_v35 = vshll.u32 %v14646_v0, 16 }
  0x45   : > { %12660 = vmatmul.mubr.msk.bf16.gmra.mrb[16].mxu0 %vm830_vm3, %v11253_v62  ;;  %v624_v31 = vrot.slane %v623_v3, 4  ;;  %v637_v38 = vor.u32 %v636_v16, %v633_v8  ;;  %v646_v27 = vrot.slane %v644_v18, 4  ;;  %v664_v45 = vshll.u32 %v14649_v10, 16  ;;  %v14672_v3 = vld [vmem:[%s14411_s18 + $0xa4] sm:$0x1] }
  0x46   : > { %v652_v42 = vrot.slane %v650_v19, 5  ;;  %v657_v53 = vrot.slane %v655_v34, 4  ;;  %v660_v51 = vrot.slane %v658_v35, 5  ;;  %v668_v44 = vshrl.u32 %v14649_v10, 16  ;;  %18340 = vst [vmem:[#allocation8_spill] sm:$0xff] %v14672_v3 }
  0x47   : > { %v629_v50 = vsel %vm14446_vm2, %v624_v31, %v628_v58  ;;  %v638_v60 = vrot.slane %v637_v38, 4  ;;  %v647_v62 = vor.u32 %v646_v27, %v642_v17  ;;  %v666_v1 = vrot.slane %v664_v45, 5 }
  0x48   : > { %v11254_v59 = vcombine.low %v619_v26, %v629_v50  ;;  %v661_v8 = vor.u32 %v660_v51, %v657_v53  ;;  %v670_v16 = vrot.slane %v668_v44, 4  ;;  %v674_v18 = vshll.u32 %v14654_v24, 16  ;;  %v14682_v50 = vld [vmem:[%s14411_s18 + $0xa8] sm:$0xf] }
  0x49   : > { %v679_v58 = vshrl.u32 %v14663_v48, 16  ;;  %v643_v19 = vsel %vm14446_vm2, %v638_v60, %v642_v17  ;;  %v648_v31 = vrot.slane %v647_v62, 4  ;;  %v682_v26 = vshll.u32 %v14663_v48, 16  ;;  %v14688_v17 = vld [vmem:[%s14411_s18 + $0xac] sm:$0xf] }
  0x4a   : > { %12663 = vmatprep.mubr.msk.bf16.mxu0 %vm830_vm3, %v11254_v59  ;;  %v688_v34 = vshll.u32 %v14669_v56, 16  ;;  %v662_v35 = vrot.slane %v661_v8, 4  ;;  %v671_v38 = vor.u32 %v670_v16, %v666_v1  ;;  %v676_v27 = vrot.slane %v674_v18, 5  ;;  %v14694_v18 = vld [vmem:[%s14411_s18 + $0xb0] sm:$0x1] }
  0x4b   : > { %v681_v45 = vrot.slane %v679_v58, 4  ;;  %v653_v53 = vsel %vm14446_vm2, %v648_v31, %v652_v42  ;;  %v684_v51 = vrot.slane %v682_v26, 5  ;;  %v692_v59 = vshrl.u32 %v14669_v56, 16  ;;  %18341 = vst [vmem:[#allocation9_spill] sm:$0xff] %v14694_v18 }
  0x4c   : > { %v690_v44 = vrot.slane %v688_v34, 5  ;;  %v11255_v60 = vcombine.low %v643_v19, %v653_v53  ;;  %v667_v62 = vsel %vm14446_vm2, %v662_v35, %v666_v1  ;;  %v672_v8 = vrot.slane %v671_v38, 4  ;;  %v14704_v35 = vld [vmem:[%s14411_s18 + $0xb4] sm:$0xf] }
  0x4d   : > { %v698_v16 = vshll.u32 %v14672_v3, 16  ;;  %v685_v58 = vor.u32 %v684_v51, %v681_v45  ;;  %v694_v37 = vrot.slane %v692_v59, 4  ;;  %v703_v42 = vshrl.u32 %v14682_v50, 16  ;;  %v14707_v59 = vld [vmem:[%s14411_s18 + $0xb8] sm:$0xf] }
  0x4e   : > { %v706_v31 = vshll.u32 %v14682_v50, 16  ;;  %12664 = vmatmul.mubr.msk.bf16.gmra.mrb[20].mxu0 %vm830_vm3, %v11255_v60  ;;  %v677_v19 = vsel %vm14446_vm2, %v672_v8, %v676_v27  ;;  %v712_v1 = vshll.u32 %v14688_v17, 16  ;;  %v716_v34 = vshrl.u32 %v14688_v17, 16 }
  0x4f   : > { %v700_v26 = vrot.slane %v698_v16, 5  ;;  %v11256_v38 = vcombine.low %v667_v62, %v677_v19  ;;  %v686_v45 = vrot.slane %v685_v58, 4  ;;  %v695_v53 = vor.u32 %v694_v37, %v690_v44 }
  0x50   : > { %v705_v51 = vrot.slane %v703_v42, 4  ;;  %v708_v3 = vrot.slane %v706_v31, 5  ;;  %v714_v24 = vrot.slane %v712_v1, 5  ;;  %v718_v54 = vrot.slane %v716_v34, 4 }
  0x51   : > { %v722_v60 = vshll.u32 %v14694_v18, 16  ;;  %12667 = vmatprep.mubr.msk.bf16.mxu0 %vm830_vm3, %v11256_v38  ;;  %v691_v27 = vsel %vm14446_vm2, %v686_v45, %v690_v44  ;;  %v696_v8 = vrot.slane %v695_v53, 4  ;;  %v727_v62 = vshrl.u32 %v14704_v35, 16 }
  0x52   : > { %v730_v37 = vshll.u32 %v14704_v35, 16  ;;  %v709_v16 = vor.u32 %v708_v3, %v705_v51  ;;  %v719_v58 = vor.u32 %v718_v54, %v714_v24  ;;  %v736_v31 = vshll.u32 %v14707_v59, 16 }
  0x53   : > { %v724_v42 = vrot.slane %v722_v60, 5  ;;  %v701_v19 = vsel %vm14446_vm2, %v696_v8, %v700_v26  ;;  %v729_v1 = vrot.slane %v727_v62, 4  ;;  %v740_v38 = vshrl.u32 %v14707_v59, 16 }
  0x54   : > { %v732_v34 = vrot.slane %v730_v37, 5  ;;  %v11257_v18 = vcombine.low %v691_v27, %v701_v19  ;;  %v710_v32 = vrot.slane %v709_v16, 4  ;;  %v720_v44 = vrot.slane %v719_v58, 4 }
  0x55   : > { %v738_v45 = vrot.slane %v736_v31, 5  ;;  %v742_v7 = vrot.slane %v740_v38, 4  ;;  %v746_v3 = vshll.u32 %v14711_v61, 16  ;;  %v11281_v54 = vcombine.low %v14425_v11, %v14428_v13 }
  0x56   : > { %v733_v53 = vor.u32 %v732_v34, %v729_v1  ;;  %v1413_v51 = vrot.slane %v14428_v13, 5  ;;  %v1416_v26 = vrot.slane %v14431_v14, 5  ;;  %12668 = vmatmul.mubr.msk.bf16.gmra.mrb[24].mxu0 %vm830_vm3, %v11257_v18  ;;  %v715_v60 = vsel %vm14446_vm2, %v710_v32, %v714_v24  ;;  %v1354_v32 = vld [vmem:[%s14411_s18 + $0xc] sm:$0xe]  ;;  %v1364_v34 = vld [vmem:[%s14411_s18 + $0x84] sm:$0xe] }
  0x57   : > { %v725_v27 = vsel %vm14446_vm2, %v720_v44, %v724_v42  ;;  %v743_v37 = vor.u32 %v742_v7, %v738_v45  ;;  %v748_v16 = vrot.slane %v746_v3, 5  ;;  %v11284_v58 = vcombine.low %v14480_v2, %v14483_v9  ;;  %v1362_v44 = vld [vmem:[%s14411_s18 + $0x6c] sm:$0xe]  ;;  %v1365_v1 = vld [vmem:[%s14411_s18 + $0x90] sm:$0xe] }
  0x58   : > { %v11258_v8 = vcombine.low %v715_v60, %v725_v27  ;;  %v734_v62 = vrot.slane %v733_v53, 4  ;;  %v11285_v11 = vcombine.low %v14503_v36, %v14509_v41  ;;  %v11286_v13 = vcombine.low %v14522_v57, %v14531_v63 }
  0x59   : > { %v744_v7 = vrot.slane %v743_v37, 4  ;;  %v11317_v60 = vrot.slane %v1354_v32, 9  ;;  %v1415_v27 = vrot.slane %v1413_v51, 4  ;;  %v1361_v32 = vld [vmem:[%s14411_s18 + $0x60] sm:$0xe]  ;;  %v18352_v57 = vcombine.low %v14546_v21, %v14554_v30 }
  0x5a   : > { %12671 = vmatprep.mubr.msk.bf16.mxu0 %vm830_vm3, %v11258_v8  ;;  %v739_v24 = vsel %vm14446_vm2, %v734_v62, %v738_v45  ;;  %v1357_v8 = vld [vmem:[%s14411_s18 + $0x30] sm:$0xe]  ;;  %v18344_v62 = vcombine.low %v14414_v4, %v14417_v5  ;;  %v11282_v4 = vcombine.low %v14442_v28, %v14451_v33  ;;  %v1437_v5 = vrot.slane %v14493_v20, 5  ;;  %v14281_v21 = vld [vmem:[%s14411_s18 + $0x4] sm:$0xf] }
  0x5b   : > { %v749_v38 = vsel %vm14446_vm2, %v744_v7, %v748_v16  ;;  %v14774_v37 = vsel %vm14762_vm6, %v11317_v60, %v1413_v51  ;;  %v14778_v16 = vsel %vm14762_vm6, %v1415_v27, %v1416_v26  ;;  %v1359_v7 = vld [vmem:[%s14411_s18 + $0x48] sm:$0xe]  ;;  %v1360_v51 = vld [vmem:[%s14411_s18 + $0x54] sm:$0xe]  ;;  %v1444_v45 = vrot.slane %v14514_v46, 5 }
  0x5c   : > { %v11259_v53 = vcombine.low %v739_v24, %v749_v38  ;;  %v1358_v24 = vld [vmem:[%s14411_s18 + $0x3c] sm:$0xe]  ;;  %v11320_v38 = vrot.slane %v1357_v8, 9  ;;  %v14075_v8 = vld [vmem:[%s18246_s1 + $0x48] sm:$0xff]   ;;  %v11322_v28 = vrot.slane %v1359_v7, 9  ;;  %v1448_v33 = vrot.slane %v14531_v63, 5 }
  0x5d   : > { %v11321_v27 = vrot.slane %v1358_v24, 9  ;;  %v11283_v20 = vcombine.low %v14464_v47, %v14467_v52  ;;  %v1451_v52 = vrot.slane %v14536_v12, 5  ;;  %v1363_v12 = vld [vmem:[%s14411_s18 + $0x78] sm:$0xe]  ;;  %v18353_v63 = vcombine.low %v14566_v43, %v14574_v55  ;;  %v14282_v43 = vld [vmem:[%s14411_s18 + $0x8] sm:$0x1] }
  0x5e   : > { %12672 = vmatmul.mubr.msk.bf16.gmra.mrb[28].mxu0 %vm830_vm3, %v11259_v53  ;;  %v1434_v53 = vrot.slane %v14483_v9, 5  ;;  %v14816_v7 = vsel %vm14762_vm6, %v11322_v28, %v1448_v33  ;;  %v1450_v47 = vrot.slane %v1448_v33, 4  ;;  %v11324_v28 = vrot.slane %v1361_v32, 9 }
  0x5f   : > { %12683 = vmatprep.mubr.msk.bf16.mxu0 %vm830_vm3, %v18344_v62  ;;  %v1441_v62 = vrot.slane %v14509_v41, 5  ;;  %v1462_v33 = vrot.slane %v14574_v55, 5  ;;  %v11325_v32 = vrot.slane %v1362_v44, 9  ;;  %v11326_v19 = vrot.slane %v1363_v12, 9  ;;  %v1366_v12 = vld [vmem:[%s14411_s18 + $0x9c] sm:$0xe] }
  0x60   : > { %v14791_v60 = vsel %vm14762_vm6, %v11320_v38, %v1434_v53  ;;  %v1436_v26 = vrot.slane %v1434_v53, 4  ;;  %v18347_v44 = vld [vmem:[#allocation5_spill] sm:$0xff]  ;;  %v1409_v55 = vrot.slane %v14282_v43, 5 }
  0x61   : > { %v14808_v24 = vsel %vm14762_vm6, %v11321_v27, %v1441_v62  ;;  %v1443_v53 = vrot.slane %v1441_v62, 4  ;;  %v1455_v27 = vrot.slane %v14554_v30, 5  ;;  %v1458_v62 = vrot.slane %v14558_v25, 5 }
  0x62   : > { %v14804_v38 = vsel %vm14762_vm6, %v1436_v26, %v1437_v5  ;;  %v14080_v5 = vld [vmem:[%s18246_s1 + $0x50] sm:$0xff]   ;;  %v11323_v26 = vrot.slane %v1360_v51, 9  ;;  %v1479_v42 = vrot.slane %v18347_v44, 5  ;;  %v1367_v44 = vld [vmem:[%s14411_s18 + $0xa8] sm:$0xe]  ;;  %v1406_v30 = vrot.slane %v14281_v21, 5 }
  0x63   : > { %v1457_v25 = vrot.slane %v1455_v27, 4 }
  0x64   : > { %v14842_v51 = vsel %vm14762_vm6, %v11323_v26, %v1455_v27  ;;  %v18346_v26 = vld [vmem:[#allocation4_spill] sm:$0xff] }
  0x65   : > { %v1472_v27 = vrot.slane %v18346_v26, 5 }
  0x66   : > { %12684 = vmatmul.mubr.msk.bf16.vlgmr.msra.gmra.mrb[0].mxu0 %vm830_vm3, %v11281_v54  ;;  %v14826_v54 = vsel %vm14762_vm6, %v1443_v53, %v1444_v45  ;;  %v18345_v53 = vld [vmem:[#allocation3_spill] sm:$0xff]  ;;  %v14854_v45 = vsel %vm14762_vm6, %v1457_v25, %v1458_v62 }
  0x67   : > { %12716 = vmatpush3.bf16.msra.mxu0 %v14551_v22  ;;  %12687 = vmatprep.mubr.msk.bf16.mxu0 %vm830_vm3, %v11282_v4  ;;  %v14835_v4 = vsel %vm14762_vm6, %v1450_v47, %v1451_v52  ;;  %v1465_v46 = vrot.slane %v18345_v53, 5  ;;  %v14848_v22 = vsel %vm14762_vm6, %v11324_v28, %v1462_v33  ;;  %v1464_v47 = vrot.slane %v1462_v33, 4  ;;  %v14085_v28 = vld [vmem:[%s18246_s1 + $0x58] sm:$0xff]  }
  0x68   : > { %12717 = vmatprep.subr.bf16.mxu0 %v14075_v8  ;;  %v1469_v52 = vrot.slane %v14592_v23, 5  ;;  %v1476_v53 = vrot.slane %v14609_v49, 5 }
  0x6a   : > { %v14869_v62 = vsel %vm14762_vm6, %v11325_v32, %v1469_v52  ;;  %v1471_v33 = vrot.slane %v1469_v52, 4  ;;  %v14876_v26 = vsel %vm14762_vm6, %v11326_v19, %v1476_v53  ;;  %v1478_v31 = vrot.slane %v1476_v53, 4  ;;  %v18348_v19 = vld [vmem:[#allocation6_spill] sm:$0xff] }
  0x6b   : > { %12718 = vmatpush3.bf16.msra.mxu0 %v14075_v8  ;;  %v14865_v8 = vsel %vm14762_vm6, %v1464_v47, %v1465_v46  ;;  %v14883_v46 = vld [vmem:[%s18246_s1 + $0x60] sm:$0xff]   ;;  %v11327_v32 = vrot.slane %v1364_v34, 9  ;;  %v1483_v52 = vrot.slane %v14631_v39, 5  ;;  %v1486_v25 = vrot.slane %v18348_v19, 5  ;;  %v1368_v19 = vld [vmem:[%s14411_s18 + $0xb4] sm:$0xe] }
  0x6c   : > { %12719 = vmatprep.subr.bf16.mxu0 %v14080_v5  ;;  %v14887_v47 = vsel %vm14762_vm6, %v1471_v33, %v1472_v27  ;;  %v14899_v53 = vsel %vm14762_vm6, %v1478_v31, %v1479_v42  ;;  %v11328_v27 = vrot.slane %v1365_v1, 9  ;;  %v1490_v34 = vrot.slane %v14649_v10, 5  ;;  %v18350_v33 = vld [vmem:[#allocation8_spill] sm:$0xff] }
  0x6d   : > { %v14907_v2 = vsel %vm14762_vm6, %v11327_v32, %v1483_v52  ;;  %v1485_v9 = vrot.slane %v1483_v52, 4  ;;  %v11329_v1 = vrot.slane %v1366_v12, 9  ;;  %v1500_v14 = vrot.slane %v18350_v33, 5  ;;  %v18351_v33 = vld [vmem:[#allocation9_spill] sm:$0xff] }
  0x6e   : > { %12688 = vmatmul.mubr.msk.bf16.gmra.mrb[4].mxu0 %vm830_vm3, %v11283_v20  ;;  %v14913_v42 = vsel %vm14762_vm6, %v11328_v27, %v1490_v34  ;;  %v1492_v31 = vrot.slane %v1490_v34, 4  ;;  %v1497_v20 = vrot.slane %v14669_v56, 5  ;;  %v11330_v32 = vrot.slane %v1367_v44, 9 }
  0x6f   : > { %12691 = vmatprep.mubr.msk.bf16.mxu0 %vm830_vm3, %v11284_v58  ;;  %12720 = vmatpush3.bf16.msra.mxu0 %v14080_v5  ;;  %v18349_v58 = vld [vmem:[#allocation7_spill] sm:$0xff]  ;;  %v14918_v18 = vsel %vm14762_vm6, %v1485_v9, %v1486_v25  ;;  %v1504_v52 = vrot.slane %v14688_v17, 5  ;;  %v1507_v9 = vrot.slane %v18351_v33, 5 }
  0x70   : > { %12721 = vmatprep.subr.bf16.mxu0 %v14085_v28  ;;  %v1493_v5 = vrot.slane %v18349_v58, 5  ;;  %v11343_v58 = vcombine.low %v14907_v2, %v14918_v18  ;;  %v14930_v12 = vsel %vm14762_vm6, %v11329_v1, %v1497_v20  ;;  %v1499_v34 = vrot.slane %v1497_v20, 4  ;;  %v14095_v18 = vld [vmem:[%s14411_s18 + $0x18] sm:$0xff]  }
  0x71   : > { %v1506_v44 = vrot.slane %v1504_v52, 4  ;;  %v1511_v20 = vrot.slane %v14707_v59, 5  ;;  %v1514_v1 = vrot.slane %v14711_v61, 5 }
  0x72   : > { %v14926_v27 = vsel %vm14762_vm6, %v1492_v31, %v1493_v5  ;;  %v14942_v5 = vsel %vm14762_vm6, %v1499_v34, %v1500_v14  ;;  %v11331_v31 = vrot.slane %v1368_v19, 9  ;;  %v1353_v34 = vld [vmem:[%s14411_s18] sm:$0xe] }
  0x73   : > { %12722 = vmatpush3.bf16.msra.mxu0 %v14085_v28  ;;  %v11344_v25 = vcombine.low %v14913_v42, %v14926_v27  ;;  %v14937_v28 = vsel %vm14762_vm6, %v11330_v32, %v1504_v52  ;;  %v11345_v32 = vcombine.low %v14930_v12, %v14942_v5  ;;  %v14954_v14 = vsel %vm14762_vm6, %v1506_v44, %v1507_v9  ;;  %v1355_v9 = vld [vmem:[%s14411_s18 + $0x18] sm:$0xe]  ;;  %v14098_v42 = vld [vmem:[%s14411_s18 + $0x3c] sm:$0xff]  }
  0x74   : > { %12755 = vmatprep.subr.bf16.mxu0 %v14883_v46  ;;  %v11346_v61 = vcombine.low %v14937_v28, %v14954_v14  ;;  %v14964_v36 = vsel %vm14762_vm6, %v11331_v31, %v1511_v20  ;;  %v1513_v41 = vrot.slane %v1511_v20, 4  ;;  %v18355_v52 = vcombine.low %v14604_v40, %v14609_v49  ;;  %v14284_v20 = vld [vmem:[%s14411_s18 + $0x20] sm:$0x1]  ;;  %v14109_v12 = vld [vmem:[%s18246_s1 + $0x98] sm:$0xff]   ;;  %v15126_v28 = vld [vmem:[%s14411_s18 + $0x50] sm:$0x1] }
  0x75   : > { %v18356_v44 = vcombine.low %v14620_v6, %v14631_v39  ;;  %v1408_v40 = vrot.slane %v1406_v30, 4  ;;  %v18358_v49 = vcombine.low %v14663_v48, %v14669_v56  ;;  %v18359_v6 = vcombine.low %v14682_v50, %v14688_v17  ;;  %v14283_v39 = vld [vmem:[%s14411_s18 + $0x1c] sm:$0xf]  ;;  %v1356_v17 = vld [vmem:[%s14411_s18 + $0x24] sm:$0xe] }
  0x76   : > { %12692 = vmatmul.mubr.msk.bf16.gmra.mrb[8].mxu0 %vm830_vm3, %v11285_v11  ;;  %v14968_v11 = vsel %vm14762_vm6, %v1513_v41, %v1514_v1  ;;  %v1420_v33 = vrot.slane %v14283_v39, 5  ;;  %v11318_v48 = vrot.slane %v1355_v9, 9  ;;  %v1423_v1 = vrot.slane %v14284_v20, 5  ;;  %v14285_v41 = vld [vmem:[%s14411_s18 + $0x28] sm:$0xf]  ;;  %v14101_v39 = vld [vmem:[%s14411_s18 + $0x54] sm:$0xff]  }
  0x77   : > { %12695 = vmatprep.mubr.msk.bf16.mxu0 %vm830_vm3, %v11286_v13  ;;  %v11347_v19 = vcombine.low %v14964_v36, %v14968_v11  ;;  %v18354_v13 = vcombine.low %v14589_v15, %v14592_v23  ;;  %v18357_v15 = vcombine.low %v14646_v0, %v14649_v10  ;;  %v11316_v23 = vrot.slane %v1353_v34, 9  ;;  %v14286_v34 = vld [vmem:[%s14411_s18 + $0x2c] sm:$0x1]  ;;  %v11525_v14 = vld [vmem:[%s14411_s18 + $0x48] sm:$0xe] }
  0x78   : > { %v1410_v10 = vsel %vm14762_vm6, %v1408_v40, %v1409_v55  ;;  %v1422_v56 = vrot.slane %v1420_v33, 4  ;;  %v18360_v50 = vcombine.low %v14704_v35, %v14707_v59  ;;  %v14090_v35 = vld [vmem:[%s18246_s1 + $0x68] sm:$0xff]   ;;  %v18361_v59 = vcombine.low %v14774_v37, %v14778_v16  ;;  %v14092_v37 = vld [vmem:[%s18246_s1 + $0x78] sm:$0xff]  }
  0x79   : > { %v1407_v0 = vsel %vm14762_vm6, %v11316_v23, %v1406_v30  ;;  %v18362_v16 = vcombine.low %v14791_v60, %v14804_v38  ;;  %v18363_v40 = vcombine.low %v14808_v24, %v14826_v54  ;;  %v18364_v60 = vcombine.low %v14816_v7, %v14835_v4  ;;  %v14093_v54 = vld [vmem:[%s14411_s18 + $0xc] sm:$0xff]   ;;  %v15162_v20 = vld [vmem:[%s14411_s18 + $0x68] sm:$0x1] }
  0x7a   : > { %v11332_v31 = vcombine.low %v1407_v0, %v1410_v10  ;;  %v18365_v38 = vcombine.low %v14842_v51, %v14854_v45  ;;  %v18367_v24 = vcombine.low %v14869_v62, %v14887_v47  ;;  %v18368_v7 = vcombine.low %v14876_v26, %v14899_v53  ;;  %v14099_v4 = vld [vmem:[%s18246_s1 + $0x88] sm:$0xff]   ;;  %v15106_v51 = vld [vmem:[%s14411_s18 + $0x10] sm:$0xf] }
  0x7b   : > { %v11436_v45 = vld [vmem:[%s14411_s18 + $0xc] sm:$0xf]  ;;  %v14097_v62 = vld [vmem:[%s14411_s18 + $0x30] sm:$0xff]   ;;  %v2281_v2 = vshll.u32 %v15106_v51, 16  ;;  %v3080_v36 = vrot.slane %v15126_v28, 5 }
  0x7c   : > { %v14104_v26 = vld [vmem:[%s18246_s1 + $0x90] sm:$0xff]   ;;  %v2272_v47 = vshrl.u32 %v11436_v45, 16  ;;  %v2275_v53 = vshll.u32 %v11436_v45, 16  ;;  %v14100_v11 = vld [vmem:[%s14411_s18 + $0x48] sm:$0xff]   ;;  %v15213_v45 = vld [vmem:[%s14411_s18 + $0x20] sm:$0x1] }
  0x7e   : > { %12696 = vmatmul.mubr.msk.bf16.gmra.mrb[12].mxu0 %vm830_vm3, %v18352_v57  ;;  %v1427_v57 = vrot.slane %v14285_v41, 5  ;;  %v15129_v5 = vrot.slane %v2272_v47, 4 }
  0x7f   : > { %12699 = vmatprep.mubr.msk.bf16.mxu0 %vm830_vm3, %v18353_v63  ;;  %v1421_v63 = vsel %vm14762_vm6, %v11318_v48, %v1420_v33  ;;  %v15141_v33 = vrot.slane %v2275_v53, 5  ;;  %v15322_v48 = vld [vmem:[%s14411_s18 + $0xc8] sm:$0x1] }
  0x80   : > { %v1429_v30 = vrot.slane %v1427_v57, 4 }
  0x86   : > { %12700 = vmatmul.mubr.msk.bf16.gmra.mrb[16].mxu0 %vm830_vm3, %v18354_v13  ;;  %v1424_v13 = vsel %vm14762_vm6, %v1422_v56, %v1423_v1  ;;  %v15159_v56 = vld [vmem:[%s14411_s18 + $0x64] sm:$0xf]  ;;  %v15165_v1 = vrot.slane %v2281_v2, 5  ;;  %v15225_v2 = vld [vmem:[%s14411_s18 + $0x94] sm:$0xf] }
  0x87   : > { %12703 = vmatprep.mubr.msk.bf16.mxu0 %vm830_vm3, %v18355_v52  ;;  %v11319_v52 = vrot.slane %v1356_v17, 9  ;;  %v11334_v21 = vcombine.low %v1421_v63, %v1424_v13  ;;  %v11527_v17 = vld [vmem:[%s14411_s18 + $0x60] sm:$0xe]  ;;  %v3091_v41 = vrot.slane %v15159_v56, 5 }
  0x88   : > { %v14102_v63 = vld [vmem:[%s14411_s18 + $0x60] sm:$0xff]  }
  0x89   : > { %v1428_v43 = vsel %vm14762_vm6, %v11319_v52, %v1427_v57  ;;  %v3094_v57 = vrot.slane %v15162_v20, 5  ;;  %v11543_v52 = vrot.slane %v11527_v17, 9 }
  0x8e   : > { %12704 = vmatmul.mubr.msk.bf16.gmra.mrb[20].mxu0 %vm830_vm3, %v18356_v44  ;;  %v1430_v44 = vrot.slane %v14286_v34, 5  ;;  %v3093_v34 = vrot.slane %v3091_v41, 4 }
  0x8f   : > { %12707 = vmatprep.mubr.msk.bf16.mxu0 %vm830_vm3, %v18357_v15  ;;  %v14091_v15 = vld [vmem:[%s18246_s1 + $0x70] sm:$0xff]  }
  0x90   : > { %v1431_v55 = vsel %vm14762_vm6, %v1429_v30, %v1430_v44  ;;  %v15175_v44 = vsel %vm14762_vm6, %v11543_v52, %v3091_v41 }
  0x91   : > { %v11335_v23 = vcombine.low %v1428_v43, %v1431_v55  ;;  %v15188_v55 = vld [vmem:[%s14411_s18 + $0x7c] sm:$0xf]  ;;  %v15319_v43 = vld [vmem:[%s14411_s18 + $0xc4] sm:$0xf] }
  0x96   : > { %12708 = vmatmul.mubr.msk.bf16.gmra.mrb[24].mxu0 %vm830_vm3, %v18358_v49  ;;  %v18366_v49 = vcombine.low %v14848_v22, %v14865_v8  ;;  %v14096_v22 = vld [vmem:[%s14411_s18 + $0x24] sm:$0xff]   ;;  %v11439_v8 = vld [vmem:[%s14411_s18 + $0x18] sm:$0xf] }
  0x97   : > { %12711 = vmatprep.mubr.msk.bf16.mxu0 %vm830_vm3, %v18359_v6  ;;  %v2296_v27 = vshrl.u32 %v11439_v8, 16  ;;  %v11541_v6 = vrot.slane %v11525_v14, 9 }
  0x99   : > { %v2298_v13 = vrot.slane %v2296_v27, 4 }
  0x9e   : > { %12712 = vmatmul.mubr.msk.bf16.gmra.mrb[28].mxu0 %vm830_vm3, %v18360_v50 }
  0x9f   : > { %12723 = vmatprep.mubr.msk.bf16.mxu0 %vm830_vm3, %v11332_v31  ;;  %v15153_v31 = vld [vmem:[%s14411_s18 + $0x1c] sm:$0xf] }
  0xa0   : > { %v2305_v30 = vshll.u32 %v15153_v31, 16 }
  0xa6   : > { %12724 = vmatmul.mubr.msk.bf16.vlgmr.msra.gmra.mrb[0].mxu0 %vm830_vm3, %v18361_v59  ;;  %v15182_v59 = vsel %vm14762_vm6, %v3093_v34, %v3094_v57 }
  0xa7   : > { %12756 = vmatpush3.bf16.msra.mxu0 %v14883_v46  ;;  %12727 = vmatprep.mubr.msk.bf16.mxu0 %vm830_vm3, %v11334_v21  ;;  %v14094_v46 = vld [vmem:[%s18246_s1 + $0x80] sm:$0xff]   ;;  %v14103_v21 = vld [vmem:[%s14411_s18 + $0x6c] sm:$0xff]  }
  0xa8   : > { %12757 = vmatprep.subr.bf16.mxu0 %v14090_v35 }
  0xab   : > { %12758 = vmatpush3.bf16.msra.mxu0 %v14090_v35  ;;  %v15178_v35 = vld [vmem:[%s14411_s18 + $0x14] sm:$0x1] }
  0xac   : > { %12759 = vmatprep.subr.bf16.mxu0 %v14091_v15 }
  0xae   : > { %12728 = vmatmul.mubr.msk.bf16.gmra.mrb[4].mxu0 %vm830_vm3, %v11335_v23 }
  0xaf   : > { %12731 = vmatprep.mubr.msk.bf16.mxu0 %vm830_vm3, %v18362_v16  ;;  %12760 = vmatpush3.bf16.msra.mxu0 %v14091_v15  ;;  %v15191_v15 = vld [vmem:[%s14411_s18 + $0x80] sm:$0x1]  ;;  %v11529_v16 = vld [vmem:[%s14411_s18 + $0x78] sm:$0xe] }
  0xb0   : > { %12761 = vmatprep.subr.bf16.mxu0 %v14092_v37 }
  0xb3   : > { %12762 = vmatpush3.bf16.msra.mxu0 %v14092_v37  ;;  %v2309_v37 = vshrl.u32 %v15153_v31, 16 }
  0xb4   : > { %12795 = vmatprep.subr.bf16.mxu0 %v14094_v46 }
  0xb6   : > { %12732 = vmatmul.mubr.msk.bf16.gmra.mrb[8].mxu0 %vm830_vm3, %v18363_v40  ;;  %v3108_v40 = vrot.slane %v15191_v15, 5 }
  0xb7   : > { %12735 = vmatprep.mubr.msk.bf16.mxu0 %vm830_vm3, %v18364_v60  ;;  %v14105_v60 = vld [vmem:[%s14411_s18 + $0x78] sm:$0xff]  }
  0xbe   : > { %12736 = vmatmul.mubr.msk.bf16.gmra.mrb[12].mxu0 %vm830_vm3, %v18365_v38  ;;  %v2291_v38 = vshll.u32 %v15178_v35, 16 }
  0xbf   : > { %12739 = vmatprep.mubr.msk.bf16.mxu0 %vm830_vm3, %v18366_v49  ;;  %v11545_v49 = vrot.slane %v11529_v16, 9 }
  0xc0   : > { %v2293_v57 = vrot.slane %v2291_v38, 5 }
  0xc6   : > { %12740 = vmatmul.mubr.msk.bf16.gmra.mrb[16].mxu0 %vm830_vm3, %v18367_v24  ;;  %v14106_v24 = vld [vmem:[%s14411_s18 + $0x84] sm:$0xff]  }
  0xc7   : > { %12743 = vmatprep.mubr.msk.bf16.mxu0 %vm830_vm3, %v18368_v7  ;;  %v15201_v7 = vrot.slane %v2305_v30, 5 }
  0xce   : > { %12744 = vmatmul.mubr.msk.bf16.gmra.mrb[20].mxu0 %vm830_vm3, %v11343_v58  ;;  %v2285_v58 = vshrl.u32 %v15106_v51, 16 }
  0xcf   : > { %12747 = vmatprep.mubr.msk.bf16.mxu0 %vm830_vm3, %v11344_v25  ;;  %v15123_v25 = vld [vmem:[%s14411_s18 + $0x4c] sm:$0xf] }
  0xd0   : > { %v2287_v50 = vrot.slane %v2285_v58, 4 }
  0xd2   : > { %v2288_v47 = vor.u32 %v2287_v50, %v15165_v1  ;;  %v14107_v50 = vld [vmem:[%s14411_s18 + $0x90] sm:$0xff]  }
  0xd4   : > { %v2289_v41 = vrot.slane %v2288_v47, 4  ;;  %v15271_v47 = vld [vmem:[%s14411_s18 + $0xb0] sm:$0x1] }
  0xd6   : > { %12748 = vmatmul.mubr.msk.bf16.gmra.mrb[24].mxu0 %vm830_vm3, %v11345_v32  ;;  %v2299_v32 = vshll.u32 %v11439_v8, 16  ;;  %v15216_v8 = vld [vmem:[%s14411_s18 + $0x28] sm:$0xf] }
  0xd7   : > { %12751 = vmatprep.mubr.msk.bf16.mxu0 %vm830_vm3, %v11346_v61  ;;  %v3077_v61 = vrot.slane %v15123_v25, 5 }
  0xd8   : > { %v2301_v23 = vrot.slane %v2299_v32, 5  ;;  %v3119_v32 = vrot.slane %v15225_v2, 5 }
  0xd9   : > { %v3079_v0 = vrot.slane %v3077_v61, 4  ;;  %v15145_v10 = vsel %vm14762_vm6, %v11541_v6, %v3077_v61  ;;  %v11445_v61 = vld [vmem:[%s14411_s18 + $0x30] sm:$0xf]  ;;  %v2329_v6 = vshll.u32 %v15216_v8, 16 }
  0xda   : > { %v2302_v53 = vor.u32 %v2301_v23, %v2298_v13  ;;  %v14108_v13 = vld [vmem:[%s14411_s18 + $0x9c] sm:$0xff]   ;;  %v15254_v23 = vld [vmem:[%s14411_s18 + $0x2c] sm:$0x1]  ;;  %v2347_v16 = vshll.u32 %v11445_v61, 16 }
  0xdb   : > { %v15149_v9 = vsel %vm14762_vm6, %v3079_v0, %v3080_v36  ;;  %v3121_v0 = vrot.slane %v3119_v32, 4  ;;  %v15261_v38 = vrot.slane %v2329_v6, 5 }
  0xdc   : > { %v15247_v52 = vrot.slane %v2302_v53, 4 }
  0xde   : > { %12752 = vmatmul.mubr.msk.bf16.gmra.mrb[28].mxu0 %vm830_vm3, %v11347_v19  ;;  %v15138_v19 = vld [vmem:[%s18246_s1 + $0xa0] sm:$0xff]  }
  0xdf   : > { %12763 = vmatprep.mubr.msk.bf16.mxu0 %vm830_vm3, %v14093_v54 }
  0xe6   : > { %12764 = vmatmul.mubr.msk.bf16.vlgmr.msra.gmra.mrb[0].mxu0 %vm830_vm3, %v14095_v18  ;;  %v11442_v18 = vld [vmem:[%s14411_s18 + $0x24] sm:$0xf] }
  0xe7   : > { %12796 = vmatpush3.bf16.msra.mxu0 %v14094_v46  ;;  %12767 = vmatprep.mubr.msk.bf16.mxu0 %vm830_vm3, %v14096_v22  ;;  %v3105_v46 = vrot.slane %v15188_v55, 5  ;;  %v2320_v58 = vshrl.u32 %v11442_v18, 16  ;;  %v2323_v27 = vshll.u32 %v11442_v18, 16  ;;  %v11448_v18 = vld [vmem:[%s14411_s18 + $0x3c] sm:$0xf] }
  0xe8   : > { %12797 = vmatprep.subr.bf16.mxu0 %v14099_v4 }
  0xe9   : > { %v3107_v54 = vrot.slane %v3105_v46, 4  ;;  %v15206_v22 = vsel %vm14762_vm6, %v11545_v49, %v3105_v46  ;;  %v2325_v30 = vrot.slane %v2323_v27, 5  ;;  %v11533_v27 = vld [vmem:[%s14411_s18 + $0xa8] sm:$0xe] }
  0xeb   : > { %12798 = vmatpush3.bf16.msra.mxu0 %v14099_v4  ;;  %v15210_v4 = vsel %vm14762_vm6, %v3107_v54, %v3108_v40 }
  0xec   : > { %12799 = vmatprep.subr.bf16.mxu0 %v14104_v26  ;;  %18369 = vst [vmem:[#allocation3_spill] sm:$0xff] %v15210_v4  ;;  %v15346_v4 = vld [vmem:[%s14411_s18 + $0x58] sm:$0xf] }
  0xee   : > { %12768 = vmatmul.mubr.msk.bf16.gmra.mrb[4].mxu0 %vm830_vm3, %v14097_v62  ;;  %v11451_v62 = vld [vmem:[%s14411_s18 + $0x48] sm:$0xf] }
  0xef   : > { %12771 = vmatprep.mubr.msk.bf16.mxu0 %vm830_vm3, %v14098_v42  ;;  %12800 = vmatpush3.bf16.msra.mxu0 %v14104_v26  ;;  %v2278_v26 = vor.u32 %v15141_v33, %v15129_v5  ;;  %v15228_v42 = vld [vmem:[%s14411_s18 + $0x98] sm:$0x1]  ;;  %v2311_v5 = vrot.slane %v2309_v37, 4  ;;  %v15239_v33 = vld [vmem:[%s14411_s18 + $0x34] sm:$0xf]  ;;  %v2344_v37 = vshrl.u32 %v11445_v61, 16 }
  0xf0   : > { %12801 = vmatprep.subr.bf16.mxu0 %v14109_v12  ;;  %v3122_v14 = vrot.slane %v15228_v42, 5  ;;  %v2353_v46 = vshll.u32 %v15239_v33, 16  ;;  %v2349_v61 = vrot.slane %v2347_v16, 5  ;;  %v2371_v16 = vshll.u32 %v11448_v18, 16 }
  0xf1   : > { %v2279_v17 = vrot.slane %v2278_v26, 4  ;;  %v2312_v54 = vor.u32 %v2311_v5, %v15201_v7  ;;  %v15268_v26 = vld [vmem:[%s14411_s18 + $0xac] sm:$0xf]  ;;  %v2346_v5 = vrot.slane %v2344_v37, 4  ;;  %v2294_v37 = vsel %vm14446_vm2, %v2289_v41, %v2293_v57 }
  0xf2   : > { %v15251_v34 = vsel %vm14762_vm6, %v3121_v0, %v3122_v14  ;;  %v15279_v14 = vld [vmem:[%s14411_s18 + $0x38] sm:$0x1]  ;;  %v15285_v0 = vld [vmem:[%s14411_s18 + $0x40] sm:$0xf] }
  0xf3   : > { %12802 = vmatpush3.bf16.msra.mxu0 %v14109_v12  ;;  %v11531_v12 = vld [vmem:[%s14411_s18 + $0x90] sm:$0xe]  ;;  %18371 = vst [vmem:[#allocation5_spill] sm:$0xff] %v15251_v34  ;;  %v2377_v41 = vshll.u32 %v15285_v0, 16  ;;  %v2381_v57 = vshrl.u32 %v15285_v0, 16  ;;  %v14112_v34 = vld [vmem:[%s14411_s18 + $0xc0] sm:$0xff]  }
  0xf4   : > { %12835 = vmatprep.subr.bf16.mxu0 %v15138_v19  ;;  %v11547_v36 = vrot.slane %v11531_v12, 9  ;;  %v3133_v12 = vrot.slane %v15268_v26, 5 }
  0xf6   : > { %12772 = vmatmul.mubr.msk.bf16.gmra.mrb[8].mxu0 %vm830_vm3, %v14100_v11  ;;  %v2315_v11 = vshll.u32 %v15213_v45, 16 }
  0xf7   : > { %12775 = vmatprep.mubr.msk.bf16.mxu0 %vm830_vm3, %v14101_v39  ;;  %v2333_v39 = vshrl.u32 %v15216_v8, 16 }
  0xf9   : > { %v2335_v49 = vrot.slane %v2333_v39, 4 }
  0xfb   : > { %v2336_v6 = vor.u32 %v2335_v49, %v15261_v38  ;;  %v15298_v49 = vrot.slane %v2312_v54, 4 }
  0xfe   : > { %12776 = vmatmul.mubr.msk.bf16.gmra.mrb[12].mxu0 %vm830_vm3, %v14102_v63  ;;  %v15244_v63 = vsel %vm14762_vm6, %v11547_v36, %v3119_v32  ;;  %v3136_v32 = vrot.slane %v15271_v47, 5  ;;  %v15281_v36 = vrot.slane %v2353_v46, 5 }
  0xff   : > { %12779 = vmatprep.mubr.msk.bf16.mxu0 %vm830_vm3, %v14103_v21  ;;  %18370 = vst [vmem:[#allocation4_spill] sm:$0xff] %v15244_v63  ;;  %v2322_v21 = vrot.slane %v2320_v58, 4  ;;  %v2339_v58 = vshll.u32 %v15254_v23, 16  ;;  %v2401_v63 = vshll.u32 %v15123_v25, 16 }
 0x101   : > { %v2326_v53 = vor.u32 %v2325_v30, %v2322_v21  ;;  %v14110_v21 = vld [vmem:[%s14411_s18 + $0xa8] sm:$0xff]   ;;  %v2284_v30 = vsel %vm14446_vm2, %v2279_v17, %v15165_v1  ;;  %v15302_v40 = vrot.slane %v2339_v58, 5  ;;  %v2363_v17 = vshll.u32 %v15279_v14, 16 }
 0x106   : > { %12780 = vmatmul.mubr.msk.bf16.gmra.mrb[16].mxu0 %vm830_vm3, %v14105_v60  ;;  %v15259_v60 = vrot.slane %v2315_v11, 5  ;;  %v11549_v11 = vrot.slane %v11533_v27, 9  ;;  %v14111_v27 = vld [vmem:[%s14411_s18 + $0xb4] sm:$0xff]  }
 0x107   : > { %12783 = vmatprep.mubr.msk.bf16.mxu0 %vm830_vm3, %v14106_v24  ;;  %v2357_v24 = vshrl.u32 %v15239_v33, 16 }
 0x108   : > { %v15295_v46 = vsel %vm14762_vm6, %v11549_v11, %v3133_v12  ;;  %v2373_v11 = vrot.slane %v2371_v16, 5  ;;  %v2395_v16 = vshll.u32 %v11451_v62, 16 }
 0x109   : > { %v2359_v39 = vrot.slane %v2357_v24, 4  ;;  %18372 = vst [vmem:[#allocation6_spill] sm:$0xff] %v15295_v46  ;;  %v15300_v24 = vrot.slane %v2326_v53, 4  ;;  %v2350_v53 = vor.u32 %v2349_v61, %v2346_v5  ;;  %v2308_v5 = vsel %vm14446_vm2, %v15247_v52, %v15201_v7 }
 0x10a   : > { %v2318_v61 = vsel %vm14446_vm2, %v15298_v49, %v15259_v60 }
 0x10b   : > { %v2360_v58 = vor.u32 %v2359_v39, %v15281_v36  ;;  %v11535_v39 = vld [vmem:[%s14411_s18 + $0xc0] sm:$0xe]  ;;  %v2351_v7 = vrot.slane %v2350_v53, 4 }
 0x10c   : > { %v11551_v54 = vrot.slane %v11535_v39, 9 }
 0x10d   : > { %v2361_v52 = vrot.slane %v2360_v58, 4 }
 0x10e   : > { %12784 = vmatmul.mubr.msk.bf16.gmra.mrb[20].mxu0 %vm830_vm3, %v14107_v50  ;;  %v2368_v50 = vshrl.u32 %v11448_v18, 16  ;;  %v15314_v18 = vrot.slane %v2336_v6, 4  ;;  %v15334_v6 = vld [vmem:[%s14411_s18 + $0x44] sm:$0x1] }
 0x10f   : > { %12787 = vmatprep.mubr.msk.bf16.mxu0 %vm830_vm3, %v14108_v13  ;;  %v3135_v13 = vrot.slane %v3133_v12, 4  ;;  %v2387_v49 = vshll.u32 %v15334_v6, 16 }
 0x110   : > { %v2370_v12 = vrot.slane %v2368_v50, 4  ;;  %v3147_v50 = vrot.slane %v15319_v43, 5 }
 0x111   : > { %v15307_v1 = vsel %vm14762_vm6, %v3135_v13, %v3136_v32  ;;  %v11484_v32 = vcombine.low %v2284_v30, %v2294_v37  ;;  %v2392_v13 = vshrl.u32 %v11451_v62, 16  ;;  %v15339_v30 = vrot.slane %v2377_v41, 5 }
 0x112   : > { %18373 = vst [vmem:[#allocation7_spill] sm:$0xff] %v15307_v1  ;;  %v2383_v37 = vrot.slane %v2381_v57, 4  ;;  %v2365_v1 = vrot.slane %v2363_v17, 5  ;;  %v3149_v46 = vrot.slane %v3147_v50, 4  ;;  %v2374_v60 = vor.u32 %v2373_v11, %v2370_v12 }
 0x113   : > { %v15350_v41 = vsel %vm14762_vm6, %v11551_v54, %v3147_v50  ;;  %v2405_v62 = vshrl.u32 %v15123_v25, 16  ;;  %v2394_v12 = vrot.slane %v2392_v13, 4  ;;  %v2397_v11 = vrot.slane %v2395_v16, 5 }
 0x114   : > { %18374 = vst [vmem:[#allocation8_spill] sm:$0xff] %v15350_v41  ;;  %v2384_v58 = vor.u32 %v2383_v37, %v15339_v30  ;;  %v2332_v54 = vsel %vm14446_vm2, %v15300_v24, %v15261_v38  ;;  %v2342_v25 = vsel %vm14446_vm2, %v15314_v18, %v15302_v40  ;;  %v2429_v50 = vshrl.u32 %v15346_v4, 16 }
 0x115   : > { %v2356_v13 = vsel %vm14446_vm2, %v2351_v7, %v15281_v36  ;;  %v2366_v38 = vsel %vm14446_vm2, %v2361_v52, %v2365_v1  ;;  %v2375_v24 = vrot.slane %v2374_v60, 4  ;;  %v15377_v37 = vrot.slane %v2401_v63, 5  ;;  %v15382_v7 = vld [vmem:[%s14411_s18 + $0x5c] sm:$0x1] }
 0x116   : > { %12788 = vmatmul.mubr.msk.bf16.gmra.mrb[24].mxu0 %vm830_vm3, %v14110_v21  ;;  %v3150_v21 = vrot.slane %v15322_v48, 5  ;;  %v2407_v40 = vrot.slane %v2405_v62, 4  ;;  %v2411_v18 = vshll.u32 %v15126_v28, 16  ;;  %v2385_v39 = vrot.slane %v2384_v58, 4  ;;  %v15396_v58 = vld [vmem:[%s14411_s18 + $0x70] sm:$0xf] }
 0x117   : > { %12791 = vmatprep.mubr.msk.bf16.mxu0 %vm830_vm3, %v14111_v27  ;;  %v11454_v27 = vld [vmem:[%s14411_s18 + $0x54] sm:$0xf]  ;;  %v11485_v36 = vcombine.low %v2308_v5, %v2318_v61  ;;  %v2431_v63 = vrot.slane %v2429_v50, 4  ;;  %v11487_v60 = vcombine.low %v2356_v13, %v2366_v38  ;;  %v2449_v28 = vshll.u32 %v15159_v56, 16 }
 0x118   : > { %v2416_v57 = vshrl.u32 %v11454_v27, 16  ;;  %v2419_v53 = vshll.u32 %v11454_v27, 16  ;;  %v15355_v17 = vsel %vm14762_vm6, %v3149_v46, %v3150_v21  ;;  %v2425_v46 = vshll.u32 %v15346_v4, 16  ;;  %v11457_v21 = vld [vmem:[%s14411_s18 + $0x60] sm:$0xf] }
 0x119   : > { %18375 = vst [vmem:[#allocation9_spill] sm:$0xff] %v15355_v17  ;;  %v2398_v17 = vor.u32 %v2397_v11, %v2394_v12  ;;  %v2440_v41 = vshrl.u32 %v11457_v21, 16  ;;  %v2443_v52 = vshll.u32 %v11457_v21, 16  ;;  %v2453_v62 = vshrl.u32 %v15159_v56, 16  ;;  %v14114_v11 = vld [vmem:[%s18246_s1 + $0xa8] sm:$0xff]  }
 0x11a   : > { %v2418_v16 = vrot.slane %v2416_v57, 4  ;;  %v2421_v27 = vrot.slane %v2419_v53, 5  ;;  %v15384_v1 = vrot.slane %v2425_v46, 5  ;;  %v11460_v57 = vld [vmem:[%s14411_s18 + $0x6c] sm:$0xf]  ;;  %v2408_v5 = vor.u32 %v2407_v40, %v15377_v37 }
 0x11b   : > { %v15393_v61 = vrot.slane %v2411_v18, 5  ;;  %v2399_v56 = vrot.slane %v2398_v17, 4  ;;  %v11463_v46 = vld [vmem:[%s14411_s18 + $0x78] sm:$0xf]  ;;  %v2445_v50 = vrot.slane %v2443_v52, 5  ;;  %v2464_v21 = vshrl.u32 %v11460_v57, 16 }
 0x11c   : > { %v2422_v53 = vor.u32 %v2421_v27, %v2418_v16  ;;  %v2467_v13 = vshll.u32 %v11460_v57, 16  ;;  %v15407_v38 = vrot.slane %v2449_v28, 5  ;;  %v2477_v40 = vshrl.u32 %v15396_v58, 16 }
 0x11d   : > { %v2459_v18 = vshll.u32 %v15162_v20, 16  ;;  %v2488_v16 = vshrl.u32 %v11463_v46, 16  ;;  %v2466_v28 = vrot.slane %v2464_v21, 4 }
 0x11e   : > { %12792 = vmatmul.mubr.msk.bf16.gmra.mrb[28].mxu0 %vm830_vm3, %v14112_v34  ;;  %v2389_v34 = vrot.slane %v2387_v49, 5  ;;  %v2380_v49 = vsel %vm14446_vm2, %v2375_v24, %v15339_v30  ;;  %v2432_v30 = vor.u32 %v2431_v63, %v15384_v1  ;;  %v2455_v24 = vrot.slane %v2453_v62, 4 }
 0x11f   : > { %12803 = vmatprep.mubr.msk.bf16.mxu0 %vm830_vm3, %v11484_v32  ;;  %v11486_v32 = vcombine.low %v2332_v54, %v2342_v25  ;;  %v2435_v54 = vshll.u32 %v15382_v7, 16  ;;  %v2442_v25 = vrot.slane %v2440_v41, 4  ;;  %v2409_v41 = vrot.slane %v2408_v5, 4  ;;  %v15421_v5 = vld [vmem:[%s14411_s18 + $0x74] sm:$0x1] }
 0x120   : > { %v2390_v12 = vsel %vm14446_vm2, %v2385_v39, %v2389_v34  ;;  %v2473_v39 = vshll.u32 %v15396_v58, 16  ;;  %v2423_v17 = vrot.slane %v2422_v53, 4  ;;  %v14115_v34 = vld [vmem:[%s18246_s1 + $0xb0] sm:$0xff]   ;;  %v2497_v63 = vshll.u32 %v15188_v55, 16 }
 0x121   : > { %v2437_v27 = vrot.slane %v2435_v54, 5  ;;  %v2433_v52 = vrot.slane %v2432_v30, 4  ;;  %v2469_v62 = vrot.slane %v2467_v13, 5  ;;  %v11488_v57 = vcombine.low %v2380_v49, %v2390_v12  ;;  %v11466_v12 = vld [vmem:[%s14411_s18 + $0x84] sm:$0xf] }
 0x122   : > { %v2456_v20 = vor.u32 %v2455_v24, %v15407_v38  ;;  %v15423_v53 = vrot.slane %v2473_v39, 5  ;;  %v2479_v54 = vrot.slane %v2477_v40, 4  ;;  %v2490_v49 = vrot.slane %v2488_v16, 4  ;;  %v15440_v24 = vld [vmem:[%s14411_s18 + $0x88] sm:$0xf] }
 0x123   : > { %v2428_v30 = vsel %vm14446_vm2, %v2423_v17, %v15384_v1  ;;  %v15437_v21 = vrot.slane %v2497_v63, 5  ;;  %v2483_v39 = vshll.u32 %v15421_v5, 16  ;;  %v2515_v17 = vshll.u32 %v11466_v12, 16 }
 0x124   : > { %v2457_v1 = vrot.slane %v2456_v20, 4  ;;  %v2480_v40 = vor.u32 %v2479_v54, %v15423_v53  ;;  %v2525_v16 = vshrl.u32 %v15440_v24, 16 }
 0x126   : > { %12804 = vmatmul.mubr.msk.bf16.vlgmr.msra.gmra.mrb[0].mxu0 %vm830_vm3, %v11485_v36  ;;  %v2491_v36 = vshll.u32 %v11463_v46, 16  ;;  %v2404_v46 = vsel %vm14446_vm2, %v2399_v56, %v15377_v37  ;;  %v14116_v37 = vld [vmem:[%s18246_s1 + $0xb8] sm:$0xff]   ;;  %v2470_v56 = vor.u32 %v2469_v62, %v2466_v28  ;;  %v2485_v62 = vrot.slane %v2483_v39, 5 }
 0x127   : > { %12836 = vmatpush3.bf16.msra.mxu0 %v15138_v19  ;;  %12807 = vmatprep.mubr.msk.bf16.mxu0 %vm830_vm3, %v11486_v32  ;;  %v2501_v19 = vshrl.u32 %v15188_v55, 16  ;;  %v2446_v32 = vor.u32 %v2445_v50, %v2442_v25  ;;  %v2414_v55 = vsel %vm14446_vm2, %v2409_v41, %v15393_v61  ;;  %v15431_v25 = vrot.slane %v2459_v18, 5 }
 0x128   : > { %12837 = vmatprep.subr.bf16.mxu0 %v14114_v11  ;;  %v2493_v50 = vrot.slane %v2491_v36, 5  ;;  %v2438_v61 = vsel %vm14446_vm2, %v2433_v52, %v2437_v27  ;;  %v2512_v41 = vshrl.u32 %v11466_v12, 16  ;;  %v2521_v18 = vshll.u32 %v15440_v24, 16  ;;  %v15459_v52 = vld [vmem:[%s18246_s1 + $0xc0] sm:$0xff]  }
 0x129   : > { %v2503_v13 = vrot.slane %v2501_v19, 4  ;;  %v11489_v27 = vcombine.low %v2404_v46, %v2414_v55  ;;  %v11469_v19 = vld [vmem:[%s14411_s18 + $0x90] sm:$0xf]  ;;  %v2471_v28 = vrot.slane %v2470_v56, 4  ;;  %v2481_v20 = vrot.slane %v2480_v40, 4 }
 0x12a   : > { %v2494_v36 = vor.u32 %v2493_v50, %v2490_v49  ;;  %v2514_v54 = vrot.slane %v2512_v41, 4  ;;  %v2517_v46 = vrot.slane %v2515_v17, 5  ;;  %v11472_v55 = vld [vmem:[%s14411_s18 + $0x9c] sm:$0xf]  ;;  %v15471_v49 = vrot.slane %v2521_v18, 5 }
 0x12b   : > { %12838 = vmatpush3.bf16.msra.mxu0 %v14114_v11  ;;  %v2447_v11 = vrot.slane %v2446_v32, 4  ;;  %v2504_v63 = vor.u32 %v2503_v13, %v15437_v21  ;;  %v2527_v12 = vrot.slane %v2525_v16, 4  ;;  %v2539_v50 = vshll.u32 %v11469_v19, 16  ;;  %v15474_v13 = vld [vmem:[%s14411_s18 + $0xa0] sm:$0xf] }
 0x12c   : > { %12839 = vmatprep.subr.bf16.mxu0 %v14115_v34  ;;  %v2549_v39 = vshrl.u32 %v15225_v2, 16  ;;  %v2563_v40 = vshll.u32 %v11472_v55, 16  ;;  %v2476_v41 = vsel %vm14446_vm2, %v2471_v28, %v15423_v53  ;;  %v2569_v17 = vshll.u32 %v15474_v13, 16 }
 0x12d   : > { %v2452_v32 = vsel %vm14446_vm2, %v2447_v11, %v15407_v38  ;;  %v2495_v38 = vrot.slane %v2494_v36, 4  ;;  %v2573_v18 = vshrl.u32 %v15474_v13, 16  ;;  %v2518_v16 = vor.u32 %v2517_v46, %v2514_v54  ;;  %v15498_v46 = vld [vmem:[%s14411_s18 + $0xa4] sm:$0x1] }
 0x12e   : > { %12808 = vmatmul.mubr.msk.bf16.gmra.mrb[4].mxu0 %vm830_vm3, %v11487_v60  ;;  %v2507_v60 = vshll.u32 %v15191_v15, 16  ;;  %v2462_v15 = vsel %vm14446_vm2, %v2457_v1, %v15431_v25  ;;  %v2545_v25 = vshll.u32 %v15225_v2, 16  ;;  %v2560_v1 = vshrl.u32 %v11472_v55, 16 }
 0x12f   : > { %12811 = vmatprep.mubr.msk.bf16.mxu0 %vm830_vm3, %v11488_v57  ;;  %12840 = vmatpush3.bf16.msra.mxu0 %v14115_v34  ;;  %v11490_v34 = vcombine.low %v2428_v30, %v2438_v61  ;;  %v15465_v57 = vld [vmem:[%s14411_s18 + $0x8c] sm:$0x1]  ;;  %v2536_v30 = vshrl.u32 %v11469_v19, 16  ;;  %v2505_v61 = vrot.slane %v2504_v63, 4  ;;  %v2528_v2 = vor.u32 %v2527_v12, %v15471_v49 }
 0x130   : > { %12841 = vmatprep.subr.bf16.mxu0 %v14116_v37  ;;  %v2509_v11 = vrot.slane %v2507_v60, 5  ;;  %v2531_v56 = vshll.u32 %v15465_v57, 16  ;;  %v2500_v53 = vsel %vm14446_vm2, %v2495_v38, %v15437_v21  ;;  %v15495_v19 = vrot.slane %v2545_v25, 5 }
 0x131   : > { %v2538_v36 = vrot.slane %v2536_v30, 4  ;;  %v2551_v28 = vrot.slane %v2549_v39, 4  ;;  %v2571_v55 = vrot.slane %v2569_v17, 5  ;;  %v2575_v12 = vrot.slane %v2573_v18, 4  ;;  %v11475_v30 = vld [vmem:[%s14411_s18 + $0xa8] sm:$0xf] }
 0x132   : > { %v2510_v63 = vsel %vm14446_vm2, %v2505_v61, %v2509_v11  ;;  %v2533_v60 = vrot.slane %v2531_v56, 5  ;;  %v2529_v21 = vrot.slane %v2528_v2, 4  ;;  %v2555_v61 = vshll.u32 %v15228_v42, 16 }
 0x133   : > { %12842 = vmatpush3.bf16.msra.mxu0 %v14116_v37  ;;  %v2486_v37 = vsel %vm14446_vm2, %v2481_v20, %v2485_v62  ;;  %v2562_v62 = vrot.slane %v2560_v1, 4  ;;  %v2565_v20 = vrot.slane %v2563_v40, 5  ;;  %v11493_v11 = vcombine.low %v2500_v53, %v2510_v63 }
 0x134   : > { %12875 = vmatprep.subr.bf16.mxu0 %v15459_v52  ;;  %v11492_v54 = vcombine.low %v2476_v41, %v2486_v37  ;;  %v2552_v56 = vor.u32 %v2551_v28, %v15495_v19  ;;  %v2579_v39 = vshll.u32 %v15498_v46, 16  ;;  %v2584_v1 = vshrl.u32 %v11475_v30, 16 }
 0x135   : > { %v2566_v25 = vor.u32 %v2565_v20, %v2562_v62  ;;  %v2576_v40 = vor.u32 %v2575_v12, %v2571_v55  ;;  %v2587_v41 = vshll.u32 %v11475_v30, 16  ;;  %v2593_v37 = vshll.u32 %v15268_v26, 16 }
 0x136   : > { %12812 = vmatmul.mubr.msk.bf16.gmra.mrb[8].mxu0 %vm830_vm3, %v11489_v27  ;;  %v2541_v27 = vrot.slane %v2539_v50, 5  ;;  %v2519_v50 = vrot.slane %v2518_v16, 4  ;;  %v2597_v17 = vshrl.u32 %v15268_v26, 16  ;;  %v2534_v18 = vsel %vm14446_vm2, %v2529_v21, %v2533_v60 }
 0x137   : > { %12815 = vmatprep.mubr.msk.bf16.mxu0 %vm830_vm3, %v11490_v34  ;;  %v11491_v34 = vcombine.low %v2452_v32, %v2462_v15  ;;  %v11478_v32 = vld [vmem:[%s14411_s18 + $0xb4] sm:$0xf]  ;;  %v15506_v15 = vld [vmem:[%s14411_s18 + $0xb8] sm:$0xf]  ;;  %v2557_v2 = vrot.slane %v2555_v61, 5  ;;  %v2553_v28 = vrot.slane %v2552_v56, 4 }
 0x138   : > { %v2542_v38 = vor.u32 %v2541_v27, %v2538_v36  ;;  %v2524_v42 = vsel %vm14446_vm2, %v2519_v50, %v15471_v49  ;;  %v2608_v36 = vshrl.u32 %v11478_v32, 16  ;;  %v2611_v27 = vshll.u32 %v11478_v32, 16  ;;  %v11481_v61 = vld [vmem:[%s14411_s18 + $0xc0] sm:$0xf] }
 0x139   : > { %v2617_v53 = vshll.u32 %v15506_v15, 16  ;;  %v2621_v63 = vshrl.u32 %v15506_v15, 16  ;;  %v2567_v26 = vrot.slane %v2566_v25, 4  ;;  %v2581_v62 = vrot.slane %v2579_v39, 5  ;;  %v15527_v39 = vld [vmem:[%s14411_s18 + $0xbc] sm:$0x1] }
 0x13a   : > { %v2543_v16 = vrot.slane %v2542_v38, 4  ;;  %v2586_v20 = vrot.slane %v2584_v1, 4  ;;  %v2595_v49 = vrot.slane %v2593_v37, 5  ;;  %v2599_v12 = vrot.slane %v2597_v17, 4 }
 0x13b   : > { %v11494_v30 = vcombine.low %v2524_v42, %v2534_v18  ;;  %v2610_v60 = vrot.slane %v2608_v36, 4  ;;  %v2613_v50 = vrot.slane %v2611_v27, 5  ;;  %v2619_v21 = vrot.slane %v2617_v53, 5 }
 0x13c   : > { %v2623_v38 = vrot.slane %v2621_v63, 4  ;;  %v2548_v32 = vsel %vm14446_vm2, %v2543_v16, %v15495_v19  ;;  %v2558_v56 = vsel %vm14446_vm2, %v2553_v28, %v2557_v2  ;;  %v2603_v25 = vshll.u32 %v15271_v47, 16 }
 0x13d   : > { %v2572_v1 = vsel %vm14446_vm2, %v2567_v26, %v2571_v55  ;;  %v2600_v37 = vor.u32 %v2599_v12, %v2595_v49  ;;  %v2632_v19 = vshrl.u32 %v11481_v61, 16  ;;  %v2635_v17 = vshll.u32 %v11481_v61, 16 }
 0x13e   : > { %12816 = vmatmul.mubr.msk.bf16.gmra.mrb[12].mxu0 %vm830_vm3, %v11491_v34  ;;  %v2577_v34 = vrot.slane %v2576_v40, 4  ;;  %v2641_v42 = vshll.u32 %v15319_v43, 16  ;;  %v2645_v47 = vshrl.u32 %v15319_v43, 16  ;;  %v2614_v18 = vor.u32 %v2613_v50, %v2610_v60 }
 0x13f   : > { %12819 = vmatprep.mubr.msk.bf16.mxu0 %vm830_vm3, %v11492_v54  ;;  %v2589_v54 = vrot.slane %v2587_v41, 5  ;;  %v2624_v16 = vor.u32 %v2623_v38, %v2619_v21  ;;  %v11495_v2 = vcombine.low %v2548_v32, %v2558_v56  ;;  %v2601_v27 = vrot.slane %v2600_v37, 4  ;;  %v11520_v56 = vld [vmem:[%s14411_s18 + $0xc] sm:$0xe] }
 0x140   : > { %v2582_v40 = vsel %vm14446_vm2, %v2577_v34, %v2581_v62  ;;  %v2605_v53 = vrot.slane %v2603_v25, 5  ;;  %v2634_v63 = vrot.slane %v2632_v19, 4  ;;  %v2637_v28 = vrot.slane %v2635_v17, 5 }
 0x141   : > { %v2590_v41 = vor.u32 %v2589_v54, %v2586_v20  ;;  %v11496_v36 = vcombine.low %v2572_v1, %v2582_v40  ;;  %v2643_v26 = vrot.slane %v2641_v42, 5  ;;  %v2647_v62 = vrot.slane %v2645_v47, 4 }
 0x142   : > { %v2615_v20 = vrot.slane %v2614_v18, 4  ;;  %v2625_v34 = vrot.slane %v2624_v16, 4  ;;  %v2606_v12 = vsel %vm14446_vm2, %v2601_v27, %v2605_v53  ;;  %v2651_v50 = vshll.u32 %v15322_v48, 16  ;;  %v11521_v18 = vld [vmem:[%s14411_s18 + $0x18] sm:$0xe] }
 0x143   : > { %v2591_v55 = vrot.slane %v2590_v41, 4  ;;  %v2648_v60 = vor.u32 %v2647_v62, %v2643_v26  ;;  %v3042_v32 = vrot.slane %v15106_v51, 5  ;;  %v11536_v37 = vrot.slane %v11520_v56, 9  ;;  %v11522_v16 = vld [vmem:[%s14411_s18 + $0x24] sm:$0xe] }
 0x144   : > { %v2620_v38 = vsel %vm14446_vm2, %v2615_v20, %v2619_v21  ;;  %v2653_v41 = vrot.slane %v2651_v50, 5  ;;  %v3045_v48 = vrot.slane %v15178_v35, 5  ;;  %v3049_v17 = vrot.slane %v15153_v31, 5  ;;  %v11523_v20 = vld [vmem:[%s14411_s18 + $0x30] sm:$0xe] }
 0x145   : > { %v2596_v43 = vsel %vm14446_vm2, %v2591_v55, %v2595_v49  ;;  %v2649_v40 = vrot.slane %v2648_v60, 4  ;;  %v3044_v19 = vrot.slane %v3042_v32, 4  ;;  %v3043_v42 = vsel %vm14762_vm6, %v11536_v37, %v3042_v32 }
 0x146   : > { %12820 = vmatmul.mubr.msk.bf16.gmra.mrb[16].mxu0 %vm830_vm3, %v11493_v11  ;;  %v2627_v11 = vshll.u32 %v15527_v39, 16  ;;  %v11497_v49 = vcombine.low %v2596_v43, %v2606_v12  ;;  %v3056_v35 = vrot.slane %v15216_v8, 5  ;;  %v3051_v55 = vrot.slane %v3049_v17, 4 }
 0x147   : > { %12823 = vmatprep.mubr.msk.bf16.mxu0 %vm830_vm3, %v11494_v30  ;;  %v2638_v30 = vor.u32 %v2637_v28, %v2634_v63  ;;  %v2654_v51 = vsel %vm14446_vm2, %v2649_v40, %v2653_v41  ;;  %v3046_v47 = vsel %vm14762_vm6, %v3044_v19, %v3045_v48  ;;  %v3052_v27 = vrot.slane %v15213_v45, 5  ;;  %v14120_v19 = vld [vmem:[%s18246_s1 + $0xd8] sm:$0xff]  }
 0x148   : > { %v2629_v54 = vrot.slane %v2627_v11, 5  ;;  %v11538_v53 = vrot.slane %v11522_v16, 9  ;;  %v3058_v31 = vrot.slane %v3056_v35, 4  ;;  %v3059_v63 = vrot.slane %v15254_v23, 5 }
 0x149   : > { %v2639_v1 = vrot.slane %v2638_v30, 4  ;;  %v3053_v28 = vsel %vm14762_vm6, %v3051_v55, %v3052_v27  ;;  %v3070_v23 = vrot.slane %v15285_v0, 5  ;;  %v11539_v12 = vrot.slane %v11523_v20, 9 }
 0x14a   : > { %v2630_v61 = vsel %vm14446_vm2, %v2625_v34, %v2629_v54  ;;  %v3057_v62 = vsel %vm14762_vm6, %v11538_v53, %v3056_v35  ;;  %v3060_v45 = vsel %vm14762_vm6, %v3058_v31, %v3059_v63  ;;  %v11524_v34 = vld [vmem:[%s14411_s18 + $0x3c] sm:$0xe]  ;;  %v3066_v60 = vrot.slane %v15279_v14, 5 }
 0x14b   : > { %v11498_v25 = vcombine.low %v2620_v38, %v2630_v61  ;;  %v2644_v21 = vsel %vm14446_vm2, %v2639_v1, %v2643_v26  ;;  %v3063_v26 = vrot.slane %v15239_v33, 5  ;;  %v11554_v43 = vcombine.low %v3057_v62, %v3060_v45  ;;  %v14118_v61 = vld [vmem:[%s18246_s1 + $0xc8] sm:$0xff]   ;;  %v11532_v31 = vld [vmem:[%s14411_s18 + $0x9c] sm:$0xe]  ;;  %v11534_v45 = vld [vmem:[%s14411_s18 + $0xb4] sm:$0xe] }
 0x14c   : > { %v11499_v11 = vcombine.low %v2644_v21, %v2654_v51  ;;  %v11540_v50 = vrot.slane %v11524_v34, 9  ;;  %v3072_v38 = vrot.slane %v3070_v23, 4  ;;  %v3073_v33 = vrot.slane %v15334_v6, 5  ;;  %v11528_v51 = vld [vmem:[%s14411_s18 + $0x6c] sm:$0xe]  ;;  %v18380_v34 = vld [vmem:[#allocation4_spill] sm:$0xff] }
 0x14d   : > { %v3065_v30 = vrot.slane %v3063_v26, 4  ;;  %v3064_v0 = vsel %vm14762_vm6, %v11539_v12, %v3063_v26  ;;  %v3084_v56 = vrot.slane %v15346_v4, 5  ;;  %v3087_v37 = vrot.slane %v15382_v7, 5  ;;  %v14122_v7 = vld [vmem:[%s18246_s1 + $0xe0] sm:$0xff]  }
 0x14e   : > { %12824 = vmatmul.mubr.msk.bf16.gmra.mrb[20].mxu0 %vm830_vm3, %v11495_v2  ;;  %v11552_v2 = vcombine.low %v3043_v42, %v3046_v47  ;;  %v3071_v32 = vsel %vm14762_vm6, %v11540_v50, %v3070_v23  ;;  %v3074_v6 = vsel %vm14762_vm6, %v3072_v38, %v3073_v33  ;;  %v3098_v21 = vrot.slane %v15396_v58, 5  ;;  %v18384_v50 = vld [vmem:[#allocation7_spill] sm:$0xff]  ;;  %v18386_v33 = vld [vmem:[#allocation8_spill] sm:$0xff] }
 0x14f   : > { %12827 = vmatprep.mubr.msk.bf16.mxu0 %vm830_vm3, %v11496_v36  ;;  %v11537_v36 = vrot.slane %v11521_v18, 9  ;;  %v3067_v14 = vsel %vm14762_vm6, %v3065_v30, %v3066_v60  ;;  %v11556_v1 = vcombine.low %v3071_v32, %v3074_v6  ;;  %v3086_v41 = vrot.slane %v3084_v56, 4  ;;  %v18383_v60 = vld [vmem:[#allocation6_spill] sm:$0xff]  ;;  %v14127_v6 = vld [vmem:[%s18246_s1 + $0xe8] sm:$0xff]  }
 0x150   : > { %v11544_v42 = vrot.slane %v11528_v51, 9  ;;  %v3100_v47 = vrot.slane %v3098_v21, 4  ;;  %v3101_v18 = vrot.slane %v15421_v5, 5  ;;  %v18376_v35 = vcombine.low %v15145_v10, %v15149_v9  ;;  %v14124_v32 = vld [vmem:[%s14411_s18 + $0x30] sm:$0xff]  }
 0x151   : > { %v3050_v8 = vsel %vm14762_vm6, %v11537_v36, %v3049_v17  ;;  %v3088_v48 = vsel %vm14762_vm6, %v3086_v41, %v3087_v37  ;;  %v3115_v27 = vrot.slane %v15465_v57, 5  ;;  %v18377_v10 = vcombine.low %v15175_v44, %v15182_v59  ;;  %v18378_v44 = vld [vmem:[#allocation3_spill] sm:$0xff]  ;;  %v11745_v41 = vld [vmem:[%s14411_s18 + $0x54] sm:$0xe] }
 0x152   : > { %v11553_v54 = vcombine.low %v3050_v8, %v3053_v28  ;;  %v3099_v58 = vsel %vm14762_vm6, %v11544_v42, %v3098_v21  ;;  %v3102_v16 = vsel %vm14762_vm6, %v3100_v47, %v3101_v18  ;;  %v3126_v53 = vrot.slane %v15474_v13, 5  ;;  %v15721_v18 = vld [vmem:[%s14411_s18 + $0x70] sm:$0xf]  ;;  %v15892_v47 = vld [vmem:[%s14411_s18 + $0xd4] sm:$0x1] }
 0x153   : > { %v11560_v36 = vcombine.low %v3099_v58, %v3102_v16  ;;  %v11548_v8 = vrot.slane %v11532_v31, 9  ;;  %v3129_v28 = vrot.slane %v15498_v46, 5  ;;  %v18379_v59 = vcombine.low %v15206_v22, %v18378_v44  ;;  %v11747_v58 = vld [vmem:[%s14411_s18 + $0x6c] sm:$0xe]  ;;  %v15889_v31 = vld [vmem:[%s14411_s18 + $0xd0] sm:$0xf] }
 0x154   : > { %v3128_v57 = vrot.slane %v3126_v53, 4  ;;  %v3140_v62 = vrot.slane %v15506_v15, 5  ;;  %v11550_v20 = vrot.slane %v11534_v45, 9  ;;  %v3143_v22 = vrot.slane %v15527_v39, 5  ;;  %v14121_v39 = vld [vmem:[%s14411_s18 + $0x18] sm:$0xff]  }
 0x155   : > { %v3127_v26 = vsel %vm14762_vm6, %v11548_v8, %v3126_v53  ;;  %v18385_v38 = vcombine.low %v18383_v60, %v18384_v50  ;;  %v4727_v16 = vrot.slane %v15721_v18, 5 }
 0x156   : > { %12828 = vmatmul.mubr.msk.bf16.gmra.mrb[24].mxu0 %vm830_vm3, %v11497_v49  ;;  %v11526_v49 = vld [vmem:[%s14411_s18 + $0x54] sm:$0xe]  ;;  %v3130_v13 = vsel %vm14762_vm6, %v3128_v57, %v3129_v28  ;;  %v3142_v23 = vrot.slane %v3140_v62, 4  ;;  %v3141_v12 = vsel %vm14762_vm6, %v11550_v20, %v3140_v62  ;;  %v11749_v62 = vld [vmem:[%s14411_s18 + $0x84] sm:$0xe] }
 0x157   : > { %12831 = vmatprep.mubr.msk.bf16.mxu0 %vm830_vm3, %v11498_v25  ;;  %v11555_v25 = vcombine.low %v3064_v0, %v3067_v14  ;;  %v11542_v40 = vrot.slane %v11526_v49, 9  ;;  %v11564_v46 = vcombine.low %v3127_v26, %v3130_v13  ;;  %v14123_v14 = vld [vmem:[%s14411_s18 + $0x24] sm:$0xff]   ;;  %v15754_v13 = vld [vmem:[%s14411_s18 + $0x8c] sm:$0x1]  ;;  %v11765_v20 = vrot.slane %v11749_v62, 9 }
 0x158   : > { %v3144_v15 = vsel %vm14762_vm6, %v3142_v23, %v3143_v22  ;;  %v14126_v49 = vld [vmem:[%s14411_s18 + $0x48] sm:$0xff]  }
 0x159   : > { %v3085_v4 = vsel %vm14762_vm6, %v11542_v40, %v3084_v56  ;;  %v11566_v30 = vcombine.low %v3141_v12, %v3144_v15  ;;  %v14132_v56 = vld [vmem:[%s18246_s1 + $0xf0] sm:$0xff]   ;;  %v15695_v40 = vld [vmem:[%s14411_s18 + $0x5c] sm:$0x1]  ;;  %v15751_v26 = vld [vmem:[%s14411_s18 + $0x88] sm:$0xf] }
 0x15a   : > { %v11558_v17 = vcombine.low %v3085_v4, %v3088_v48  ;;  %v15704_v4 = vld [vmem:[%s18246_s1 + $0x100] sm:$0xff]   ;;  %v11761_v48 = vrot.slane %v11745_v41, 9  ;;  %v4741_v45 = vrot.slane %v15751_v26, 5  ;;  %v15790_v41 = vld [vmem:[%s14411_s18 + $0x34] sm:$0xf]  ;;  %v14136_v62 = vld [vmem:[%s14411_s18 + $0xa8] sm:$0xff]  }
 0x15b   : > { %v14133_v12 = vld [vmem:[%s14411_s18 + $0x84] sm:$0xff]   ;;  %v15767_v15 = vld [vmem:[%s14411_s18 + $0x20] sm:$0x1] }
 0x15e   : > { %12832 = vmatmul.mubr.msk.bf16.gmra.mrb[28].mxu0 %vm830_vm3, %v11499_v11  ;;  %v3112_v11 = vrot.slane %v15440_v24, 5 }
 0x15f   : > { %12843 = vmatprep.mubr.msk.bf16.mxu0 %vm830_vm3, %v11552_v2  ;;  %v11530_v2 = vld [vmem:[%s14411_s18 + $0x84] sm:$0xe] }
 0x160   : > { %v11546_v5 = vrot.slane %v11530_v2, 9  ;;  %v3114_v55 = vrot.slane %v3112_v11, 4  ;;  %v11763_v2 = vrot.slane %v11747_v58, 9 }
 0x162   : > { %v3113_v9 = vsel %vm14762_vm6, %v11546_v5, %v3112_v11  ;;  %v3116_v24 = vsel %vm14762_vm6, %v3114_v55, %v3115_v27  ;;  %v14130_v5 = vld [vmem:[%s14411_s18 + $0x6c] sm:$0xff]   ;;  %v11656_v55 = vld [vmem:[%s14411_s18 + $0x18] sm:$0xf]  ;;  %v15733_v27 = vld [vmem:[%s14411_s18 + $0x1c] sm:$0xf] }
 0x163   : > { %v11562_v63 = vcombine.low %v3113_v9, %v3116_v24  ;;  %v14131_v9 = vld [vmem:[%s14411_s18 + $0x78] sm:$0xff]   ;;  %v11659_v24 = vld [vmem:[%s14411_s18 + $0x24] sm:$0xf]  ;;  %v3911_v8 = vshll.u32 %v11656_v55, 16  ;;  %v3917_v57 = vshll.u32 %v15733_v27, 16  ;;  %v3921_v28 = vshrl.u32 %v15733_v27, 16 }
 0x164   : > { %v3932_v44 = vshrl.u32 %v11659_v24, 16 }
 0x165   : > { %v3913_v22 = vrot.slane %v3911_v8, 5  ;;  %v14135_v8 = vld [vmem:[%s14411_s18 + $0x9c] sm:$0xff]  }
 0x166   : > { %12844 = vmatmul.mubr.msk.bf16.vlgmr.msra.gmra.mrb[0].mxu0 %vm830_vm3, %v11553_v54  ;;  %v18381_v54 = vld [vmem:[#allocation5_spill] sm:$0xff]  ;;  %v3934_v60 = vrot.slane %v3932_v44, 4 }
 0x167   : > { %12876 = vmatpush3.bf16.msra.mxu0 %v15459_v52  ;;  %12847 = vmatprep.mubr.msk.bf16.mxu0 %vm830_vm3, %v11554_v43  ;;  %v14119_v52 = vld [vmem:[%s18246_s1 + $0xd0] sm:$0xff]   ;;  %v18382_v43 = vcombine.low %v18380_v34, %v18381_v54  ;;  %v15760_v34 = vrot.slane %v3917_v57, 5  ;;  %v15763_v54 = vld [vmem:[%s14411_s18 + $0x28] sm:$0xf] }
 0x168   : > { %12877 = vmatprep.subr.bf16.mxu0 %v14118_v61 }
 0x16b   : > { %12878 = vmatpush3.bf16.msra.mxu0 %v14118_v61  ;;  %v18387_v61 = vld [vmem:[#allocation9_spill] sm:$0xff] }
 0x16c   : > { %12879 = vmatprep.subr.bf16.mxu0 %v14119_v52  ;;  %v18388_v0 = vcombine.low %v18386_v33, %v18387_v61  ;;  %v3941_v61 = vshll.u32 %v15763_v54, 16 }
 0x16e   : > { %12848 = vmatmul.mubr.msk.bf16.gmra.mrb[4].mxu0 %vm830_vm3, %v11555_v25  ;;  %v14137_v25 = vld [vmem:[%s18246_s1 + $0xf8] sm:$0xff]  }
 0x16f   : > { %12851 = vmatprep.mubr.msk.bf16.mxu0 %vm830_vm3, %v11556_v1  ;;  %12880 = vmatpush3.bf16.msra.mxu0 %v14119_v52  ;;  %v14125_v52 = vld [vmem:[%s14411_s18 + $0x3c] sm:$0xff]   ;;  %v15692_v1 = vld [vmem:[%s14411_s18 + $0x58] sm:$0xf] }
 0x170   : > { %12881 = vmatprep.subr.bf16.mxu0 %v14120_v19  ;;  %v4713_v37 = vrot.slane %v15692_v1, 5 }
 0x172   : > { %v4715_v21 = vrot.slane %v4713_v37, 4  ;;  %v15709_v51 = vsel %vm14762_vm6, %v11761_v48, %v4713_v37  ;;  %v15793_v37 = vld [vmem:[%s14411_s18 + $0xa0] sm:$0xf] }
 0x173   : > { %12882 = vmatpush3.bf16.msra.mxu0 %v14120_v19  ;;  %v4716_v19 = vrot.slane %v15695_v40, 5 }
 0x174   : > { %12915 = vmatprep.subr.bf16.mxu0 %v14122_v7 }
 0x175   : > { %v15714_v42 = vsel %vm14762_vm6, %v4715_v21, %v4716_v19  ;;  %v15796_v19 = vld [vmem:[%s14411_s18 + $0xa4] sm:$0x1] }
 0x176   : > { %12852 = vmatmul.mubr.msk.bf16.gmra.mrb[8].mxu0 %vm830_vm3, %v18376_v35  ;;  %v15724_v35 = vld [vmem:[%s14411_s18 + $0x74] sm:$0x1]  ;;  %v4758_v58 = vrot.slane %v15796_v19, 5 }
 0x177   : > { %12855 = vmatprep.mubr.msk.bf16.mxu0 %vm830_vm3, %v11558_v17  ;;  %v14129_v17 = vld [vmem:[%s14411_s18 + $0x60] sm:$0xff]   ;;  %v4730_v11 = vrot.slane %v15724_v35, 5 }
 0x17e   : > { %12856 = vmatmul.mubr.msk.bf16.gmra.mrb[12].mxu0 %vm830_vm3, %v18377_v10  ;;  %v15737_v10 = vsel %vm14762_vm6, %v11763_v2, %v4727_v16  ;;  %v11665_v2 = vld [vmem:[%s14411_s18 + $0x3c] sm:$0xf] }
 0x17f   : > { %12859 = vmatprep.mubr.msk.bf16.mxu0 %vm830_vm3, %v11560_v36  ;;  %v4729_v36 = vrot.slane %v4727_v16, 4  ;;  %v15802_v16 = vrot.slane %v3941_v61, 5 }
 0x181   : > { %v15743_v53 = vsel %vm14762_vm6, %v4729_v36, %v4730_v11 }
 0x186   : > { %12860 = vmatmul.mubr.msk.bf16.gmra.mrb[16].mxu0 %vm830_vm3, %v18379_v59  ;;  %v3935_v59 = vshll.u32 %v11659_v24, 16  ;;  %v15809_v24 = vld [vmem:[%s14411_s18 + $0x40] sm:$0xf] }
 0x187   : > { %12863 = vmatprep.mubr.msk.bf16.mxu0 %vm830_vm3, %v11562_v63  ;;  %v3908_v63 = vshrl.u32 %v11656_v55, 16  ;;  %v3965_v55 = vshll.u32 %v15790_v41, 16 }
 0x188   : > { %v3937_v50 = vrot.slane %v3935_v59, 5 }
 0x189   : > { %v3910_v23 = vrot.slane %v3908_v63, 4 }
 0x18e   : > { %12864 = vmatmul.mubr.msk.bf16.gmra.mrb[20].mxu0 %vm830_vm3, %v18382_v43  ;;  %v4743_v43 = vrot.slane %v4741_v45, 4 }
 0x18f   : > { %12867 = vmatprep.mubr.msk.bf16.mxu0 %vm830_vm3, %v11564_v46  ;;  %v4744_v46 = vrot.slane %v15754_v13, 5 }
 0x191   : > { %v15776_v33 = vsel %vm14762_vm6, %v4743_v43, %v4744_v46  ;;  %v3980_v43 = vshrl.u32 %v11665_v2, 16 }
 0x192   : > { %18389 = vst [vmem:[#allocation3_spill] sm:$0xff] %v15776_v33  ;;  %v15916_v33 = vld [vmem:[%s14411_s18 + $0x64] sm:$0xf] }
 0x196   : > { %12868 = vmatmul.mubr.msk.bf16.gmra.mrb[24].mxu0 %vm830_vm3, %v18385_v38  ;;  %v15771_v38 = vsel %vm14762_vm6, %v11765_v20, %v4741_v45 }
 0x197   : > { %12871 = vmatprep.mubr.msk.bf16.mxu0 %vm830_vm3, %v11566_v30  ;;  %v3923_v30 = vrot.slane %v3921_v28, 4 }
 0x19e   : > { %12872 = vmatmul.mubr.msk.bf16.gmra.mrb[28].mxu0 %vm830_vm3, %v18388_v0  ;;  %v3945_v0 = vshrl.u32 %v15763_v54, 16 }
 0x19f   : > { %12883 = vmatprep.mubr.msk.bf16.mxu0 %vm830_vm3, %v14121_v39  ;;  %v14134_v39 = vld [vmem:[%s14411_s18 + $0x90] sm:$0xff]  }
 0x1a0   : > { %v3947_v11 = vrot.slane %v3945_v0, 4  ;;  %v3993_v0 = vshrl.u32 %v15809_v24, 16 }
 0x1a6   : > { %12884 = vmatmul.mubr.msk.bf16.vlgmr.msra.gmra.mrb[0].mxu0 %vm830_vm3, %v14123_v14  ;;  %v11662_v14 = vld [vmem:[%s14411_s18 + $0x30] sm:$0xf] }
 0x1a7   : > { %12916 = vmatpush3.bf16.msra.mxu0 %v14122_v7  ;;  %12887 = vmatprep.mubr.msk.bf16.mxu0 %vm830_vm3, %v14124_v32  ;;  %v14128_v7 = vld [vmem:[%s14411_s18 + $0x54] sm:$0xff]   ;;  %v3956_v48 = vshrl.u32 %v11662_v14, 16  ;;  %v3959_v21 = vshll.u32 %v11662_v14, 16  ;;  %v3948_v14 = vor.u32 %v3947_v11, %v15802_v16  ;;  %v3982_v11 = vrot.slane %v3980_v43, 4 }
 0x1a8   : > { %12917 = vmatprep.subr.bf16.mxu0 %v14127_v6  ;;  %v11671_v32 = vld [vmem:[%s14411_s18 + $0x54] sm:$0xf] }
 0x1a9   : > { %v3958_v46 = vrot.slane %v3956_v48, 4  ;;  %v3961_v20 = vrot.slane %v3959_v21, 5  ;;  %v11753_v21 = vld [vmem:[%s14411_s18 + $0xb4] sm:$0xe] }
 0x1ab   : > { %12918 = vmatpush3.bf16.msra.mxu0 %v14127_v6  ;;  %v3927_v6 = vshll.u32 %v15767_v15, 16 }
 0x1ac   : > { %12919 = vmatprep.subr.bf16.mxu0 %v14132_v56 }
 0x1ad   : > { %v3929_v44 = vrot.slane %v3927_v6, 5  ;;  %v11668_v6 = vld [vmem:[%s14411_s18 + $0x48] sm:$0xf] }
 0x1ae   : > { %12888 = vmatmul.mubr.msk.bf16.gmra.mrb[4].mxu0 %vm830_vm3, %v14125_v52  ;;  %v3914_v52 = vor.u32 %v3913_v22, %v3910_v23  ;;  %v15824_v22 = vld [vmem:[%s14411_s18 + $0x38] sm:$0x1] }
 0x1af   : > { %12891 = vmatprep.mubr.msk.bf16.mxu0 %vm830_vm3, %v14126_v49  ;;  %12920 = vmatpush3.bf16.msra.mxu0 %v14132_v56  ;;  %v15785_v56 = vld [vmem:[%s14411_s18 + $0x2c] sm:$0x1]  ;;  %v3924_v49 = vor.u32 %v3923_v30, %v15760_v34  ;;  %v3989_v30 = vshll.u32 %v15809_v24, 16  ;;  %v3975_v48 = vshll.u32 %v15824_v22, 16 }
 0x1b0   : > { %12921 = vmatprep.subr.bf16.mxu0 %v14137_v25  ;;  %v3915_v57 = vrot.slane %v3914_v52, 4  ;;  %v15838_v52 = vld [vmem:[%s14411_s18 + $0xb8] sm:$0xf] }
 0x1b1   : > { %v3925_v28 = vrot.slane %v3924_v49, 4  ;;  %v15841_v49 = vld [vmem:[%s14411_s18 + $0xbc] sm:$0x1] }
 0x1b3   : > { %12922 = vmatpush3.bf16.msra.mxu0 %v14137_v25  ;;  %v3938_v25 = vor.u32 %v3937_v50, %v3934_v60  ;;  %v3930_v43 = vsel %vm14446_vm2, %v3925_v28, %v3929_v44  ;;  %v15872_v60 = vrot.slane %v3975_v48, 5 }
 0x1b4   : > { %12955 = vmatprep.subr.bf16.mxu0 %v15704_v4 }
 0x1b5   : > { %v15817_v45 = vrot.slane %v3938_v25, 4  ;;  %v3962_v25 = vor.u32 %v3961_v20, %v3958_v46  ;;  %v14138_v46 = vld [vmem:[%s14411_s18 + $0xb4] sm:$0xff]   ;;  %v3920_v20 = vsel %vm14446_vm2, %v3915_v57, %v15760_v34 }
 0x1b6   : > { %12892 = vmatmul.mubr.msk.bf16.gmra.mrb[8].mxu0 %vm830_vm3, %v14128_v7  ;;  %v11751_v7 = vld [vmem:[%s14411_s18 + $0x9c] sm:$0xe] }
 0x1b7   : > { %12895 = vmatprep.mubr.msk.bf16.mxu0 %vm830_vm3, %v14129_v17  ;;  %v4755_v17 = vrot.slane %v15793_v37, 5  ;;  %v11767_v36 = vrot.slane %v11751_v7, 9  ;;  %v4769_v7 = vrot.slane %v15838_v52, 5 }
 0x1b9   : > { %v4757_v63 = vrot.slane %v4755_v17, 4  ;;  %v15814_v59 = vsel %vm14762_vm6, %v11767_v36, %v4755_v17  ;;  %v4772_v17 = vrot.slane %v15841_v49, 5  ;;  %v15851_v36 = vrot.slane %v3989_v30, 5 }
 0x1ba   : > { %18390 = vst [vmem:[#allocation4_spill] sm:$0xff] %v15814_v59  ;;  %v4037_v59 = vshll.u32 %v15692_v1, 16 }
 0x1bb   : > { %v15821_v23 = vsel %vm14762_vm6, %v4757_v63, %v4758_v58  ;;  %v15849_v58 = vld [vmem:[%s14411_s18 + $0x44] sm:$0x1]  ;;  %v15855_v63 = vld [vmem:[%s14411_s18 + $0x4c] sm:$0xf] }
 0x1bc   : > { %18391 = vst [vmem:[#allocation5_spill] sm:$0xff] %v15821_v23  ;;  %v3999_v57 = vshll.u32 %v15849_v58, 16  ;;  %v4013_v28 = vshll.u32 %v15855_v63, 16  ;;  %v4017_v44 = vshrl.u32 %v15855_v63, 16  ;;  %v14140_v23 = vld [vmem:[%s14411_s18 + $0xcc] sm:$0xff]  }
 0x1be   : > { %12896 = vmatmul.mubr.msk.bf16.gmra.mrb[12].mxu0 %vm830_vm3, %v14130_v5  ;;  %v3951_v5 = vshll.u32 %v15785_v56, 16 }
 0x1bf   : > { %12899 = vmatprep.mubr.msk.bf16.mxu0 %vm830_vm3, %v14131_v9  ;;  %v3969_v9 = vshrl.u32 %v15790_v41, 16 }
 0x1c0   : > { %v15829_v50 = vrot.slane %v3951_v5, 5  ;;  %v11769_v5 = vrot.slane %v11753_v21, 9  ;;  %v14139_v21 = vld [vmem:[%s14411_s18 + $0xc0] sm:$0xff]  }
 0x1c1   : > { %v3971_v61 = vrot.slane %v3969_v9, 4  ;;  %v3995_v9 = vrot.slane %v3993_v0, 4  ;;  %v15870_v0 = vrot.slane %v3962_v25, 4 }
 0x1c2   : > { %v15865_v30 = vsel %vm14762_vm6, %v11769_v5, %v4769_v7 }
 0x1c3   : > { %18392 = vst [vmem:[#allocation6_spill] sm:$0xff] %v15865_v30  ;;  %v3996_v48 = vor.u32 %v3995_v9, %v15851_v36  ;;  %v11755_v9 = vld [vmem:[%s14411_s18 + $0xcc] sm:$0xe] }
 0x1c6   : > { %12900 = vmatmul.mubr.msk.bf16.gmra.mrb[16].mxu0 %vm830_vm3, %v14133_v12  ;;  %v3983_v12 = vshll.u32 %v11665_v2, 16 }
 0x1c7   : > { %12903 = vmatprep.mubr.msk.bf16.mxu0 %vm830_vm3, %v14134_v39  ;;  %v15831_v39 = vrot.slane %v3965_v55, 5 }
 0x1c8   : > { %v3985_v2 = vrot.slane %v3983_v12, 5  ;;  %v4007_v12 = vshll.u32 %v11668_v6, 16 }
 0x1c9   : > { %v3972_v55 = vor.u32 %v3971_v61, %v15831_v39  ;;  %v15868_v61 = vrot.slane %v3948_v14, 4  ;;  %v11771_v14 = vrot.slane %v11755_v9, 9 }
 0x1ca   : > { %v3986_v25 = vor.u32 %v3985_v2, %v3982_v11  ;;  %v4009_v5 = vrot.slane %v4007_v12, 5  ;;  %v3944_v11 = vsel %vm14446_vm2, %v15817_v45, %v15802_v16  ;;  %v4031_v12 = vshll.u32 %v11671_v32, 16 }
 0x1cb   : > { %v3954_v2 = vsel %vm14446_vm2, %v15868_v61, %v15829_v50  ;;  %v3997_v45 = vrot.slane %v3996_v48, 4 }
 0x1cc   : > { %v3987_v16 = vrot.slane %v3986_v25, 4 }
 0x1ce   : > { %12904 = vmatmul.mubr.msk.bf16.gmra.mrb[20].mxu0 %vm830_vm3, %v14135_v8  ;;  %v4004_v8 = vshrl.u32 %v11668_v6, 16  ;;  %v15884_v6 = vrot.slane %v3972_v55, 4  ;;  %v15904_v55 = vld [vmem:[%s14411_s18 + $0x50] sm:$0x1] }
 0x1cf   : > { %12907 = vmatprep.mubr.msk.bf16.mxu0 %vm830_vm3, %v14136_v62  ;;  %v4771_v62 = vrot.slane %v4769_v7, 4  ;;  %v4023_v61 = vshll.u32 %v15904_v55, 16 }
 0x1d0   : > { %v4006_v7 = vrot.slane %v4004_v8, 4  ;;  %v4783_v8 = vrot.slane %v15889_v31, 5 }
 0x1d1   : > { %v15877_v34 = vsel %vm14762_vm6, %v4771_v62, %v4772_v17  ;;  %v11704_v17 = vcombine.low %v3920_v20, %v3930_v43  ;;  %v4028_v62 = vshrl.u32 %v11671_v32, 16  ;;  %v15909_v20 = vrot.slane %v4013_v28, 5 }
 0x1d2   : > { %18393 = vst [vmem:[#allocation7_spill] sm:$0xff] %v15877_v34  ;;  %v4019_v43 = vrot.slane %v4017_v44, 4  ;;  %v4001_v34 = vrot.slane %v3999_v57, 5  ;;  %v4785_v30 = vrot.slane %v4783_v8, 4  ;;  %v4010_v50 = vor.u32 %v4009_v5, %v4006_v7 }
 0x1d3   : > { %v15920_v28 = vsel %vm14762_vm6, %v11771_v14, %v4783_v8  ;;  %v4041_v32 = vshrl.u32 %v15692_v1, 16  ;;  %v4030_v7 = vrot.slane %v4028_v62, 4  ;;  %v4033_v5 = vrot.slane %v4031_v12, 5 }
 0x1d4   : > { %18394 = vst [vmem:[#allocation8_spill] sm:$0xff] %v15920_v28  ;;  %v4020_v48 = vor.u32 %v4019_v43, %v15909_v20  ;;  %v3968_v14 = vsel %vm14446_vm2, %v15870_v0, %v15831_v39  ;;  %v3978_v1 = vsel %vm14446_vm2, %v15884_v6, %v15872_v60  ;;  %v4065_v8 = vshrl.u32 %v15916_v33, 16 }
 0x1d5   : > { %v3992_v62 = vsel %vm14446_vm2, %v3987_v16, %v15851_v36  ;;  %v4002_v39 = vsel %vm14446_vm2, %v3997_v45, %v4001_v34  ;;  %v4011_v0 = vrot.slane %v4010_v50, 4  ;;  %v15947_v43 = vrot.slane %v4037_v59, 5  ;;  %v15952_v16 = vld [vmem:[%s14411_s18 + $0x68] sm:$0x1] }
 0x1d6   : > { %12908 = vmatmul.mubr.msk.bf16.gmra.mrb[24].mxu0 %vm830_vm3, %v14138_v46  ;;  %v4786_v46 = vrot.slane %v15892_v47, 5  ;;  %v4043_v60 = vrot.slane %v4041_v32, 4  ;;  %v4047_v6 = vshll.u32 %v15695_v40, 16  ;;  %v4021_v9 = vrot.slane %v4020_v48, 4  ;;  %v15966_v48 = vld [vmem:[%s14411_s18 + $0x7c] sm:$0xf] }
 0x1d7   : > { %12911 = vmatprep.mubr.msk.bf16.mxu0 %vm830_vm3, %v14139_v21  ;;  %v11674_v21 = vld [vmem:[%s14411_s18 + $0x60] sm:$0xf]  ;;  %v11705_v36 = vcombine.low %v3944_v11, %v3954_v2  ;;  %v4067_v59 = vrot.slane %v4065_v8, 4  ;;  %v11707_v50 = vcombine.low %v3992_v62, %v4002_v39  ;;  %v4085_v40 = vshll.u32 %v15721_v18, 16 }
 0x1d8   : > { %v4052_v44 = vshrl.u32 %v11674_v21, 16  ;;  %v4055_v25 = vshll.u32 %v11674_v21, 16  ;;  %v15925_v57 = vsel %vm14762_vm6, %v4785_v30, %v4786_v46  ;;  %v4061_v30 = vshll.u32 %v15916_v33, 16  ;;  %v11677_v46 = vld [vmem:[%s14411_s18 + $0x6c] sm:$0xf] }
 0x1d9   : > { %18395 = vst [vmem:[#allocation9_spill] sm:$0xff] %v15925_v57  ;;  %v4034_v57 = vor.u32 %v4033_v5, %v4030_v7  ;;  %v4076_v28 = vshrl.u32 %v11677_v46, 16  ;;  %v4079_v45 = vshll.u32 %v11677_v46, 16  ;;  %v4089_v32 = vshrl.u32 %v15721_v18, 16  ;;  %v14142_v5 = vld [vmem:[%s18246_s1 + $0x108] sm:$0xff]  }
 0x1da   : > { %v4054_v12 = vrot.slane %v4052_v44, 4  ;;  %v4057_v21 = vrot.slane %v4055_v25, 5  ;;  %v15954_v34 = vrot.slane %v4061_v30, 5  ;;  %v11680_v44 = vld [vmem:[%s14411_s18 + $0x78] sm:$0xf]  ;;  %v4044_v11 = vor.u32 %v4043_v60, %v15947_v43 }
 0x1db   : > { %v15963_v2 = vrot.slane %v4047_v6, 5  ;;  %v4035_v18 = vrot.slane %v4034_v57, 4  ;;  %v11683_v30 = vld [vmem:[%s14411_s18 + $0x84] sm:$0xf]  ;;  %v4081_v8 = vrot.slane %v4079_v45, 5  ;;  %v4100_v46 = vshrl.u32 %v11680_v44, 16 }
 0x1dc   : > { %v4058_v25 = vor.u32 %v4057_v21, %v4054_v12  ;;  %v4103_v62 = vshll.u32 %v11680_v44, 16  ;;  %v15977_v39 = vrot.slane %v4085_v40, 5  ;;  %v4113_v60 = vshrl.u32 %v15966_v48, 16 }
 0x1dd   : > { %v4095_v6 = vshll.u32 %v15724_v35, 16  ;;  %v4124_v12 = vshrl.u32 %v11683_v30, 16  ;;  %v4102_v40 = vrot.slane %v4100_v46, 4 }
 0x1de   : > { %12912 = vmatmul.mubr.msk.bf16.gmra.mrb[28].mxu0 %vm830_vm3, %v14140_v23  ;;  %v4025_v23 = vrot.slane %v4023_v61, 5  ;;  %v4016_v61 = vsel %vm14446_vm2, %v4011_v0, %v15909_v20  ;;  %v4068_v20 = vor.u32 %v4067_v59, %v15954_v34  ;;  %v4091_v0 = vrot.slane %v4089_v32, 4 }
 0x1df   : > { %12923 = vmatprep.mubr.msk.bf16.mxu0 %vm830_vm3, %v11704_v17  ;;  %v11706_v17 = vcombine.low %v3968_v14, %v3978_v1  ;;  %v4071_v14 = vshll.u32 %v15952_v16, 16  ;;  %v4078_v1 = vrot.slane %v4076_v28, 4  ;;  %v4045_v28 = vrot.slane %v4044_v11, 4  ;;  %v15991_v11 = vld [vmem:[%s14411_s18 + $0x80] sm:$0x1] }
 0x1e0   : > { %v4026_v7 = vsel %vm14446_vm2, %v4021_v9, %v4025_v23  ;;  %v4109_v9 = vshll.u32 %v15966_v48, 16  ;;  %v4059_v57 = vrot.slane %v4058_v25, 4  ;;  %v14143_v23 = vld [vmem:[%s18246_s1 + $0x110] sm:$0xff]   ;;  %v4133_v59 = vshll.u32 %v15751_v26, 16 }
 0x1e1   : > { %v4073_v21 = vrot.slane %v4071_v14, 5  ;;  %v4069_v45 = vrot.slane %v4068_v20, 4  ;;  %v4105_v32 = vrot.slane %v4103_v62, 5  ;;  %v11708_v44 = vcombine.low %v4016_v61, %v4026_v7  ;;  %v11686_v7 = vld [vmem:[%s14411_s18 + $0x90] sm:$0xf] }
 0x1e2   : > { %v4092_v35 = vor.u32 %v4091_v0, %v15977_v39  ;;  %v15993_v25 = vrot.slane %v4109_v9, 5  ;;  %v4115_v14 = vrot.slane %v4113_v60, 4  ;;  %v4126_v61 = vrot.slane %v4124_v12, 4  ;;  %v16010_v0 = vld [vmem:[%s14411_s18 + $0x94] sm:$0xf] }
 0x1e3   : > { %v4064_v20 = vsel %vm14446_vm2, %v4059_v57, %v15954_v34  ;;  %v16007_v46 = vrot.slane %v4133_v59, 5  ;;  %v4119_v9 = vshll.u32 %v15991_v11, 16  ;;  %v4151_v57 = vshll.u32 %v11686_v7, 16 }
 0x1e4   : > { %v4093_v34 = vrot.slane %v4092_v35, 4  ;;  %v4116_v60 = vor.u32 %v4115_v14, %v15993_v25  ;;  %v4161_v12 = vshrl.u32 %v16010_v0, 16 }
 0x1e6   : > { %12924 = vmatmul.mubr.msk.bf16.vlgmr.msra.gmra.mrb[0].mxu0 %vm830_vm3, %v11705_v36  ;;  %v4127_v36 = vshll.u32 %v11683_v30, 16  ;;  %v4040_v30 = vsel %vm14446_vm2, %v4035_v18, %v15947_v43  ;;  %v14144_v43 = vld [vmem:[%s18246_s1 + $0x118] sm:$0xff]   ;;  %v4106_v18 = vor.u32 %v4105_v32, %v4102_v40  ;;  %v4121_v40 = vrot.slane %v4119_v9, 5 }
 0x1e7   : > { %12956 = vmatpush3.bf16.msra.mxu0 %v15704_v4  ;;  %12927 = vmatprep.mubr.msk.bf16.mxu0 %vm830_vm3, %v11706_v17  ;;  %v4137_v4 = vshrl.u32 %v15751_v26, 16  ;;  %v4082_v17 = vor.u32 %v4081_v8, %v4078_v1  ;;  %v4050_v26 = vsel %vm14446_vm2, %v4045_v28, %v15963_v2  ;;  %v16001_v1 = vrot.slane %v4095_v6, 5  ;;  %v16030_v32 = vld [vmem:[%s14411_s18 + $0x98] sm:$0x1] }
 0x1e8   : > { %12957 = vmatprep.subr.bf16.mxu0 %v14142_v5  ;;  %v4129_v8 = vrot.slane %v4127_v36, 5  ;;  %v4074_v2 = vsel %vm14446_vm2, %v4069_v45, %v4073_v21  ;;  %v4148_v28 = vshrl.u32 %v11686_v7, 16  ;;  %v4157_v6 = vshll.u32 %v16010_v0, 16 }
 0x1e9   : > { %v4139_v62 = vrot.slane %v4137_v4, 4  ;;  %v11709_v21 = vcombine.low %v4040_v30, %v4050_v26  ;;  %v11689_v4 = vld [vmem:[%s14411_s18 + $0x9c] sm:$0xf]  ;;  %v11710_v45 = vcombine.low %v4064_v20, %v4074_v2  ;;  %v4117_v35 = vrot.slane %v4116_v60, 4 }
 0x1ea   : > { %v4130_v36 = vor.u32 %v4129_v8, %v4126_v61  ;;  %v4150_v14 = vrot.slane %v4148_v28, 4  ;;  %v4153_v30 = vrot.slane %v4151_v57, 5  ;;  %v16036_v26 = vrot.slane %v4157_v6, 5  ;;  %v16039_v8 = vld [vmem:[%s14411_s18 + $0xac] sm:$0xf] }
 0x1eb   : > { %12958 = vmatpush3.bf16.msra.mxu0 %v14142_v5  ;;  %v4083_v5 = vrot.slane %v4082_v17, 4  ;;  %v4140_v59 = vor.u32 %v4139_v62, %v16007_v46  ;;  %v4163_v61 = vrot.slane %v4161_v12, 4  ;;  %v4172_v7 = vshrl.u32 %v11689_v4, 16 }
 0x1ec   : > { %12959 = vmatprep.subr.bf16.mxu0 %v14143_v23  ;;  %v4175_v20 = vshll.u32 %v11689_v4, 16  ;;  %v4205_v28 = vshll.u32 %v16039_v8, 16  ;;  %v4209_v57 = vshrl.u32 %v16039_v8, 16  ;;  %v4154_v6 = vor.u32 %v4153_v30, %v4150_v14  ;;  %v16062_v14 = vld [vmem:[%s14411_s18 + $0xb0] sm:$0x1] }
 0x1ed   : > { %v4088_v17 = vsel %vm14446_vm2, %v4083_v5, %v15977_v39  ;;  %v4131_v39 = vrot.slane %v4130_v36, 4  ;;  %v4141_v62 = vrot.slane %v4140_v59, 4  ;;  %v4167_v5 = vshll.u32 %v16030_v32, 16 }
 0x1ee   : > { %12928 = vmatmul.mubr.msk.bf16.gmra.mrb[4].mxu0 %vm830_vm3, %v11707_v50  ;;  %v4143_v50 = vshll.u32 %v15754_v13, 16  ;;  %v11692_v13 = vld [vmem:[%s14411_s18 + $0xa8] sm:$0xf]  ;;  %v4174_v12 = vrot.slane %v4172_v7, 4  ;;  %v4207_v30 = vrot.slane %v4205_v28, 5  ;;  %v4155_v7 = vrot.slane %v4154_v6, 4 }
 0x1ef   : > { %12931 = vmatprep.mubr.msk.bf16.mxu0 %vm830_vm3, %v11708_v44  ;;  %12960 = vmatpush3.bf16.msra.mxu0 %v14143_v23  ;;  %v4107_v23 = vrot.slane %v4106_v18, 4  ;;  %v4098_v44 = vsel %vm14446_vm2, %v4093_v34, %v16001_v1  ;;  %v4181_v18 = vshll.u32 %v15793_v37, 16  ;;  %v4185_v1 = vshrl.u32 %v15793_v37, 16 }
 0x1f0   : > { %12961 = vmatprep.subr.bf16.mxu0 %v14144_v43  ;;  %v4145_v2 = vrot.slane %v4143_v50, 5  ;;  %v4196_v9 = vshrl.u32 %v11692_v13, 16  ;;  %v4199_v34 = vshll.u32 %v11692_v13, 16  ;;  %v4164_v37 = vor.u32 %v4163_v61, %v16036_v26  ;;  %v11695_v61 = vld [vmem:[%s14411_s18 + $0xb4] sm:$0xf] }
 0x1f1   : > { %v4112_v60 = vsel %vm14446_vm2, %v4107_v23, %v15993_v25  ;;  %v4136_v25 = vsel %vm14446_vm2, %v4131_v39, %v16007_v46  ;;  %v4169_v59 = vrot.slane %v4167_v5, 5  ;;  %v16059_v50 = vrot.slane %v4181_v18, 5 }
 0x1f2   : > { %v4146_v36 = vsel %vm14446_vm2, %v4141_v62, %v4145_v2  ;;  %v4187_v4 = vrot.slane %v4185_v1, 4  ;;  %v4198_v23 = vrot.slane %v4196_v9, 4  ;;  %v4211_v13 = vrot.slane %v4209_v57, 4 }
 0x1f3   : > { %12962 = vmatpush3.bf16.msra.mxu0 %v14144_v43  ;;  %v4122_v43 = vsel %vm14446_vm2, %v4117_v35, %v4121_v40  ;;  %v4201_v40 = vrot.slane %v4199_v34, 5  ;;  %v4165_v46 = vrot.slane %v4164_v37, 4  ;;  %v4191_v39 = vshll.u32 %v15796_v19, 16 }
 0x1f4   : > { %v11712_v35 = vcombine.low %v4112_v60, %v4122_v43  ;;  %v11713_v62 = vcombine.low %v4136_v25, %v4146_v36  ;;  %v4188_v2 = vor.u32 %v4187_v4, %v16059_v50  ;;  %v4215_v18 = vshll.u32 %v16062_v14, 16 }
 0x1f5   : > { %v4202_v5 = vor.u32 %v4201_v40, %v4198_v23  ;;  %v4220_v1 = vshrl.u32 %v11695_v61, 16  ;;  %v4212_v9 = vor.u32 %v4211_v13, %v4207_v30  ;;  %v4223_v34 = vshll.u32 %v11695_v61, 16 }
 0x1f6   : > { %12932 = vmatmul.mubr.msk.bf16.gmra.mrb[8].mxu0 %vm830_vm3, %v11709_v21  ;;  %v4177_v21 = vrot.slane %v4175_v20, 5  ;;  %v4229_v60 = vshll.u32 %v15838_v52, 16  ;;  %v4233_v43 = vshrl.u32 %v15838_v52, 16  ;;  %v4160_v19 = vsel %vm14446_vm2, %v4155_v7, %v16036_v26 }
 0x1f7   : > { %12935 = vmatprep.mubr.msk.bf16.mxu0 %vm830_vm3, %v11710_v45  ;;  %v11711_v45 = vcombine.low %v4088_v17, %v4098_v44  ;;  %v11698_v17 = vld [vmem:[%s14411_s18 + $0xc0] sm:$0xf]  ;;  %v16070_v44 = vld [vmem:[%s14411_s18 + $0xc4] sm:$0xf]  ;;  %v4170_v28 = vsel %vm14446_vm2, %v4165_v46, %v4169_v59  ;;  %v4193_v6 = vrot.slane %v4191_v39, 5  ;;  %v4189_v36 = vrot.slane %v4188_v2, 4 }
 0x1f8   : > { %v4178_v20 = vor.u32 %v4177_v21, %v4174_v12  ;;  %v4244_v37 = vshrl.u32 %v11698_v17, 16  ;;  %v4247_v12 = vshll.u32 %v11698_v17, 16  ;;  %v4253_v21 = vshll.u32 %v16070_v44, 16 }
 0x1f9   : > { %v4257_v25 = vshrl.u32 %v16070_v44, 16  ;;  %v4203_v52 = vrot.slane %v4202_v5, 4  ;;  %v4217_v4 = vrot.slane %v4215_v18, 5  ;;  %v4222_v23 = vrot.slane %v4220_v1, 4  ;;  %v16091_v18 = vld [vmem:[%s14411_s18 + $0xc8] sm:$0x1] }
 0x1fa   : > { %v4179_v57 = vrot.slane %v4178_v20, 4  ;;  %v4213_v40 = vrot.slane %v4212_v9, 4  ;;  %v4231_v26 = vrot.slane %v4229_v60, 5  ;;  %v11714_v13 = vcombine.low %v4160_v19, %v4170_v28  ;;  %v11701_v20 = vld [vmem:[%s14411_s18 + $0xcc] sm:$0xf] }
 0x1fb   : > { %v4246_v59 = vrot.slane %v4244_v37, 4  ;;  %v4249_v61 = vrot.slane %v4247_v12, 5  ;;  %v4255_v7 = vrot.slane %v4253_v21, 5  ;;  %v4259_v46 = vrot.slane %v4257_v25, 4 }
 0x1fc   : > { %v4184_v39 = vsel %vm14446_vm2, %v4179_v57, %v16059_v50  ;;  %v4194_v2 = vsel %vm14446_vm2, %v4189_v36, %v4193_v6  ;;  %v4239_v5 = vshll.u32 %v15841_v49, 16  ;;  %v4208_v1 = vsel %vm14446_vm2, %v4203_v52, %v4207_v30 }
 0x1fd   : > { %v4218_v17 = vsel %vm14446_vm2, %v4213_v40, %v4217_v4  ;;  %v4268_v50 = vshrl.u32 %v11701_v20, 16  ;;  %v4271_v60 = vshll.u32 %v11701_v20, 16  ;;  %v4281_v49 = vshrl.u32 %v15889_v31, 16 }
 0x1fe   : > { %12936 = vmatmul.mubr.msk.bf16.gmra.mrb[12].mxu0 %vm830_vm3, %v11711_v45  ;;  %v4225_v45 = vrot.slane %v4223_v34, 5  ;;  %v4250_v19 = vor.u32 %v4249_v61, %v4246_v59  ;;  %v4260_v28 = vor.u32 %v4259_v46, %v4255_v7  ;;  %v11715_v57 = vcombine.low %v4184_v39, %v4194_v2  ;;  %v11740_v39 = vld [vmem:[%s14411_s18 + $0x18] sm:$0xe] }
 0x1ff   : > { %12939 = vmatprep.mubr.msk.bf16.mxu0 %vm830_vm3, %v11712_v35  ;;  %v4235_v35 = vrot.slane %v4233_v43, 4  ;;  %v4277_v43 = vshll.u32 %v15889_v31, 16  ;;  %v11716_v6 = vcombine.low %v4208_v1, %v4218_v17  ;;  %v4241_v12 = vrot.slane %v4239_v5, 5 }
 0x200   : > { %v4226_v9 = vor.u32 %v4225_v45, %v4222_v23  ;;  %v4270_v21 = vrot.slane %v4268_v50, 4  ;;  %v4273_v25 = vrot.slane %v4271_v60, 5  ;;  %v4283_v52 = vrot.slane %v4281_v49, 4  ;;  %v11741_v49 = vld [vmem:[%s14411_s18 + $0x24] sm:$0xe] }
 0x201   : > { %v4236_v34 = vor.u32 %v4235_v35, %v4231_v26  ;;  %v4279_v36 = vrot.slane %v4277_v43, 5  ;;  %v4251_v4 = vrot.slane %v4250_v19, 4  ;;  %v4261_v23 = vrot.slane %v4260_v28, 4  ;;  %v11742_v19 = vld [vmem:[%s14411_s18 + $0x30] sm:$0xe] }
 0x202   : > { %v4227_v30 = vrot.slane %v4226_v9, 4  ;;  %v4274_v35 = vor.u32 %v4273_v25, %v4270_v21  ;;  %v4287_v59 = vshll.u32 %v15892_v47, 16  ;;  %v4678_v20 = vrot.slane %v15733_v27, 5 }
 0x203   : > { %v4237_v37 = vrot.slane %v4236_v34, 4  ;;  %v4256_v61 = vsel %vm14446_vm2, %v4251_v4, %v4255_v7  ;;  %v11756_v9 = vrot.slane %v11740_v39, 9  ;;  %v4681_v47 = vrot.slane %v15767_v15, 5  ;;  %v11744_v4 = vld [vmem:[%s14411_s18 + $0x48] sm:$0xe] }
 0x204   : > { %v4232_v31 = vsel %vm14446_vm2, %v4227_v30, %v4231_v26  ;;  %v4275_v5 = vrot.slane %v4274_v35, 4  ;;  %v4289_v17 = vrot.slane %v4287_v59, 5  ;;  %v4680_v34 = vrot.slane %v4678_v20, 4 }
 0x205   : > { %v4242_v45 = vsel %vm14446_vm2, %v4237_v37, %v4241_v12  ;;  %v4685_v50 = vrot.slane %v15763_v54, 5  ;;  %v4679_v60 = vsel %vm14762_vm6, %v11756_v9, %v4678_v20  ;;  %v4692_v15 = vrot.slane %v15790_v41, 5 }
 0x206   : > { %12940 = vmatmul.mubr.msk.bf16.gmra.mrb[16].mxu0 %vm830_vm3, %v11713_v62  ;;  %v4263_v62 = vshll.u32 %v16091_v18, 16  ;;  %v11717_v26 = vcombine.low %v4232_v31, %v4242_v45  ;;  %v4280_v7 = vsel %vm14446_vm2, %v4275_v5, %v4279_v36  ;;  %v4682_v43 = vsel %vm14762_vm6, %v4680_v34, %v4681_v47  ;;  %v11748_v34 = vld [vmem:[%s14411_s18 + $0x78] sm:$0xe] }
 0x207   : > { %12943 = vmatprep.mubr.msk.bf16.mxu0 %vm830_vm3, %v11714_v13  ;;  %v4284_v13 = vor.u32 %v4283_v52, %v4279_v36  ;;  %v4688_v30 = vrot.slane %v15785_v56, 5  ;;  %v11758_v37 = vrot.slane %v11742_v19, 9  ;;  %v4694_v54 = vrot.slane %v4692_v15, 4  ;;  %v11743_v52 = vld [vmem:[%s14411_s18 + $0x3c] sm:$0xe] }
 0x208   : > { %v4265_v40 = vrot.slane %v4263_v62, 5  ;;  %v11772_v62 = vcombine.low %v4679_v60, %v4682_v43  ;;  %v4695_v12 = vrot.slane %v15824_v22, 5  ;;  %v4699_v25 = vrot.slane %v15809_v24, 5 }
 0x209   : > { %v4285_v1 = vrot.slane %v4284_v13, 4  ;;  %v4693_v36 = vsel %vm14762_vm6, %v11758_v37, %v4692_v15  ;;  %v4706_v22 = vrot.slane %v15855_v63, 5  ;;  %v11759_v31 = vrot.slane %v11743_v52, 9 }
 0x20a   : > { %v4266_v46 = vsel %vm14446_vm2, %v4261_v23, %v4265_v40  ;;  %v4696_v56 = vsel %vm14762_vm6, %v4694_v54, %v4695_v12  ;;  %v4701_v45 = vrot.slane %v4699_v25, 4  ;;  %v4702_v35 = vrot.slane %v15849_v58, 5 }
 0x20b   : > { %v11718_v2 = vcombine.low %v4256_v61, %v4266_v46  ;;  %v4290_v27 = vsel %vm14446_vm2, %v4285_v1, %v4289_v17  ;;  %v11774_v40 = vcombine.low %v4693_v36, %v4696_v56  ;;  %v11760_v13 = vrot.slane %v11744_v4, 9  ;;  %v18400_v56 = vld [vmem:[#allocation4_spill] sm:$0xff] }
 0x20c   : > { %v11719_v28 = vcombine.low %v4280_v7, %v4290_v27  ;;  %v4708_v59 = vrot.slane %v4706_v22, 4  ;;  %v4709_v24 = vrot.slane %v15904_v55, 5  ;;  %v4700_v61 = vsel %vm14762_vm6, %v11759_v31, %v4699_v25  ;;  %v11746_v55 = vld [vmem:[%s14411_s18 + $0x60] sm:$0xe] }
 0x20d   : > { %v4703_v63 = vsel %vm14762_vm6, %v4701_v45, %v4702_v35  ;;  %v4707_v46 = vsel %vm14762_vm6, %v11760_v13, %v4706_v22  ;;  %v4720_v20 = vrot.slane %v15916_v33, 5  ;;  %v4723_v1 = vrot.slane %v15952_v16, 5  ;;  %v18407_v45 = vld [vmem:[#allocation9_spill] sm:$0xff]  ;;  %v14145_v13 = vld [vmem:[%s18248_s3 + $0x40] sm:$0xff]  }
 0x20e   : > { %12944 = vmatmul.mubr.msk.bf16.gmra.mrb[20].mxu0 %vm830_vm3, %v11715_v57  ;;  %v11757_v57 = vrot.slane %v11741_v49, 9  ;;  %v4710_v58 = vsel %vm14762_vm6, %v4708_v59, %v4709_v24  ;;  %v11775_v39 = vcombine.low %v4700_v61, %v4703_v63  ;;  %v4734_v33 = vrot.slane %v15966_v48, 5  ;;  %v11750_v49 = vld [vmem:[%s14411_s18 + $0x90] sm:$0xe]  ;;  %12995 = vmatprep.subr.bf16.mxu1 %v14145_v13  ;;  %v14146_v24 = vld [vmem:[%s18248_s3 + $0x48] sm:$0xff]   ;;  %v14148_v63 = vld [vmem:[%s18248_s3 + $0x58] sm:$0xff]  }
 0x20f   : > { %12947 = vmatprep.mubr.msk.bf16.mxu0 %vm830_vm3, %v11716_v6  ;;  %v4687_v6 = vrot.slane %v4685_v50, 4  ;;  %v4722_v5 = vrot.slane %v4720_v20, 4  ;;  %v11764_v7 = vrot.slane %v11748_v34, 9  ;;  %v18396_v16 = vcombine.low %v15709_v51, %v15714_v42  ;;  %12996 = vmatpush3.bf16.msra.mxu1 %v14145_v13  ;;  %v14147_v61 = vld [vmem:[%s18248_s3 + $0x50] sm:$0xff]  }
 0x210   : > { %v4686_v41 = vsel %vm14762_vm6, %v11757_v57, %v4685_v50  ;;  %v4736_v27 = vrot.slane %v4734_v33, 4  ;;  %v4737_v50 = vrot.slane %v15991_v11, 5  ;;  %v4748_v43 = vrot.slane %v16010_v0, 5  ;;  %v11752_v57 = vld [vmem:[%s14411_s18 + $0xa8] sm:$0xe]  ;;  %12997 = vmatprep.subr.bf16.mxu1 %v14146_v24 }
 0x211   : > { %v4689_v21 = vsel %vm14762_vm6, %v4687_v6, %v4688_v30  ;;  %v4724_v9 = vsel %vm14762_vm6, %v4722_v5, %v4723_v1  ;;  %v4735_v60 = vsel %vm14762_vm6, %v11764_v7, %v4734_v33  ;;  %v11766_v19 = vrot.slane %v11750_v49, 9 }
 0x212   : > { %v11773_v23 = vcombine.low %v4686_v41, %v4689_v21  ;;  %v4738_v48 = vsel %vm14762_vm6, %v4736_v27, %v4737_v50  ;;  %v4750_v11 = vrot.slane %v4748_v43, 4  ;;  %v18397_v51 = vcombine.low %v15737_v10, %v15743_v53  ;;  %v18398_v10 = vld [vmem:[#allocation3_spill] sm:$0xff]  ;;  %v11754_v41 = vld [vmem:[%s14411_s18 + $0xc0] sm:$0xe] }
 0x213   : > { %v11780_v15 = vcombine.low %v4735_v60, %v4738_v48  ;;  %v4749_v42 = vsel %vm14762_vm6, %v11766_v19, %v4748_v43  ;;  %v11768_v30 = vrot.slane %v11752_v57, 9  ;;  %v4765_v37 = vrot.slane %v16062_v14, 5  ;;  %12998 = vmatpush3.bf16.msra.mxu1 %v14146_v24 }
 0x214   : > { %v18399_v53 = vcombine.low %v15771_v38, %v18398_v10  ;;  %v11770_v25 = vrot.slane %v11754_v41, 9  ;;  %v4779_v14 = vrot.slane %v16091_v18, 5  ;;  %v18401_v38 = vld [vmem:[#allocation5_spill] sm:$0xff]  ;;  %v18406_v18 = vld [vmem:[#allocation8_spill] sm:$0xff]  ;;  %v14339_v59 = vmov 0   ;;  %12999 = vmatprep.subr.bf16.mxu1 %v14147_v61 }
 0x215   : > { %v18402_v52 = vcombine.low %v18400_v56, %v18401_v38  ;;  %v18408_v35 = vcombine.low %v18406_v18, %v18407_v45  ;;  %5202 = vst [vmem:[#allocation2 + $0x18] sm:$0xf] %v14339_v59  ;;  %5196 = vst [vmem:[#allocation2] sm:$0xf] %v14339_v59 }
 0x216   : > { %12948 = vmatmul.mubr.msk.bf16.gmra.mrb[24].mxu0 %vm830_vm3, %v11717_v26  ;;  %v11776_v26 = vcombine.low %v4707_v46, %v4710_v58  ;;  %5197 = vst [vmem:[#allocation2 + $0x4] sm:$0xf] %v14339_v59  ;;  %5198 = vst [vmem:[#allocation2 + $0x8] sm:$0x1] %v14339_v59  ;;  %v14149_v46 = vld [vmem:[%s18248_s3 + $0x60] sm:$0xff]   ;;  %v14150_v58 = vld [vmem:[%s18248_s3 + $0x68] sm:$0xff]  }
 0x217   : > { %12951 = vmatprep.mubr.msk.bf16.mxu0 %vm830_vm3, %v11718_v2  ;;  %v11762_v2 = vrot.slane %v11746_v55, 9  ;;  %5199 = vst [vmem:[#allocation2 + $0xc] sm:$0xf] %v14339_v59  ;;  %5200 = vst [vmem:[#allocation2 + $0x10] sm:$0xf] %v14339_v59  ;;  %13000 = vmatpush3.bf16.msra.mxu1 %v14147_v61 }
 0x218   : > { %5201 = vst [vmem:[#allocation2 + $0x14] sm:$0x1] %v14339_v59  ;;  %5203 = vst [vmem:[#allocation2 + $0x1c] sm:$0xf] %v14339_v59  ;;  %13001 = vmatprep.subr.bf16.mxu1 %v14148_v63 }
 0x219   : > { %v4721_v17 = vsel %vm14762_vm6, %v11762_v2, %v4720_v20  ;;  %5204 = vst [vmem:[#allocation2 + $0x20] sm:$0x1] %v14339_v59  ;;  %5205 = vst [vmem:[#allocation2 + $0x24] sm:$0xf] %v14339_v59  ;;  %v14151_v20 = vld [vmem:[%s18248_s3 + $0x70] sm:$0xff]  }
 0x21a   : > { %v11778_v47 = vcombine.low %v4721_v17, %v4724_v9  ;;  %5206 = vst [vmem:[#allocation2 + $0x28] sm:$0xf] %v14339_v59  ;;  %5207 = vst [vmem:[#allocation2 + $0x2c] sm:$0x1] %v14339_v59  ;;  %v14152_v17 = vld [vmem:[%s18248_s3 + $0x78] sm:$0xff]  }
 0x21b   : > { %5208 = vst [vmem:[#allocation2 + $0x30] sm:$0xf] %v14339_v59  ;;  %5209 = vst [vmem:[#allocation2 + $0x34] sm:$0xf] %v14339_v59  ;;  %13002 = vmatpush3.bf16.msra.mxu1 %v14148_v63 }
 0x21c   : > { %5210 = vst [vmem:[#allocation2 + $0x38] sm:$0x1] %v14339_v59  ;;  %5211 = vst [vmem:[#allocation2 + $0x3c] sm:$0xf] %v14339_v59  ;;  %13003 = vmatprep.subr.bf16.mxu1 %v14149_v46  ;;  %v5771_v55 = vld [vmem:[#allocation2] sm:$0xf] }
 0x21d   : > { %5212 = vst [vmem:[#allocation2 + $0x40] sm:$0xf] %v14339_v59  ;;  %5213 = vst [vmem:[#allocation2 + $0x44] sm:$0x1] %v14339_v59  ;;  %v5839_v2 = vshll.u32 %v5771_v55, 16 }
 0x21e   : > { %12952 = vmatmul.mubr.msk.bf16.gmra.mrb[28].mxu0 %vm830_vm3, %v11719_v28  ;;  %v4751_v28 = vrot.slane %v16030_v32, 5  ;;  %5214 = vst [vmem:[#allocation2 + $0x48] sm:$0xf] %v14339_v59  ;;  %5215 = vst [vmem:[#allocation2 + $0x4c] sm:$0xf] %v14339_v59 }
 0x21f   : > { %12963 = vmatprep.mubr.msk.bf16.mxu0 %vm830_vm3, %v11772_v62  ;;  %v4762_v62 = vrot.slane %v16039_v8, 5  ;;  %v4776_v8 = vrot.slane %v16070_v44, 5  ;;  %5216 = vst [vmem:[#allocation2 + $0x50] sm:$0x1] %v14339_v59  ;;  %5217 = vst [vmem:[#allocation2 + $0x54] sm:$0xf] %v14339_v59  ;;  %13004 = vmatpush3.bf16.msra.mxu1 %v14149_v46 }
 0x220   : > { %v4752_v0 = vsel %vm14762_vm6, %v4750_v11, %v4751_v28  ;;  %5218 = vst [vmem:[#allocation2 + $0x58] sm:$0xf] %v14339_v59  ;;  %5219 = vst [vmem:[#allocation2 + $0x5c] sm:$0x1] %v14339_v59  ;;  %13005 = vmatprep.subr.bf16.mxu1 %v14150_v58  ;;  %v5841_v33 = vrot.slane %v5839_v2, 5  ;;  %v16255_v11 = vld [vmem:[%s18248_s3] sm:$0xff]  }
 0x221   : > { %v11782_v6 = vcombine.low %v4749_v42, %v4752_v0  ;;  %v4764_v32 = vrot.slane %v4762_v62, 4  ;;  %v4763_v54 = vsel %vm14762_vm6, %v11768_v30, %v4762_v62  ;;  %v4778_v36 = vrot.slane %v4776_v8, 4  ;;  %5220 = vst [vmem:[#allocation2 + $0x60] sm:$0xf] %v14339_v59  ;;  %5221 = vst [vmem:[#allocation2 + $0x64] sm:$0xf] %v14339_v59 }
 0x222   : > { %v4777_v22 = vsel %vm14762_vm6, %v11770_v25, %v4776_v8  ;;  %5222 = vst [vmem:[#allocation2 + $0x68] sm:$0x1] %v14339_v59  ;;  %5223 = vst [vmem:[#allocation2 + $0x6c] sm:$0xf] %v14339_v59  ;;  %v16261_v28 = vld [vmem:[%s18247_s2] ss:$0 sm:$0xff] }
 0x223   : > { %v4766_v12 = vsel %vm14762_vm6, %v4764_v32, %v4765_v37  ;;  %v4780_v4 = vsel %vm14762_vm6, %v4778_v36, %v4779_v14  ;;  %5224 = vst [vmem:[#allocation2 + $0x70] sm:$0xf] %v14339_v59  ;;  %5225 = vst [vmem:[#allocation2 + $0x74] sm:$0x1] %v14339_v59  ;;  %13006 = vmatpush3.bf16.msra.mxu1 %v14150_v58  ;;  %v5657_v63 = vld [vmem:[#allocation2 + $0xc] sm:$0xf] }
 0x224   : > { %v11784_v21 = vcombine.low %v4763_v54, %v4766_v12  ;;  %v11786_v44 = vcombine.low %v4777_v22, %v4780_v4  ;;  %5226 = vst [vmem:[#allocation2 + $0x78] sm:$0xf] %v14339_v59  ;;  %5227 = vst [vmem:[#allocation2 + $0x7c] sm:$0xf] %v14339_v59  ;;  %13007 = vmatprep.subr.bf16.mxu1 %v14151_v20 }
 0x225   : > { %5228 = vst [vmem:[#allocation2 + $0x80] sm:$0x1] %v14339_v59  ;;  %5229 = vst [vmem:[#allocation2 + $0x84] sm:$0xf] %v14339_v59 }
 0x226   : > { %12964 = vmatmul.mubr.msk.bf16.vlgmr.msra.gmra.mrb[0].mxu0 %vm830_vm3, %v11773_v23  ;;  %v18403_v23 = vld [vmem:[#allocation6_spill] sm:$0xff]  ;;  %5230 = vst [vmem:[#allocation2 + $0x88] sm:$0xf] %v14339_v59  ;;  %5231 = vst [vmem:[#allocation2 + $0x8c] sm:$0x1] %v14339_v59 }
 0x227   : > { %12967 = vmatprep.mubr.msk.bf16.mxu0 %vm830_vm3, %v11774_v40  ;;  %v18404_v40 = vld [vmem:[#allocation7_spill] sm:$0xff]  ;;  %5232 = vst [vmem:[#allocation2 + $0x90] sm:$0xf] %v14339_v59  ;;  %5233 = vst [vmem:[#allocation2 + $0x94] sm:$0xf] %v14339_v59  ;;  %13008 = vmatpush3.bf16.msra.mxu1 %v14151_v20 }
 0x228   : > { %v18405_v31 = vcombine.low %v18403_v23, %v18404_v40  ;;  %5234 = vst [vmem:[#allocation2 + $0x98] sm:$0x1] %v14339_v59  ;;  %5235 = vst [vmem:[#allocation2 + $0x9c] sm:$0xf] %v14339_v59  ;;  %13009 = vmatprep.subr.bf16.mxu1 %v14152_v17 }
 0x229   : > { %5236 = vst [vmem:[#allocation2 + $0xa0] sm:$0xf] %v14339_v59  ;;  %5237 = vst [vmem:[#allocation2 + $0xa4] sm:$0x1] %v14339_v59 }
 0x22a   : > { %5238 = vst [vmem:[#allocation2 + $0xa8] sm:$0xf] %v14339_v59  ;;  %5239 = vst [vmem:[#allocation2 + $0xac] sm:$0xf] %v14339_v59 }
 0x22b   : > { %5240 = vst [vmem:[#allocation2 + $0xb0] sm:$0x1] %v14339_v59  ;;  %5241 = vst [vmem:[#allocation2 + $0xb4] sm:$0xf] %v14339_v59  ;;  %13010 = vmatpush3.bf16.msra.mxu1 %v14152_v17 }
 0x22c   : > { %5242 = vst [vmem:[#allocation2 + $0xb8] sm:$0xf] %v14339_v59  ;;  %5243 = vst [vmem:[#allocation2 + $0xbc] sm:$0x1] %v14339_v59  ;;  %13043 = vmatprep.subr.bf16.mxu1 %v16255_v11 }
 0x22d   : > { %5244 = vst [vmem:[#allocation2 + $0xc0] sm:$0xf] %v14339_v59  ;;  %5245 = vst [vmem:[#allocation2 + $0xc4] sm:$0xf] %v14339_v59 }
 0x22e   : > { %12968 = vmatmul.mubr.msk.bf16.gmra.mrb[4].mxu0 %vm830_vm3, %v11775_v39  ;;  %5246 = vst [vmem:[#allocation2 + $0xc8] sm:$0x1] %v14339_v59  ;;  %5247 = vst [vmem:[#allocation2 + $0xcc] sm:$0xf] %v14339_v59  ;;  %v5772_v39 = vld [vmem:[#allocation2 + $0x4] sm:$0xf] }
 0x22f   : > { %12971 = vmatprep.mubr.msk.bf16.mxu0 %vm830_vm3, %v11776_v26  ;;  %5248 = vst [vmem:[#allocation2 + $0xd0] sm:$0xf] %v14339_v59  ;;  %5249 = vst [vmem:[#allocation2 + $0xd4] sm:$0x1] %v14339_v59  ;;  %v5836_v26 = vshrl.u32 %v5771_v55, 16  ;;  %v5845_v5 = vshll.u32 %v5772_v39, 16 }
 0x230   : > { %v5849_v1 = vshrl.u32 %v5772_v39, 16 }
 0x231   : > { %v5838_v9 = vrot.slane %v5836_v26, 4  ;;  %v5847_v34 = vrot.slane %v5845_v5, 5  ;;  %v5670_v5 = vld [vmem:[#allocation2 + $0x20] sm:$0x1] }
 0x232   : > { %v5851_v7 = vrot.slane %v5849_v1, 4 }
 0x233   : > { %v5842_v27 = vor.u32 %v5841_v33, %v5838_v9 }
 0x235   : > { %v5843_v60 = vrot.slane %v5842_v27, 4 }
 0x236   : > { %12972 = vmatmul.mubr.msk.bf16.gmra.mrb[8].mxu0 %vm830_vm3, %v18396_v16  ;;  %v5852_v16 = vor.u32 %v5851_v7, %v5847_v34 }
 0x237   : > { %12975 = vmatprep.mubr.msk.bf16.mxu0 %vm830_vm3, %v11778_v47  ;;  %v5819_v47 = vld [vmem:[#allocation2 + $0x8] sm:$0x1]  ;;  %v5848_v49 = vsel %vm14446_vm2, %v5843_v60, %v5847_v34 }
 0x238   : > { %v5855_v50 = vshll.u32 %v5819_v47, 16  ;;  %v5853_v43 = vrot.slane %v5852_v16, 4  ;;  %v5663_v47 = vld [vmem:[#allocation2 + $0x14] sm:$0x1] }
 0x23a   : > { %v5857_v48 = vrot.slane %v5855_v50, 5 }
 0x23e   : > { %12976 = vmatmul.mubr.msk.bf16.gmra.mrb[12].mxu0 %vm830_vm3, %v18397_v51 }
 0x23f   : > { %12979 = vmatprep.mubr.msk.bf16.mxu0 %vm830_vm3, %v11780_v15  ;;  %v5858_v15 = vsel %vm14446_vm2, %v5853_v43, %v5857_v48 }
 0x240   : > { %v11841_v19 = vcombine.low %v5848_v49, %v5858_v15 }
 0x242   : > { %13011 = vmatprep.mubr.bf16.mxu1 %v11841_v19 }
 0x246   : > { %12980 = vmatmul.mubr.msk.bf16.gmra.mrb[16].mxu0 %vm830_vm3, %v18399_v53 }
 0x247   : > { %12983 = vmatprep.mubr.msk.bf16.mxu0 %vm830_vm3, %v11782_v6 }
 0x24e   : > { %12984 = vmatmul.mubr.msk.bf16.gmra.mrb[20].mxu0 %vm830_vm3, %v18402_v52 }
 0x24f   : > { %12987 = vmatprep.mubr.msk.bf16.mxu0 %vm830_vm3, %v11784_v21 }
 0x256   : > { %12988 = vmatmul.mubr.msk.bf16.gmra.mrb[24].mxu0 %vm830_vm3, %v18405_v31  ;;  %v5666_v31 = vld [vmem:[#allocation2 + $0x18] sm:$0xf] }
 0x257   : > { %12991 = vmatprep.mubr.msk.bf16.mxu0 %vm830_vm3, %v11786_v44 }
 0x25e   : > { %12992 = vmatmul.mubr.msk.bf16.gmra.mrb[28].mxu0 %vm830_vm3, %v18408_v35 }
 0x2f9   : > { %v12965_v51 = vpop.f32.mrb[0].mxu0 }
 0x2fa   : > { %v5118_v42 = vadd.f32 %v12965_v51, %v16261_v28  ;;  %v4950_v0 = vpop.f32.mrb[1].mxu0 }
 0x2fb   : > { %v5116_v62 = vadd.f32 %v16261_v28, %v4950_v0  ;;  %v12966_v57 = vpop.f32.mrb[2].mxu0 }
 0x2fc   : > { %v5150_v6 = vmax.f32 %v5118_v42, 0.0  ;;  %v5119_v30 = vadd.f32 %v12966_v57, %v16261_v28  ;;  %v4953_v32 = vpop.f32.mrb[3].mxu0 }
 0x2fd   : > { %v5148_v37 = vmax.f32 %v5116_v62, 0.0  ;;  %v5117_v10 = vadd.f32 %v16261_v28, %v4953_v32 }
 0x2fe   : > { %v12161_v53 = vpack.c.bf16 %v5150_v6, %v5150_v6  ;;  %v5151_v54 = vmax.f32 %v5119_v30, 0.0 }
 0x2ff   : > { %v12159_v12 = vpack.c.bf16 %v5148_v37, %v5148_v37  ;;  %v5149_v8 = vmax.f32 %v5117_v10, 0.0  ;;  %v5680_v37 = vld [vmem:[#allocation2 + $0x30] sm:$0xf] }
 0x300   : > { %v5351_v41 = vshrl.u32 %v12161_v53, 16  ;;  %v12162_v21 = vpack.c.bf16 %v5151_v54, %v5151_v54  ;;  %v5354_v25 = vshll.u32 %v12161_v53, 16 }
 0x301   : > { %v5334_v36 = vshrl.u32 %v12159_v12, 16  ;;  %v5337_v14 = vshll.u32 %v12159_v12, 16  ;;  %v12160_v56 = vpack.c.bf16 %v5149_v8, %v5149_v8  ;;  %v12969_v38 = vpop.f32.mrb[4].mxu0 }
 0x302   : > { %v5353_v52 = vrot.slane %v5351_v41, 7  ;;  %v5359_v22 = vshrl.u32 %v12162_v21, 16  ;;  %v5362_v4 = vshll.u32 %v12162_v21, 16  ;;  %v5122_v44 = vadd.f32 %v12969_v38, %v16261_v28  ;;  %v4966_v23 = vpop.f32.mrb[5].mxu0  ;;  %v5673_v21 = vld [vmem:[#allocation2 + $0x24] sm:$0xf] }
 0x303   : > { %v5336_v18 = vrot.slane %v5334_v36, 7  ;;  %v5342_v45 = vshrl.u32 %v12160_v56, 16  ;;  %v5345_v35 = vshll.u32 %v12160_v56, 16  ;;  %v5120_v13 = vadd.f32 %v16261_v28, %v4966_v23  ;;  %v12970_v59 = vpop.f32.mrb[6].mxu0 }
 0x304   : > { %v5356_v24 = vor.u32 %v5354_v25, %v5353_v52  ;;  %v5357_v61 = vrot.slane %v5353_v52, 4  ;;  %v5361_v58 = vrot.slane %v5359_v22, 7  ;;  %v5154_v20 = vmax.f32 %v5122_v44, 0.0  ;;  %v4969_v55 = vpop.f32.mrb[7].mxu0 }
 0x305   : > { %v5339_v39 = vor.u32 %v5337_v14, %v5336_v18  ;;  %v5340_v26 = vrot.slane %v5336_v18, 4  ;;  %v5344_v1 = vrot.slane %v5342_v45, 7  ;;  %v5152_v17 = vmax.f32 %v5120_v13, 0.0 }
 0x306   : > { %v5667_v9 = vsel %vm16270_vm12, %v5356_v24, %v5666_v31  ;;  %v5364_v33 = vor.u32 %v5362_v4, %v5361_v58  ;;  %v5366_v34 = vrot.slane %v5361_v58, 4  ;;  %v12165_v7 = vpack.c.bf16 %v5154_v20, %v5154_v20  ;;  %v5684_v58 = vld [vmem:[#allocation2 + $0x38] sm:$0x1]  ;;  %v5677_v20 = vld [vmem:[#allocation2 + $0x2c] sm:$0x1] }
 0x307   : > { %5668 = vst [vmem:[#allocation2 + $0x18] sm:$0xf] %v5667_v9  ;;  %v5658_v27 = vsel %vm16270_vm12, %v5339_v39, %v5657_v63  ;;  %v5347_v50 = vor.u32 %v5345_v35, %v5344_v1  ;;  %v5349_v16 = vrot.slane %v5344_v1, 4  ;;  %v12163_v60 = vpack.c.bf16 %v5152_v17, %v5152_v17 }
 0x308   : > { %5659 = vst [vmem:[#allocation2 + $0xc] sm:$0xf] %v5658_v27  ;;  %v5365_v48 = vsel %vm16277_vm13, %v5357_v61, %v5364_v33  ;;  %v5671_v43 = vsel %vm16283_vm14, %v5366_v34, %v5670_v5  ;;  %v5385_v49 = vshrl.u32 %v12165_v7, 16  ;;  %v5388_v51 = vshll.u32 %v12165_v7, 16  ;;  %v5694_v27 = vld [vmem:[#allocation2 + $0x48] sm:$0xf] }
 0x309   : > { %5669 = vst [vmem:[#allocation2 + $0x1c] sm:$0xf] %v5365_v48  ;;  %5672 = vst [vmem:[#allocation2 + $0x20] sm:$0x1] %v5671_v43  ;;  %v5348_v15 = vsel %vm16277_vm13, %v5340_v26, %v5347_v50  ;;  %v5664_v19 = vsel %vm16283_vm14, %v5349_v16, %v5663_v47  ;;  %v5368_v42 = vshrl.u32 %v12163_v60, 16  ;;  %v12973_v0 = vpop.f32.mrb[8].mxu0  ;;  %v5123_v57 = vadd.f32 %v12970_v59, %v16261_v28 }
 0x30a   : > { %5660 = vst [vmem:[#allocation2 + $0x10] sm:$0xf] %v5348_v15  ;;  %5665 = vst [vmem:[#allocation2 + $0x14] sm:$0x1] %v5664_v19  ;;  %v16299_v62 = vrot.slane %v5385_v49, 7  ;;  %v5121_v6 = vadd.f32 %v16261_v28, %v4969_v55  ;;  %v5126_v30 = vadd.f32 %v12973_v0, %v16261_v28  ;;  %v4982_v32 = vpop.f32.mrb[9].mxu0 }
 0x30b   : > { %v5370_v10 = vrot.slane %v5368_v42, 7  ;;  %v5371_v53 = vshll.u32 %v12163_v60, 16  ;;  %v5124_v54 = vadd.f32 %v16261_v28, %v4982_v32  ;;  %v12974_v12 = vpop.f32.mrb[10].mxu0  ;;  %v5155_v25 = vmax.f32 %v5123_v57, 0.0 }
 0x30c   : > { %v5390_v8 = vor.u32 %v5388_v51, %v16299_v62  ;;  %v5391_v41 = vrot.slane %v16299_v62, 4  ;;  %v5153_v36 = vmax.f32 %v5121_v6, 0.0  ;;  %v4985_v14 = vpop.f32.mrb[11].mxu0  ;;  %v5158_v52 = vmax.f32 %v5126_v30, 0.0  ;;  %v5687_v51 = vld [vmem:[#allocation2 + $0x3c] sm:$0xf] }
 0x30d   : > { %v5373_v56 = vor.u32 %v5371_v53, %v5370_v10  ;;  %v5374_v38 = vrot.slane %v5370_v10, 4  ;;  %v5156_v22 = vmax.f32 %v5124_v54, 0.0  ;;  %v12166_v44 = vpack.c.bf16 %v5155_v25, %v5155_v25 }
 0x30e   : > { %v5681_v4 = vsel %vm16270_vm12, %v5390_v8, %v5680_v37  ;;  %v12164_v23 = vpack.c.bf16 %v5153_v36, %v5153_v36  ;;  %v5127_v31 = vadd.f32 %v12974_v12, %v16261_v28  ;;  %v12169_v45 = vpack.c.bf16 %v5158_v52, %v5158_v52 }
 0x30f   : > { %5682 = vst [vmem:[#allocation2 + $0x30] sm:$0xf] %v5681_v4  ;;  %v5674_v18 = vsel %vm16270_vm12, %v5373_v56, %v5673_v21  ;;  %v12167_v35 = vpack.c.bf16 %v5156_v22, %v5156_v22  ;;  %v5125_v13 = vadd.f32 %v16261_v28, %v4985_v14  ;;  %v5393_v59 = vshrl.u32 %v12166_v44, 16  ;;  %v5698_v4 = vld [vmem:[#allocation2 + $0x50] sm:$0x1] }
 0x310   : > { %5675 = vst [vmem:[#allocation2 + $0x24] sm:$0xf] %v5674_v18  ;;  %v5396_v24 = vshll.u32 %v12166_v44, 16  ;;  %v5376_v61 = vshrl.u32 %v12164_v23, 16  ;;  %v5379_v63 = vshll.u32 %v12164_v23, 16  ;;  %v5419_v55 = vshrl.u32 %v12169_v45, 16 }
 0x311   : > { %v5422_v39 = vshll.u32 %v12169_v45, 16  ;;  %v5402_v26 = vshrl.u32 %v12167_v35, 16  ;;  %v5405_v5 = vshll.u32 %v12167_v35, 16  ;;  %v12977_v1 = vpop.f32.mrb[12].mxu0  ;;  %v5395_v17 = vrot.slane %v5393_v59, 7 }
 0x312   : > { %v5378_v9 = vrot.slane %v5376_v61, 7  ;;  %v5159_v33 = vmax.f32 %v5127_v31, 0.0  ;;  %v5157_v34 = vmax.f32 %v5125_v13, 0.0  ;;  %v4998_v47 = vpop.f32.mrb[13].mxu0  ;;  %v16313_v7 = vrot.slane %v5419_v55, 7 }
 0x313   : > { %v16315_v50 = vrot.slane %v5402_v26, 7  ;;  %v5130_v16 = vadd.f32 %v12977_v1, %v16261_v28  ;;  %v5128_v60 = vadd.f32 %v16261_v28, %v4998_v47  ;;  %v12978_v48 = vpop.f32.mrb[14].mxu0  ;;  %v5398_v43 = vor.u32 %v5396_v24, %v5395_v17  ;;  %v5691_v59 = vld [vmem:[#allocation2 + $0x44] sm:$0x1] }
 0x314   : > { %v5400_v49 = vrot.slane %v5395_v17, 4  ;;  %v5381_v15 = vor.u32 %v5379_v63, %v5378_v9  ;;  %v5383_v19 = vrot.slane %v5378_v9, 4  ;;  %v5001_v42 = vpop.f32.mrb[15].mxu0  ;;  %v5424_v0 = vor.u32 %v5422_v39, %v16313_v7 }
 0x315   : > { %v5425_v62 = vrot.slane %v16313_v7, 4  ;;  %v5407_v57 = vor.u32 %v5405_v5, %v16315_v50  ;;  %v5408_v6 = vrot.slane %v16315_v50, 4  ;;  %v5399_v30 = vsel %vm16277_vm13, %v5391_v41, %v5398_v43  ;;  %v5701_v43 = vld [vmem:[#allocation2 + $0x54] sm:$0xf] }
 0x316   : > { %v5685_v32 = vsel %vm16283_vm14, %v5400_v49, %v5684_v58  ;;  %v5382_v37 = vsel %vm16277_vm13, %v5374_v38, %v5381_v15  ;;  %v5678_v10 = vsel %vm16283_vm14, %v5383_v19, %v5677_v20  ;;  %5683 = vst [vmem:[#allocation2 + $0x34] sm:$0xf] %v5399_v30  ;;  %v5695_v53 = vsel %vm16270_vm12, %v5424_v0, %v5694_v27 }
 0x317   : > { %5686 = vst [vmem:[#allocation2 + $0x38] sm:$0x1] %v5685_v32  ;;  %5676 = vst [vmem:[#allocation2 + $0x28] sm:$0xf] %v5382_v37  ;;  %v5688_v54 = vsel %vm16270_vm12, %v5407_v57, %v5687_v51  ;;  %v12170_v12 = vpack.c.bf16 %v5159_v33, %v5159_v33  ;;  %v12168_v8 = vpack.c.bf16 %v5157_v34, %v5157_v34  ;;  %v5162_v41 = vmax.f32 %v5130_v16, 0.0 }
 0x318   : > { %5679 = vst [vmem:[#allocation2 + $0x2c] sm:$0x1] %v5678_v10  ;;  %5696 = vst [vmem:[#allocation2 + $0x48] sm:$0xf] %v5695_v53  ;;  %v5160_v21 = vmax.f32 %v5128_v60, 0.0  ;;  %v5131_v25 = vadd.f32 %v12978_v48, %v16261_v28  ;;  %v5129_v36 = vadd.f32 %v16261_v28, %v5001_v42 }
 0x319   : > { %5689 = vst [vmem:[#allocation2 + $0x3c] sm:$0xf] %v5688_v54  ;;  %v5427_v14 = vshrl.u32 %v12170_v12, 16  ;;  %v5430_v56 = vshll.u32 %v12170_v12, 16  ;;  %v5410_v38 = vshrl.u32 %v12168_v8, 16  ;;  %v5413_v52 = vshll.u32 %v12168_v8, 16 }
 0x31a   : > { %v12981_v22 = vpop.f32.mrb[16].mxu0  ;;  %v12173_v44 = vpack.c.bf16 %v5162_v41, %v5162_v41  ;;  %v12171_v23 = vpack.c.bf16 %v5160_v21, %v5160_v21  ;;  %v5163_v31 = vmax.f32 %v5131_v25, 0.0  ;;  %v5161_v18 = vmax.f32 %v5129_v36, 0.0  ;;  %v5708_v48 = vld [vmem:[#allocation2 + $0x60] sm:$0xf] }
 0x31b   : > { %v5014_v45 = vpop.f32.mrb[17].mxu0  ;;  %v5429_v35 = vrot.slane %v5427_v14, 7  ;;  %v5412_v13 = vrot.slane %v5410_v38, 7  ;;  %v5134_v24 = vadd.f32 %v12981_v22, %v16261_v28  ;;  %v5773_v42 = vld [vmem:[#allocation2 + $0xc] sm:$0xf] }
 0x31c   : > { %v5132_v61 = vadd.f32 %v16261_v28, %v5014_v45  ;;  %v12982_v63 = vpop.f32.mrb[18].mxu0  ;;  %v5453_v58 = vshrl.u32 %v12173_v44, 16  ;;  %v5456_v20 = vshll.u32 %v12173_v44, 16  ;;  %v5436_v55 = vshrl.u32 %v12171_v23, 16  ;;  %v5712_v10 = vld [vmem:[#allocation2 + $0x68] sm:$0x1] }
 0x31d   : > { %v5439_v39 = vshll.u32 %v12171_v23, 16  ;;  %v5017_v26 = vpop.f32.mrb[19].mxu0  ;;  %v5432_v5 = vor.u32 %v5430_v56, %v5429_v35  ;;  %v5434_v1 = vrot.slane %v5429_v35, 4  ;;  %v5415_v17 = vor.u32 %v5413_v52, %v5412_v13  ;;  %v5705_v53 = vld [vmem:[#allocation2 + $0x5c] sm:$0x1] }
 0x31e   : > { %v5417_v9 = vrot.slane %v5412_v13, 4  ;;  %v5455_v33 = vrot.slane %v5453_v58, 7  ;;  %v5438_v34 = vrot.slane %v5436_v55, 7  ;;  %v12174_v47 = vpack.c.bf16 %v5163_v31, %v5163_v31  ;;  %v5774_v52 = vld [vmem:[#allocation2 + $0x10] sm:$0xf] }
 0x31f   : > { %v12172_v7 = vpack.c.bf16 %v5161_v18, %v5161_v18  ;;  %v5433_v27 = vsel %vm16277_vm13, %v5425_v62, %v5432_v5  ;;  %v5699_v50 = vsel %vm16283_vm14, %v5434_v1, %v5698_v4  ;;  %v5416_v16 = vsel %vm16277_vm13, %v5408_v6, %v5415_v17  ;;  %v5722_v55 = vld [vmem:[#allocation2 + $0x78] sm:$0xf] }
 0x320   : > { %v5692_v60 = vsel %vm16283_vm14, %v5417_v9, %v5691_v59  ;;  %5697 = vst [vmem:[#allocation2 + $0x4c] sm:$0xf] %v5433_v27  ;;  %5700 = vst [vmem:[#allocation2 + $0x50] sm:$0x1] %v5699_v50  ;;  %v5458_v49 = vor.u32 %v5456_v20, %v5455_v33  ;;  %v5459_v15 = vrot.slane %v5455_v33, 4  ;;  %v5441_v19 = vor.u32 %v5439_v39, %v5438_v34 }
 0x321   : > { %5690 = vst [vmem:[#allocation2 + $0x40] sm:$0xf] %v5416_v16  ;;  %5693 = vst [vmem:[#allocation2 + $0x44] sm:$0x1] %v5692_v60  ;;  %v5442_v51 = vrot.slane %v5438_v34, 4  ;;  %v5461_v0 = vshrl.u32 %v12174_v47, 16  ;;  %v5135_v25 = vadd.f32 %v12982_v63, %v16261_v28  ;;  %v5133_v36 = vadd.f32 %v16261_v28, %v5017_v26 }
 0x322   : > { %v5464_v62 = vshll.u32 %v12174_v47, 16  ;;  %v5444_v57 = vshrl.u32 %v12172_v7, 16  ;;  %v5447_v30 = vshll.u32 %v12172_v7, 16  ;;  %v16347_v32 = vpop.f32.mrb[20].mxu0  ;;  %v5709_v6 = vsel %vm16270_vm12, %v5458_v49, %v5708_v48  ;;  %v5715_v39 = vld [vmem:[#allocation2 + $0x6c] sm:$0xf] }
 0x323   : > { %v5702_v37 = vsel %vm16270_vm12, %v5441_v19, %v5701_v43  ;;  %v5166_v54 = vmax.f32 %v5134_v24, 0.0  ;;  %v5164_v12 = vmax.f32 %v5132_v61, 0.0  ;;  %v16353_v8 = vpop.f32.mrb[21].mxu0  ;;  %5710 = vst [vmem:[#allocation2 + $0x60] sm:$0xf] %v5709_v6  ;;  %v5463_v41 = vrot.slane %v5461_v0, 7 }
 0x324   : > { %5703 = vst [vmem:[#allocation2 + $0x54] sm:$0xf] %v5702_v37  ;;  %v5446_v21 = vrot.slane %v5444_v57, 7  ;;  %v16357_v14 = vpop.f32.mrb[22].mxu0  ;;  %v5860_v22 = vshrl.u32 %v5773_v42, 16  ;;  %v5863_v4 = vshll.u32 %v5773_v42, 16 }
 0x325   : > { %v12177_v56 = vpack.c.bf16 %v5166_v54, %v5166_v54  ;;  %v12175_v38 = vpack.c.bf16 %v5164_v12, %v5164_v12  ;;  %v16359_v44 = vpop.f32.mrb[23].mxu0  ;;  %v5466_v23 = vor.u32 %v5464_v62, %v5463_v41  ;;  %v5468_v31 = vrot.slane %v5463_v41, 4  ;;  %v5820_v9 = vld [vmem:[#allocation2 + $0x14] sm:$0x1]  ;;  %v5776_v6 = vld [vmem:[#allocation2 + $0x1c] sm:$0xf] }
 0x326   : > { %v5449_v18 = vor.u32 %v5447_v30, %v5446_v21  ;;  %v5451_v45 = vrot.slane %v5446_v21, 4  ;;  %v5167_v1 = vmax.f32 %v5135_v25, 0.0  ;;  %v5165_v17 = vmax.f32 %v5133_v36, 0.0 }
 0x327   : > { %v5487_v35 = vshrl.u32 %v12177_v56, 16  ;;  %v5490_v13 = vshll.u32 %v12177_v56, 16  ;;  %v5470_v59 = vshrl.u32 %v12175_v38, 16  ;;  %v5473_v24 = vshll.u32 %v12175_v38, 16  ;;  %v5726_v38 = vld [vmem:[#allocation2 + $0x80] sm:$0x1] }
 0x328   : > { %v5467_v61 = vsel %vm16277_vm13, %v5459_v15, %v5466_v23  ;;  %v5713_v63 = vsel %vm16283_vm14, %v5468_v31, %v5712_v10  ;;  %v5450_v58 = vsel %vm16277_vm13, %v5442_v51, %v5449_v18  ;;  %v5706_v20 = vsel %vm16283_vm14, %v5451_v45, %v5705_v53  ;;  %v5775_v51 = vld [vmem:[#allocation2 + $0x18] sm:$0xf]  ;;  %v5719_v23 = vld [vmem:[#allocation2 + $0x74] sm:$0x1] }
 0x329   : > { %5711 = vst [vmem:[#allocation2 + $0x64] sm:$0xf] %v5467_v61  ;;  %5714 = vst [vmem:[#allocation2 + $0x68] sm:$0x1] %v5713_v63  ;;  %v5489_v26 = vrot.slane %v5487_v35, 7  ;;  %v5472_v5 = vrot.slane %v5470_v59, 7  ;;  %v12178_v43 = vpack.c.bf16 %v5167_v1, %v5167_v1  ;;  %v12176_v49 = vpack.c.bf16 %v5165_v17, %v5165_v17 }
 0x32a   : > { %5704 = vst [vmem:[#allocation2 + $0x58] sm:$0xf] %v5450_v58  ;;  %5707 = vst [vmem:[#allocation2 + $0x5c] sm:$0x1] %v5706_v20  ;;  %v5862_v33 = vrot.slane %v5860_v22, 4  ;;  %v5865_v34 = vrot.slane %v5863_v4, 5 }
 0x32b   : > { %v5869_v47 = vshll.u32 %v5774_v52, 16  ;;  %v5873_v7 = vshrl.u32 %v5774_v52, 16  ;;  %v16369_v27 = vpop.f32.mrb[24].mxu0  ;;  %v5492_v50 = vor.u32 %v5490_v13, %v5489_v26  ;;  %v5493_v16 = vrot.slane %v5489_v26, 4  ;;  %v5821_v63 = vld [vmem:[#allocation2 + $0x20] sm:$0x1] }
 0x32c   : > { %v5475_v60 = vor.u32 %v5473_v24, %v5472_v5  ;;  %v16371_v48 = vpop.f32.mrb[25].mxu0  ;;  %v5866_v15 = vor.u32 %v5865_v34, %v5862_v33  ;;  %v5879_v30 = vshll.u32 %v5820_v9, 16  ;;  %v5476_v10 = vrot.slane %v5472_v5, 4  ;;  %v5777_v5 = vld [vmem:[#allocation2 + $0x24] sm:$0xf] }
 0x32d   : > { %v5871_v19 = vrot.slane %v5869_v47, 5  ;;  %v16373_v42 = vpop.f32.mrb[26].mxu0  ;;  %v5723_v0 = vsel %vm16270_vm12, %v5492_v50, %v5722_v55  ;;  %v5875_v57 = vrot.slane %v5873_v7, 4  ;;  %v5495_v53 = vshrl.u32 %v12178_v43, 16 }
 0x32e   : > { %v5716_v62 = vsel %vm16270_vm12, %v5475_v60, %v5715_v39  ;;  %v16379_v37 = vpop.f32.mrb[27].mxu0  ;;  %5724 = vst [vmem:[#allocation2 + $0x78] sm:$0xf] %v5723_v0  ;;  %v5498_v54 = vshll.u32 %v12178_v43, 16  ;;  %v5478_v12 = vshrl.u32 %v12176_v49, 16  ;;  %v5481_v41 = vshll.u32 %v12176_v49, 16 }
 0x32f   : > { %5717 = vst [vmem:[#allocation2 + $0x6c] sm:$0xf] %v5716_v62  ;;  %v5867_v21 = vrot.slane %v5866_v15, 4  ;;  %v5876_v25 = vor.u32 %v5875_v57, %v5871_v19  ;;  %v5881_v36 = vrot.slane %v5879_v30, 5  ;;  %v5497_v56 = vrot.slane %v5495_v53, 7 }
 0x330   : > { %v5480_v52 = vrot.slane %v5478_v12, 7  ;;  %v5884_v22 = vshrl.u32 %v5775_v51, 16  ;;  %v5887_v4 = vshll.u32 %v5775_v51, 16  ;;  %v5893_v45 = vshll.u32 %v5776_v6, 16  ;;  %v5778_v62 = vld [vmem:[#allocation2 + $0x28] sm:$0xf] }
 0x331   : > { %v5872_v31 = vsel %vm14446_vm2, %v5867_v21, %v5871_v19  ;;  %v5877_v18 = vrot.slane %v5876_v25, 4  ;;  %v5897_v35 = vshrl.u32 %v5776_v6, 16  ;;  %v5500_v13 = vor.u32 %v5498_v54, %v5497_v56  ;;  %v16383_v58 = vpop.f32.mrb[28].mxu0 }
 0x332   : > { %v5502_v59 = vrot.slane %v5497_v56, 4  ;;  %v5483_v24 = vor.u32 %v5481_v41, %v5480_v52  ;;  %v5485_v61 = vrot.slane %v5480_v52, 4  ;;  %v5886_v55 = vrot.slane %v5884_v22, 4  ;;  %v16387_v1 = vpop.f32.mrb[29].mxu0 }
 0x333   : > { %v5882_v20 = vsel %vm14446_vm2, %v5877_v18, %v5881_v36  ;;  %v5889_v39 = vrot.slane %v5887_v4, 5  ;;  %v5895_v26 = vrot.slane %v5893_v45, 5  ;;  %v5501_v17 = vsel %vm16277_vm13, %v5493_v16, %v5500_v13  ;;  %v16397_v47 = vpop.f32.mrb[30].mxu0  ;;  %v14154_v16 = vld [vmem:[%s18248_s3 + $0x8] sm:$0xff]  }
 0x334   : > { %v5727_v9 = vsel %vm16283_vm14, %v5502_v59, %v5726_v38  ;;  %v5484_v33 = vsel %vm16277_vm13, %v5476_v10, %v5483_v24  ;;  %v5720_v34 = vsel %vm16283_vm14, %v5485_v61, %v5719_v23  ;;  %5725 = vst [vmem:[#allocation2 + $0x7c] sm:$0xf] %v5501_v17  ;;  %v11842_v7 = vcombine.low %v5872_v31, %v5882_v20  ;;  %v16402_v49 = vpop.f32.mrb[31].mxu0  ;;  %v5729_v59 = vld [vmem:[#allocation2 + $0x84] sm:$0xf]  ;;  %v14156_v20 = vld [vmem:[%s18248_s3 + $0x18] sm:$0xff]  }
 0x335   : > { %5728 = vst [vmem:[#allocation2 + $0x80] sm:$0x1] %v5727_v9  ;;  %5718 = vst [vmem:[#allocation2 + $0x70] sm:$0xf] %v5484_v33  ;;  %v5890_v50 = vor.u32 %v5889_v39, %v5886_v55  ;;  %v5899_v60 = vrot.slane %v5897_v35, 4  ;;  %v5903_v43 = vshll.u32 %v5821_v63, 16  ;;  %v5138_v15 = vadd.f32 %v16347_v32, %v16261_v28 }
 0x336   : > { %5721 = vst [vmem:[#allocation2 + $0x74] sm:$0x1] %v5720_v34  ;;  %v5136_v19 = vadd.f32 %v16261_v28, %v16353_v8  ;;  %v5139_v51 = vadd.f32 %v16357_v14, %v16261_v28  ;;  %v5137_v0 = vadd.f32 %v16261_v28, %v16359_v44  ;;  %13012 = vmatmul.mubr.bf16.vlgmr.msra.gmra.mrb[0].mxu1 %v11842_v7  ;;  %v5908_v10 = vshrl.u32 %v5777_v5, 16  ;;  %v14155_v44 = vld [vmem:[%s18248_s3 + $0x10] sm:$0xff]   ;;  %v5733_v17 = vld [vmem:[#allocation2 + $0x8c] sm:$0x1] }
 0x337   : > { %v5891_v57 = vrot.slane %v5890_v50, 4  ;;  %v5900_v30 = vor.u32 %v5899_v60, %v5895_v26  ;;  %v5905_v6 = vrot.slane %v5903_v43, 5  ;;  %13044 = vmatpush3.bf16.msra.mxu1 %v16255_v11  ;;  %v5170_v53 = vmax.f32 %v5138_v15, 0.0  ;;  %v5736_v35 = vld [vmem:[#allocation2 + $0x90] sm:$0xf]  ;;  %v14157_v60 = vld [vmem:[%s18248_s3 + $0x20] sm:$0xff]  }
 0x338   : > { %v5168_v54 = vmax.f32 %v5136_v19, 0.0  ;;  %v5171_v32 = vmax.f32 %v5139_v51, 0.0  ;;  %v5169_v12 = vmax.f32 %v5137_v0, 0.0  ;;  %13045 = vmatprep.subr.bf16.mxu1 %v14154_v16  ;;  %v5910_v14 = vrot.slane %v5908_v10, 4 }
 0x339   : > { %v5896_v8 = vsel %vm14446_vm2, %v5891_v57, %v5895_v26  ;;  %v5901_v41 = vrot.slane %v5900_v30, 4  ;;  %v5911_v21 = vshll.u32 %v5777_v5, 16  ;;  %v12181_v25 = vpack.c.bf16 %v5170_v53, %v5170_v53  ;;  %v5740_v26 = vld [vmem:[#allocation2 + $0x98] sm:$0x1]  ;;  %v5822_v30 = vld [vmem:[#allocation2 + $0x2c] sm:$0x1] }
 0x33a   : > { %v12179_v36 = vpack.c.bf16 %v5168_v54, %v5168_v54  ;;  %v12182_v56 = vpack.c.bf16 %v5171_v32, %v5171_v32  ;;  %v12180_v38 = vpack.c.bf16 %v5169_v12, %v5169_v12  ;;  %v5917_v22 = vshll.u32 %v5778_v62, 16  ;;  %v16432_v12 = vld [vmem:[#allocation2 + $0x34] sm:$0xf] }
 0x33b   : > { %v5906_v11 = vsel %vm14446_vm2, %v5901_v41, %v5905_v6  ;;  %v5913_v52 = vrot.slane %v5911_v21, 5  ;;  %v5921_v4 = vshrl.u32 %v5778_v62, 16  ;;  %v5521_v31 = vshrl.u32 %v12181_v25, 16  ;;  %13046 = vmatpush3.bf16.msra.mxu1 %v14154_v16  ;;  %v16426_v6 = vld [vmem:[#allocation2 + $0x30] sm:$0xf] }
 0x33c   : > { %v11843_v23 = vcombine.low %v5896_v8, %v5906_v11  ;;  %v5524_v18 = vshll.u32 %v12181_v25, 16  ;;  %v5504_v45 = vshrl.u32 %v12179_v36, 16  ;;  %v5507_v13 = vshll.u32 %v12179_v36, 16  ;;  %13047 = vmatprep.subr.bf16.mxu1 %v14155_v44  ;;  %v5823_v8 = vld [vmem:[#allocation2 + $0x38] sm:$0x1] }
 0x33d   : > { %v5529_v24 = vshrl.u32 %v12182_v56, 16  ;;  %v5532_v61 = vshll.u32 %v12182_v56, 16  ;;  %v5512_v63 = vshrl.u32 %v12180_v38, 16  ;;  %v5523_v55 = vrot.slane %v5521_v31, 7 }
 0x33e   : > { %13015 = vmatprep.mubr.bf16.mxu1 %v11843_v23  ;;  %v5506_v39 = vrot.slane %v5504_v45, 7  ;;  %v5515_v5 = vshll.u32 %v12180_v38, 16  ;;  %v5914_v9 = vor.u32 %v5913_v52, %v5910_v14  ;;  %v5919_v7 = vrot.slane %v5917_v22, 5  ;;  %v14158_v23 = vld [vmem:[%s18248_s3 + $0x28] sm:$0xff]  }
 0x33f   : > { %v5531_v33 = vrot.slane %v5529_v24, 7  ;;  %v5514_v34 = vrot.slane %v5512_v63, 7  ;;  %v5923_v50 = vrot.slane %v5921_v4, 4  ;;  %v5526_v43 = vor.u32 %v5524_v18, %v5523_v55  ;;  %13048 = vmatpush3.bf16.msra.mxu1 %v14155_v44  ;;  %v16455_v63 = vld [vmem:[#allocation2 + $0x3c] sm:$0xf] }
 0x340   : > { %v5527_v16 = vrot.slane %v5523_v55, 4  ;;  %v5509_v15 = vor.u32 %v5507_v13, %v5506_v39  ;;  %v5510_v19 = vrot.slane %v5506_v39, 4  ;;  %13049 = vmatprep.subr.bf16.mxu1 %v14156_v20  ;;  %v5915_v54 = vrot.slane %v5914_v9, 4  ;;  %v14159_v9 = vld [vmem:[%s18248_s3 + $0x30] sm:$0xff]  }
 0x341   : > { %v5534_v51 = vor.u32 %v5532_v61, %v5531_v33  ;;  %v5536_v0 = vrot.slane %v5531_v33, 4  ;;  %v5517_v62 = vor.u32 %v5515_v5, %v5514_v34  ;;  %v5519_v57 = vrot.slane %v5514_v34, 4 }
 0x342   : > { %v5737_v10 = vsel %vm16270_vm12, %v5526_v43, %v5736_v35  ;;  %v5730_v53 = vsel %vm16270_vm12, %v5509_v15, %v5729_v59  ;;  %v5924_v32 = vor.u32 %v5923_v50, %v5919_v7  ;;  %v5920_v25 = vsel %vm14446_vm2, %v5915_v54, %v5919_v7 }
 0x343   : > { %5738 = vst [vmem:[#allocation2 + $0x90] sm:$0xf] %v5737_v10  ;;  %5731 = vst [vmem:[#allocation2 + $0x84] sm:$0xf] %v5730_v53  ;;  %v5535_v41 = vsel %vm16277_vm13, %v5527_v16, %v5534_v51  ;;  %v5741_v14 = vsel %vm16283_vm14, %v5536_v0, %v5740_v26  ;;  %v5518_v21 = vsel %vm16277_vm13, %v5510_v19, %v5517_v62  ;;  %v5927_v56 = vshll.u32 %v5822_v30, 16  ;;  %v14160_v53 = vld [vmem:[%s18248_s3 + $0x38] sm:$0xff]  }
 0x344   : > { %v5734_v44 = vsel %vm16283_vm14, %v5519_v57, %v5733_v17  ;;  %5739 = vst [vmem:[#allocation2 + $0x94] sm:$0xf] %v5535_v41  ;;  %5742 = vst [vmem:[#allocation2 + $0x98] sm:$0x1] %v5741_v14  ;;  %v5925_v36 = vrot.slane %v5924_v32, 4  ;;  %v5932_v38 = vshrl.u32 %v16426_v6, 16  ;;  %13050 = vmatpush3.bf16.msra.mxu1 %v14156_v20  ;;  %v5142_v45 = vadd.f32 %v16369_v27, %v16261_v28 }
 0x345   : > { %5732 = vst [vmem:[#allocation2 + $0x88] sm:$0xf] %v5518_v21  ;;  %5735 = vst [vmem:[#allocation2 + $0x8c] sm:$0x1] %v5734_v44  ;;  %v5935_v11 = vshll.u32 %v16426_v6, 16  ;;  %v5941_v52 = vshll.u32 %v16432_v12, 16  ;;  %13051 = vmatprep.subr.bf16.mxu1 %v14157_v60  ;;  %v5140_v35 = vadd.f32 %v16261_v28, %v16371_v48  ;;  %v5143_v26 = vadd.f32 %v16373_v42, %v16261_v28 }
 0x346   : > { %v5945_v22 = vshrl.u32 %v16432_v12, 16  ;;  %v5951_v4 = vshll.u32 %v5823_v8, 16  ;;  %v5929_v31 = vrot.slane %v5927_v56, 5  ;;  %v5934_v18 = vrot.slane %v5932_v38, 4  ;;  %v5750_v62 = vld [vmem:[#allocation2 + $0xa8] sm:$0xf] }
 0x347   : > { %v5937_v13 = vrot.slane %v5935_v11, 5  ;;  %v5943_v59 = vrot.slane %v5941_v52, 5  ;;  %v5174_v55 = vmax.f32 %v5142_v45, 0.0  ;;  %v5172_v39 = vmax.f32 %v5140_v35, 0.0  ;;  %v5743_v57 = vld [vmem:[#allocation2 + $0x9c] sm:$0xf] }
 0x348   : > { %v5947_v24 = vrot.slane %v5945_v22, 4  ;;  %v5953_v61 = vrot.slane %v5951_v4, 5  ;;  %v5930_v20 = vsel %vm14446_vm2, %v5925_v36, %v5929_v31  ;;  %13052 = vmatpush3.bf16.msra.mxu1 %v14157_v60  ;;  %v5141_v48 = vadd.f32 %v16261_v28, %v16379_v37  ;;  %v16475_v41 = vld [vmem:[#allocation2 + $0x40] sm:$0xf]  ;;  %v5824_v56 = vld [vmem:[#allocation2 + $0x44] sm:$0x1] }
 0x349   : > { %v11844_v5 = vcombine.low %v5920_v25, %v5930_v20  ;;  %v5938_v27 = vor.u32 %v5937_v13, %v5934_v18  ;;  %13053 = vmatprep.subr.bf16.mxu1 %v14158_v23  ;;  %v12185_v33 = vpack.c.bf16 %v5174_v55, %v5174_v55  ;;  %v12183_v34 = vpack.c.bf16 %v5172_v39, %v5172_v39  ;;  %v5754_v4 = vld [vmem:[#allocation2 + $0xb0] sm:$0x1]  ;;  %v16481_v13 = vld [vmem:[%s18248_s3 + $0x80] sm:$0xff]   ;;  %v16488_v55 = vld [vmem:[#allocation2 + $0x48] sm:$0xf] }
 0x34a   : > { %v5948_v17 = vor.u32 %v5947_v24, %v5943_v59  ;;  %v5175_v7 = vmax.f32 %v5143_v26, 0.0  ;;  %v5956_v50 = vshrl.u32 %v16455_v63, 16  ;;  %v5173_v60 = vmax.f32 %v5141_v48, 0.0 }
 0x34b   : > { %13016 = vmatmul.mubr.bf16.gmra.mrb[4].mxu1 %v11844_v5  ;;  %v5939_v43 = vrot.slane %v5938_v27, 4  ;;  %v5959_v16 = vshll.u32 %v16455_v63, 16  ;;  %v5555_v15 = vshrl.u32 %v12185_v33, 16  ;;  %v5558_v19 = vshll.u32 %v12185_v33, 16 }
 0x34c   : > { %v5949_v42 = vrot.slane %v5948_v17, 4  ;;  %v5538_v51 = vshrl.u32 %v12183_v34, 16  ;;  %v5541_v28 = vshll.u32 %v12183_v34, 16  ;;  %13054 = vmatpush3.bf16.msra.mxu1 %v14158_v23  ;;  %v12186_v30 = vpack.c.bf16 %v5175_v7, %v5175_v7  ;;  %v5747_v23 = vld [vmem:[#allocation2 + $0xa4] sm:$0x1] }
 0x34d   : > { %v5944_v37 = vsel %vm14446_vm2, %v5939_v43, %v5943_v59  ;;  %v12184_v10 = vpack.c.bf16 %v5173_v60, %v5173_v60  ;;  %13055 = vmatprep.subr.bf16.mxu1 %v14159_v9  ;;  %v5557_v32 = vrot.slane %v5555_v15, 7  ;;  %v5958_v14 = vrot.slane %v5956_v50, 4  ;;  %v16490_v17 = vld [vmem:[#allocation2 + $0x4c] sm:$0xf]  ;;  %v16492_v7 = vld [vmem:[#allocation2 + $0x50] sm:$0x1] }
 0x34e   : > { %v5954_v0 = vsel %vm14446_vm2, %v5949_v42, %v5953_v61  ;;  %v5540_v8 = vrot.slane %v5538_v51, 7  ;;  %v5563_v21 = vshrl.u32 %v12186_v30, 16  ;;  %v5566_v44 = vshll.u32 %v12186_v30, 16 }
 0x34f   : > { %v11845_v54 = vcombine.low %v5944_v37, %v5954_v0  ;;  %v5546_v25 = vshrl.u32 %v12184_v10, 16  ;;  %v5549_v36 = vshll.u32 %v12184_v10, 16  ;;  %v5560_v38 = vor.u32 %v5558_v19, %v5557_v32 }
 0x350   : > { %v5561_v11 = vrot.slane %v5557_v32, 4  ;;  %v5543_v52 = vor.u32 %v5541_v28, %v5540_v8  ;;  %v5544_v22 = vrot.slane %v5540_v8, 4  ;;  %13056 = vmatpush3.bf16.msra.mxu1 %v14159_v9  ;;  %v5565_v31 = vrot.slane %v5563_v21, 7 }
 0x351   : > { %13019 = vmatprep.mubr.bf16.mxu1 %v11845_v54  ;;  %v5548_v18 = vrot.slane %v5546_v25, 7  ;;  %v5961_v45 = vrot.slane %v5959_v16, 5  ;;  %v5965_v35 = vshll.u32 %v16475_v41, 16  ;;  %13057 = vmatprep.subr.bf16.mxu1 %v14160_v53  ;;  %v5751_v59 = vsel %vm16270_vm12, %v5560_v38, %v5750_v62  ;;  %v14287_v62 = vld [vmem:[%s18247_s2] ss:$0 sm:$0xff] }
 0x352   : > { %v5744_v24 = vsel %vm16270_vm12, %v5543_v52, %v5743_v57  ;;  %v5969_v61 = vshrl.u32 %v16475_v41, 16  ;;  %v5975_v20 = vshll.u32 %v5824_v56, 16  ;;  %5752 = vst [vmem:[#allocation2 + $0xa8] sm:$0xf] %v5751_v59  ;;  %v5568_v39 = vor.u32 %v5566_v44, %v5565_v31  ;;  %v16514_v44 = vld [vmem:[#allocation2 + $0x54] sm:$0xf] }
 0x353   : > { %5745 = vst [vmem:[#allocation2 + $0x9c] sm:$0xf] %v5744_v24  ;;  %v5570_v26 = vrot.slane %v5565_v31, 4  ;;  %v5551_v5 = vor.u32 %v5549_v36, %v5548_v18  ;;  %v5553_v27 = vrot.slane %v5548_v18, 4  ;;  %v5962_v48 = vor.u32 %v5961_v45, %v5958_v14 }
 0x354   : > { %v5967_v9 = vrot.slane %v5965_v35, 5  ;;  %v5971_v33 = vrot.slane %v5969_v61, 4  ;;  %v5977_v34 = vrot.slane %v5975_v20, 5  ;;  %13058 = vmatpush3.bf16.msra.mxu1 %v14160_v53  ;;  %v5569_v50 = vsel %vm16277_vm13, %v5561_v11, %v5568_v39  ;;  %v5764_v61 = vld [vmem:[#allocation2 + $0xc0] sm:$0xf] }
 0x355   : > { %v5755_v43 = vsel %vm16283_vm14, %v5570_v26, %v5754_v4  ;;  %v5552_v42 = vsel %vm16277_vm13, %v5544_v22, %v5551_v5  ;;  %v5748_v60 = vsel %vm16283_vm14, %v5553_v27, %v5747_v23  ;;  %13091 = vmatprep.subr.bf16.mxu1 %v16481_v13  ;;  %5753 = vst [vmem:[#allocation2 + $0xac] sm:$0xf] %v5569_v50  ;;  %v5963_v16 = vrot.slane %v5962_v48, 4  ;;  %v16526_v27 = vld [vmem:[#allocation2 + $0x58] sm:$0xf] }
 0x356   : > { %5756 = vst [vmem:[#allocation2 + $0xb0] sm:$0x1] %v5755_v43  ;;  %5746 = vst [vmem:[#allocation2 + $0xa0] sm:$0xf] %v5552_v42  ;;  %v5972_v15 = vor.u32 %v5971_v33, %v5967_v9  ;;  %v5980_v19 = vshrl.u32 %v16488_v55, 16  ;;  %v5983_v51 = vshll.u32 %v16488_v55, 16  ;;  %v5146_v57 = vadd.f32 %v14287_v62, %v16383_v58 }
 0x357   : > { %5749 = vst [vmem:[#allocation2 + $0xa4] sm:$0x1] %v5748_v60  ;;  %v5989_v28 = vshll.u32 %v16490_v17, 16  ;;  %v5993_v37 = vshrl.u32 %v16490_v17, 16  ;;  %v5999_v0 = vshll.u32 %v16492_v7, 16  ;;  %v5968_v30 = vsel %vm14446_vm2, %v5963_v16, %v5967_v9 }
 0x358   : > { %v5973_v10 = vrot.slane %v5972_v15, 4  ;;  %v5982_v53 = vrot.slane %v5980_v19, 4  ;;  %v5985_v54 = vrot.slane %v5983_v51, 5  ;;  %v5178_v21 = vmax.f32 %v5146_v57, 0.0  ;;  %v5757_v19 = vld [vmem:[#allocation2 + $0xb4] sm:$0xf] }
 0x359   : > { %v5991_v32 = vrot.slane %v5989_v28, 5  ;;  %v5995_v8 = vrot.slane %v5993_v37, 4  ;;  %v6001_v14 = vrot.slane %v5999_v0, 5  ;;  %v5144_v56 = vadd.f32 %v14287_v62, %v16387_v1 }
 0x35a   : > { %v5978_v25 = vsel %vm14446_vm2, %v5973_v10, %v5977_v34  ;;  %v5986_v36 = vor.u32 %v5985_v54, %v5982_v53  ;;  %v5147_v58 = vadd.f32 %v14287_v62, %v16397_v47  ;;  %v12189_v52 = vpack.c.bf16 %v5178_v21, %v5178_v21  ;;  %v16533_v21 = vld [vmem:[#allocation2 + $0x5c] sm:$0x1] }
 0x35b   : > { %v11846_v38 = vcombine.low %v5968_v30, %v5978_v25  ;;  %v5996_v11 = vor.u32 %v5995_v8, %v5991_v32  ;;  %v5145_v22 = vadd.f32 %v14287_v62, %v16402_v49  ;;  %v5176_v23 = vmax.f32 %v5144_v56, 0.0  ;;  %v5768_v62 = vld [vmem:[#allocation2 + $0xc8] sm:$0x1] }
 0x35c   : > { %v5987_v4 = vrot.slane %v5986_v36, 4  ;;  %v5179_v31 = vmax.f32 %v5147_v58, 0.0  ;;  %v6004_v18 = vshrl.u32 %v16514_v44, 16  ;;  %v5589_v35 = vshrl.u32 %v12189_v52, 16 }
 0x35d   : > { %13020 = vmatmul.mubr.bf16.gmra.mrb[8].mxu1 %v11846_v38  ;;  %v5997_v45 = vrot.slane %v5996_v11, 4  ;;  %v5592_v59 = vshll.u32 %v12189_v52, 16  ;;  %v5177_v24 = vmax.f32 %v5145_v22, 0.0  ;;  %v12187_v47 = vpack.c.bf16 %v5176_v23, %v5176_v23  ;;  %v16535_v38 = vld [vmem:[#allocation2 + $0x60] sm:$0xf] }
 0x35e   : > { %v5992_v1 = vsel %vm14446_vm2, %v5987_v4, %v5991_v32  ;;  %v12190_v20 = vpack.c.bf16 %v5179_v31, %v5179_v31  ;;  %v6006_v39 = vrot.slane %v6004_v18, 4  ;;  %v5591_v26 = vrot.slane %v5589_v35, 7  ;;  %v16537_v11 = vld [vmem:[#allocation2 + $0x64] sm:$0xf]  ;;  %v16545_v31 = vld [vmem:[#allocation2 + $0x68] sm:$0x1] }
 0x35f   : > { %v6002_v49 = vsel %vm14446_vm2, %v5997_v45, %v6001_v14  ;;  %v12188_v5 = vpack.c.bf16 %v5177_v24, %v5177_v24  ;;  %v6007_v48 = vshll.u32 %v16514_v44, 16  ;;  %v5572_v33 = vshrl.u32 %v12187_v47, 16  ;;  %v5761_v14 = vld [vmem:[#allocation2 + $0xbc] sm:$0x1] }
 0x360   : > { %v11847_v9 = vcombine.low %v5992_v1, %v6002_v49  ;;  %v5575_v34 = vshll.u32 %v12187_v47, 16  ;;  %v5597_v50 = vshrl.u32 %v12190_v20, 16  ;;  %v5594_v43 = vor.u32 %v5592_v59, %v5591_v26  ;;  %v16555_v47 = vld [vmem:[#allocation2 + $0x6c] sm:$0xf]  ;;  %v16561_v49 = vld [vmem:[#allocation2 + $0x70] sm:$0xf] }
 0x361   : > { %v5595_v42 = vrot.slane %v5591_v26, 4  ;;  %v5600_v60 = vshll.u32 %v12190_v20, 16  ;;  %v5580_v16 = vshrl.u32 %v12188_v5, 16  ;;  %v5574_v15 = vrot.slane %v5572_v33, 7  ;;  %v16563_v33 = vld [vmem:[#allocation2 + $0x74] sm:$0x1] }
 0x362   : > { %13023 = vmatprep.mubr.bf16.mxu1 %v11847_v9  ;;  %v5599_v51 = vrot.slane %v5597_v50, 7  ;;  %v5583_v28 = vshll.u32 %v12188_v5, 16  ;;  %v6009_v37 = vrot.slane %v6007_v48, 5  ;;  %v5765_v0 = vsel %vm16270_vm12, %v5594_v43, %v5764_v61 }
 0x363   : > { %v5582_v57 = vrot.slane %v5580_v16, 7  ;;  %v6013_v30 = vshll.u32 %v16526_v27, 16  ;;  %v6017_v10 = vshrl.u32 %v16526_v27, 16  ;;  %5766 = vst [vmem:[#allocation2 + $0xc0] sm:$0xf] %v5765_v0  ;;  %v5577_v53 = vor.u32 %v5575_v34, %v5574_v15 }
 0x364   : > { %v5578_v54 = vrot.slane %v5574_v15, 4  ;;  %v5602_v32 = vor.u32 %v5600_v60, %v5599_v51  ;;  %v5604_v8 = vrot.slane %v5599_v51, 4  ;;  %v6010_v56 = vor.u32 %v6009_v37, %v6006_v39  ;;  %v16571_v51 = vld [vmem:[#allocation2 + $0x78] sm:$0xf] }
 0x365   : > { %v5585_v25 = vor.u32 %v5583_v28, %v5582_v57  ;;  %v5587_v36 = vrot.slane %v5582_v57, 4  ;;  %v6015_v58 = vrot.slane %v6013_v30, 5  ;;  %v5758_v52 = vsel %vm16270_vm12, %v5577_v53, %v5757_v19  ;;  %v16573_v28 = vld [vmem:[#allocation2 + $0x7c] sm:$0xf] }
 0x366   : > { %v5603_v22 = vsel %vm16277_vm13, %v5595_v42, %v5602_v32  ;;  %v5769_v4 = vsel %vm16283_vm14, %v5604_v8, %v5768_v62  ;;  %v6019_v23 = vrot.slane %v6017_v10, 4  ;;  %5759 = vst [vmem:[#allocation2 + $0xb4] sm:$0xf] %v5758_v52  ;;  %v6011_v40 = vrot.slane %v6010_v56, 4 }
 0x367   : > { %5767 = vst [vmem:[#allocation2 + $0xc4] sm:$0xf] %v5603_v22  ;;  %5770 = vst [vmem:[#allocation2 + $0xc8] sm:$0x1] %v5769_v4  ;;  %v5586_v18 = vsel %vm16277_vm13, %v5578_v54, %v5585_v25  ;;  %v5762_v45 = vsel %vm16283_vm14, %v5587_v36, %v5761_v14  ;;  %v6023_v35 = vshll.u32 %v16533_v21, 16  ;;  %v6028_v24 = vshrl.u32 %v16535_v38, 16 }
 0x368   : > { %5760 = vst [vmem:[#allocation2 + $0xb8] sm:$0xf] %v5586_v18  ;;  %5763 = vst [vmem:[#allocation2 + $0xbc] sm:$0x1] %v5762_v45  ;;  %v6020_v59 = vor.u32 %v6019_v23, %v6015_v58  ;;  %v6031_v1 = vshll.u32 %v16535_v38, 16  ;;  %v6037_v61 = vshll.u32 %v16537_v11, 16  ;;  %v6016_v46 = vsel %vm14446_vm2, %v6011_v40, %v6015_v58 }
 0x369   : > { %v6025_v20 = vrot.slane %v6023_v35, 5  ;;  %v6041_v2 = vshrl.u32 %v16537_v11, 16  ;;  %v6047_v39 = vshll.u32 %v16545_v31, 16  ;;  %v6030_v5 = vrot.slane %v6028_v24, 4  ;;  %v16576_v14 = vld [vmem:[#allocation2 + $0x80] sm:$0x1] }
 0x36a   : > { %v6021_v26 = vrot.slane %v6020_v59, 4  ;;  %v6033_v48 = vrot.slane %v6031_v1, 5  ;;  %v6039_v9 = vrot.slane %v6037_v61, 5  ;;  %v6052_v43 = vshrl.u32 %v16555_v47, 16  ;;  %v16583_v4 = vld [vmem:[#allocation2 + $0x84] sm:$0xf] }
 0x36b   : > { %v6043_v34 = vrot.slane %v6041_v2, 4  ;;  %v6049_v50 = vrot.slane %v6047_v39, 5  ;;  %v6055_v42 = vshll.u32 %v16555_v47, 16  ;;  %v6061_v15 = vshll.u32 %v16561_v49, 16  ;;  %v16585_v23 = vld [vmem:[#allocation2 + $0x88] sm:$0xf] }
 0x36c   : > { %v6026_v60 = vsel %vm14446_vm2, %v6021_v26, %v6025_v20  ;;  %v6034_v16 = vor.u32 %v6033_v48, %v6030_v5  ;;  %v6065_v19 = vshrl.u32 %v16561_v49, 16  ;;  %v6054_v62 = vrot.slane %v6052_v43, 4  ;;  %v16594_v26 = vld [vmem:[#allocation2 + $0x90] sm:$0xf] }
 0x36d   : > { %v11848_v37 = vcombine.low %v6016_v46, %v6026_v60  ;;  %v6044_v0 = vor.u32 %v6043_v34, %v6039_v9  ;;  %v6057_v57 = vrot.slane %v6055_v42, 5  ;;  %v6063_v10 = vrot.slane %v6061_v15, 5  ;;  %v16602_v15 = vld [vmem:[#allocation2 + $0x94] sm:$0xf] }
 0x36e   : > { %v6035_v30 = vrot.slane %v6034_v16, 4  ;;  %v6067_v53 = vrot.slane %v6065_v19, 4  ;;  %v6071_v54 = vshll.u32 %v16563_v33, 16  ;;  %v6076_v25 = vshrl.u32 %v16571_v51, 16 }
 0x36f   : > { %13024 = vmatmul.mubr.bf16.gmra.mrb[12].mxu1 %v11848_v37  ;;  %v6045_v32 = vrot.slane %v6044_v0, 4  ;;  %v6058_v8 = vor.u32 %v6057_v57, %v6054_v62  ;;  %v6079_v36 = vshll.u32 %v16571_v51, 16  ;;  %v6085_v22 = vshll.u32 %v16573_v28, 16 }
 0x370   : > { %v6040_v56 = vsel %vm14446_vm2, %v6035_v30, %v6039_v9  ;;  %v6068_v58 = vor.u32 %v6067_v53, %v6063_v10  ;;  %v6073_v52 = vrot.slane %v6071_v54, 5  ;;  %v6078_v40 = vrot.slane %v6076_v25, 4  ;;  %v16598_v9 = vld [vmem:[#allocation2 + $0x8c] sm:$0x1]  ;;  %v16610_v25 = vld [vmem:[#allocation2 + $0x98] sm:$0x1] }
 0x371   : > { %v6050_v18 = vsel %vm14446_vm2, %v6045_v32, %v6049_v50  ;;  %v6059_v45 = vrot.slane %v6058_v8, 4  ;;  %v6081_v35 = vrot.slane %v6079_v36, 5  ;;  %v6087_v1 = vrot.slane %v6085_v22, 5 }
 0x372   : > { %v11849_v59 = vcombine.low %v6040_v56, %v6050_v18  ;;  %v6069_v24 = vrot.slane %v6068_v58, 4  ;;  %v6089_v61 = vshrl.u32 %v16573_v28, 16  ;;  %v6095_v2 = vshll.u32 %v16576_v14, 16  ;;  %v16614_v18 = vld [vmem:[#allocation2 + $0x9c] sm:$0xf] }
 0x373   : > { %v6064_v46 = vsel %vm14446_vm2, %v6059_v45, %v6063_v10  ;;  %v6082_v20 = vor.u32 %v6081_v35, %v6078_v40  ;;  %v6100_v39 = vshrl.u32 %v16583_v4, 16  ;;  %v6103_v34 = vshll.u32 %v16583_v4, 16 }
 0x374   : > { %13027 = vmatprep.mubr.bf16.mxu1 %v11849_v59  ;;  %v6074_v5 = vsel %vm14446_vm2, %v6069_v24, %v6073_v52  ;;  %v6091_v48 = vrot.slane %v6089_v61, 4  ;;  %v6109_v50 = vshll.u32 %v16585_v23, 16  ;;  %v6097_v60 = vrot.slane %v6095_v2, 5  ;;  %v16618_v24 = vld [vmem:[#allocation2 + $0xa0] sm:$0xf] }
 0x375   : > { %v11850_v43 = vcombine.low %v6064_v46, %v6074_v5  ;;  %v6083_v42 = vrot.slane %v6082_v20, 4  ;;  %v6102_v16 = vrot.slane %v6100_v39, 4  ;;  %v6105_v37 = vrot.slane %v6103_v34, 5  ;;  %v16621_v2 = vld [vmem:[#allocation2 + $0xa8] sm:$0xf] }
 0x376   : > { %v6092_v19 = vor.u32 %v6091_v48, %v6087_v1  ;;  %v6111_v0 = vrot.slane %v6109_v50, 5  ;;  %v6113_v62 = vshrl.u32 %v16585_v23, 16  ;;  %v6119_v30 = vshll.u32 %v16598_v9, 16 }
 0x377   : > { %13028 = vmatmul.mubr.bf16.gmra.mrb[16].mxu1 %v11850_v43  ;;  %v6088_v57 = vsel %vm14446_vm2, %v6083_v42, %v6087_v1  ;;  %v6124_v10 = vshrl.u32 %v16594_v26, 16  ;;  %v6127_v53 = vshll.u32 %v16594_v26, 16  ;;  %v6106_v32 = vor.u32 %v6105_v37, %v6102_v16 }
 0x378   : > { %v6093_v54 = vrot.slane %v6092_v19, 4  ;;  %v6115_v8 = vrot.slane %v6113_v62, 4  ;;  %v6133_v36 = vshll.u32 %v16602_v15, 16  ;;  %v6121_v56 = vrot.slane %v6119_v30, 5 }
 0x379   : > { %v6126_v58 = vrot.slane %v6124_v10, 4  ;;  %v6129_v52 = vrot.slane %v6127_v53, 5  ;;  %v6137_v22 = vshrl.u32 %v16602_v15, 16  ;;  %v6107_v40 = vrot.slane %v6106_v32, 4  ;;  %v16637_v32 = vld [vmem:[#allocation2 + $0xb0] sm:$0x1] }
 0x37a   : > { %v6098_v45 = vsel %vm14446_vm2, %v6093_v54, %v6097_v60  ;;  %v6116_v35 = vor.u32 %v6115_v8, %v6111_v0  ;;  %v6135_v59 = vrot.slane %v6133_v36, 5  ;;  %v6143_v20 = vshll.u32 %v16610_v25, 16  ;;  %v16627_v60 = vld [vmem:[#allocation2 + $0xa4] sm:$0x1]  ;;  %v16639_v8 = vld [vmem:[#allocation2 + $0xb4] sm:$0xf] }
 0x37b   : > { %v11851_v1 = vcombine.low %v6088_v57, %v6098_v45  ;;  %v6130_v61 = vor.u32 %v6129_v52, %v6126_v58  ;;  %v6139_v46 = vrot.slane %v6137_v22, 4  ;;  %v6112_v39 = vsel %vm14446_vm2, %v6107_v40, %v6111_v0  ;;  %v16633_v57 = vld [vmem:[#allocation2 + $0xac] sm:$0xf] }
 0x37c   : > { %v6117_v5 = vrot.slane %v6116_v35, 4  ;;  %v6148_v48 = vshrl.u32 %v16614_v18, 16  ;;  %v6151_v34 = vshll.u32 %v16614_v18, 16  ;;  %v6145_v42 = vrot.slane %v6143_v20, 5  ;;  %v16648_v20 = vld [vmem:[#allocation2 + $0xb8] sm:$0xf] }
 0x37d   : > { %13031 = vmatprep.mubr.bf16.mxu1 %v11851_v1  ;;  %v6131_v50 = vrot.slane %v6130_v61, 4  ;;  %v6140_v43 = vor.u32 %v6139_v46, %v6135_v59  ;;  %v6157_v16 = vshll.u32 %v16618_v24, 16  ;;  %v6161_v0 = vshrl.u32 %v16618_v24, 16 }
 0x37e   : > { %v6122_v19 = vsel %vm14446_vm2, %v6117_v5, %v6121_v56  ;;  %v6150_v37 = vrot.slane %v6148_v48, 4  ;;  %v6153_v62 = vrot.slane %v6151_v34, 5  ;;  %v6167_v56 = vshll.u32 %v16627_v60, 16 }
 0x37f   : > { %v11852_v30 = vcombine.low %v6112_v39, %v6122_v19  ;;  %v6136_v10 = vsel %vm14446_vm2, %v6131_v50, %v6135_v59  ;;  %v6141_v53 = vrot.slane %v6140_v43, 4  ;;  %v6159_v54 = vrot.slane %v6157_v16, 5 }
 0x380   : > { %v6154_v36 = vor.u32 %v6153_v62, %v6150_v37  ;;  %v6163_v58 = vrot.slane %v6161_v0, 4  ;;  %v6172_v52 = vshrl.u32 %v16621_v2, 16  ;;  %v6175_v45 = vshll.u32 %v16621_v2, 16  ;;  %v16654_v62 = vld [vmem:[#allocation2 + $0xbc] sm:$0x1] }
 0x381   : > { %13032 = vmatmul.mubr.bf16.gmra.mrb[20].mxu1 %v11852_v30  ;;  %v6146_v22 = vsel %vm14446_vm2, %v6141_v53, %v6145_v42  ;;  %v6181_v40 = vshll.u32 %v16633_v57, 16  ;;  %v6185_v35 = vshrl.u32 %v16633_v57, 16  ;;  %v6169_v46 = vrot.slane %v6167_v56, 5 }
 0x382   : > { %v11853_v59 = vcombine.low %v6136_v10, %v6146_v22  ;;  %v6155_v1 = vrot.slane %v6154_v36, 4  ;;  %v6164_v61 = vor.u32 %v6163_v58, %v6159_v54  ;;  %v6174_v39 = vrot.slane %v6172_v52, 4 }
 0x383   : > { %v6177_v5 = vrot.slane %v6175_v45, 5  ;;  %v6183_v48 = vrot.slane %v6181_v40, 5  ;;  %v6187_v34 = vrot.slane %v6185_v35, 4  ;;  %v6191_v42 = vshll.u32 %v16637_v32, 16 }
 0x384   : > { %13035 = vmatprep.mubr.bf16.mxu1 %v11853_v59  ;;  %v6160_v50 = vsel %vm14446_vm2, %v6155_v1, %v6159_v54  ;;  %v6165_v43 = vrot.slane %v6164_v61, 4  ;;  %v6196_v16 = vshrl.u32 %v16639_v8, 16  ;;  %v6199_v0 = vshll.u32 %v16639_v8, 16 }
 0x385   : > { %v6178_v19 = vor.u32 %v6177_v5, %v6174_v39  ;;  %v6188_v37 = vor.u32 %v6187_v34, %v6183_v48  ;;  %v6205_v30 = vshll.u32 %v16648_v20, 16  ;;  %v6193_v53 = vrot.slane %v6191_v42, 5  ;;  %v14288_v34 = vld [vmem:[#allocation2] sm:$0xf] }
 0x386   : > { %v6170_v10 = vsel %vm14446_vm2, %v6165_v43, %v6169_v46  ;;  %v6198_v36 = vrot.slane %v6196_v16, 4  ;;  %v6209_v54 = vshrl.u32 %v16648_v20, 16  ;;  %v6201_v22 = vrot.slane %v6199_v0, 5 }
 0x387   : > { %v11854_v58 = vcombine.low %v6160_v50, %v6170_v10  ;;  %v6179_v56 = vrot.slane %v6178_v19, 4  ;;  %v6189_v52 = vrot.slane %v6188_v37, 4  ;;  %v6207_v45 = vrot.slane %v6205_v30, 5  ;;  %v16666_v50 = vld [vmem:[#allocation2 + $0x4] sm:$0xf] }
 0x388   : > { %v6211_v40 = vrot.slane %v6209_v54, 4  ;;  %v6215_v35 = vshll.u32 %v16654_v62, 16  ;;  %v6202_v61 = vor.u32 %v6201_v22, %v6198_v36  ;;  %v11865_v43 = vcombine.low %v14288_v34, %v16666_v50  ;;  %v14290_v22 = vld [vmem:[#allocation2 + $0xc] sm:$0xf]  ;;  %v14168_v34 = vld [vmem:[%s18248_s3 + $0x90] sm:$0xff]  }
 0x389   : > { %13036 = vmatmul.mubr.bf16.gmra.mrb[24].mxu1 %v11854_v58  ;;  %v6184_v59 = vsel %vm14446_vm2, %v6179_v56, %v6183_v48  ;;  %v6194_v1 = vsel %vm14446_vm2, %v6189_v52, %v6193_v53  ;;  %v11872_v19 = vcombine.low %v16514_v44, %v16526_v27  ;;  %v11873_v48 = vcombine.low %v16535_v38, %v16537_v11  ;;  %v6823_v58 = vld [vmem:[#allocation2 + $0x78] sm:$0xe]  ;;  %v6813_v38 = vld [vmem:[#allocation2] sm:$0xe] }
 0x38a   : > { %v11855_v46 = vcombine.low %v6184_v59, %v6194_v1  ;;  %v6212_v39 = vor.u32 %v6211_v40, %v6207_v45  ;;  %v6203_v5 = vrot.slane %v6202_v61, 4  ;;  %v6217_v16 = vrot.slane %v6215_v35, 5  ;;  %v14165_v35 = vld [vmem:[%s18248_s3 + $0x88] sm:$0xff]   ;;  %v14292_v59 = vld [vmem:[#allocation2 + $0x18] sm:$0xf] }
 0x38b   : > { %v11874_v0 = vcombine.low %v16555_v47, %v16561_v49  ;;  %v11875_v30 = vcombine.low %v16571_v51, %v16573_v28  ;;  %v11876_v10 = vcombine.low %v16583_v4, %v16585_v23  ;;  %v16697_v1 = vld [vmem:[#allocation2 + $0x1c] sm:$0xf]  ;;  %v6922_v52 = vrot.slane %v16545_v31, 5 }
 0x38c   : > { %13039 = vmatprep.mubr.bf16.mxu1 %v11855_v46  ;;  %v6213_v42 = vrot.slane %v6212_v39, 4  ;;  %v6208_v37 = vsel %vm14446_vm2, %v6203_v5, %v6207_v45  ;;  %v16691_v45 = vld [vmem:[#allocation2 + $0x10] sm:$0xf]  ;;  %v11867_v61 = vcombine.low %v14292_v59, %v16697_v1  ;;  %v6820_v46 = vld [vmem:[#allocation2 + $0x54] sm:$0xe]  ;;  %v6912_v5 = vrot.slane %v16526_v27, 5 }
 0x38d   : > { %v11866_v40 = vcombine.low %v14290_v22, %v16691_v45  ;;  %v6821_v39 = vld [vmem:[#allocation2 + $0x60] sm:$0xe]  ;;  %v11869_v59 = vcombine.low %v16426_v6, %v16432_v12  ;;  %v6926_v6 = vrot.slane %v16561_v49, 5  ;;  %v6824_v12 = vld [vmem:[#allocation2 + $0x84] sm:$0xe]  ;;  %v18415_v44 = vcombine.low %v16594_v26, %v16602_v15 }
 0x38e   : > { %v6218_v53 = vsel %vm14446_vm2, %v6213_v42, %v6217_v16  ;;  %v6919_v42 = vrot.slane %v16537_v11, 5  ;;  %v6822_v16 = vld [vmem:[#allocation2 + $0x6c] sm:$0xe]  ;;  %v6914_v22 = vrot.slane %v6912_v5, 4  ;;  %v6863_v27 = vrot.slane %v16666_v50, 5 }
 0x38f   : > { %v11856_v56 = vcombine.low %v6208_v37, %v6218_v53  ;;  %v14294_v37 = vld [vmem:[#allocation2 + $0x24] sm:$0xf]  ;;  %v16706_v53 = vld [vmem:[#allocation2 + $0x28] sm:$0xf]  ;;  %v18416_v49 = vcombine.low %v16614_v18, %v16618_v24  ;;  %v18417_v51 = vcombine.low %v16621_v2, %v16633_v57  ;;  %v6877_v26 = vrot.slane %v16697_v1, 5 }
 0x390   : > { %v14296_v11 = vld [vmem:[#allocation2 + $0x8] sm:$0x1]  ;;  %v6865_v47 = vrot.slane %v6863_v27, 4  ;;  %v18418_v18 = vcombine.low %v16639_v8, %v16648_v20  ;;  %v14297_v2 = vld [vmem:[#allocation2 + $0x14] sm:$0x1]  ;;  %v6884_v1 = vrot.slane %v16706_v53, 5 }
 0x391   : > { %13040 = vmatmul.mubr.bf16.gmra.mrb[28].mxu1 %v11856_v56  ;;  %v11868_v56 = vcombine.low %v14294_v37, %v16706_v53  ;;  %v6928_v37 = vrot.slane %v6926_v6, 4  ;;  %v14299_v8 = vld [vmem:[#allocation2 + $0x34] sm:$0xf]  ;;  %v6816_v53 = vld [vmem:[#allocation2 + $0x24] sm:$0xe] }
 0x392   : > { %13059 = vmatprep.mubr.bf16.mxu1 %v11865_v43  ;;  %v11896_v43 = vrot.slane %v6820_v46, 9  ;;  %v6921_v46 = vrot.slane %v6919_v42, 4 }
 0x399   : > { %13060 = vmatmul.mubr.bf16.vlgmr.msra.gmra.mrb[0].mxu1 %v11866_v40  ;;  %v11897_v40 = vrot.slane %v6821_v39, 9  ;;  %v11898_v39 = vrot.slane %v6822_v16, 9  ;;  %v6827_v16 = vld [vmem:[#allocation2 + $0xa8] sm:$0xe] }
 0x39a   : > { %13092 = vmatpush3.bf16.msra.mxu1 %v16481_v13  ;;  %13063 = vmatprep.mubr.bf16.mxu1 %v11867_v61  ;;  %v6915_v13 = vrot.slane %v16533_v21, 5  ;;  %v16714_v61 = vsel %vm14762_vm6, %v11896_v43, %v6912_v5  ;;  %v14171_v5 = vld [vmem:[%s18248_s3 + $0x98] sm:$0xff]   ;;  %v6929_v43 = vrot.slane %v16563_v33, 5 }
 0x39b   : > { %13093 = vmatprep.subr.bf16.mxu1 %v14165_v35  ;;  %v16723_v21 = vsel %vm14762_vm6, %v11897_v40, %v6919_v42  ;;  %v6933_v42 = vrot.slane %v16573_v28, 5  ;;  %v6825_v40 = vld [vmem:[#allocation2 + $0x90] sm:$0xe]  ;;  %v16742_v31 = vsel %vm14762_vm6, %v11898_v39, %v6926_v6  ;;  %v14174_v39 = vld [vmem:[%s18248_s3 + $0xa0] sm:$0xff]  }
 0x39c   : > { %v16719_v54 = vsel %vm14762_vm6, %v6914_v22, %v6915_v13  ;;  %v11899_v22 = vrot.slane %v6823_v58, 9  ;;  %v6936_v13 = vrot.slane %v16576_v14, 5  ;;  %v16747_v33 = vsel %vm14762_vm6, %v6928_v37, %v6929_v43  ;;  %v6826_v43 = vld [vmem:[#allocation2 + $0x9c] sm:$0xe] }
 0x39d   : > { %v6935_v36 = vrot.slane %v6933_v42, 4  ;;  %v6943_v14 = vrot.slane %v16598_v9, 5  ;;  %v11870_v9 = vcombine.low %v16455_v63, %v16475_v41  ;;  %v6954_v63 = vrot.slane %v16618_v24, 5  ;;  %v6814_v24 = vld [vmem:[#allocation2 + $0xc] sm:$0xe] }
 0x39e   : > { %13094 = vmatpush3.bf16.msra.mxu1 %v14165_v35  ;;  %v16733_v35 = vsel %vm14762_vm6, %v6921_v46, %v6922_v52  ;;  %v11900_v52 = vrot.slane %v6824_v12, 9  ;;  %v6940_v46 = vrot.slane %v16585_v23, 5  ;;  %v16751_v58 = vsel %vm14762_vm6, %v11899_v22, %v6933_v42 }
 0x39f   : > { %13095 = vmatprep.subr.bf16.mxu1 %v14168_v34  ;;  %v11901_v12 = vrot.slane %v6825_v40, 9  ;;  %v6950_v22 = vrot.slane %v16610_v25, 5  ;;  %v11902_v40 = vrot.slane %v6826_v43, 9  ;;  %v6964_v43 = vrot.slane %v16637_v32, 5 }
 0x3a0   : > { %v6942_v6 = vrot.slane %v6940_v46, 4  ;;  %v6968_v41 = vrot.slane %v16648_v20, 5  ;;  %v6870_v23 = vrot.slane %v16691_v45, 5  ;;  %v6891_v20 = vrot.slane %v14299_v8, 5 }
 0x3a1   : > { %13064 = vmatmul.mubr.bf16.gmra.mrb[4].mxu1 %v11868_v56  ;;  %v6947_v56 = vrot.slane %v16602_v15, 5  ;;  %v16801_v42 = vsel %vm14762_vm6, %v11902_v40, %v6954_v63  ;;  %v14180_v40 = vld [vmem:[%s18248_s3 + $0xb0] sm:$0xff]  }
 0x3a2   : > { %13067 = vmatprep.mubr.bf16.mxu1 %v11869_v59  ;;  %13096 = vmatpush3.bf16.msra.mxu1 %v14168_v34  ;;  %v16762_v59 = vsel %vm14762_vm6, %v6935_v36, %v6936_v13  ;;  %v16771_v34 = vsel %vm14762_vm6, %v11900_v52, %v6940_v46  ;;  %v16775_v36 = vsel %vm14762_vm6, %v6942_v6, %v6943_v14  ;;  %v6961_v52 = vrot.slane %v16633_v57, 5  ;;  %v6828_v46 = vld [vmem:[#allocation2 + $0xb4] sm:$0xe]  ;;  %v14177_v14 = vld [vmem:[%s18248_s3 + $0xa8] sm:$0xff]  }
 0x3a3   : > { %13097 = vmatprep.subr.bf16.mxu1 %v14171_v5  ;;  %v6949_v37 = vrot.slane %v6947_v56, 4  ;;  %v16779_v13 = vsel %vm14762_vm6, %v11901_v12, %v6947_v56  ;;  %v6957_v6 = vrot.slane %v16627_v60, 5  ;;  %v11903_v12 = vrot.slane %v6827_v16, 9 }
 0x3a4   : > { %v11904_v16 = vrot.slane %v6828_v46, 9  ;;  %v6872_v50 = vrot.slane %v6870_v23, 4  ;;  %v6873_v57 = vrot.slane %v14297_v2, 5  ;;  %v6818_v2 = vld [vmem:[#allocation2 + $0x3c] sm:$0xe] }
 0x3a5   : > { %v16786_v25 = vsel %vm14762_vm6, %v6949_v37, %v6950_v22  ;;  %v11871_v37 = vcombine.low %v16488_v55, %v16490_v17  ;;  %v6963_v22 = vrot.slane %v6961_v52, 4  ;;  %v16809_v60 = vsel %vm14762_vm6, %v11903_v12, %v6961_v52 }
 0x3a6   : > { %13098 = vmatpush3.bf16.msra.mxu1 %v14171_v5  ;;  %v6956_v5 = vrot.slane %v6954_v63, 4  ;;  %v6971_v63 = vrot.slane %v16654_v62, 5  ;;  %v14183_v62 = vld [vmem:[%s18248_s3 + $0xb8] sm:$0xff]   ;;  %v6874_v45 = vsel %vm14762_vm6, %v6872_v50, %v6873_v57  ;;  %v18432_v52 = vcombine.low %v16771_v34, %v16775_v36  ;;  %v8446_v34 = vld [vmem:[#allocation2 + $0xb4] sm:$0xe] }
 0x3a7   : > { %13099 = vmatprep.subr.bf16.mxu1 %v14174_v39  ;;  %v16815_v32 = vsel %vm14762_vm6, %v6963_v22, %v6964_v43 }
 0x3a8   : > { %v16805_v56 = vsel %vm14762_vm6, %v6956_v5, %v6957_v6  ;;  %v11890_v6 = vrot.slane %v6814_v24, 9 }
 0x3a9   : > { %13068 = vmatmul.mubr.bf16.gmra.mrb[8].mxu1 %v11870_v9  ;;  %v6970_v9 = vrot.slane %v6968_v41, 4 }
 0x3aa   : > { %13071 = vmatprep.mubr.bf16.mxu1 %v11871_v37  ;;  %13100 = vmatpush3.bf16.msra.mxu1 %v14174_v39  ;;  %v16825_v39 = vsel %vm14762_vm6, %v11904_v16, %v6968_v41  ;;  %v14185_v41 = vld [vmem:[%s18248_s3 + $0xc0] sm:$0xff]   ;;  %v6871_v22 = vsel %vm14762_vm6, %v11890_v6, %v6870_v23  ;;  %v6905_v23 = vrot.slane %v16490_v17, 5 }
 0x3ab   : > { %13101 = vmatprep.subr.bf16.mxu1 %v14177_v14  ;;  %v16829_v46 = vsel %vm14762_vm6, %v6970_v9, %v6971_v63  ;;  %v11906_v43 = vcombine.low %v6871_v22, %v6874_v45  ;;  %v14186_v9 = vld [vmem:[%s18248_s3 + $0xc8] sm:$0xff]   ;;  %v14303_v17 = vld [vmem:[#allocation2 + $0x44] sm:$0x1]  ;;  %v11894_v45 = vrot.slane %v6818_v2, 9 }
 0x3ac   : > { %v6907_v57 = vrot.slane %v6905_v23, 4  ;;  %v14189_v6 = vld [vmem:[%s18248_s3 + $0xe0] sm:$0xff]   ;;  %v14190_v22 = vld [vmem:[%s18248_s3 + $0xe8] sm:$0xff]  }
 0x3ae   : > { %13102 = vmatpush3.bf16.msra.mxu1 %v14177_v14 }
 0x3af   : > { %13103 = vmatprep.subr.bf16.mxu1 %v14180_v40 }
 0x3b1   : > { %13072 = vmatmul.mubr.bf16.gmra.mrb[12].mxu1 %v11872_v19  ;;  %v6866_v19 = vrot.slane %v14296_v11, 5  ;;  %v14301_v11 = vld [vmem:[#allocation2 + $0x38] sm:$0x1] }
 0x3b2   : > { %13075 = vmatprep.mubr.bf16.mxu1 %v11873_v48  ;;  %13104 = vmatpush3.bf16.msra.mxu1 %v14180_v40  ;;  %v11889_v48 = vrot.slane %v6813_v38, 9  ;;  %v6886_v40 = vrot.slane %v6884_v1, 4  ;;  %v6817_v38 = vld [vmem:[#allocation2 + $0x30] sm:$0xe] }
 0x3b3   : > { %13105 = vmatprep.subr.bf16.mxu1 %v14183_v62  ;;  %v6867_v4 = vsel %vm14762_vm6, %v6865_v47, %v6866_v19  ;;  %v6894_v19 = vrot.slane %v14301_v11, 5  ;;  %v11892_v47 = vrot.slane %v6816_v53, 9  ;;  %v16925_v53 = vld [vmem:[#allocation2 + $0x34] sm:$0xf]  ;;  %v18419_v11 = vcombine.low %v16714_v61, %v16719_v54  ;;  %v16946_v54 = vld [vmem:[%s18248_s3 + $0x100] sm:$0xff]  }
 0x3b4   : > { %v6864_v28 = vsel %vm14762_vm6, %v11889_v48, %v6863_v27  ;;  %v14187_v48 = vld [vmem:[%s18248_s3 + $0xd0] sm:$0xff]  }
 0x3b5   : > { %v11905_v15 = vcombine.low %v6864_v28, %v6867_v4  ;;  %v11893_v4 = vrot.slane %v6817_v38, 9  ;;  %v16948_v61 = vld [vmem:[#allocation2 + $0x50] sm:$0x1] }
 0x3b6   : > { %13106 = vmatpush3.bf16.msra.mxu1 %v14183_v62  ;;  %v6893_v62 = vrot.slane %v6891_v20, 4 }
 0x3b7   : > { %13139 = vmatprep.subr.bf16.mxu1 %v14185_v41  ;;  %v6892_v50 = vsel %vm14762_vm6, %v11893_v4, %v6891_v20 }
 0x3b9   : > { %13076 = vmatmul.mubr.bf16.gmra.mrb[16].mxu1 %v11874_v0  ;;  %v6879_v0 = vrot.slane %v6877_v26, 4 }
 0x3ba   : > { %13079 = vmatprep.mubr.bf16.mxu1 %v11875_v30  ;;  %v6815_v30 = vld [vmem:[#allocation2 + $0x18] sm:$0xe] }
 0x3bb   : > { %v11891_v12 = vrot.slane %v6815_v30, 9  ;;  %v6901_v30 = vrot.slane %v14303_v17, 5 }
 0x3bd   : > { %v6878_v16 = vsel %vm14762_vm6, %v11891_v12, %v6877_v26  ;;  %v6885_v26 = vsel %vm14762_vm6, %v11892_v47, %v6884_v1  ;;  %v8435_v47 = vld [vmem:[#allocation2 + $0x30] sm:$0xe] }
 0x3c1   : > { %13080 = vmatmul.mubr.bf16.gmra.mrb[20].mxu1 %v11876_v10  ;;  %v14298_v10 = vld [vmem:[#allocation2 + $0x20] sm:$0x1] }
 0x3c2   : > { %13083 = vmatprep.mubr.bf16.mxu1 %v18415_v44  ;;  %v6880_v14 = vrot.slane %v14298_v10, 5  ;;  %v14300_v44 = vld [vmem:[#allocation2 + $0x2c] sm:$0x1]  ;;  %v6819_v10 = vld [vmem:[#allocation2 + $0x48] sm:$0xe] }
 0x3c3   : > { %v6887_v27 = vrot.slane %v14300_v44, 5  ;;  %v11895_v12 = vrot.slane %v6819_v10, 9  ;;  %v16927_v44 = vld [vmem:[#allocation2 + $0x38] sm:$0x1]  ;;  %v16967_v10 = vld [vmem:[#allocation2 + $0x64] sm:$0xf] }
 0x3c4   : > { %v6881_v37 = vsel %vm14762_vm6, %v6879_v0, %v6880_v14  ;;  %v6908_v14 = vrot.slane %v16492_v7, 5 }
 0x3c5   : > { %v11907_v63 = vcombine.low %v6878_v16, %v6881_v37  ;;  %v6906_v7 = vsel %vm14762_vm6, %v11895_v12, %v6905_v23  ;;  %v14191_v16 = vld [vmem:[%s18248_s3 + $0xf0] sm:$0xff]   ;;  %v8519_v23 = vrot.slane %v16925_v53, 5 }
 0x3c6   : > { %v6909_v37 = vsel %vm14762_vm6, %v6907_v57, %v6908_v14 }
 0x3c7   : > { %v8521_v2 = vrot.slane %v8519_v23, 4 }
 0x3c9   : > { %13084 = vmatmul.mubr.bf16.gmra.mrb[24].mxu1 %v18416_v49  ;;  %v6888_v49 = vsel %vm14762_vm6, %v6886_v40, %v6887_v27  ;;  %v14192_v40 = vld [vmem:[%s18248_s3 + $0xf8] sm:$0xff]   ;;  %v16929_v27 = vld [vmem:[#allocation2 + $0x40] sm:$0xf] }
 0x3ca   : > { %13087 = vmatprep.mubr.bf16.mxu1 %v18417_v51  ;;  %v14302_v51 = vld [vmem:[#allocation2 + $0x40] sm:$0xf]  ;;  %v8526_v17 = vrot.slane %v16929_v27, 5 }
 0x3cb   : > { %v6898_v28 = vrot.slane %v14302_v51, 5 }
 0x3cd   : > { %v6900_v0 = vrot.slane %v6898_v28, 4  ;;  %v6899_v8 = vsel %vm14762_vm6, %v11894_v45, %v6898_v28 }
 0x3cf   : > { %v6902_v1 = vsel %vm14762_vm6, %v6900_v0, %v6901_v30  ;;  %v8438_v30 = vld [vmem:[#allocation2 + $0x54] sm:$0xe] }
 0x3d0   : > { %v11910_v20 = vcombine.low %v6899_v8, %v6902_v1  ;;  %v8528_v8 = vrot.slane %v8526_v17, 4 }
 0x3d1   : > { %13088 = vmatmul.mubr.bf16.gmra.mrb[28].mxu1 %v18418_v18  ;;  %v14188_v18 = vld [vmem:[%s18248_s3 + $0xd8] sm:$0xff]  }
 0x3d2   : > { %13107 = vmatprep.mubr.bf16.mxu1 %v11905_v15  ;;  %v11908_v15 = vcombine.low %v6885_v26, %v6888_v49  ;;  %v18420_v49 = vcombine.low %v16723_v21, %v16733_v35  ;;  %v8437_v26 = vld [vmem:[#allocation2 + $0x48] sm:$0xe]  ;;  %v16953_v21 = vld [vmem:[#allocation2 + $0x5c] sm:$0x1] }
 0x3d3   : > { %v11982_v45 = vrot.slane %v8437_v26, 9 }
 0x3d9   : > { %13108 = vmatmul.mubr.bf16.vlgmr.msra.gmra.mrb[0].mxu1 %v11906_v43  ;;  %v11911_v43 = vcombine.low %v6906_v7, %v6909_v37  ;;  %v8439_v7 = vld [vmem:[#allocation2 + $0x60] sm:$0xe] }
 0x3da   : > { %13140 = vmatpush3.bf16.msra.mxu1 %v14185_v41  ;;  %13111 = vmatprep.mubr.bf16.mxu1 %v11907_v63  ;;  %v6895_v41 = vsel %vm14762_vm6, %v6893_v62, %v6894_v19  ;;  %v16920_v63 = vld [vmem:[#allocation2 + $0x2c] sm:$0x1]  ;;  %v8434_v62 = vld [vmem:[#allocation2 + $0x24] sm:$0xe]  ;;  %v16935_v19 = vld [vmem:[#allocation2 + $0x44] sm:$0x1] }
 0x3db   : > { %13141 = vmatprep.subr.bf16.mxu1 %v14186_v9  ;;  %v11909_v24 = vcombine.low %v6892_v50, %v6895_v41  ;;  %v11979_v51 = vrot.slane %v8434_v62, 9  ;;  %v8515_v4 = vrot.slane %v16920_v63, 5  ;;  %v8436_v41 = vld [vmem:[#allocation2 + $0x3c] sm:$0xe] }
 0x3dc   : > { %v11981_v57 = vrot.slane %v8436_v41, 9  ;;  %v18423_v41 = vcombine.low %v16751_v58, %v16762_v59 }
 0x3de   : > { %13142 = vmatpush3.bf16.msra.mxu1 %v14186_v9  ;;  %v16918_v9 = vld [vmem:[#allocation2 + $0x28] sm:$0xf]  ;;  %v16982_v37 = vsel %vm14762_vm6, %v11981_v57, %v8526_v17  ;;  %v17018_v57 = vld [vmem:[#allocation2 + $0x80] sm:$0x1] }
 0x3df   : > { %13143 = vmatprep.subr.bf16.mxu1 %v14187_v48  ;;  %v8512_v38 = vrot.slane %v16918_v9, 5 }
 0x3e1   : > { %13112 = vmatmul.mubr.bf16.gmra.mrb[4].mxu1 %v11908_v15  ;;  %v8514_v28 = vrot.slane %v8512_v38, 4  ;;  %v16951_v15 = vld [vmem:[#allocation2 + $0x58] sm:$0xf]  ;;  %v16957_v35 = vsel %vm14762_vm6, %v11979_v51, %v8512_v38  ;;  %v18421_v38 = vcombine.low %v16742_v31, %v16747_v33  ;;  %v8543_v51 = vrot.slane %v16953_v21, 5  ;;  %v17008_v31 = vld [vmem:[#allocation2 + $0x7c] sm:$0xf] }
 0x3e2   : > { %13115 = vmatprep.mubr.bf16.mxu1 %v11909_v24  ;;  %13144 = vmatpush3.bf16.msra.mxu1 %v14187_v48  ;;  %v16937_v48 = vld [vmem:[#allocation2 + $0x4c] sm:$0xf]  ;;  %v8522_v24 = vrot.slane %v16927_v44, 5  ;;  %v8540_v62 = vrot.slane %v16951_v15, 5  ;;  %v17054_v33 = vld [vmem:[#allocation2 + $0xa0] sm:$0xf] }
 0x3e3   : > { %13145 = vmatprep.subr.bf16.mxu1 %v14188_v18  ;;  %v16961_v50 = vsel %vm14762_vm6, %v8514_v28, %v8515_v4  ;;  %v8533_v1 = vrot.slane %v16937_v48, 5  ;;  %v8547_v28 = vrot.slane %v16967_v10, 5  ;;  %v8440_v4 = vld [vmem:[#allocation2 + $0x6c] sm:$0xe] }
 0x3e4   : > { %v16978_v12 = vsel %vm14762_vm6, %v8521_v2, %v8522_v24  ;;  %v8542_v26 = vrot.slane %v8540_v62, 4  ;;  %v8441_v24 = vld [vmem:[#allocation2 + $0x78] sm:$0xe]  ;;  %v17016_v2 = vld [vmem:[#allocation2 + $0x74] sm:$0x1] }
 0x3e5   : > { %v8549_v17 = vrot.slane %v8547_v28, 4  ;;  %v8557_v58 = vrot.slane %v17016_v2, 5 }
 0x3e6   : > { %13146 = vmatpush3.bf16.msra.mxu1 %v14188_v18  ;;  %v11980_v18 = vrot.slane %v8435_v47, 9 }
 0x3e7   : > { %13147 = vmatprep.subr.bf16.mxu1 %v14189_v6 }
 0x3e8   : > { %v16971_v14 = vsel %vm14762_vm6, %v11980_v18, %v8519_v23  ;;  %v11984_v18 = vrot.slane %v8439_v7, 9 }
 0x3e9   : > { %13116 = vmatmul.mubr.bf16.gmra.mrb[8].mxu1 %v11910_v20  ;;  %v8536_v20 = vrot.slane %v16948_v61, 5 }
 0x3ea   : > { %13119 = vmatprep.mubr.bf16.mxu1 %v11911_v43  ;;  %13148 = vmatpush3.bf16.msra.mxu1 %v14189_v6  ;;  %v8529_v6 = vrot.slane %v16935_v19, 5 }
 0x3eb   : > { %13149 = vmatprep.subr.bf16.mxu1 %v14190_v22 }
 0x3ec   : > { %v16997_v47 = vsel %vm14762_vm6, %v8528_v8, %v8529_v6  ;;  %v17027_v6 = vld [vmem:[#allocation2 + $0x88] sm:$0xf]  ;;  %v17035_v8 = vsel %vm14762_vm6, %v11984_v18, %v8547_v28  ;;  %v7717_v28 = vld [vmem:[#allocation2 + $0xa4] sm:$0x1] }
 0x3ed   : > { %18427 = vst [vmem:[#allocation7_spill] sm:$0xff] %v17035_v8  ;;  %v8568_v43 = vrot.slane %v17027_v6, 5 }
 0x3ee   : > { %13150 = vmatpush3.bf16.msra.mxu1 %v14190_v22  ;;  %v16985_v22 = vld [vmem:[#allocation2 + $0x68] sm:$0x1] }
 0x3ef   : > { %13151 = vmatprep.subr.bf16.mxu1 %v14191_v16 }
 0x3f1   : > { %13120 = vmatmul.mubr.bf16.gmra.mrb[12].mxu1 %v18419_v11  ;;  %v16993_v11 = vld [vmem:[#allocation2 + $0x70] sm:$0xf] }
 0x3f2   : > { %13123 = vmatprep.mubr.bf16.mxu1 %v18420_v49  ;;  %13152 = vmatpush3.bf16.msra.mxu1 %v14191_v16  ;;  %v8535_v16 = vrot.slane %v8533_v1, 4  ;;  %v17001_v49 = vsel %vm14762_vm6, %v11982_v45, %v8533_v1  ;;  %v7711_v45 = vld [vmem:[#allocation2 + $0x8c] sm:$0x1]  ;;  %v17031_v1 = vsel %vm14762_vm6, %v8542_v26, %v8543_v51  ;;  %v8554_v7 = vrot.slane %v16993_v11, 5  ;;  %v7714_v26 = vld [vmem:[#allocation2 + $0x98] sm:$0x1] }
 0x3f3   : > { %13153 = vmatprep.subr.bf16.mxu1 %v14192_v40  ;;  %18422 = vst [vmem:[#allocation3_spill] sm:$0xff] %v17001_v49  ;;  %18426 = vst [vmem:[#allocation6_spill] sm:$0xff] %v17031_v1  ;;  %v8561_v51 = vrot.slane %v17008_v31, 5  ;;  %v8571_v0 = vrot.slane %v7711_v45, 5  ;;  %v18434_v45 = vcombine.low %v16779_v13, %v16786_v25  ;;  %v17081_v1 = vld [vmem:[#allocation2 + $0xb8] sm:$0xf] }
 0x3f4   : > { %v17014_v23 = vsel %vm14762_vm6, %v8535_v16, %v8536_v20  ;;  %v11985_v20 = vrot.slane %v8440_v4, 9  ;;  %v17038_v16 = vld [vmem:[#allocation2 + $0x94] sm:$0xf]  ;;  %v8556_v18 = vrot.slane %v8554_v7, 4  ;;  %v8582_v25 = vrot.slane %v17054_v33, 5 }
 0x3f5   : > { %18424 = vst [vmem:[#allocation4_spill] sm:$0xff] %v17014_v23  ;;  %v8575_v5 = vrot.slane %v17038_v16, 5 }
 0x3f6   : > { %13154 = vmatpush3.bf16.msra.mxu1 %v14192_v40  ;;  %v11983_v40 = vrot.slane %v8438_v30, 9  ;;  %v8550_v30 = vrot.slane %v16985_v22, 5  ;;  %v17051_v4 = vsel %vm14762_vm6, %v11985_v20, %v8554_v7  ;;  %v17064_v20 = vsel %vm14762_vm6, %v8556_v18, %v8557_v58  ;;  %v8444_v58 = vld [vmem:[#allocation2 + $0x9c] sm:$0xe]  ;;  %v8445_v18 = vld [vmem:[#allocation2 + $0xa8] sm:$0xe] }
 0x3f7   : > { %13187 = vmatprep.subr.bf16.mxu1 %v16946_v54  ;;  %18429 = vst [vmem:[#allocation9_spill] sm:$0xff] %v17051_v4  ;;  %18431 = vst [vmem:[#allocation11_spill] sm:$0xff] %v17064_v20  ;;  %v8577_v36 = vrot.slane %v8575_v5, 4 }
 0x3f8   : > { %v17024_v59 = vsel %vm14762_vm6, %v11983_v40, %v8540_v62  ;;  %v17044_v62 = vsel %vm14762_vm6, %v8549_v17, %v8550_v30  ;;  %v8443_v40 = vld [vmem:[#allocation2 + $0x90] sm:$0xe]  ;;  %v8563_v17 = vrot.slane %v8561_v51, 4  ;;  %v8564_v30 = vrot.slane %v17018_v57, 5 }
 0x3f9   : > { %13124 = vmatmul.mubr.bf16.gmra.mrb[16].mxu1 %v18421_v38  ;;  %18425 = vst [vmem:[#allocation5_spill] sm:$0xff] %v17024_v59  ;;  %18428 = vst [vmem:[#allocation8_spill] sm:$0xff] %v17044_v62  ;;  %v11986_v38 = vrot.slane %v8441_v24, 9  ;;  %v8570_v62 = vrot.slane %v8568_v43, 4  ;;  %v11988_v8 = vrot.slane %v8443_v40, 9 }
 0x3fa   : > { %13127 = vmatprep.mubr.bf16.mxu1 %v18423_v41  ;;  %v8442_v41 = vld [vmem:[#allocation2 + $0x84] sm:$0xe]  ;;  %v17074_v55 = vsel %vm14762_vm6, %v8563_v17, %v8564_v30  ;;  %v7703_v59 = vld [vmem:[#allocation2 + $0x6c] sm:$0xf] }
 0x3fb   : > { %v17058_v24 = vsel %vm14762_vm6, %v11986_v38, %v8561_v51  ;;  %v11987_v7 = vrot.slane %v8442_v41, 9  ;;  %v7719_v38 = vld [vmem:[#allocation2 + $0xac] sm:$0xf]  ;;  %18433 = vst [vmem:[#allocation12_spill] sm:$0xff] %v17074_v55  ;;  %v7720_v41 = vld [vmem:[#allocation2 + $0xb0] sm:$0x1]  ;;  %v17089_v40 = vsel %vm14762_vm6, %v8570_v62, %v8571_v0  ;;  %v17093_v13 = vsel %vm14762_vm6, %v11988_v8, %v8575_v5 }
 0x3fc   : > { %18430 = vst [vmem:[#allocation10_spill] sm:$0xff] %v17058_v24  ;;  %v7723_v51 = vld [vmem:[#allocation2 + $0xbc] sm:$0x1]  ;;  %18436 = vst [vmem:[#allocation14_spill] sm:$0xff] %v17089_v40  ;;  %v7725_v30 = vld [vmem:[#allocation2 + $0xc4] sm:$0xf]  ;;  %v18443_v0 = vcombine.low %v16801_v42, %v16805_v56 }
 0x3fd   : > { %v17085_v17 = vsel %vm14762_vm6, %v11987_v7, %v8568_v43  ;;  %18437 = vst [vmem:[#allocation15_spill] sm:$0xff] %v17093_v13  ;;  %v11989_v43 = vrot.slane %v8444_v58, 9  ;;  %v8589_v7 = vrot.slane %v7719_v38, 5  ;;  %v7726_v55 = vld [vmem:[#allocation2 + $0xc8] sm:$0x1]  ;;  %v8584_v62 = vrot.slane %v8582_v25, 4 }
 0x3fe   : > { %18435 = vst [vmem:[#allocation13_spill] sm:$0xff] %v17085_v17  ;;  %v8585_v5 = vrot.slane %v7717_v28, 5  ;;  %v11990_v8 = vrot.slane %v8445_v18, 9  ;;  %v8596_v40 = vrot.slane %v17081_v1, 5  ;;  %v8603_v28 = vrot.slane %v7725_v30, 5  ;;  %v14207_v17 = vld [vmem:[#allocation2 + $0x78] sm:$0xff]  }
 0x3ff   : > { %v17106_v24 = vsel %vm14762_vm6, %v11989_v43, %v8582_v25  ;;  %v8591_v20 = vrot.slane %v8589_v7, 4  ;;  %v8599_v43 = vrot.slane %v7723_v51, 5  ;;  %v18444_v30 = vcombine.low %v16809_v60, %v16815_v32  ;;  %v14193_v32 = vld [vmem:[#allocation2 + $0xc] sm:$0xff]  }
 0x400   : > { %18439 = vst [vmem:[#allocation17_spill] sm:$0xff] %v17106_v24  ;;  %v17111_v38 = vsel %vm14762_vm6, %v8584_v62, %v8585_v5  ;;  %v17115_v58 = vsel %vm14762_vm6, %v11990_v8, %v8589_v7  ;;  %v8605_v5 = vrot.slane %v8603_v28, 4  ;;  %v14196_v8 = vld [vmem:[#allocation2 + $0x24] sm:$0xff]   ;;  %v17167_v62 = vld [vmem:[#allocation2 + $0x14] sm:$0x1] }
 0x401   : > { %13128 = vmatmul.mubr.bf16.gmra.mrb[20].mxu1 %v18432_v52  ;;  %v8578_v52 = vrot.slane %v7714_v26, 5  ;;  %v8592_v26 = vrot.slane %v7720_v41, 5  ;;  %18440 = vst [vmem:[#allocation18_spill] sm:$0xff] %v17111_v38  ;;  %18441 = vst [vmem:[#allocation19_spill] sm:$0xff] %v17115_v58  ;;  %v8598_v41 = vrot.slane %v8596_v40, 4  ;;  %v7809_v38 = vshll.u32 %v16925_v53, 16 }
 0x402   : > { %13131 = vmatprep.mubr.bf16.mxu1 %v18434_v45 }
 0x403   : > { %v17100_v45 = vsel %vm14762_vm6, %v8577_v36, %v8578_v52  ;;  %v8447_v36 = vld [vmem:[#allocation2 + $0xc0] sm:$0xe]  ;;  %v11991_v52 = vrot.slane %v8446_v34, 9  ;;  %v17121_v25 = vsel %vm14762_vm6, %v8591_v20, %v8592_v26  ;;  %v8606_v34 = vrot.slane %v7726_v55, 5  ;;  %v14195_v26 = vld [vmem:[#allocation2 + $0x18] sm:$0xff]  }
 0x404   : > { %18438 = vst [vmem:[#allocation16_spill] sm:$0xff] %v17100_v45  ;;  %18442 = vst [vmem:[#allocation20_spill] sm:$0xff] %v17121_v25  ;;  %v11992_v7 = vrot.slane %v8447_v36, 9  ;;  %v17137_v51 = vsel %vm14762_vm6, %v8598_v41, %v8599_v43  ;;  %v14200_v36 = vld [vmem:[%s18248_s3 + $0x110] sm:$0xff]  }
 0x405   : > { %v17133_v20 = vsel %vm14762_vm6, %v11991_v52, %v8596_v40  ;;  %18446 = vst [vmem:[#allocation22_spill] sm:$0xff] %v17137_v51  ;;  %v17147_v55 = vsel %vm14762_vm6, %v8605_v5, %v8606_v34  ;;  %v18449_v40 = vcombine.low %v16825_v39, %v16829_v46  ;;  %v7679_v52 = vld [vmem:[#allocation2 + $0xc] sm:$0xf]  ;;  %v14198_v5 = vld [vmem:[#allocation2 + $0x30] sm:$0xff]   ;;  %v14199_v34 = vld [vmem:[#allocation2 + $0x3c] sm:$0xff]   ;;  %v7785_v51 = vshll.u32 %v16918_v9, 16 }
 0x406   : > { %18445 = vst [vmem:[#allocation21_spill] sm:$0xff] %v17133_v20  ;;  %v17143_v56 = vsel %vm14762_vm6, %v11992_v7, %v8603_v28  ;;  %18448 = vst [vmem:[#allocation24_spill] sm:$0xff] %v17147_v55  ;;  %v7680_v28 = vld [vmem:[#allocation2 + $0x10] sm:$0xf]  ;;  %v7728_v39 = vshrl.u32 %v7679_v52, 16  ;;  %v7731_v46 = vshll.u32 %v7679_v52, 16 }
 0x407   : > { %18447 = vst [vmem:[#allocation23_spill] sm:$0xff] %v17143_v56  ;;  %v7737_v41 = vshll.u32 %v7680_v28, 16  ;;  %v7741_v43 = vshrl.u32 %v7680_v28, 16  ;;  %v7682_v7 = vld [vmem:[#allocation2 + $0x18] sm:$0xf]  ;;  %v14206_v28 = vld [vmem:[%s18248_s3 + $0x120] sm:$0xff]  }
 0x408   : > { %v17175_v56 = vld [vmem:[#allocation2 + $0x20] sm:$0x1] }
 0x409   : > { %13132 = vmatmul.mubr.bf16.gmra.mrb[24].mxu1 %v18443_v0  ;;  %v14197_v0 = vld [vmem:[%s18248_s3 + $0x108] sm:$0xff]   ;;  %v7743_v52 = vrot.slane %v7741_v43, 4  ;;  %v14202_v43 = vld [vmem:[#allocation2 + $0x54] sm:$0xff]  }
 0x40a   : > { %13135 = vmatprep.mubr.bf16.mxu1 %v18444_v30  ;;  %v7683_v30 = vld [vmem:[#allocation2 + $0x1c] sm:$0xf] }
 0x40b   : > { %v7761_v60 = vshll.u32 %v7683_v30, 16  ;;  %v7765_v42 = vshrl.u32 %v7683_v30, 16  ;;  %v7747_v30 = vshll.u32 %v17167_v62, 16 }
 0x40d   : > { %v7749_v20 = vrot.slane %v7747_v30, 5 }
 0x411   : > { %13136 = vmatmul.mubr.bf16.gmra.mrb[28].mxu1 %v18449_v40  ;;  %v7755_v40 = vshll.u32 %v7682_v7, 16 }
 0x412   : > { %13155 = vmatprep.mubr.bf16.mxu1 %v14193_v32  ;;  %v7752_v32 = vshrl.u32 %v7682_v7, 16 }
 0x413   : > { %v7757_v55 = vrot.slane %v7755_v40, 5 }
 0x414   : > { %v7754_v18 = vrot.slane %v7752_v32, 4 }
 0x419   : > { %13156 = vmatmul.mubr.bf16.vlgmr.msra.gmra.mrb[0].mxu1 %v14195_v26  ;;  %v7730_v26 = vrot.slane %v7728_v39, 4  ;;  %v14209_v39 = vld [vmem:[%s18248_s3 + $0x128] sm:$0xff]  }
 0x41a   : > { %13188 = vmatpush3.bf16.msra.mxu1 %v16946_v54  ;;  %13159 = vmatprep.mubr.bf16.mxu1 %v14196_v8  ;;  %v14203_v54 = vld [vmem:[%s18248_s3 + $0x118] sm:$0xff]   ;;  %v7739_v8 = vrot.slane %v7737_v41, 5  ;;  %v7767_v41 = vrot.slane %v7765_v42, 4 }
 0x41b   : > { %13189 = vmatprep.subr.bf16.mxu1 %v14197_v0 }
 0x41e   : > { %13190 = vmatpush3.bf16.msra.mxu1 %v14197_v0  ;;  %v7733_v0 = vrot.slane %v7731_v46, 5  ;;  %v17172_v46 = vrot.slane %v7761_v60, 5  ;;  %v14212_v60 = vld [vmem:[%s18248_s3 + $0x130] sm:$0xff]  }
 0x41f   : > { %13191 = vmatprep.subr.bf16.mxu1 %v14200_v36 }
 0x420   : > { %v7734_v7 = vor.u32 %v7733_v0, %v7730_v26  ;;  %v7768_v42 = vor.u32 %v7767_v41, %v17172_v46  ;;  %v14204_v41 = vld [vmem:[#allocation2 + $0x60] sm:$0xff]  }
 0x421   : > { %13160 = vmatmul.mubr.bf16.gmra.mrb[4].mxu1 %v14198_v5  ;;  %v7685_v5 = vld [vmem:[#allocation2 + $0x24] sm:$0xf] }
 0x422   : > { %13163 = vmatprep.mubr.bf16.mxu1 %v14199_v34  ;;  %13192 = vmatpush3.bf16.msra.mxu1 %v14200_v36  ;;  %v7744_v34 = vor.u32 %v7743_v52, %v7739_v8  ;;  %v14201_v36 = vld [vmem:[#allocation2 + $0x48] sm:$0xff]   ;;  %v7776_v32 = vshrl.u32 %v7685_v5, 16  ;;  %v7779_v40 = vshll.u32 %v7685_v5, 16  ;;  %v7735_v26 = vrot.slane %v7734_v7, 4 }
 0x423   : > { %13193 = vmatprep.subr.bf16.mxu1 %v14203_v54  ;;  %v7771_v52 = vshll.u32 %v17175_v56, 16  ;;  %v7769_v30 = vrot.slane %v7768_v42, 4  ;;  %v7813_v42 = vshrl.u32 %v16925_v53, 16  ;;  %v7857_v53 = vshll.u32 %v16937_v48, 16 }
 0x424   : > { %v7745_v0 = vrot.slane %v7744_v34, 4  ;;  %v7778_v25 = vrot.slane %v7776_v32, 4  ;;  %v7781_v5 = vrot.slane %v7779_v40, 5  ;;  %v7740_v7 = vsel %vm14446_vm2, %v7735_v26, %v7739_v8 }
 0x425   : > { %v7773_v32 = vrot.slane %v7771_v52, 5  ;;  %v17191_v40 = vrot.slane %v7785_v51, 5  ;;  %v7837_v52 = vshrl.u32 %v16929_v27, 16 }
 0x426   : > { %13194 = vmatpush3.bf16.msra.mxu1 %v14203_v54  ;;  %v7758_v54 = vor.u32 %v7757_v55, %v7754_v18  ;;  %v7789_v18 = vshrl.u32 %v16918_v9, 16  ;;  %v7750_v34 = vsel %vm14446_vm2, %v7745_v0, %v7749_v20  ;;  %v7795_v9 = vshll.u32 %v16920_v63, 16 }
 0x427   : > { %13195 = vmatprep.subr.bf16.mxu1 %v14206_v28  ;;  %v17194_v20 = vcombine.low %v7740_v7, %v7750_v34  ;;  %v7839_v13 = vrot.slane %v7837_v52, 4 }
 0x428   : > { %v7759_v55 = vrot.slane %v7758_v54, 4  ;;  %v7782_v54 = vor.u32 %v7781_v5, %v7778_v25  ;;  %v7791_v58 = vrot.slane %v7789_v18, 4  ;;  %v7833_v25 = vshll.u32 %v16929_v27, 16  ;;  %v7694_v5 = vld [vmem:[#allocation2 + $0x48] sm:$0xf]  ;;  %v17206_v18 = vld [vmem:[%s18248_s3 + $0x140] sm:$0xff]  }
 0x429   : > { %13164 = vmatmul.mubr.bf16.gmra.mrb[8].mxu1 %v14201_v36  ;;  %v7691_v36 = vld [vmem:[#allocation2 + $0x3c] sm:$0xf]  ;;  %v7848_v24 = vshrl.u32 %v7694_v5, 16  ;;  %v7851_v45 = vshll.u32 %v7694_v5, 16 }
 0x42a   : > { %13167 = vmatprep.mubr.bf16.mxu1 %v14202_v43  ;;  %13196 = vmatpush3.bf16.msra.mxu1 %v14206_v28  ;;  %v7688_v28 = vld [vmem:[#allocation2 + $0x30] sm:$0xf]  ;;  %v14215_v43 = vld [vmem:[%s18248_s3 + $0x138] sm:$0xff]   ;;  %v7764_v0 = vsel %vm14446_vm2, %v7759_v55, %v17172_v46  ;;  %v7824_v51 = vshrl.u32 %v7691_v36, 16  ;;  %v7827_v63 = vshll.u32 %v7691_v36, 16  ;;  %v7774_v46 = vsel %vm14446_vm2, %v7769_v30, %v7773_v32 }
 0x42b   : > { %13197 = vmatprep.subr.bf16.mxu1 %v14209_v39  ;;  %v7800_v8 = vshrl.u32 %v7688_v28, 16  ;;  %v7803_v26 = vshll.u32 %v7688_v28, 16  ;;  %v17210_v55 = vrot.slane %v7795_v9, 5  ;;  %v17214_v28 = vrot.slane %v7782_v54, 4  ;;  %v7697_v36 = vld [vmem:[#allocation2 + $0x54] sm:$0xf] }
 0x42c   : > { %v7792_v27 = vor.u32 %v7791_v58, %v17191_v40  ;;  %v7826_v30 = vrot.slane %v7824_v51, 4  ;;  %v7829_v32 = vrot.slane %v7827_v63, 5  ;;  %v17219_v9 = vrot.slane %v7833_v25, 5 }
 0x42d   : > { %v7802_v7 = vrot.slane %v7800_v8, 4  ;;  %v7805_v34 = vrot.slane %v7803_v26, 5  ;;  %v7872_v54 = vshrl.u32 %v7697_v36, 16  ;;  %v7875_v8 = vshll.u32 %v7697_v36, 16  ;;  %v14208_v26 = vld [vmem:[#allocation2 + $0x84] sm:$0xff]  }
 0x42e   : > { %13198 = vmatpush3.bf16.msra.mxu1 %v14209_v39  ;;  %v14205_v39 = vld [vmem:[#allocation2 + $0x6c] sm:$0xff]   ;;  %v7885_v51 = vshrl.u32 %v16951_v15, 16  ;;  %v7793_v63 = vrot.slane %v7792_v27, 4  ;;  %v7819_v25 = vshll.u32 %v16927_v44, 16  ;;  %v7850_v52 = vrot.slane %v7848_v24, 4 }
 0x42f   : > { %13199 = vmatprep.subr.bf16.mxu1 %v14212_v60  ;;  %v7853_v5 = vrot.slane %v7851_v45, 5  ;;  %v7843_v36 = vshll.u32 %v16935_v19, 16  ;;  %v7874_v4 = vrot.slane %v7872_v54, 4 }
 0x430   : > { %v7887_v27 = vrot.slane %v7885_v51, 4  ;;  %v7798_v19 = vsel %vm14446_vm2, %v7793_v63, %v17210_v55  ;;  %v14211_v51 = vld [vmem:[#allocation2 + $0x9c] sm:$0xff]  }
 0x431   : > { %13168 = vmatmul.mubr.bf16.gmra.mrb[12].mxu1 %v14204_v41  ;;  %v17217_v41 = vrot.slane %v7809_v38, 5  ;;  %v17224_v38 = vcombine.low %v7764_v0, %v7774_v46  ;;  %v7840_v46 = vor.u32 %v7839_v13, %v17219_v9  ;;  %v7854_v45 = vor.u32 %v7853_v5, %v7850_v52 }
 0x432   : > { %13171 = vmatprep.mubr.bf16.mxu1 %v14205_v39  ;;  %13200 = vmatpush3.bf16.msra.mxu1 %v14212_v60  ;;  %v7861_v60 = vshrl.u32 %v16937_v48, 16  ;;  %v7815_v39 = vrot.slane %v7813_v42, 4  ;;  %v17222_v48 = vrot.slane %v7857_v53, 5  ;;  %v7881_v42 = vshll.u32 %v16951_v15, 16  ;;  %v7700_v53 = vld [vmem:[#allocation2 + $0x60] sm:$0xf] }
 0x433   : > { %13201 = vmatprep.subr.bf16.mxu1 %v14215_v43  ;;  %v7877_v15 = vrot.slane %v7875_v8, 5  ;;  %v7896_v44 = vshrl.u32 %v7700_v53, 16  ;;  %v7899_v24 = vshll.u32 %v7700_v53, 16  ;;  %v7845_v54 = vrot.slane %v7843_v36, 5 }
 0x434   : > { %v7863_v58 = vrot.slane %v7861_v60, 4  ;;  %v7806_v60 = vor.u32 %v7805_v34, %v7802_v7  ;;  %v7816_v0 = vor.u32 %v7815_v39, %v17217_v41  ;;  %v7905_v7 = vshll.u32 %v16967_v10, 16 }
 0x435   : > { %v7909_v34 = vshrl.u32 %v16967_v10, 16  ;;  %v7821_v39 = vrot.slane %v7819_v25, 5  ;;  %v7898_v5 = vrot.slane %v7896_v44, 4  ;;  %v7901_v53 = vrot.slane %v7899_v24, 5  ;;  %v17274_v24 = vld [vmem:[#allocation2 + $0x78] sm:$0xf] }
 0x436   : > { %13202 = vmatpush3.bf16.msra.mxu1 %v14215_v43  ;;  %v7788_v43 = vsel %vm14446_vm2, %v17214_v28, %v17191_v40  ;;  %v7830_v40 = vor.u32 %v7829_v32, %v7826_v30  ;;  %v7864_v28 = vor.u32 %v7863_v58, %v17222_v48  ;;  %v7817_v13 = vrot.slane %v7816_v0, 4  ;;  %v14210_v32 = vld [vmem:[#allocation2 + $0x90] sm:$0xff]  }
 0x437   : > { %13235 = vmatprep.subr.bf16.mxu1 %v17206_v18  ;;  %v7841_v30 = vrot.slane %v7840_v46, 4  ;;  %v7807_v58 = vrot.slane %v7806_v60, 4  ;;  %v7855_v10 = vrot.slane %v7854_v45, 4  ;;  %v17246_v49 = vrot.slane %v7905_v7, 5 }
 0x438   : > { %v7865_v8 = vrot.slane %v7864_v28, 4  ;;  %v7831_v52 = vrot.slane %v7830_v40, 4  ;;  %v7911_v55 = vrot.slane %v7909_v34, 4  ;;  %v17248_v63 = vcombine.low %v7788_v43, %v7798_v19  ;;  %v17285_v19 = vld [vmem:[#allocation2 + $0x20] sm:$0x1] }
 0x439   : > { %13172 = vmatmul.mubr.bf16.gmra.mrb[16].mxu1 %v14207_v17  ;;  %v17237_v17 = vrot.slane %v7881_v42, 5  ;;  %v7878_v42 = vor.u32 %v7877_v15, %v7874_v4  ;;  %v7822_v25 = vsel %vm14446_vm2, %v7817_v13, %v7821_v39  ;;  %v7846_v4 = vsel %vm14446_vm2, %v7841_v30, %v7845_v54  ;;  %18450 = vst [vmem:[#allocation25_spill] sm:$0xff] %v17285_v19  ;;  %v14213_v13 = vld [vmem:[#allocation2 + $0xa8] sm:$0xff]   ;;  %v10068_v54 = vld [vmem:[#allocation2 + $0x18] sm:$0xe] }
 0x43a   : > { %13175 = vmatprep.mubr.bf16.mxu1 %v14208_v26  ;;  %v7867_v26 = vshll.u32 %v16948_v61, 16  ;;  %v7891_v60 = vshll.u32 %v16953_v21, 16  ;;  %v7920_v36 = vshrl.u32 %v7703_v59, 16  ;;  %v7923_v40 = vshll.u32 %v7703_v59, 16 }
 0x43b   : > { %v7888_v61 = vor.u32 %v7887_v27, %v17237_v17  ;;  %v17257_v46 = vrot.slane %v7878_v42, 4  ;;  %v7812_v43 = vsel %vm14446_vm2, %v7807_v58, %v17217_v41  ;;  %v7902_v15 = vor.u32 %v7901_v53, %v7898_v5  ;;  %v17276_v41 = vld [vmem:[#allocation2 + $0x1c] sm:$0xf]  ;;  %v17298_v58 = vld [vmem:[#allocation2 + $0x2c] sm:$0x1] }
 0x43c   : > { %v7869_v23 = vrot.slane %v7867_v26, 5  ;;  %v7929_v27 = vshll.u32 %v16993_v11, 16  ;;  %v17265_v44 = vcombine.low %v7812_v43, %v7822_v25  ;;  %v7836_v21 = vsel %vm14446_vm2, %v7831_v52, %v17219_v9  ;;  %v17287_v9 = vld [vmem:[#allocation2 + $0x28] sm:$0xf]  ;;  %18452 = vst [vmem:[#allocation27_spill] sm:$0xff] %v17298_v58 }
 0x43d   : > { %v17262_v28 = vrot.slane %v7888_v61, 4  ;;  %v7912_v59 = vor.u32 %v7911_v55, %v17246_v49  ;;  %v17278_v45 = vcombine.low %v7836_v21, %v7846_v4  ;;  %v17282_v7 = vrot.slane %v7891_v60, 5  ;;  %18451 = vst [vmem:[#allocation26_spill] sm:$0xff] %v17287_v9  ;;  %v10069_v5 = vld [vmem:[#allocation2 + $0x24] sm:$0xe] }
 0x43e   : > { %v7870_v0 = vsel %vm14446_vm2, %v7865_v8, %v7869_v23  ;;  %v7860_v23 = vsel %vm14446_vm2, %v7855_v10, %v17222_v48  ;;  %v17293_v39 = vrot.slane %v7920_v36, 4  ;;  %v17295_v30 = vrot.slane %v7923_v40, 5  ;;  %v14214_v8 = vld [vmem:[#allocation2 + $0xb4] sm:$0xff]   ;;  %v17318_v60 = vld [vmem:[#allocation2 + $0x40] sm:$0xf] }
 0x43f   : > { %v17280_v26 = vcombine.low %v7860_v23, %v7870_v0  ;;  %v17306_v52 = vrot.slane %v7929_v27, 5  ;;  %v10134_v61 = vrot.slane %v17276_v41, 5  ;;  %v17309_v53 = vrot.slane %v7912_v59, 4  ;;  %v17314_v25 = vld [vmem:[#allocation2 + $0x34] sm:$0xf]  ;;  %18455 = vst [vmem:[#allocation30_spill] sm:$0xff] %v17318_v60 }
 0x440   : > { %v7944_v10 = vshrl.u32 %v17274_v24, 16  ;;  %18453 = vst [vmem:[#allocation28_spill] sm:$0xff] %v17314_v25  ;;  %v17316_v4 = vld [vmem:[#allocation2 + $0x38] sm:$0x1]  ;;  %v12065_v0 = vrot.slane %v10068_v54, 9  ;;  %v10137_v40 = vrot.slane %v17285_v19, 5 }
 0x441   : > { %13176 = vmatmul.mubr.bf16.gmra.mrb[20].mxu1 %v14210_v32  ;;  %v7933_v32 = vshrl.u32 %v16993_v11, 16  ;;  %18454 = vst [vmem:[#allocation29_spill] sm:$0xff] %v17316_v4  ;;  %v10136_v36 = vrot.slane %v10134_v61, 4  ;;  %v10141_v43 = vrot.slane %v17287_v9, 5  ;;  %v12066_v23 = vrot.slane %v10069_v5, 9  ;;  %v14216_v21 = vld [vmem:[#allocation2 + $0xc0] sm:$0xff]  }
 0x442   : > { %13179 = vmatprep.mubr.bf16.mxu1 %v14211_v51  ;;  %v17304_v51 = vrot.slane %v7902_v15, 4  ;;  %v10070_v59 = vld [vmem:[#allocation2 + $0x30] sm:$0xe]  ;;  %v10144_v34 = vrot.slane %v17298_v58, 5  ;;  %v10071_v48 = vld [vmem:[#allocation2 + $0x3c] sm:$0xe] }
 0x443   : > { %v17324_v27 = vrot.slane %v7933_v32, 4  ;;  %v17335_v54 = vsel %vm14762_vm6, %v10136_v36, %v10137_v40  ;;  %v10143_v11 = vrot.slane %v10141_v43, 4  ;;  %v17338_v32 = vrot.slane %v7944_v10, 4  ;;  %v17341_v5 = vld [vmem:[#allocation2 + $0x44] sm:$0x1] }
 0x444   : > { %18458 = vst [vmem:[#allocation33_spill] sm:$0xff] %v17335_v54  ;;  %18459 = vst [vmem:[#allocation34_spill] sm:$0xff] %v17341_v5  ;;  %v17348_v36 = vsel %vm14762_vm6, %v12066_v23, %v10141_v43  ;;  %v12067_v10 = vrot.slane %v10070_v59, 9  ;;  %v10155_v55 = vrot.slane %v17318_v60, 5  ;;  %v10072_v42 = vld [vmem:[#allocation2 + $0x48] sm:$0xe] }
 0x445   : > { %18460 = vst [vmem:[#allocation35_spill] sm:$0xff] %v17348_v36  ;;  %v17352_v40 = vsel %vm14762_vm6, %v10143_v11, %v10144_v34  ;;  %v17355_v58 = vld [vmem:[#allocation2 + $0x58] sm:$0xf]  ;;  %v17362_v23 = vld [vmem:[#allocation2 + $0x5c] sm:$0x1]  ;;  %v10158_v59 = vrot.slane %v17341_v5, 5 }
 0x446   : > { %18461 = vst [vmem:[#allocation36_spill] sm:$0xff] %v17352_v40  ;;  %18462 = vst [vmem:[#allocation37_spill] sm:$0xff] %v17355_v58  ;;  %v10157_v11 = vrot.slane %v10155_v55, 4  ;;  %v10073_v60 = vld [vmem:[#allocation2 + $0x54] sm:$0xe]  ;;  %v12069_v43 = vrot.slane %v10072_v42, 9 }
 0x447   : > { %18463 = vst [vmem:[#allocation38_spill] sm:$0xff] %v17362_v23  ;;  %v17369_v19 = vld [vmem:[#allocation2 + $0x64] sm:$0xf]  ;;  %v17381_v36 = vld [vmem:[#allocation2 + $0x70] sm:$0xf] }
 0x448   : > { %18465 = vst [vmem:[#allocation40_spill] sm:$0xff] %v17369_v19  ;;  %18468 = vst [vmem:[#allocation43_spill] sm:$0xff] %v17381_v36  ;;  %v9338_v9 = vld [vmem:[#allocation2 + $0x74] sm:$0x1] }
 0x449   : > { %13180 = vmatmul.mubr.bf16.gmra.mrb[24].mxu1 %v14213_v13  ;;  %v17327_v13 = vld [vmem:[#allocation2 + $0x4c] sm:$0xf] }
 0x44a   : > { %13183 = vmatprep.mubr.bf16.mxu1 %v14214_v8  ;;  %18456 = vst [vmem:[#allocation31_spill] sm:$0xff] %v17327_v13  ;;  %v17331_v8 = vsel %vm14762_vm6, %v12065_v0, %v10134_v61  ;;  %v10148_v61 = vrot.slane %v17314_v25, 5  ;;  %v9329_v0 = vld [vmem:[#allocation2 + $0x50] sm:$0x1]  ;;  %v12068_v25 = vrot.slane %v10071_v48, 9  ;;  %v10162_v40 = vrot.slane %v17327_v13, 5 }
 0x44b   : > { %18457 = vst [vmem:[#allocation32_spill] sm:$0xff] %v17331_v8  ;;  %v10151_v8 = vrot.slane %v17316_v4, 5  ;;  %v12070_v13 = vrot.slane %v10073_v60, 9  ;;  %v10075_v4 = vld [vmem:[#allocation2 + $0x6c] sm:$0xe] }
 0x44c   : > { %v10150_v54 = vrot.slane %v10148_v61, 4  ;;  %v17366_v34 = vsel %vm14762_vm6, %v12067_v10, %v10148_v61  ;;  %v17377_v48 = vsel %vm14762_vm6, %v12068_v25, %v10155_v55  ;;  %v10074_v61 = vld [vmem:[#allocation2 + $0x60] sm:$0xe]  ;;  %v9335_v10 = vld [vmem:[#allocation2 + $0x68] sm:$0x1]  ;;  %v10169_v55 = vrot.slane %v17355_v58, 5 }
 0x44d   : > { %18464 = vst [vmem:[#allocation39_spill] sm:$0xff] %v17366_v34  ;;  %18467 = vst [vmem:[#allocation42_spill] sm:$0xff] %v17377_v48  ;;  %v9340_v25 = vld [vmem:[#allocation2 + $0x7c] sm:$0xf]  ;;  %v10164_v5 = vrot.slane %v10162_v40, 4  ;;  %v10179_v42 = vrot.slane %v9335_v10, 5 }
 0x44e   : > { %v17373_v15 = vsel %vm14762_vm6, %v10150_v54, %v10151_v8  ;;  %v17387_v8 = vsel %vm14762_vm6, %v10157_v11, %v10158_v59  ;;  %v10165_v54 = vrot.slane %v9329_v0, 5  ;;  %v12071_v11 = vrot.slane %v10074_v61, 9  ;;  %v9341_v59 = vld [vmem:[#allocation2 + $0x80] sm:$0x1]  ;;  %v10076_v48 = vld [vmem:[#allocation2 + $0x78] sm:$0xe] }
 0x44f   : > { %18466 = vst [vmem:[#allocation41_spill] sm:$0xff] %v17373_v15  ;;  %18469 = vst [vmem:[#allocation44_spill] sm:$0xff] %v17387_v8  ;;  %v10171_v15 = vrot.slane %v10169_v55, 4  ;;  %v10176_v0 = vrot.slane %v17369_v19, 5  ;;  %v17404_v60 = vsel %vm14762_vm6, %v12070_v13, %v10169_v55  ;;  %v10183_v8 = vrot.slane %v17381_v36, 5  ;;  %v14218_v13 = vld [vmem:[%s18248_s3 + $0x148] sm:$0xff]  }
 0x450   : > { %v17400_v34 = vsel %vm14762_vm6, %v10164_v5, %v10165_v54  ;;  %v12072_v5 = vrot.slane %v10075_v4, 9  ;;  %v10186_v36 = vrot.slane %v9338_v9, 5  ;;  %v10078_v58 = vld [vmem:[#allocation2 + $0x90] sm:$0xe]  ;;  %v9347_v10 = vld [vmem:[#allocation2 + $0x98] sm:$0x1] }
 0x451   : > { %13184 = vmatmul.mubr.bf16.gmra.mrb[28].mxu1 %v14216_v21  ;;  %v17395_v21 = vsel %vm14762_vm6, %v12069_v43, %v10162_v40  ;;  %18471 = vst [vmem:[#allocation46_spill] sm:$0xff] %v17400_v34  ;;  %v9344_v40 = vld [vmem:[#allocation2 + $0x8c] sm:$0x1]  ;;  %v10178_v19 = vrot.slane %v10176_v0, 4  ;;  %v17420_v54 = vsel %vm14762_vm6, %v12071_v11, %v10176_v0  ;;  %v10185_v55 = vrot.slane %v10183_v8, 4  ;;  %v14219_v9 = vld [vmem:[%s18248_s3 + $0x150] sm:$0xff]  }
 0x452   : > { %13203 = vmatprep.mubr.bf16.mxu1 %v17194_v20  ;;  %v10172_v20 = vrot.slane %v17362_v23, 5  ;;  %18470 = vst [vmem:[#allocation45_spill] sm:$0xff] %v17395_v21  ;;  %v9343_v23 = vld [vmem:[#allocation2 + $0x88] sm:$0xf]  ;;  %18472 = vst [vmem:[#allocation47_spill] sm:$0xff] %v17420_v54  ;;  %v17428_v4 = vsel %vm14762_vm6, %v12072_v5, %v10183_v8  ;;  %v10190_v21 = vrot.slane %v9340_v25, 5 }
 0x453   : > { %v10077_v43 = vld [vmem:[#allocation2 + $0x84] sm:$0xe]  ;;  %v9346_v34 = vld [vmem:[#allocation2 + $0x94] sm:$0xf]  ;;  %18474 = vst [vmem:[#allocation49_spill] sm:$0xff] %v17428_v4  ;;  %v17435_v0 = vsel %vm14762_vm6, %v10185_v55, %v10186_v36  ;;  %v10200_v25 = vrot.slane %v9344_v40, 5 }
 0x454   : > { %v17411_v61 = vsel %vm14762_vm6, %v10171_v15, %v10172_v20  ;;  %v17424_v15 = vsel %vm14762_vm6, %v10178_v19, %v10179_v42  ;;  %v12073_v20 = vrot.slane %v10076_v48, 9  ;;  %v9349_v11 = vld [vmem:[#allocation2 + $0xa0] sm:$0xf]  ;;  %18475 = vst [vmem:[#allocation50_spill] sm:$0xff] %v17435_v0  ;;  %v10193_v19 = vrot.slane %v9341_v59, 5 }
 0x455   : > { %18473 = vst [vmem:[#allocation48_spill] sm:$0xff] %v17424_v15  ;;  %v10197_v42 = vrot.slane %v9343_v23, 5  ;;  %v10192_v8 = vrot.slane %v10190_v21, 4  ;;  %v10079_v5 = vld [vmem:[#allocation2 + $0x9c] sm:$0xe]  ;;  %v12075_v59 = vrot.slane %v10078_v58, 9 }
 0x456   : > { %v9350_v36 = vld [vmem:[#allocation2 + $0xa4] sm:$0x1]  ;;  %v17446_v23 = vsel %vm14762_vm6, %v12073_v20, %v10190_v21  ;;  %v9352_v55 = vld [vmem:[#allocation2 + $0xac] sm:$0xf]  ;;  %v9353_v15 = vld [vmem:[#allocation2 + $0xb0] sm:$0x1] }
 0x457   : > { %v10207_v48 = vrot.slane %v9347_v10, 5  ;;  %v10211_v0 = vrot.slane %v9349_v11, 5  ;;  %v9355_v4 = vld [vmem:[#allocation2 + $0xb8] sm:$0xf]  ;;  %v12076_v20 = vrot.slane %v10079_v5, 9 }
 0x458   : > { %v10080_v54 = vld [vmem:[#allocation2 + $0xa8] sm:$0xe]  ;;  %v9358_v21 = vld [vmem:[#allocation2 + $0xc4] sm:$0xf] }
 0x459   : > { %13204 = vmatmul.mubr.bf16.vlgmr.msra.gmra.mrb[0].mxu1 %v17224_v38  ;;  %v12074_v38 = vrot.slane %v10077_v43, 9  ;;  %v17450_v43 = vsel %vm14762_vm6, %v10192_v8, %v10193_v19  ;;  %v18479_v19 = vshll.u32 %v17008_v31, 16  ;;  %v10213_v11 = vrot.slane %v10211_v0, 4 }
 0x45a   : > { %13236 = vmatpush3.bf16.msra.mxu1 %v17206_v18  ;;  %13207 = vmatprep.mubr.bf16.mxu1 %v17248_v63  ;;  %v10199_v18 = vrot.slane %v10197_v42, 4  ;;  %v10204_v63 = vrot.slane %v9346_v34, 5  ;;  %18476 = vst [vmem:[#allocation51_spill] sm:$0xff] %v17450_v43  ;;  %v10225_v43 = vrot.slane %v9355_v4, 5  ;;  %v7709_v4 = vld [vmem:[#allocation2 + $0x84] sm:$0xf] }
 0x45b   : > { %13237 = vmatprep.subr.bf16.mxu1 %v14218_v13  ;;  %v17454_v40 = vsel %vm14762_vm6, %v12074_v38, %v10197_v42  ;;  %v17464_v8 = vrot.slane %v18479_v19, 5  ;;  %v10214_v42 = vrot.slane %v9350_v36, 5  ;;  %v10081_v38 = vld [vmem:[#allocation2 + $0xb4] sm:$0xe]  ;;  %v17481_v19 = vsel %vm14762_vm6, %v12076_v20, %v10211_v0 }
 0x45c   : > { %18477 = vst [vmem:[#allocation52_spill] sm:$0xff] %v17454_v40  ;;  %v17460_v58 = vsel %vm14762_vm6, %v10199_v18, %v10200_v25  ;;  %v10206_v34 = vrot.slane %v10204_v63, 4  ;;  %v14220_v25 = vld [vmem:[%s18248_s3 + $0x158] sm:$0xff]   ;;  %v10218_v36 = vrot.slane %v9352_v55, 5  ;;  %v12077_v40 = vrot.slane %v10080_v54, 9 }
 0x45d   : > { %18478 = vst [vmem:[#allocation53_spill] sm:$0xff] %v17460_v58  ;;  %v9356_v18 = vld [vmem:[#allocation2 + $0xbc] sm:$0x1]  ;;  %v17487_v58 = vsel %vm14762_vm6, %v10213_v11, %v10214_v42  ;;  %v10221_v0 = vrot.slane %v9353_v15, 5  ;;  %v12078_v20 = vrot.slane %v10081_v38, 9  ;;  %v18480_v55 = vshrl.u32 %v17008_v31, 16 }
 0x45e   : > { %13238 = vmatpush3.bf16.msra.mxu1 %v14218_v13  ;;  %v17473_v13 = vsel %vm14762_vm6, %v12075_v59, %v10204_v63  ;;  %v17477_v5 = vsel %vm14762_vm6, %v10206_v34, %v10207_v48  ;;  %v10082_v59 = vld [vmem:[#allocation2 + $0xc0] sm:$0xe]  ;;  %v9359_v63 = vld [vmem:[#allocation2 + $0xc8] sm:$0x1]  ;;  %v10220_v34 = vrot.slane %v10218_v36, 4  ;;  %v10227_v11 = vrot.slane %v10225_v43, 4 }
 0x45f   : > { %13239 = vmatprep.subr.bf16.mxu1 %v14219_v9  ;;  %v7959_v10 = vrot.slane %v18480_v55, 4  ;;  %v10228_v42 = vrot.slane %v9356_v18, 5  ;;  %v10232_v54 = vrot.slane %v9358_v21, 5  ;;  %v17500_v48 = vsel %vm14762_vm6, %v12077_v40, %v10218_v36 }
 0x460   : > { %v17508_v31 = vsel %vm14762_vm6, %v12078_v20, %v10225_v43  ;;  %v12079_v15 = vrot.slane %v10082_v59, 9  ;;  %v10235_v18 = vrot.slane %v9359_v63, 5  ;;  %v18481_v40 = vshll.u32 %v17274_v24, 16 }
 0x461   : > { %13208 = vmatmul.mubr.bf16.gmra.mrb[4].mxu1 %v17265_v44  ;;  %v14221_v44 = vld [vmem:[%s18248_s3 + $0x160] sm:$0xff]   ;;  %v17514_v21 = vsel %vm14762_vm6, %v10227_v11, %v10228_v42  ;;  %v10234_v38 = vrot.slane %v10232_v54, 4  ;;  %v7968_v59 = vshrl.u32 %v7709_v4, 16  ;;  %v7971_v20 = vshll.u32 %v7709_v4, 16 }
 0x462   : > { %13211 = vmatprep.mubr.bf16.mxu1 %v17278_v45  ;;  %13240 = vmatpush3.bf16.msra.mxu1 %v14219_v9  ;;  %v17504_v45 = vsel %vm14762_vm6, %v10220_v34, %v10221_v0  ;;  %v7949_v36 = vrot.slane %v18481_v40, 5  ;;  %v7977_v34 = vshll.u32 %v17027_v6, 16  ;;  %v7981_v0 = vshrl.u32 %v17027_v6, 16 }
 0x463   : > { %13241 = vmatprep.subr.bf16.mxu1 %v14220_v25  ;;  %v12093_v9 = vcombine.low %v17500_v48, %v17504_v45  ;;  %v12094_v43 = vcombine.low %v17508_v31, %v17514_v21  ;;  %v17524_v55 = vsel %vm14762_vm6, %v12079_v15, %v10232_v54  ;;  %v17528_v63 = vsel %vm14762_vm6, %v10234_v38, %v10235_v18  ;;  %v14222_v54 = vld [vmem:[%s18248_s3 + $0x168] sm:$0xff]  }
 0x464   : > { %v18482_v24 = vor.u32 %v17295_v30, %v17293_v39  ;;  %v18483_v6 = vor.u32 %v17324_v27, %v17306_v52  ;;  %v12095_v4 = vcombine.low %v17524_v55, %v17528_v63  ;;  %v18484_v39 = vsel %vm14446_vm2, %v17262_v28, %v17282_v7  ;;  %v7712_v28 = vld [vmem:[#allocation2 + $0x90] sm:$0xf] }
 0x465   : > { %v18485_v30 = vsel %vm14446_vm2, %v17257_v46, %v17237_v17  ;;  %v18487_v38 = vshll.u32 %v17016_v2, 16  ;;  %v7963_v40 = vshll.u32 %v17018_v57, 16  ;;  %v7908_v17 = vsel %vm14446_vm2, %v17304_v51, %v17246_v49  ;;  %v14223_v49 = vld [vmem:[%s18248_s3 + $0x170] sm:$0xff]  }
 0x466   : > { %13242 = vmatpush3.bf16.msra.mxu1 %v14220_v25  ;;  %v7927_v11 = vrot.slane %v18482_v24, 4  ;;  %v7937_v42 = vrot.slane %v18483_v6, 4  ;;  %v7960_v25 = vor.u32 %v7959_v10, %v17464_v8  ;;  %v11959_v27 = vcombine.low %v18485_v30, %v18484_v39 }
 0x467   : > { %13243 = vmatprep.subr.bf16.mxu1 %v14221_v44  ;;  %v18486_v10 = vshll.u32 %v16985_v22, 16  ;;  %v7941_v18 = vrot.slane %v18487_v38, 5  ;;  %v17558_v24 = vrot.slane %v7977_v34, 5  ;;  %v7983_v6 = vrot.slane %v7981_v0, 4  ;;  %v14224_v38 = vld [vmem:[%s18248_s3 + $0x178] sm:$0xff]  }
 0x468   : > { %v7950_v22 = vor.u32 %v7949_v36, %v17338_v32  ;;  %v7970_v46 = vrot.slane %v7968_v59, 4  ;;  %v7932_v57 = vsel %vm14446_vm2, %v7927_v11, %v17306_v52  ;;  %v7961_v34 = vrot.slane %v7960_v25, 4 }
 0x469   : > { %v7917_v15 = vrot.slane %v18486_v10, 5  ;;  %13212 = vmatmul.mubr.bf16.gmra.mrb[8].mxu1 %v17280_v26  ;;  %v7973_v26 = vrot.slane %v7971_v20, 5  ;;  %v7942_v7 = vsel %vm14446_vm2, %v7937_v42, %v7941_v18  ;;  %v7992_v51 = vshrl.u32 %v7712_v28, 16 }
 0x46a   : > { %13215 = vmatprep.mubr.bf16.mxu1 %v11959_v27  ;;  %13244 = vmatpush3.bf16.msra.mxu1 %v14221_v44  ;;  %v7995_v32 = vshll.u32 %v7712_v28, 16  ;;  %v8001_v44 = vshll.u32 %v17038_v16, 16  ;;  %v8005_v36 = vshrl.u32 %v17038_v16, 16  ;;  %v7965_v0 = vrot.slane %v7963_v40, 5  ;;  %v14304_v27 = vld [vmem:[#allocation2 + $0x8c] sm:$0x1] }
 0x46b   : > { %v7918_v2 = vsel %vm14446_vm2, %v17309_v53, %v7917_v15  ;;  %13245 = vmatprep.subr.bf16.mxu1 %v14222_v54  ;;  %v7715_v53 = vld [vmem:[#allocation2 + $0x9c] sm:$0xf]  ;;  %v7984_v59 = vor.u32 %v7983_v6, %v17558_v24  ;;  %v8025_v52 = vshll.u32 %v17054_v33, 16  ;;  %v8029_v20 = vshrl.u32 %v17054_v33, 16 }
 0x46c   : > { %v11960_v11 = vcombine.low %v7908_v17, %v7918_v2  ;;  %v11961_v42 = vcombine.low %v7932_v57, %v7942_v7  ;;  %v7951_v25 = vrot.slane %v7950_v22, 4  ;;  %v7974_v39 = vor.u32 %v7973_v26, %v7970_v46 }
 0x46d   : > { %v7966_v30 = vsel %vm14446_vm2, %v7961_v34, %v7965_v0  ;;  %v7987_v10 = vshll.u32 %v14304_v27, 16  ;;  %v8016_v15 = vshrl.u32 %v7715_v53, 16  ;;  %v8019_v16 = vshll.u32 %v7715_v53, 16  ;;  %v7718_v34 = vld [vmem:[#allocation2 + $0xa8] sm:$0xf] }
 0x46e   : > { %13246 = vmatpush3.bf16.msra.mxu1 %v14222_v54  ;;  %v7994_v18 = vrot.slane %v7992_v51, 4  ;;  %v7997_v40 = vrot.slane %v7995_v32, 5  ;;  %v17586_v33 = vrot.slane %v8001_v44, 5  ;;  %v8007_v6 = vrot.slane %v8005_v36, 4  ;;  %v17596_v51 = vld [vmem:[%s18248_s3 + $0x180] sm:$0xff]  }
 0x46f   : > { %13247 = vmatprep.subr.bf16.mxu1 %v14223_v49  ;;  %v7985_v28 = vrot.slane %v7984_v59, 4  ;;  %v17588_v54 = vrot.slane %v8025_v52, 5  ;;  %v8031_v17 = vrot.slane %v8029_v20, 4  ;;  %v7956_v22 = vsel %vm14446_vm2, %v7951_v25, %v17464_v8  ;;  %v14305_v36 = vld [vmem:[#allocation2 + $0xac] sm:$0xf] }
 0x470   : > { %v7975_v46 = vrot.slane %v7974_v39, 4  ;;  %v11962_v26 = vcombine.low %v7956_v22, %v7966_v30  ;;  %v7989_v2 = vrot.slane %v7987_v10, 5  ;;  %v8018_v57 = vrot.slane %v8016_v15, 4  ;;  %v7721_v8 = vld [vmem:[#allocation2 + $0xb4] sm:$0xf] }
 0x471   : > { %13216 = vmatmul.mubr.bf16.gmra.mrb[12].mxu1 %v11960_v11  ;;  %v8021_v7 = vrot.slane %v8019_v16, 5  ;;  %v7998_v32 = vor.u32 %v7997_v40, %v7994_v18  ;;  %v8008_v44 = vor.u32 %v8007_v6, %v17586_v33  ;;  %v8049_v53 = vshll.u32 %v14305_v36, 16  ;;  %v14307_v10 = vld [vmem:[#allocation2 + $0xa4] sm:$0x1] }
 0x472   : > { %13219 = vmatprep.mubr.bf16.mxu1 %v11961_v42  ;;  %13248 = vmatpush3.bf16.msra.mxu1 %v14223_v49  ;;  %v8053_v0 = vshrl.u32 %v14305_v36, 16  ;;  %v7990_v49 = vsel %vm14446_vm2, %v7985_v28, %v7989_v2  ;;  %v8032_v59 = vor.u32 %v8031_v17, %v17588_v54  ;;  %v8073_v52 = vshll.u32 %v17081_v1, 16  ;;  %v14306_v42 = vld [vmem:[#allocation2 + $0x98] sm:$0x1] }
 0x473   : > { %13249 = vmatprep.subr.bf16.mxu1 %v14224_v38  ;;  %v8077_v20 = vshrl.u32 %v17081_v1, 16  ;;  %v7980_v11 = vsel %vm14446_vm2, %v7975_v46, %v17558_v24  ;;  %v8011_v25 = vshll.u32 %v14306_v42, 16  ;;  %v8040_v39 = vshrl.u32 %v7718_v34, 16 }
 0x474   : > { %v8043_v30 = vshll.u32 %v7718_v34, 16  ;;  %v8022_v27 = vor.u32 %v8021_v7, %v8018_v57  ;;  %v8035_v15 = vshll.u32 %v14307_v10, 16  ;;  %v8064_v16 = vshrl.u32 %v7721_v8, 16 }
 0x475   : > { %v8067_v18 = vshll.u32 %v7721_v8, 16  ;;  %v11963_v40 = vcombine.low %v7980_v11, %v7990_v49  ;;  %v8009_v6 = vrot.slane %v8008_v44, 4  ;;  %v8051_v28 = vrot.slane %v8049_v53, 5  ;;  %v7724_v8 = vld [vmem:[#allocation2 + $0xc0] sm:$0xf] }
 0x476   : > { %13250 = vmatpush3.bf16.msra.mxu1 %v14224_v38  ;;  %v8055_v1 = vrot.slane %v8053_v0, 4  ;;  %v7999_v17 = vrot.slane %v7998_v32, 4  ;;  %v8033_v22 = vrot.slane %v8032_v59, 4  ;;  %v8075_v24 = vrot.slane %v8073_v52, 5  ;;  %v14308_v53 = vld [vmem:[#allocation2 + $0xc4] sm:$0xf] }
 0x477   : > { %13283 = vmatprep.subr.bf16.mxu1 %v17596_v51  ;;  %v8079_v46 = vrot.slane %v8077_v20, 4  ;;  %v8013_v2 = vrot.slane %v8011_v25, 5  ;;  %v8042_v34 = vrot.slane %v8040_v39, 4  ;;  %v8045_v38 = vrot.slane %v8043_v30, 5  ;;  %v14309_v11 = vld [vmem:[#allocation2 + $0xb0] sm:$0x1] }
 0x478   : > { %v8023_v57 = vrot.slane %v8022_v27, 4  ;;  %v8037_v7 = vrot.slane %v8035_v15, 5  ;;  %v8066_v36 = vrot.slane %v8064_v16, 4  ;;  %v8069_v42 = vrot.slane %v8067_v18, 5  ;;  %v14310_v16 = vld [vmem:[#allocation2 + $0xbc] sm:$0x1] }
 0x479   : > { %13220 = vmatmul.mubr.bf16.gmra.mrb[16].mxu1 %v11962_v26  ;;  %v8014_v49 = vsel %vm14446_vm2, %v8009_v6, %v8013_v2  ;;  %v8056_v44 = vor.u32 %v8055_v1, %v8051_v28  ;;  %v8097_v0 = vshll.u32 %v14308_v53, 16  ;;  %v8101_v26 = vshrl.u32 %v14308_v53, 16  ;;  %v14312_v53 = vld [vmem:[#allocation2 + $0xc8] sm:$0x1] }
 0x47a   : > { %13223 = vmatprep.mubr.bf16.mxu1 %v11963_v40  ;;  %v8004_v32 = vsel %vm14446_vm2, %v7999_v17, %v17586_v33  ;;  %v8038_v59 = vsel %vm14446_vm2, %v8033_v22, %v8037_v7  ;;  %v8080_v52 = vor.u32 %v8079_v46, %v8075_v24  ;;  %v8046_v20 = vor.u32 %v8045_v38, %v8042_v34 }
 0x47b   : > { %v8059_v25 = vshll.u32 %v14309_v11, 16  ;;  %v8088_v39 = vshrl.u32 %v7724_v8, 16  ;;  %v8091_v30 = vshll.u32 %v7724_v8, 16  ;;  %v11964_v27 = vcombine.low %v8004_v32, %v8014_v49 }
 0x47c   : > { %v8028_v10 = vsel %vm14446_vm2, %v8023_v57, %v17588_v54  ;;  %v8070_v15 = vor.u32 %v8069_v42, %v8066_v36  ;;  %v8083_v18 = vshll.u32 %v14310_v16, 16  ;;  %v8057_v6 = vrot.slane %v8056_v44, 4  ;;  %v14311_v36 = vld [vmem:[#allocation2 + $0x10] sm:$0xf] }
 0x47d   : > { %v11965_v40 = vcombine.low %v8028_v10, %v8038_v59  ;;  %v8099_v33 = vrot.slane %v8097_v0, 5  ;;  %v8103_v1 = vrot.slane %v8101_v26, 4  ;;  %v8081_v17 = vrot.slane %v8080_v52, 4 }
 0x47e   : > { %v8047_v22 = vrot.slane %v8046_v20, 4  ;;  %v8061_v46 = vrot.slane %v8059_v25, 5  ;;  %v8090_v2 = vrot.slane %v8088_v39, 4  ;;  %v8093_v34 = vrot.slane %v8091_v30, 5  ;;  %v8432_v39 = vld [vmem:[#allocation2 + $0xc] sm:$0xe] }
 0x47f   : > { %v8071_v38 = vrot.slane %v8070_v15, 4  ;;  %v8085_v7 = vrot.slane %v8083_v18, 5  ;;  %v8104_v54 = vor.u32 %v8103_v1, %v8099_v33  ;;  %v8498_v42 = vrot.slane %v14311_v36, 5  ;;  %v18495_v36 = vld [vmem:[#allocation6_spill] sm:$0xff] }
 0x480   : > { %v8062_v8 = vsel %vm14446_vm2, %v8057_v6, %v8061_v46  ;;  %v8052_v49 = vsel %vm14446_vm2, %v8047_v22, %v8051_v28  ;;  %v8094_v44 = vor.u32 %v8093_v34, %v8090_v2  ;;  %v8107_v0 = vshll.u32 %v14312_v53, 16 }
 0x481   : > { %13224 = vmatmul.mubr.bf16.gmra.mrb[20].mxu1 %v11964_v27  ;;  %v8086_v57 = vsel %vm14446_vm2, %v8081_v17, %v8085_v7  ;;  %v11966_v26 = vcombine.low %v8052_v49, %v8062_v8  ;;  %v8076_v32 = vsel %vm14446_vm2, %v8071_v38, %v8075_v24  ;;  %v8105_v52 = vrot.slane %v8104_v54, 4  ;;  %v14313_v27 = vld [vmem:[#allocation2 + $0x1c] sm:$0xf] }
 0x482   : > { %13227 = vmatprep.mubr.bf16.mxu1 %v11965_v40  ;;  %v11967_v59 = vcombine.low %v8076_v32, %v8086_v57  ;;  %v8500_v20 = vrot.slane %v8498_v42, 4  ;;  %v8095_v11 = vrot.slane %v8094_v44, 4  ;;  %v8109_v25 = vrot.slane %v8107_v0, 5  ;;  %v14228_v7 = vld [vmem:[%s18248_s3 + $0x198] sm:$0xff]   ;;  %v18492_v57 = vld [vmem:[#allocation4_spill] sm:$0xff]  ;;  %v18500_v0 = vld [vmem:[#allocation9_spill] sm:$0xff] }
 0x483   : > { %v8501_v30 = vrot.slane %v17167_v62, 5  ;;  %v8505_v10 = vrot.slane %v14313_v27, 5  ;;  %v11977_v15 = vrot.slane %v8432_v39, 9  ;;  %v8433_v62 = vld [vmem:[#allocation2 + $0x18] sm:$0xe]  ;;  %v8508_v17 = vrot.slane %v17175_v56, 5 }
 0x484   : > { %v8110_v28 = vsel %vm14446_vm2, %v8105_v52, %v8109_v25  ;;  %v8100_v24 = vsel %vm14446_vm2, %v8095_v11, %v8099_v33  ;;  %v11978_v22 = vrot.slane %v8433_v62, 9  ;;  %v14226_v33 = vld [vmem:[%s18248_s3 + $0x188] sm:$0xff]   ;;  %v18488_v38 = vcombine.low %v16957_v35, %v16961_v50  ;;  %v14227_v56 = vld [vmem:[%s18248_s3 + $0x190] sm:$0xff]   ;;  %v14229_v35 = vld [vmem:[%s18248_s3 + $0x1a0] sm:$0xff]  }
 0x485   : > { %v8502_v16 = vsel %vm14762_vm6, %v8500_v20, %v8501_v30  ;;  %v11968_v18 = vcombine.low %v8100_v24, %v8110_v28  ;;  %v8499_v40 = vsel %vm14762_vm6, %v11977_v15, %v8498_v42  ;;  %v8507_v1 = vrot.slane %v8505_v10, 4  ;;  %v14230_v50 = vld [vmem:[%s18248_s3 + $0x1a8] sm:$0xff]   ;;  %v18491_v54 = vld [vmem:[#allocation3_spill] sm:$0xff]  ;;  %v18498_v44 = vld [vmem:[#allocation8_spill] sm:$0xff] }
 0x486   : > { %v11993_v6 = vcombine.low %v8499_v40, %v8502_v16  ;;  %v8506_v2 = vsel %vm14762_vm6, %v11978_v22, %v8505_v10  ;;  %v18489_v8 = vcombine.low %v16971_v14, %v16978_v12  ;;  %v18493_v14 = vcombine.low %v18491_v54, %v18492_v57  ;;  %v18494_v12 = vld [vmem:[#allocation5_spill] sm:$0xff]  ;;  %v14232_v42 = vld [vmem:[%s18248_s3 + $0x1b8] sm:$0xff]   ;;  %v18503_v52 = vld [vmem:[#allocation10_spill] sm:$0xff] }
 0x487   : > { %v8509_v46 = vsel %vm14762_vm6, %v8507_v1, %v8508_v17  ;;  %v18497_v49 = vld [vmem:[#allocation7_spill] sm:$0xff]  ;;  %v18504_v20 = vld [vmem:[#allocation12_spill] sm:$0xff]  ;;  %v18506_v25 = vld [vmem:[#allocation13_spill] sm:$0xff] }
 0x488   : > { %v11994_v34 = vcombine.low %v8506_v2, %v8509_v46  ;;  %v18499_v53 = vcombine.low %v18497_v49, %v18498_v44  ;;  %v18505_v11 = vcombine.low %v18503_v52, %v18504_v20  ;;  %v18507_v39 = vld [vmem:[#allocation14_spill] sm:$0xff]  ;;  %v18509_v28 = vld [vmem:[#allocation15_spill] sm:$0xff]  ;;  %v18510_v27 = vld [vmem:[#allocation16_spill] sm:$0xff]  ;;  %v9373_v44 = vshll.u32 %v17276_v41, 16 }
 0x489   : > { %13228 = vmatmul.mubr.bf16.gmra.mrb[24].mxu1 %v11966_v26  ;;  %v18501_v26 = vld [vmem:[#allocation11_spill] sm:$0xff]  ;;  %v18508_v30 = vcombine.low %v18506_v25, %v18507_v39  ;;  %v18511_v10 = vcombine.low %v18509_v28, %v18510_v27  ;;  %v18512_v15 = vld [vmem:[#allocation17_spill] sm:$0xff]  ;;  %v18513_v16 = vld [vmem:[#allocation18_spill] sm:$0xff] }
 0x48a   : > { %13231 = vmatprep.mubr.bf16.mxu1 %v11967_v59  ;;  %v18502_v32 = vcombine.low %v18500_v0, %v18501_v26  ;;  %v14234_v59 = vld [vmem:[%s18248_s3 + $0x1c0] sm:$0xff]   ;;  %v18514_v24 = vcombine.low %v18512_v15, %v18513_v16  ;;  %v18518_v1 = vld [vmem:[#allocation21_spill] sm:$0xff]  ;;  %v18519_v62 = vld [vmem:[#allocation22_spill] sm:$0xff]  ;;  %v9375_v20 = vrot.slane %v9373_v44, 5 }
 0x48b   : > { %v18516_v40 = vld [vmem:[#allocation20_spill] sm:$0xff]  ;;  %v18520_v17 = vcombine.low %v18518_v1, %v18519_v62  ;;  %v14233_v22 = vld [vmem:[#allocation2 + $0x18] sm:$0xff]   ;;  %v14249_v57 = vld [vmem:[%s18248_s3 + $0x1e8] sm:$0xff]  }
 0x48c   : > { %v18521_v46 = vld [vmem:[#allocation23_spill] sm:$0xff]  ;;  %v18522_v2 = vld [vmem:[#allocation24_spill] sm:$0xff]  ;;  %v14248_v52 = vld [vmem:[#allocation2 + $0x90] sm:$0xff]  }
 0x48d   : > { %v14241_v54 = vld [vmem:[#allocation2 + $0x54] sm:$0xff]   ;;  %v9318_v0 = vld [vmem:[#allocation2 + $0x24] sm:$0xf]  ;;  %v18525_v1 = vld [vmem:[#allocation25_spill] sm:$0xff] }
 0x48e   : > { %v9315_v49 = vld [vmem:[#allocation2 + $0x18] sm:$0xf]  ;;  %v14247_v26 = vld [vmem:[#allocation2 + $0x84] sm:$0xff]   ;;  %v9388_v25 = vshrl.u32 %v9318_v0, 16  ;;  %v9391_v39 = vshll.u32 %v9318_v0, 16  ;;  %v18524_v27 = vld [vmem:[#allocation26_spill] sm:$0xff] }
 0x48f   : > { %v9383_v62 = vshll.u32 %v18525_v1, 16 }
 0x490   : > { %v9393_v16 = vrot.slane %v9391_v39, 5 }
 0x491   : > { %13232 = vmatmul.mubr.bf16.gmra.mrb[28].mxu1 %v11968_v18  ;;  %v18515_v18 = vld [vmem:[#allocation19_spill] sm:$0xff] }
 0x492   : > { %13251 = vmatprep.mubr.bf16.mxu1 %v11993_v6  ;;  %v18517_v6 = vcombine.low %v18515_v18, %v18516_v40  ;;  %v9321_v18 = vld [vmem:[#allocation2 + $0x30] sm:$0xf]  ;;  %v14250_v40 = vld [vmem:[#allocation2 + $0x9c] sm:$0xff]  }
 0x499   : > { %13252 = vmatmul.mubr.bf16.vlgmr.msra.gmra.mrb[0].mxu1 %v11994_v34  ;;  %v18523_v34 = vcombine.low %v18521_v46, %v18522_v2  ;;  %v9412_v46 = vshrl.u32 %v9321_v18, 16 }
 0x49a   : > { %13284 = vmatpush3.bf16.msra.mxu1 %v17596_v51  ;;  %13255 = vmatprep.mubr.bf16.mxu1 %v18488_v38  ;;  %v18490_v51 = vcombine.low %v16982_v37, %v16997_v47  ;;  %v18496_v37 = vcombine.low %v18494_v12, %v18495_v36  ;;  %v14231_v47 = vld [vmem:[%s18248_s3 + $0x1b0] sm:$0xff]   ;;  %v14237_v38 = vld [vmem:[%s18248_s3 + $0x1c8] sm:$0xff]  }
 0x49b   : > { %13285 = vmatprep.subr.bf16.mxu1 %v14226_v33  ;;  %v14252_v12 = vld [vmem:[%s18248_s3 + $0x1f0] sm:$0xff]  }
 0x49c   : > { %v14244_v36 = vld [vmem:[#allocation2 + $0x6c] sm:$0xff]  }
 0x49e   : > { %13286 = vmatpush3.bf16.msra.mxu1 %v14226_v33  ;;  %v14235_v33 = vld [vmem:[#allocation2 + $0x24] sm:$0xff]  }
 0x49f   : > { %13287 = vmatprep.subr.bf16.mxu1 %v14227_v56 }
 0x4a1   : > { %13256 = vmatmul.mubr.bf16.gmra.mrb[4].mxu1 %v18489_v8  ;;  %v14238_v8 = vld [vmem:[#allocation2 + $0x3c] sm:$0xff]  }
 0x4a2   : > { %13259 = vmatprep.mubr.bf16.mxu1 %v18490_v51  ;;  %13288 = vmatpush3.bf16.msra.mxu1 %v14227_v56  ;;  %v14236_v56 = vld [vmem:[#allocation2 + $0x30] sm:$0xff]   ;;  %v14243_v51 = vld [vmem:[%s18248_s3 + $0x1d8] sm:$0xff]  }
 0x4a3   : > { %13289 = vmatprep.subr.bf16.mxu1 %v14228_v7 }
 0x4a6   : > { %13290 = vmatpush3.bf16.msra.mxu1 %v14228_v7  ;;  %v14240_v7 = vld [vmem:[%s18248_s3 + $0x1d0] sm:$0xff]  }
 0x4a7   : > { %13291 = vmatprep.subr.bf16.mxu1 %v14229_v35 }
 0x4a9   : > { %13260 = vmatmul.mubr.bf16.gmra.mrb[8].mxu1 %v18493_v14  ;;  %v14242_v14 = vld [vmem:[#allocation2 + $0x60] sm:$0xff]  }
 0x4aa   : > { %13263 = vmatprep.mubr.bf16.mxu1 %v18496_v37  ;;  %13292 = vmatpush3.bf16.msra.mxu1 %v14229_v35  ;;  %v14239_v35 = vld [vmem:[#allocation2 + $0x48] sm:$0xff]   ;;  %v14255_v37 = vld [vmem:[%s18248_s3 + $0x1f8] sm:$0xff]  }
 0x4ab   : > { %13293 = vmatprep.subr.bf16.mxu1 %v14230_v50 }
 0x4ae   : > { %13294 = vmatpush3.bf16.msra.mxu1 %v14230_v50  ;;  %v14246_v50 = vld [vmem:[%s18248_s3 + $0x1e0] sm:$0xff]  }
 0x4af   : > { %13295 = vmatprep.subr.bf16.mxu1 %v14231_v47 }
 0x4b1   : > { %13264 = vmatmul.mubr.bf16.gmra.mrb[12].mxu1 %v18499_v53  ;;  %v9377_v53 = vshrl.u32 %v17276_v41, 16  ;;  %v9390_v41 = vrot.slane %v9388_v25, 4 }
 0x4b2   : > { %13267 = vmatprep.mubr.bf16.mxu1 %v18502_v32  ;;  %13296 = vmatpush3.bf16.msra.mxu1 %v14231_v47  ;;  %v14245_v47 = vld [vmem:[#allocation2 + $0x78] sm:$0xff]   ;;  %v9364_v32 = vshrl.u32 %v9315_v49, 16 }
 0x4b3   : > { %13297 = vmatprep.subr.bf16.mxu1 %v14232_v42 }
 0x4b6   : > { %13298 = vmatpush3.bf16.msra.mxu1 %v14232_v42  ;;  %v17731_v42 = vld [vmem:[%s18248_s3 + $0x200] sm:$0xff]  }
 0x4b7   : > { %13331 = vmatprep.subr.bf16.mxu1 %v14234_v59 }
 0x4b9   : > { %13268 = vmatmul.mubr.bf16.gmra.mrb[16].mxu1 %v18505_v11  ;;  %v9379_v11 = vrot.slane %v9377_v53, 4  ;;  %v14253_v53 = vld [vmem:[#allocation2 + $0xb4] sm:$0xff]  }
 0x4ba   : > { %13271 = vmatprep.mubr.bf16.mxu1 %v18508_v30  ;;  %v9366_v30 = vrot.slane %v9364_v32, 4  ;;  %v18528_v32 = vld [vmem:[#allocation29_spill] sm:$0xff] }
 0x4bb   : > { %v9380_v15 = vor.u32 %v9379_v11, %v9375_v20  ;;  %v14254_v11 = vld [vmem:[#allocation2 + $0xc0] sm:$0xff]  }
 0x4bd   : > { %v9381_v2 = vrot.slane %v9380_v15, 4 }
 0x4c1   : > { %13272 = vmatmul.mubr.bf16.gmra.mrb[20].mxu1 %v18511_v10  ;;  %v9397_v10 = vshll.u32 %v18524_v27, 16 }
 0x4c2   : > { %13275 = vmatprep.mubr.bf16.mxu1 %v18514_v24  ;;  %v9401_v24 = vshrl.u32 %v18524_v27, 16 }
 0x4c9   : > { %13276 = vmatmul.mubr.bf16.gmra.mrb[24].mxu1 %v18517_v6 }
 0x4ca   : > { %13279 = vmatprep.mubr.bf16.mxu1 %v18520_v17  ;;  %v14251_v17 = vld [vmem:[#allocation2 + $0xa8] sm:$0xff]  }
 0x4d1   : > { %13280 = vmatmul.mubr.bf16.gmra.mrb[28].mxu1 %v18523_v34  ;;  %v9394_v34 = vor.u32 %v9393_v16, %v9390_v41  ;;  %v18530_v16 = vld [vmem:[#allocation31_spill] sm:$0xff] }
 0x4d2   : > { %13299 = vmatprep.mubr.bf16.mxu1 %v14233_v22  ;;  %v17739_v22 = vrot.slane %v9397_v10, 5  ;;  %v9327_v10 = vld [vmem:[#allocation2 + $0x48] sm:$0xf]  ;;  %v9473_v1 = vshrl.u32 %v18530_v16, 16 }
 0x4d9   : > { %13300 = vmatmul.mubr.bf16.vlgmr.msra.gmra.mrb[0].mxu1 %v14235_v33  ;;  %v9403_v33 = vrot.slane %v9401_v24, 4  ;;  %v9469_v24 = vshll.u32 %v18530_v16, 16 }
 0x4da   : > { %13332 = vmatpush3.bf16.msra.mxu1 %v14234_v59  ;;  %13303 = vmatprep.mubr.bf16.mxu1 %v14236_v56  ;;  %v9367_v59 = vshll.u32 %v9315_v49, 16  ;;  %v18526_v56 = vld [vmem:[#allocation28_spill] sm:$0xff] }
 0x4db   : > { %13333 = vmatprep.subr.bf16.mxu1 %v14237_v38 }
 0x4dc   : > { %v9369_v28 = vrot.slane %v9367_v59, 5  ;;  %v9431_v59 = vshll.u32 %v18528_v32, 16 }
 0x4de   : > { %13334 = vmatpush3.bf16.msra.mxu1 %v14237_v38  ;;  %v9370_v6 = vor.u32 %v9369_v28, %v9366_v30  ;;  %v9415_v38 = vshll.u32 %v9321_v18, 16  ;;  %v18529_v30 = vld [vmem:[#allocation30_spill] sm:$0xff] }
 0x4df   : > { %13335 = vmatprep.subr.bf16.mxu1 %v14240_v7  ;;  %v9445_v28 = vshll.u32 %v18529_v30, 16  ;;  %v9449_v27 = vshrl.u32 %v18529_v30, 16  ;;  %v17763_v18 = vld [vmem:[#allocation2 + $0xd0] sm:$0xf] }
 0x4e1   : > { %13304 = vmatmul.mubr.bf16.gmra.mrb[4].mxu1 %v14238_v8  ;;  %v9425_v8 = vshrl.u32 %v18526_v56, 16 }
 0x4e2   : > { %13307 = vmatprep.mubr.bf16.mxu1 %v14239_v35  ;;  %13336 = vmatpush3.bf16.msra.mxu1 %v14240_v7  ;;  %v9421_v7 = vshll.u32 %v18526_v56, 16  ;;  %v9385_v35 = vrot.slane %v9383_v62, 5  ;;  %v10083_v62 = vld [vmem:[#allocation2 + $0xcc] sm:$0xe] }
 0x4e3   : > { %13337 = vmatprep.subr.bf16.mxu1 %v14243_v51  ;;  %v9427_v44 = vrot.slane %v9425_v8, 4  ;;  %v12080_v56 = vrot.slane %v10083_v62, 9  ;;  %v17773_v8 = vrot.slane %v9445_v28, 5  ;;  %v14266_v62 = vld [vmem:[%s18250_s5 + $0x8] sm:$0xff]  }
 0x4e4   : > { %v17749_v49 = vrot.slane %v9421_v7, 5 }
 0x4e6   : > { %13338 = vmatpush3.bf16.msra.mxu1 %v14243_v51  ;;  %v9371_v51 = vrot.slane %v9370_v6, 4  ;;  %v9428_v6 = vor.u32 %v9427_v44, %v17749_v49 }
 0x4e7   : > { %13339 = vmatprep.subr.bf16.mxu1 %v14246_v50 }
 0x4e8   : > { %v9376_v0 = vsel %vm14446_vm2, %v9371_v51, %v9375_v20  ;;  %v9451_v51 = vrot.slane %v9449_v27, 4  ;;  %v9429_v28 = vrot.slane %v9428_v6, 4  ;;  %v18532_v27 = vld [vmem:[#allocation34_spill] sm:$0xff] }
 0x4e9   : > { %13308 = vmatmul.mubr.bf16.gmra.mrb[8].mxu1 %v14241_v54 }
 0x4ea   : > { %13311 = vmatprep.mubr.bf16.mxu1 %v14242_v14  ;;  %13340 = vmatpush3.bf16.msra.mxu1 %v14246_v50  ;;  %v18527_v50 = vld [vmem:[#allocation27_spill] sm:$0xff]  ;;  %v9452_v16 = vor.u32 %v9451_v51, %v17773_v8 }
 0x4eb   : > { %13341 = vmatprep.subr.bf16.mxu1 %v14249_v57  ;;  %v9407_v54 = vshll.u32 %v18527_v50, 16  ;;  %v9324_v14 = vld [vmem:[#allocation2 + $0x3c] sm:$0xf]  ;;  %v14256_v50 = vld [vmem:[#allocation2 + $0xcc] sm:$0xff]  }
 0x4ec   : > { %v9439_v39 = vshll.u32 %v9324_v14, 16 }
 0x4ee   : > { %13342 = vmatpush3.bf16.msra.mxu1 %v14249_v57  ;;  %v9414_v57 = vrot.slane %v9412_v46, 4  ;;  %v9441_v7 = vrot.slane %v9439_v39, 5 }
 0x4ef   : > { %13343 = vmatprep.subr.bf16.mxu1 %v14252_v12 }
 0x4f1   : > { %13312 = vmatmul.mubr.bf16.gmra.mrb[12].mxu1 %v14244_v36  ;;  %v17746_v36 = vrot.slane %v9394_v34, 4  ;;  %v18531_v34 = vld [vmem:[#allocation37_spill] sm:$0xff] }
 0x4f2   : > { %13315 = vmatprep.mubr.bf16.mxu1 %v14245_v47  ;;  %13344 = vmatpush3.bf16.msra.mxu1 %v14252_v12  ;;  %v9386_v12 = vsel %vm14446_vm2, %v9381_v2, %v9385_v35  ;;  %v9417_v47 = vrot.slane %v9415_v38, 5  ;;  %v9497_v38 = vshrl.u32 %v18531_v34, 16 }
 0x4f3   : > { %13345 = vmatprep.subr.bf16.mxu1 %v14255_v37  ;;  %v12041_v25 = vcombine.low %v9376_v0, %v9386_v12  ;;  %v9400_v15 = vsel %vm14446_vm2, %v17746_v36, %v17739_v22  ;;  %v9475_v36 = vrot.slane %v9473_v1, 4  ;;  %v14265_v1 = vld [vmem:[%s18250_s5] sm:$0xff]  }
 0x4f4   : > { %v9418_v41 = vor.u32 %v9417_v47, %v9414_v57  ;;  %v9463_v57 = vshll.u32 %v9327_v10, 16  ;;  %v9499_v32 = vrot.slane %v9497_v38, 4  ;;  %13427 = vmatprep.subr.bf16.mxu0 %v14265_v1 }
 0x4f5   : > { %13428 = vmatpush3.bf16.msra.mxu0 %v14265_v1 }
 0x4f6   : > { %13346 = vmatpush3.bf16.msra.mxu1 %v14255_v37  ;;  %v9404_v37 = vor.u32 %v9403_v33, %v17739_v22  ;;  %v9330_v22 = vld [vmem:[#allocation2 + $0x54] sm:$0xf]  ;;  %v9493_v33 = vshll.u32 %v18531_v34, 16  ;;  %v9419_v30 = vrot.slane %v9418_v41, 4  ;;  %13429 = vmatprep.subr.bf16.mxu0 %v14266_v62 }
 0x4f7   : > { %13379 = vmatprep.subr.bf16.mxu1 %v17731_v42  ;;  %v9487_v47 = vshll.u32 %v9330_v22, 16 }
 0x4f8   : > { %v9405_v20 = vrot.slane %v9404_v37, 4  ;;  %v9484_v37 = vshrl.u32 %v9330_v22, 16  ;;  %v17785_v0 = vrot.slane %v9493_v33, 5  ;;  %v9424_v38 = vsel %vm14446_vm2, %v9419_v30, %v17749_v49 }
 0x4f9   : > { %13316 = vmatmul.mubr.bf16.gmra.mrb[16].mxu1 %v14247_v26  ;;  %v17753_v26 = vrot.slane %v9407_v54, 5  ;;  %v9460_v54 = vshrl.u32 %v9327_v10, 16  ;;  %v9455_v10 = vshll.u32 %v18532_v27, 16  ;;  %v9489_v41 = vrot.slane %v9487_v47, 5  ;;  %13430 = vmatpush3.bf16.msra.mxu0 %v14266_v62 }
 0x4fa   : > { %13319 = vmatprep.mubr.bf16.mxu1 %v14248_v52  ;;  %v9436_v52 = vshrl.u32 %v9324_v14, 16  ;;  %v17775_v14 = vrot.slane %v9469_v24, 5  ;;  %v9465_v24 = vrot.slane %v9463_v57, 5 }
 0x4fb   : > { %v9410_v39 = vsel %vm14446_vm2, %v9405_v20, %v17753_v26  ;;  %v9486_v20 = vrot.slane %v9484_v37, 4 }
 0x4fc   : > { %v9438_v2 = vrot.slane %v9436_v52, 4  ;;  %v9333_v52 = vld [vmem:[#allocation2 + $0x60] sm:$0xf]  ;;  %v9476_v26 = vor.u32 %v9475_v36, %v17775_v14  ;;  %v12042_v33 = vcombine.low %v9400_v15, %v9410_v39  ;;  %v14267_v15 = vld [vmem:[%s18250_s5 + $0x10] sm:$0xff]  }
 0x4fd   : > { %v9508_v6 = vshrl.u32 %v9333_v52, 16  ;;  %v9490_v47 = vor.u32 %v9489_v41, %v9486_v20  ;;  %v9339_v41 = vld [vmem:[#allocation2 + $0x78] sm:$0xf]  ;;  %13431 = vmatprep.subr.bf16.mxu0 %v14267_v15 }
 0x4fe   : > { %v9442_v3 = vor.u32 %v9441_v7, %v9438_v2  ;;  %v18533_v2 = vld [vmem:[#allocation40_spill] sm:$0xff]  ;;  %v9477_v37 = vrot.slane %v9476_v26, 4  ;;  %13432 = vmatpush3.bf16.msra.mxu0 %v14267_v15 }
 0x4ff   : > { %v9517_v22 = vshll.u32 %v18533_v2, 16  ;;  %v9521_v34 = vshrl.u32 %v18533_v2, 16  ;;  %v9510_v49 = vrot.slane %v9508_v6, 4  ;;  %v14269_v6 = vld [vmem:[%s18250_s5 + $0x18] sm:$0xff]   ;;  %v14259_v2 = vld [vmem:[%s18248_s3 + $0x210] sm:$0xff]  }
 0x500   : > { %v9443_v51 = vrot.slane %v9442_v3, 4  ;;  %v18535_v3 = vld [vmem:[#allocation43_spill] sm:$0xff]  ;;  %13433 = vmatprep.subr.bf16.mxu0 %v14269_v6 }
 0x501   : > { %13320 = vmatmul.mubr.bf16.gmra.mrb[20].mxu1 %v14250_v40  ;;  %v17765_v40 = vld [vmem:[#allocation2 + $0xd4] sm:$0x1]  ;;  %v17816_v30 = vrot.slane %v9517_v22, 5  ;;  %v9545_v1 = vshrl.u32 %v18535_v3, 16 }
 0x502   : > { %13323 = vmatprep.mubr.bf16.mxu1 %v14251_v17  ;;  %v10239_v17 = vrot.slane %v17763_v18, 5  ;;  %v10242_v46 = vrot.slane %v17765_v40, 5  ;;  %13434 = vmatpush3.bf16.msra.mxu0 %v14269_v6  ;;  %v14261_v6 = vld [vmem:[%s18248_s3 + $0x220] sm:$0xff]  }
 0x504   : > { %v10241_v35 = vrot.slane %v10239_v17, 4  ;;  %v17779_v12 = vsel %vm14762_vm6, %v12080_v56, %v10239_v17  ;;  %v9500_v17 = vor.u32 %v9499_v32, %v17785_v0  ;;  %v14314_v56 = vld [vmem:[#allocation2 + $0x50] sm:$0x1]  ;;  %v9336_v32 = vld [vmem:[#allocation2 + $0x6c] sm:$0xf] }
 0x505   : > { %v9479_v7 = vshll.u32 %v14314_v56, 16  ;;  %v9532_v26 = vshrl.u32 %v9336_v32, 16  ;;  %v9535_v20 = vshll.u32 %v9336_v32, 16  ;;  %v9547_v56 = vrot.slane %v9545_v1, 4 }
 0x506   : > { %v17783_v44 = vsel %vm14762_vm6, %v10241_v35, %v10242_v46  ;;  %v9511_v46 = vshll.u32 %v9333_v52, 16  ;;  %v9453_v35 = vrot.slane %v9452_v16, 4  ;;  %v9501_v52 = vrot.slane %v9500_v17, 4 }
 0x507   : > { %v9541_v16 = vshll.u32 %v18535_v3, 16 }
 0x508   : > { %v9513_v39 = vrot.slane %v9511_v46, 5 }
 0x509   : > { %13324 = vmatmul.mubr.bf16.gmra.mrb[24].mxu1 %v14253_v53  ;;  %v9433_v53 = vrot.slane %v9431_v59, 5  ;;  %v9462_v59 = vrot.slane %v9460_v54, 4  ;;  %v18534_v54 = vld [vmem:[#allocation38_spill] sm:$0xff] }
 0x50a   : > { %13327 = vmatprep.mubr.bf16.mxu1 %v14254_v11  ;;  %v12096_v11 = vcombine.low %v17779_v12, %v17783_v44  ;;  %v9503_v57 = vshll.u32 %v18534_v54, 16  ;;  %v14316_v54 = vld [vmem:[#allocation2 + $0x7c] sm:$0xf] }
 0x50b   : > { %v9466_v36 = vor.u32 %v9465_v24, %v9462_v59  ;;  %v9448_v59 = vsel %vm14446_vm2, %v9443_v51, %v17773_v8  ;;  %v9491_v8 = vrot.slane %v9490_v47, 4  ;;  %v9559_v51 = vshll.u32 %v9339_v41, 16 }
 0x50c   : > { %v9505_v24 = vrot.slane %v9503_v57, 5  ;;  %v9565_v57 = vshll.u32 %v14316_v54, 16 }
 0x50d   : > { %v9467_v17 = vrot.slane %v9466_v36, 4  ;;  %v9569_v36 = vshrl.u32 %v14316_v54, 16  ;;  %v9496_v15 = vsel %vm14446_vm2, %v9491_v8, %v17785_v0  ;;  %v9561_v1 = vrot.slane %v9559_v51, 5  ;;  %v14317_v0 = vld [vmem:[#allocation2 + $0x74] sm:$0x1] }
 0x50e   : > { %v9506_v22 = vsel %vm14446_vm2, %v9501_v52, %v9505_v24  ;;  %v9551_v24 = vshll.u32 %v14317_v0, 16 }
 0x50f   : > { %v12046_v52 = vcombine.low %v9496_v15, %v9506_v22 }
 0x510   : > { %v9553_v54 = vrot.slane %v9551_v24, 5 }
 0x511   : > { %13328 = vmatmul.mubr.bf16.gmra.mrb[28].mxu1 %v14256_v50  ;;  %v9457_v50 = vrot.slane %v9455_v10, 5  ;;  %v9481_v10 = vrot.slane %v9479_v7, 5  ;;  %v9556_v7 = vshrl.u32 %v9339_v41, 16  ;;  %v14273_v41 = vld [vmem:[%s18250_s5 + $0x28] sm:$0xff]  }
 0x512   : > { %13347 = vmatprep.mubr.bf16.mxu1 %v12041_v25  ;;  %v9434_v25 = vsel %vm14446_vm2, %v9429_v28, %v9433_v53  ;;  %v14258_v53 = vld [vmem:[%s18248_s3 + $0x208] sm:$0xff]   ;;  %v9523_v28 = vrot.slane %v9521_v34, 4  ;;  %v9514_v34 = vor.u32 %v9513_v39, %v9510_v49  ;;  %v9472_v49 = vsel %vm14446_vm2, %v9467_v17, %v17775_v14  ;;  %v9345_v14 = vld [vmem:[#allocation2 + $0x90] sm:$0xf] }
 0x513   : > { %v12043_v27 = vcombine.low %v9424_v38, %v9434_v25  ;;  %v9458_v62 = vsel %vm14446_vm2, %v9453_v35, %v9457_v50  ;;  %v9482_v46 = vsel %vm14446_vm2, %v9477_v37, %v9481_v10  ;;  %v17837_v25 = vrot.slane %v9541_v16, 5  ;;  %v14271_v37 = vld [vmem:[%s18250_s5 + $0x20] sm:$0xff]  }
 0x514   : > { %v9534_v35 = vrot.slane %v9532_v26, 4  ;;  %v9537_v50 = vrot.slane %v9535_v20, 5  ;;  %v12044_v47 = vcombine.low %v9448_v59, %v9458_v62  ;;  %v12045_v32 = vcombine.low %v9472_v49, %v9482_v46  ;;  %v9342_v10 = vld [vmem:[#allocation2 + $0x84] sm:$0xf]  ;;  %13435 = vmatprep.subr.bf16.mxu0 %v14271_v37  ;;  %v14318_v46 = vld [vmem:[#allocation2 + $0x88] sm:$0xf] }
 0x515   : > { %v9515_v39 = vrot.slane %v9514_v34, 4  ;;  %v9558_v16 = vrot.slane %v9556_v7, 4  ;;  %v17852_v26 = vrot.slane %v9565_v57, 5  ;;  %v9571_v20 = vrot.slane %v9569_v36, 4  ;;  %13436 = vmatpush3.bf16.msra.mxu0 %v14271_v37  ;;  %v14320_v36 = vld [vmem:[#allocation2 + $0x80] sm:$0x1] }
 0x516   : > { %v9538_v59 = vor.u32 %v9537_v50, %v9534_v35  ;;  %v9580_v62 = vshrl.u32 %v9342_v10, 16  ;;  %v9583_v17 = vshll.u32 %v9342_v10, 16  ;;  %v9589_v8 = vshll.u32 %v14318_v46, 16  ;;  %13437 = vmatprep.subr.bf16.mxu0 %v14273_v41  ;;  %v14275_v49 = vld [vmem:[%s18250_s5 + $0x30] sm:$0xff]  }
 0x517   : > { %v9593_v22 = vshrl.u32 %v14318_v46, 16  ;;  %v9604_v34 = vshrl.u32 %v9345_v14, 16  ;;  %v9520_v7 = vsel %vm14446_vm2, %v9515_v39, %v17816_v30  ;;  %v9562_v35 = vor.u32 %v9561_v1, %v9558_v16  ;;  %v14262_v16 = vld [vmem:[%s18248_s3 + $0x228] sm:$0xff]  }
 0x518   : > { %v9539_v50 = vrot.slane %v9538_v59, 4  ;;  %v9572_v57 = vor.u32 %v9571_v20, %v17852_v26  ;;  %v9582_v15 = vrot.slane %v9580_v62, 4 }
 0x519   : > { %13348 = vmatmul.mubr.bf16.vlgmr.msra.gmra.mrb[0].mxu1 %v12042_v33  ;;  %v14315_v33 = vld [vmem:[#allocation2 + $0x68] sm:$0x1]  ;;  %v9595_v39 = vrot.slane %v9593_v22, 4  ;;  %v9606_v37 = vrot.slane %v9604_v34, 4  ;;  %13438 = vmatpush3.bf16.msra.mxu0 %v14273_v41  ;;  %v14321_v41 = vld [vmem:[#allocation2 + $0x8c] sm:$0x1] }
 0x51a   : > { %13380 = vmatpush3.bf16.msra.mxu1 %v17731_v42  ;;  %13351 = vmatprep.mubr.bf16.mxu1 %v12043_v27  ;;  %v9524_v42 = vor.u32 %v9523_v28, %v17816_v30  ;;  %v9527_v38 = vshll.u32 %v14315_v33, 16  ;;  %v14260_v27 = vld [vmem:[%s18248_s3 + $0x218] sm:$0xff]   ;;  %v14319_v33 = vld [vmem:[#allocation2 + $0x94] sm:$0xf]  ;;  %v9585_v30 = vrot.slane %v9583_v17, 5  ;;  %v9544_v59 = vsel %vm14446_vm2, %v9539_v50, %v17837_v25 }
 0x51b   : > { %13381 = vmatprep.subr.bf16.mxu1 %v14258_v53  ;;  %v9573_v0 = vrot.slane %v9572_v57, 4  ;;  %13439 = vmatprep.subr.bf16.mxu0 %v14275_v49 }
 0x51c   : > { %v9529_v28 = vrot.slane %v9527_v38, 5  ;;  %v9525_v3 = vrot.slane %v9524_v42, 4  ;;  %v9607_v42 = vshll.u32 %v9345_v14, 16  ;;  %v9613_v38 = vshll.u32 %v14319_v33, 16 }
 0x51d   : > { %v9563_v14 = vrot.slane %v9562_v35, 4  ;;  %v9586_v24 = vor.u32 %v9585_v30, %v9582_v15  ;;  %13440 = vmatpush3.bf16.msra.mxu0 %v14275_v49  ;;  %v14324_v35 = vld [vmem:[#allocation2 + $0xac] sm:$0xf]  ;;  %v14264_v49 = vld [vmem:[%s18248_s3 + $0x238] sm:$0xff]  }
 0x51e   : > { %13382 = vmatpush3.bf16.msra.mxu1 %v14258_v53  ;;  %v9548_v53 = vor.u32 %v9547_v56, %v17837_v25  ;;  %v9617_v56 = vshrl.u32 %v14319_v33, 16  ;;  %v9609_v10 = vrot.slane %v9607_v42, 5  ;;  %v9599_v42 = vshll.u32 %v14321_v41, 16  ;;  %v14322_v33 = vld [vmem:[#allocation2 + $0xa0] sm:$0xf] }
 0x51f   : > { %13383 = vmatprep.subr.bf16.mxu1 %v14259_v2  ;;  %v9568_v25 = vsel %vm14446_vm2, %v9563_v14, %v17852_v26  ;;  %v9661_v50 = vshll.u32 %v14324_v35, 16  ;;  %v9587_v57 = vrot.slane %v9586_v24, 4 }
 0x520   : > { %v9549_v51 = vrot.slane %v9548_v53, 4  ;;  %v9619_v53 = vrot.slane %v9617_v56, 4  ;;  %v9610_v22 = vor.u32 %v9609_v10, %v9606_v37  ;;  %v9351_v56 = vld [vmem:[#allocation2 + $0xa8] sm:$0xf]  ;;  %v9601_v10 = vrot.slane %v9599_v42, 5 }
 0x521   : > { %13352 = vmatmul.mubr.bf16.gmra.mrb[4].mxu1 %v12044_v47  ;;  %v9575_v47 = vshll.u32 %v14320_v36, 16  ;;  %v17896_v14 = vrot.slane %v9661_v50, 5  ;;  %v14326_v42 = vld [vmem:[#allocation2 + $0xb8] sm:$0xf] }
 0x522   : > { %13355 = vmatprep.mubr.bf16.mxu1 %v12045_v32  ;;  %13384 = vmatpush3.bf16.msra.mxu1 %v14259_v2  ;;  %v9530_v2 = vsel %vm14446_vm2, %v9525_v3, %v9529_v28  ;;  %v17869_v32 = vrot.slane %v9589_v8, 5  ;;  %v9348_v28 = vld [vmem:[#allocation2 + $0x9c] sm:$0xf]  ;;  %v17871_v3 = vrot.slane %v9613_v38, 5  ;;  %v9641_v38 = vshrl.u32 %v14322_v33, 16 }
 0x523   : > { %13385 = vmatprep.subr.bf16.mxu1 %v14260_v27  ;;  %v12047_v1 = vcombine.low %v9520_v7, %v9530_v2  ;;  %v9628_v62 = vshrl.u32 %v9348_v28, 16  ;;  %v9631_v17 = vshll.u32 %v9348_v28, 16  ;;  %v9577_v8 = vrot.slane %v9575_v47, 5  ;;  %v14323_v2 = vld [vmem:[#allocation2 + $0x98] sm:$0x1] }
 0x524   : > { %v9596_v20 = vor.u32 %v9595_v39, %v17869_v32  ;;  %v9620_v34 = vor.u32 %v9619_v53, %v17871_v3  ;;  %v9611_v26 = vrot.slane %v9610_v22, 4  ;;  %v9652_v39 = vshrl.u32 %v9351_v56, 16 }
 0x525   : > { %v9578_v7 = vsel %vm14446_vm2, %v9573_v0, %v9577_v8  ;;  %v9630_v47 = vrot.slane %v9628_v62, 4  ;;  %v9633_v15 = vrot.slane %v9631_v17, 5  ;;  %v9655_v28 = vshll.u32 %v9351_v56, 16  ;;  %v14325_v62 = vld [vmem:[#allocation2 + $0xa4] sm:$0x1] }
 0x526   : > { %13386 = vmatpush3.bf16.msra.mxu1 %v14260_v27  ;;  %v9554_v27 = vsel %vm14446_vm2, %v9549_v51, %v9553_v54  ;;  %v9623_v51 = vshll.u32 %v14323_v2, 16  ;;  %v9665_v54 = vshrl.u32 %v14324_v35, 16  ;;  %v9597_v36 = vrot.slane %v9596_v20, 4  ;;  %v14327_v56 = vld [vmem:[#allocation2 + $0xc4] sm:$0xf] }
 0x527   : > { %13387 = vmatprep.subr.bf16.mxu1 %v14261_v6  ;;  %v12048_v46 = vcombine.low %v9544_v59, %v9554_v27  ;;  %v9621_v30 = vrot.slane %v9620_v34, 4  ;;  %v12049_v37 = vcombine.low %v9568_v25, %v9578_v7  ;;  %v9592_v0 = vsel %vm14446_vm2, %v9587_v57, %v17869_v32  ;;  %v17911_v32 = vld [vmem:[%s18251_s6] sm:$0xff]  }
 0x528   : > { %v9625_v27 = vrot.slane %v9623_v51, 5  ;;  %v9667_v59 = vrot.slane %v9665_v54, 4  ;;  %v9602_v24 = vsel %vm14446_vm2, %v9597_v36, %v9601_v10  ;;  %v9634_v20 = vor.u32 %v9633_v15, %v9630_v47  ;;  %v14328_v36 = vld [vmem:[#allocation2 + $0xb0] sm:$0x1] }
 0x529   : > { %13356 = vmatmul.mubr.bf16.gmra.mrb[8].mxu1 %v12046_v52  ;;  %v14263_v52 = vld [vmem:[%s18248_s3 + $0x230] sm:$0xff]   ;;  %v9647_v17 = vshll.u32 %v14325_v62, 16  ;;  %v9654_v22 = vrot.slane %v9652_v39, 4  ;;  %v9657_v34 = vrot.slane %v9655_v28, 5  ;;  %v9709_v7 = vshll.u32 %v14327_v56, 16 }
 0x52a   : > { %13359 = vmatprep.mubr.bf16.mxu1 %v12047_v1  ;;  %13388 = vmatpush3.bf16.msra.mxu1 %v14261_v6  ;;  %v9637_v6 = vshll.u32 %v14322_v33, 16  ;;  %v9643_v1 = vrot.slane %v9641_v38, 4  ;;  %v9626_v8 = vsel %vm14446_vm2, %v9621_v30, %v9625_v27  ;;  %v9689_v33 = vshrl.u32 %v14326_v42, 16  ;;  %v9360_v30 = vld [vmem:[#allocation2 + $0xcc] sm:$0xf] }
 0x52b   : > { %13389 = vmatprep.subr.bf16.mxu1 %v14262_v16  ;;  %v9713_v2 = vshrl.u32 %v14327_v56, 16  ;;  %v12050_v51 = vcombine.low %v9592_v0, %v9602_v24  ;;  %v9635_v50 = vrot.slane %v9634_v20, 4  ;;  %v9649_v54 = vrot.slane %v9647_v17, 5 }
 0x52c   : > { %v17894_v53 = vrot.slane %v9637_v6, 5  ;;  %v9357_v6 = vld [vmem:[#allocation2 + $0xc0] sm:$0xf]  ;;  %v9658_v57 = vor.u32 %v9657_v34, %v9654_v22  ;;  %v9671_v47 = vshll.u32 %v14328_v36, 16  ;;  %v9691_v10 = vrot.slane %v9689_v33, 4 }
 0x52d   : > { %v9700_v15 = vshrl.u32 %v9357_v6, 16  ;;  %v9724_v0 = vshrl.u32 %v9360_v30, 16  ;;  %v9733_v24 = vshll.u32 %v17763_v18, 16  ;;  %v9737_v20 = vshrl.u32 %v17763_v18, 16 }
 0x52e   : > { %13390 = vmatpush3.bf16.msra.mxu1 %v14262_v16  ;;  %v9354_v16 = vld [vmem:[#allocation2 + $0xb4] sm:$0xf]  ;;  %v9644_v25 = vor.u32 %v9643_v1, %v17894_v53  ;;  %v9659_v62 = vrot.slane %v9658_v57, 4  ;;  %v9673_v17 = vrot.slane %v9671_v47, 5  ;;  %v9640_v22 = vsel %vm14446_vm2, %v9635_v50, %v17894_v53 }
 0x52f   : > { %13391 = vmatprep.subr.bf16.mxu1 %v14263_v52  ;;  %v9676_v41 = vshrl.u32 %v9354_v16, 16  ;;  %v9679_v38 = vshll.u32 %v9354_v16, 16  ;;  %v9715_v16 = vrot.slane %v9713_v2, 4  ;;  %v9726_v18 = vrot.slane %v9724_v0, 4 }
 0x530   : > { %v9645_v39 = vrot.slane %v9644_v25, 4  ;;  %v9739_v56 = vrot.slane %v9737_v20, 4  ;;  %v9664_v53 = vsel %vm14446_vm2, %v9659_v62, %v17896_v14 }
 0x531   : > { %13360 = vmatmul.mubr.bf16.gmra.mrb[12].mxu1 %v12048_v46  ;;  %v9616_v46 = vsel %vm14446_vm2, %v9611_v26, %v17871_v3  ;;  %v9668_v3 = vor.u32 %v9667_v59, %v17896_v14  ;;  %v9703_v26 = vshll.u32 %v9357_v6, 16  ;;  %v9678_v28 = vrot.slane %v9676_v41, 4 }
 0x532   : > { %13363 = vmatprep.mubr.bf16.mxu1 %v12049_v37  ;;  %13392 = vmatpush3.bf16.msra.mxu1 %v14263_v52  ;;  %v9685_v52 = vshll.u32 %v14326_v42, 16  ;;  %v12051_v35 = vcombine.low %v9616_v46, %v9626_v8  ;;  %v9681_v27 = vrot.slane %v9679_v38, 5  ;;  %v9711_v59 = vrot.slane %v9709_v7, 5 }
 0x533   : > { %13393 = vmatprep.subr.bf16.mxu1 %v14264_v49  ;;  %v9669_v1 = vrot.slane %v9668_v3, 4  ;;  %v9702_v46 = vrot.slane %v9700_v15, 4  ;;  %v9705_v8 = vrot.slane %v9703_v26, 5  ;;  %v9650_v34 = vsel %vm14446_vm2, %v9645_v39, %v9649_v54 }
 0x534   : > { %v9687_v37 = vrot.slane %v9685_v52, 5  ;;  %v9682_v42 = vor.u32 %v9681_v27, %v9678_v28  ;;  %v14329_v52 = vld [vmem:[#allocation2 + $0xbc] sm:$0x1]  ;;  %v9716_v6 = vor.u32 %v9715_v16, %v9711_v59  ;;  %v9735_v38 = vrot.slane %v9733_v24, 5 }
 0x535   : > { %v9674_v41 = vsel %vm14446_vm2, %v9669_v1, %v9673_v17  ;;  %v9695_v33 = vshll.u32 %v14329_v52, 16  ;;  %v12052_v7 = vcombine.low %v9640_v22, %v9650_v34  ;;  %v9706_v2 = vor.u32 %v9705_v8, %v9702_v46  ;;  %v18536_v46 = vld [vmem:[#allocation32_spill] sm:$0xff]  ;;  %v17947_v22 = vld [vmem:[%s18251_s6 + $0x8] sm:$0xff]  }
 0x536   : > { %13394 = vmatpush3.bf16.msra.mxu1 %v14264_v49  ;;  %v9727_v49 = vshll.u32 %v9360_v30, 16  ;;  %v9692_v25 = vor.u32 %v9691_v10, %v9687_v37  ;;  %v12053_v50 = vcombine.low %v9664_v53, %v9674_v41  ;;  %v9717_v36 = vrot.slane %v9716_v6, 4  ;;  %v18540_v34 = vld [vmem:[#allocation36_spill] sm:$0xff]  ;;  %v18542_v41 = vld [vmem:[#allocation39_spill] sm:$0xff]  ;;  %v18545_v6 = vld [vmem:[#allocation42_spill] sm:$0xff] }
 0x537   : > { %13523 = vmatprep.subr.bf16.mxu1 %v17911_v32  ;;  %v9697_v57 = vrot.slane %v9695_v33, 5  ;;  %v9683_v47 = vrot.slane %v9682_v42, 4  ;;  %v9740_v26 = vor.u32 %v9739_v56, %v9735_v38  ;;  %v9743_v30 = vshll.u32 %v17765_v40, 16  ;;  %v18543_v42 = vld [vmem:[#allocation41_spill] sm:$0xff]  ;;  %v17967_v33 = vld [vmem:[%s18251_s6 + $0x18] sm:$0xff]   ;;  %v18549_v56 = vld [vmem:[#allocation46_spill] sm:$0xff] }
 0x538   : > { %v9729_v3 = vrot.slane %v9727_v49, 5  ;;  %v9693_v54 = vrot.slane %v9692_v25, 4  ;;  %v9707_v39 = vrot.slane %v9706_v2, 4  ;;  %v18544_v52 = vcombine.low %v18542_v41, %v18543_v42  ;;  %v17980_v53 = vld [vmem:[%s18251_s6 + $0x20] sm:$0xff]  }
 0x539   : > { %13364 = vmatmul.mubr.bf16.gmra.mrb[16].mxu1 %v12050_v51  ;;  %v14330_v51 = vld [vmem:[#allocation2 + $0xc8] sm:$0x1]  ;;  %v9688_v1 = vsel %vm14446_vm2, %v9683_v47, %v9687_v37  ;;  %v9741_v16 = vrot.slane %v9740_v26, 4  ;;  %v9745_v0 = vrot.slane %v9743_v30, 5  ;;  %v18551_v2 = vcombine.low %v17404_v60, %v17411_v61  ;;  %v18558_v47 = vld [vmem:[#allocation51_spill] sm:$0xff]  ;;  %v18560_v26 = vld [vmem:[#allocation52_spill] sm:$0xff] }
 0x53a   : > { %13367 = vmatprep.mubr.bf16.mxu1 %v12051_v35  ;;  %v9719_v35 = vshll.u32 %v14330_v51, 16  ;;  %v9730_v15 = vor.u32 %v9729_v3, %v9726_v18  ;;  %v9698_v10 = vsel %vm14446_vm2, %v9693_v54, %v9697_v57  ;;  %v9712_v24 = vsel %vm14446_vm2, %v9707_v39, %v9711_v59  ;;  %v18537_v37 = vld [vmem:[#allocation33_spill] sm:$0xff]  ;;  %v18539_v59 = vld [vmem:[#allocation35_spill] sm:$0xff]  ;;  %v18546_v18 = vld [vmem:[#allocation44_spill] sm:$0xff] }
 0x53b   : > { %v12054_v49 = vcombine.low %v9688_v1, %v9698_v10  ;;  %v9746_v62 = vsel %vm14446_vm2, %v9741_v16, %v9745_v0  ;;  %v18538_v8 = vcombine.low %v18536_v46, %v18537_v37  ;;  %v18541_v25 = vcombine.low %v18539_v59, %v18540_v34  ;;  %v18552_v51 = vld [vmem:[#allocation47_spill] sm:$0xff]  ;;  %v18555_v54 = vld [vmem:[#allocation49_spill] sm:$0xff]  ;;  %v18556_v57 = vld [vmem:[#allocation50_spill] sm:$0xff] }
 0x53c   : > { %v9721_v28 = vrot.slane %v9719_v35, 5  ;;  %v9731_v27 = vrot.slane %v9730_v15, 4  ;;  %v18547_v3 = vcombine.low %v18545_v6, %v18546_v18  ;;  %v18553_v35 = vld [vmem:[#allocation48_spill] sm:$0xff]  ;;  %v18559_v15 = vcombine.low %v17446_v23, %v18558_v47  ;;  %v18561_v30 = vld [vmem:[#allocation53_spill] sm:$0xff]  ;;  %v14277_v23 = vld [vmem:[%s18250_s5 + $0x38] sm:$0xff]  }
 0x53d   : > { %v18562_v39 = vcombine.low %v18560_v26, %v18561_v30  ;;  %v18563_v60 = vcombine.low %v17473_v13, %v17477_v5  ;;  %v18564_v61 = vcombine.low %v17481_v19, %v17487_v58  ;;  %v18024_v58 = vld [vmem:[%s18251_s6 + $0x28] sm:$0xff]   ;;  %13441 = vmatprep.subr.bf16.mxu0 %v14277_v23  ;;  %v18032_v13 = vld [vmem:[%s18251_s6 + $0x30] sm:$0xff]   ;;  %v18037_v5 = vld [vmem:[%s18251_s6 + $0x38] sm:$0xff]  }
 0x53e   : > { %v9722_v14 = vsel %vm14446_vm2, %v9717_v36, %v9721_v28  ;;  %v9736_v40 = vsel %vm14446_vm2, %v9731_v27, %v9735_v38  ;;  %v18548_v38 = vld [vmem:[#allocation45_spill] sm:$0xff]  ;;  %v18557_v36 = vcombine.low %v18555_v54, %v18556_v57  ;;  %13442 = vmatpush3.bf16.msra.mxu0 %v14277_v23  ;;  %v18046_v19 = vld [vmem:[%s18249_s4] ss:$0 sm:$0xff] }
 0x53f   : > { %v12055_v20 = vcombine.low %v9712_v24, %v9722_v14  ;;  %v12056_v17 = vcombine.low %v9736_v40, %v9746_v62  ;;  %13475 = vmatprep.subr.bf16.mxu0 %v17911_v32 }
 0x541   : > { %13368 = vmatmul.mubr.bf16.gmra.mrb[20].mxu1 %v12052_v7  ;;  %v18550_v7 = vcombine.low %v18548_v38, %v18549_v56 }
 0x542   : > { %13371 = vmatprep.mubr.bf16.mxu1 %v12053_v50  ;;  %v18554_v50 = vcombine.low %v18552_v51, %v18553_v35 }
 0x549   : > { %13372 = vmatmul.mubr.bf16.gmra.mrb[24].mxu1 %v12054_v49 }
 0x54a   : > { %13375 = vmatprep.mubr.bf16.mxu1 %v12055_v20 }
 0x551   : > { %13376 = vmatmul.mubr.bf16.gmra.mrb[28].mxu1 %v12056_v17 }
 0x552   : > { %13395 = vmatprep.mubr.bf16.mxu1 %v18538_v8 }
 0x559   : > { %13396 = vmatmul.mubr.bf16.vlgmr.msra.gmra.mrb[0].mxu1 %v18541_v25 }
 0x55a   : > { %13399 = vmatprep.mubr.bf16.mxu1 %v18544_v52  ;;  %13531 = vmatpush3.bf16.msra.mxu1 %v17911_v32 }
 0x55b   : > { %13524 = vmatprep.subr.bf16.mxu1 %v17947_v22 }
 0x55e   : > { %13532 = vmatpush3.bf16.msra.mxu1 %v17947_v22 }
 0x55f   : > { %13525 = vmatprep.subr.bf16.mxu1 %v17960_v29 }
 0x561   : > { %13400 = vmatmul.mubr.bf16.gmra.mrb[4].mxu1 %v18547_v3 }
 0x562   : > { %13403 = vmatprep.mubr.bf16.mxu1 %v18550_v7  ;;  %13533 = vmatpush3.bf16.msra.mxu1 %v17960_v29 }
 0x563   : > { %13526 = vmatprep.subr.bf16.mxu1 %v17967_v33 }
 0x566   : > { %13534 = vmatpush3.bf16.msra.mxu1 %v17967_v33 }
 0x567   : > { %13527 = vmatprep.subr.bf16.mxu1 %v17980_v53 }
 0x569   : > { %13404 = vmatmul.mubr.bf16.gmra.mrb[8].mxu1 %v18551_v2 }
 0x56a   : > { %13407 = vmatprep.mubr.bf16.mxu1 %v18554_v50  ;;  %13535 = vmatpush3.bf16.msra.mxu1 %v17980_v53 }
 0x56b   : > { %13528 = vmatprep.subr.bf16.mxu1 %v18024_v58 }
 0x56e   : > { %13536 = vmatpush3.bf16.msra.mxu1 %v18024_v58 }
 0x56f   : > { %13529 = vmatprep.subr.bf16.mxu1 %v18032_v13 }
 0x571   : > { %13408 = vmatmul.mubr.bf16.gmra.mrb[12].mxu1 %v18557_v36 }
 0x572   : > { %13411 = vmatprep.mubr.bf16.mxu1 %v18559_v15  ;;  %13537 = vmatpush3.bf16.msra.mxu1 %v18032_v13 }
 0x573   : > { %13530 = vmatprep.subr.bf16.mxu1 %v18037_v5 }
 0x576   : > { %13538 = vmatpush3.bf16.msra.mxu1 %v18037_v5 }
 0x579   : > { %13412 = vmatmul.mubr.bf16.gmra.mrb[16].mxu1 %v18562_v39 }
 0x57a   : > { %13415 = vmatprep.mubr.bf16.mxu1 %v18563_v60 }
 0x581   : > { %13416 = vmatmul.mubr.bf16.gmra.mrb[20].mxu1 %v18564_v61 }
 0x582   : > { %13419 = vmatprep.mubr.bf16.mxu1 %v12093_v9 }
 0x589   : > { %13420 = vmatmul.mubr.bf16.gmra.mrb[24].mxu1 %v12094_v43 }
 0x58a   : > { %13423 = vmatprep.mubr.bf16.mxu1 %v12095_v4 }
 0x591   : > { %13424 = vmatmul.mubr.bf16.gmra.mrb[28].mxu1 %v12096_v11 }
 0x62c   : > { %v13397_v48 = vpop.f32.mrb[0].mxu1 }
 0x62d   : > { %v10574_v45 = vadd.f32 %v13397_v48, %v18046_v19  ;;  %v10406_v31 = vpop.f32.mrb[1].mxu1 }
 0x62e   : > { %v10572_v9 = vadd.f32 %v18046_v19, %v10406_v31  ;;  %v13398_v21 = vpop.f32.mrb[2].mxu1 }
 0x62f   : > { %v10575_v43 = vadd.f32 %v13398_v21, %v18046_v19  ;;  %v10409_v55 = vpop.f32.mrb[3].mxu1  ;;  %v10606_v4 = vmax.f32 %v10574_v45, 0.0 }
 0x630   : > { %v10573_v63 = vadd.f32 %v18046_v19, %v10409_v55  ;;  %v10604_v44 = vmax.f32 %v10572_v9, 0.0 }
 0x631   : > { %v10607_v12 = vmax.f32 %v10575_v43, 0.0 }
 0x632   : > { %v10605_v11 = vmax.f32 %v10573_v63, 0.0 }
 0x633   : > { %v18052_v28 = vpack.c.bf16 %v10607_v12, %v10606_v4 }
 0x634   : > { %v18054_v10 = vpack.c.bf16 %v10605_v11, %v10604_v44  ;;  %v13401_v14 = vpop.f32.mrb[4].mxu1 }
 0x635   : > { %v10578_v1 = vadd.f32 %v13401_v14, %v18046_v19  ;;  %v10422_v27 = vpop.f32.mrb[5].mxu1 }
 0x636   : > { %v10576_v16 = vadd.f32 %v18046_v19, %v10422_v27  ;;  %v13402_v0 = vpop.f32.mrb[6].mxu1  ;;  %13443 = vmatprep.mubr.bf16.mxu0 %v18054_v10 }
 0x637   : > { %v10579_v49 = vadd.f32 %v13402_v0, %v18046_v19  ;;  %v10425_v24 = vpop.f32.mrb[7].mxu1  ;;  %13444 = vmatmul.mubr.bf16.vlgmr.msra.gmra.mrb[32].mxu0 %v18052_v28  ;;  %v10610_v40 = vmax.f32 %v10578_v1, 0.0 }
 0x638   : > { %v10577_v20 = vadd.f32 %v18046_v19, %v10425_v24  ;;  %13476 = vmatpush3.bf16.msra.mxu0 %v17911_v32  ;;  %v10608_v17 = vmax.f32 %v10576_v16, 0.0 }
 0x639   : > { %v10611_v62 = vmax.f32 %v10579_v49, 0.0  ;;  %13477 = vmatprep.subr.bf16.mxu0 %v17947_v22 }
 0x63a   : > { %v10609_v46 = vmax.f32 %v10577_v20, 0.0 }
 0x63b   : > { %v10639_v37 = vpack.c.bf16 %v10611_v62, %v10610_v40 }
 0x63c   : > { %v10638_v8 = vpack.c.bf16 %v10609_v46, %v10608_v17  ;;  %v13405_v59 = vpop.f32.mrb[8].mxu1  ;;  %13478 = vmatpush3.bf16.msra.mxu0 %v17947_v22 }
 0x63d   : > { %v10582_v34 = vadd.f32 %v13405_v59, %v18046_v19  ;;  %v10438_v25 = vpop.f32.mrb[9].mxu1  ;;  %13479 = vmatprep.subr.bf16.mxu0 %v17960_v29 }
 0x63e   : > { %v10580_v41 = vadd.f32 %v18046_v19, %v10438_v25  ;;  %v13406_v42 = vpop.f32.mrb[10].mxu1  ;;  %13447 = vmatprep.mubr.bf16.mxu0 %v10638_v8  ;;  %13495 = vmatprep.mubr.bf16.mxu1 %v10638_v8 }
 0x63f   : > { %v10583_v32 = vadd.f32 %v13406_v42, %v18046_v19  ;;  %v10441_v52 = vpop.f32.mrb[11].mxu1  ;;  %13448 = vmatmul.mubr.bf16.gmra.mrb[36].mxu0 %v10639_v37  ;;  %13496 = vmatmul.mubr.bf16.vlgmr.msra.gmra.mrb[32].mxu1 %v10639_v37  ;;  %v10614_v22 = vmax.f32 %v10582_v34, 0.0 }
 0x640   : > { %v10581_v6 = vadd.f32 %v18046_v19, %v10441_v52  ;;  %13480 = vmatpush3.bf16.msra.mxu0 %v17960_v29  ;;  %v10612_v3 = vmax.f32 %v10580_v41, 0.0 }
 0x641   : > { %v10615_v18 = vmax.f32 %v10583_v32, 0.0  ;;  %13481 = vmatprep.subr.bf16.mxu0 %v17967_v33 }
 0x642   : > { %v10613_v38 = vmax.f32 %v10581_v6, 0.0 }
 0x643   : > { %v10641_v56 = vpack.c.bf16 %v10615_v18, %v10614_v22 }
 0x644   : > { %v10640_v7 = vpack.c.bf16 %v10613_v38, %v10612_v3  ;;  %v13409_v2 = vpop.f32.mrb[12].mxu1  ;;  %13482 = vmatpush3.bf16.msra.mxu0 %v17967_v33 }
 0x645   : > { %v10586_v51 = vadd.f32 %v13409_v2, %v18046_v19  ;;  %v10454_v35 = vpop.f32.mrb[13].mxu1  ;;  %13483 = vmatprep.subr.bf16.mxu0 %v17980_v53 }
 0x646   : > { %v10584_v50 = vadd.f32 %v18046_v19, %v10454_v35  ;;  %v13410_v54 = vpop.f32.mrb[14].mxu1  ;;  %13451 = vmatprep.mubr.bf16.mxu0 %v10640_v7  ;;  %13499 = vmatprep.mubr.bf16.mxu1 %v10640_v7 }
 0x647   : > { %v10587_v29 = vadd.f32 %v13410_v54, %v18046_v19  ;;  %v10457_v57 = vpop.f32.mrb[15].mxu1  ;;  %13452 = vmatmul.mubr.bf16.gmra.mrb[40].mxu0 %v10641_v56  ;;  %13500 = vmatmul.mubr.bf16.gmra.mrb[36].mxu1 %v10641_v56  ;;  %v10618_v33 = vmax.f32 %v10586_v51, 0.0 }
 0x648   : > { %v10585_v36 = vadd.f32 %v18046_v19, %v10457_v57  ;;  %13484 = vmatpush3.bf16.msra.mxu0 %v17980_v53  ;;  %v10616_v15 = vmax.f32 %v10584_v50, 0.0 }
 0x649   : > { %v10619_v47 = vmax.f32 %v10587_v29, 0.0  ;;  %13485 = vmatprep.subr.bf16.mxu0 %v18024_v58 }
 0x64a   : > { %v10617_v26 = vmax.f32 %v10585_v36, 0.0 }
 0x64b   : > { %v10643_v30 = vpack.c.bf16 %v10619_v47, %v10618_v33  ;;  %v18107_v47 = vld [vmem:[%s18252_s7] ss:$0 sm:$0xff] }
 0x64c   : > { %v10642_v39 = vpack.c.bf16 %v10617_v26, %v10616_v15  ;;  %v13413_v60 = vpop.f32.mrb[16].mxu1  ;;  %13486 = vmatpush3.bf16.msra.mxu0 %v18024_v58 }
 0x64d   : > { %v10590_v61 = vadd.f32 %v13413_v60, %v18046_v19  ;;  %v10470_v23 = vpop.f32.mrb[17].mxu1  ;;  %13487 = vmatprep.subr.bf16.mxu0 %v18032_v13 }
 0x64e   : > { %v10588_v48 = vadd.f32 %v18046_v19, %v10470_v23  ;;  %v13414_v45 = vpop.f32.mrb[18].mxu1  ;;  %13455 = vmatprep.mubr.bf16.mxu0 %v10642_v39  ;;  %13503 = vmatprep.mubr.bf16.mxu1 %v10642_v39 }
 0x64f   : > { %v10591_v53 = vadd.f32 %v13414_v45, %v18046_v19  ;;  %v10473_v31 = vpop.f32.mrb[19].mxu1  ;;  %13456 = vmatmul.mubr.bf16.gmra.mrb[44].mxu0 %v10643_v30  ;;  %13504 = vmatmul.mubr.bf16.gmra.mrb[40].mxu1 %v10643_v30  ;;  %v10622_v58 = vmax.f32 %v10590_v61, 0.0 }
 0x650   : > { %v10589_v9 = vadd.f32 %v18046_v19, %v10473_v31  ;;  %13488 = vmatpush3.bf16.msra.mxu0 %v18032_v13  ;;  %v10620_v43 = vmax.f32 %v10588_v48, 0.0 }
 0x651   : > { %v10623_v21 = vmax.f32 %v10591_v53, 0.0  ;;  %13489 = vmatprep.subr.bf16.mxu0 %v18037_v5 }
 0x652   : > { %v10621_v55 = vmax.f32 %v10589_v9, 0.0 }
 0x653   : > { %v10645_v63 = vpack.c.bf16 %v10623_v21, %v10622_v58 }
 0x654   : > { %v10644_v4 = vpack.c.bf16 %v10621_v55, %v10620_v43  ;;  %v13417_v12 = vpop.f32.mrb[20].mxu1  ;;  %13490 = vmatpush3.bf16.msra.mxu0 %v18037_v5 }
 0x655   : > { %v10594_v44 = vadd.f32 %v13417_v12, %v18046_v19  ;;  %v10486_v11 = vpop.f32.mrb[21].mxu1 }
 0x656   : > { %v10592_v14 = vadd.f32 %v18046_v19, %v10486_v11  ;;  %v13418_v1 = vpop.f32.mrb[22].mxu1  ;;  %13459 = vmatprep.mubr.bf16.mxu0 %v10644_v4  ;;  %13507 = vmatprep.mubr.bf16.mxu1 %v10644_v4 }
 0x657   : > { %v10595_v13 = vadd.f32 %v13418_v1, %v18046_v19  ;;  %v10489_v27 = vpop.f32.mrb[23].mxu1  ;;  %13460 = vmatmul.mubr.bf16.gmra.mrb[48].mxu0 %v10645_v63  ;;  %13508 = vmatmul.mubr.bf16.gmra.mrb[44].mxu1 %v10645_v63  ;;  %v10626_v0 = vmax.f32 %v10594_v44, 0.0 }
 0x658   : > { %v10593_v16 = vadd.f32 %v18046_v19, %v10489_v27  ;;  %v10624_v24 = vmax.f32 %v10592_v14, 0.0 }
 0x659   : > { %v10627_v49 = vmax.f32 %v10595_v13, 0.0 }
 0x65a   : > { %v10625_v20 = vmax.f32 %v10593_v16, 0.0 }
 0x65b   : > { %v10647_v5 = vpack.c.bf16 %v10627_v49, %v10626_v0 }
 0x65c   : > { %v10646_v40 = vpack.c.bf16 %v10625_v20, %v10624_v24  ;;  %v13421_v62 = vpop.f32.mrb[24].mxu1 }
 0x65d   : > { %v10598_v17 = vadd.f32 %v13421_v62, %v18046_v19  ;;  %v10502_v46 = vpop.f32.mrb[25].mxu1 }
 0x65e   : > { %v10596_v37 = vadd.f32 %v18046_v19, %v10502_v46  ;;  %v13422_v8 = vpop.f32.mrb[26].mxu1  ;;  %13463 = vmatprep.mubr.bf16.mxu0 %v10646_v40  ;;  %13511 = vmatprep.mubr.bf16.mxu1 %v10646_v40 }
 0x65f   : > { %v10599_v59 = vadd.f32 %v13422_v8, %v18046_v19  ;;  %v10505_v34 = vpop.f32.mrb[27].mxu1  ;;  %13464 = vmatmul.mubr.bf16.gmra.mrb[52].mxu0 %v10647_v5  ;;  %13512 = vmatmul.mubr.bf16.gmra.mrb[48].mxu1 %v10647_v5  ;;  %v10630_v41 = vmax.f32 %v10598_v17, 0.0 }
 0x660   : > { %v10597_v25 = vadd.f32 %v18046_v19, %v10505_v34  ;;  %v10628_v32 = vmax.f32 %v10596_v37, 0.0 }
 0x661   : > { %v10631_v42 = vmax.f32 %v10599_v59, 0.0 }
 0x662   : > { %v10629_v52 = vmax.f32 %v10597_v25, 0.0 }
 0x663   : > { %v10649_v6 = vpack.c.bf16 %v10631_v42, %v10630_v41 }
 0x664   : > { %v10648_v22 = vpack.c.bf16 %v10629_v52, %v10628_v32  ;;  %v13425_v18 = vpop.f32.mrb[28].mxu1 }
 0x665   : > { %v10602_v3 = vadd.f32 %v13425_v18, %v18046_v19  ;;  %v10518_v38 = vpop.f32.mrb[29].mxu1 }
 0x666   : > { %v10600_v56 = vadd.f32 %v18046_v19, %v10518_v38  ;;  %v13426_v7 = vpop.f32.mrb[30].mxu1  ;;  %13467 = vmatprep.mubr.bf16.mxu0 %v10648_v22  ;;  %13515 = vmatprep.mubr.bf16.mxu1 %v10648_v22 }
 0x667   : > { %v10603_v2 = vadd.f32 %v13426_v7, %v18046_v19  ;;  %v10521_v51 = vpop.f32.mrb[31].mxu1  ;;  %13468 = vmatmul.mubr.bf16.gmra.mrb[56].mxu0 %v10649_v6  ;;  %13516 = vmatmul.mubr.bf16.gmra.mrb[52].mxu1 %v10649_v6  ;;  %v10634_v50 = vmax.f32 %v10602_v3, 0.0 }
 0x668   : > { %v10601_v35 = vadd.f32 %v18046_v19, %v10521_v51  ;;  %v10632_v29 = vmax.f32 %v10600_v56, 0.0 }
 0x669   : > { %v10635_v54 = vmax.f32 %v10603_v2, 0.0 }
 0x66a   : > { %v10633_v57 = vmax.f32 %v10601_v35, 0.0 }
 0x66b   : > { %v10651_v36 = vpack.c.bf16 %v10635_v54, %v10634_v50 }
 0x66c   : > { %v10650_v33 = vpack.c.bf16 %v10633_v57, %v10632_v29 }
 0x66e   : > { %13471 = vmatprep.mubr.bf16.mxu0 %v10650_v33  ;;  %13519 = vmatprep.mubr.bf16.mxu1 %v10650_v33 }
 0x66f   : > { %13472 = vmatmul.mubr.bf16.gmra.mrb[60].mxu0 %v10651_v36  ;;  %13520 = vmatmul.mubr.bf16.gmra.mrb[56].mxu1 %v10651_v36 }
 0x670   : > { %13491 = vmatprep.mubr.bf16.mxu0 %v18054_v10 }
 0x677   : > { %13492 = vmatmul.mubr.bf16.vlgmr.msra.gmra.mrb[64].mxu0 %v18052_v28 }
 0x70a   : > { %v13445_v19 = vpop.f32.mrb[32].mxu0 }
 0x70b   : > { %v10766_v10 = vadd.f32 %v13445_v19, %v18107_v47  ;;  %v10757_v15 = vpop.f32.mrb[33].mxu0 }
 0x70c   : > { %v10758_v28 = vadd.f32 %v18107_v47, %v10757_v15  ;;  %v13446_v26 = vpop.f32.mrb[34].mxu0 }
 0x70d   : > { %10886 = vst [vmem:[%s18112_s12 + $0x20] sm:$0xff] %v10766_v10  ;;  %v10769_v30 = vadd.f32 %v13446_v26, %v18107_v47  ;;  %v10760_v39 = vpop.f32.mrb[35].mxu0 }
 0x70e   : > { %10884 = vst [vmem:[%s18112_s12] sm:$0xff] %v10758_v28  ;;  %v10761_v60 = vadd.f32 %v18107_v47, %v10760_v39 }
 0x70f   : > { %10887 = vst [vmem:[%s18112_s12 + $0x28] sm:$0xff] %v10769_v30 }
 0x710   : > { %10885 = vst [vmem:[%s18112_s12 + $0x8] sm:$0xff] %v10761_v60 }
 0x712   : > { %v13449_v61 = vpop.f32.mrb[36].mxu0  ;;  %v13497_v23 = vpop.f32.mrb[32].mxu1 }
 0x713   : > { %v10782_v48 = vadd.f32 %v13449_v61, %v18107_v47  ;;  %v11046_v45 = vadd.f32 %v13497_v23, %v18107_v47  ;;  %v10773_v53 = vpop.f32.mrb[37].mxu0  ;;  %v11037_v31 = vpop.f32.mrb[33].mxu1 }
 0x714   : > { %v10774_v9 = vadd.f32 %v18107_v47, %v10773_v53  ;;  %v11038_v58 = vadd.f32 %v18107_v47, %v11037_v31  ;;  %v13450_v21 = vpop.f32.mrb[38].mxu0  ;;  %v13498_v43 = vpop.f32.mrb[34].mxu1 }
 0x715   : > { %10890 = vst [vmem:[%s18112_s12 + $0x60] sm:$0xff] %v10782_v48  ;;  %12130 = vst [vmem:[%s18112_s12 + $0x70] sm:$0xff] %v11046_v45  ;;  %v10785_v55 = vadd.f32 %v13450_v21, %v18107_v47  ;;  %v11049_v63 = vadd.f32 %v13498_v43, %v18107_v47  ;;  %v10776_v4 = vpop.f32.mrb[39].mxu0  ;;  %v11040_v12 = vpop.f32.mrb[35].mxu1 }
 0x716   : > { %10888 = vst [vmem:[%s18112_s12 + $0x40] sm:$0xff] %v10774_v9  ;;  %12128 = vst [vmem:[%s18112_s12 + $0x50] sm:$0xff] %v11038_v58  ;;  %v10777_v44 = vadd.f32 %v18107_v47, %v10776_v4  ;;  %v11041_v11 = vadd.f32 %v18107_v47, %v11040_v12 }
 0x717   : > { %10891 = vst [vmem:[%s18112_s12 + $0x68] sm:$0xff] %v10785_v55  ;;  %12131 = vst [vmem:[%s18112_s12 + $0x78] sm:$0xff] %v11049_v63 }
 0x718   : > { %10889 = vst [vmem:[%s18112_s12 + $0x48] sm:$0xff] %v10777_v44  ;;  %12129 = vst [vmem:[%s18112_s12 + $0x58] sm:$0xff] %v11041_v11 }
 0x71a   : > { %v13453_v14 = vpop.f32.mrb[40].mxu0  ;;  %v13501_v1 = vpop.f32.mrb[36].mxu1 }
 0x71b   : > { %v10798_v13 = vadd.f32 %v13453_v14, %v18107_v47  ;;  %v11062_v27 = vadd.f32 %v13501_v1, %v18107_v47  ;;  %v10789_v16 = vpop.f32.mrb[41].mxu0  ;;  %v11053_v0 = vpop.f32.mrb[37].mxu1 }
 0x71c   : > { %v10790_v49 = vadd.f32 %v18107_v47, %v10789_v16  ;;  %v11054_v24 = vadd.f32 %v18107_v47, %v11053_v0  ;;  %v13454_v20 = vpop.f32.mrb[42].mxu0  ;;  %v13502_v5 = vpop.f32.mrb[38].mxu1 }
 0x71d   : > { %10894 = vst [vmem:[%s18112_s12 + $0xa0] sm:$0xff] %v10798_v13  ;;  %12134 = vst [vmem:[%s18112_s12 + $0xb0] sm:$0xff] %v11062_v27  ;;  %v10801_v40 = vadd.f32 %v13454_v20, %v18107_v47  ;;  %v11065_v62 = vadd.f32 %v13502_v5, %v18107_v47  ;;  %v10792_v17 = vpop.f32.mrb[43].mxu0  ;;  %v11056_v46 = vpop.f32.mrb[39].mxu1 }
 0x71e   : > { %10892 = vst [vmem:[%s18112_s12 + $0x80] sm:$0xff] %v10790_v49  ;;  %12132 = vst [vmem:[%s18112_s12 + $0x90] sm:$0xff] %v11054_v24  ;;  %v10793_v37 = vadd.f32 %v18107_v47, %v10792_v17  ;;  %v11057_v8 = vadd.f32 %v18107_v47, %v11056_v46 }
 0x71f   : > { %10895 = vst [vmem:[%s18112_s12 + $0xa8] sm:$0xff] %v10801_v40  ;;  %12135 = vst [vmem:[%s18112_s12 + $0xb8] sm:$0xff] %v11065_v62 }
 0x720   : > { %10893 = vst [vmem:[%s18112_s12 + $0x88] sm:$0xff] %v10793_v37  ;;  %12133 = vst [vmem:[%s18112_s12 + $0x98] sm:$0xff] %v11057_v8 }
 0x722   : > { %v13457_v59 = vpop.f32.mrb[44].mxu0  ;;  %v13505_v34 = vpop.f32.mrb[40].mxu1 }
 0x723   : > { %v10814_v25 = vadd.f32 %v13457_v59, %v18107_v47  ;;  %v11078_v41 = vadd.f32 %v13505_v34, %v18107_v47  ;;  %v10805_v42 = vpop.f32.mrb[45].mxu0  ;;  %v11069_v32 = vpop.f32.mrb[41].mxu1 }
 0x724   : > { %v10806_v52 = vadd.f32 %v18107_v47, %v10805_v42  ;;  %v11070_v6 = vadd.f32 %v18107_v47, %v11069_v32  ;;  %v13458_v22 = vpop.f32.mrb[46].mxu0  ;;  %v13506_v18 = vpop.f32.mrb[42].mxu1 }
 0x725   : > { %10898 = vst [vmem:[%s18112_s12 + $0xe0] sm:$0xff] %v10814_v25  ;;  %12138 = vst [vmem:[%s18112_s12 + $0xf0] sm:$0xff] %v11078_v41  ;;  %v10817_v3 = vadd.f32 %v13458_v22, %v18107_v47  ;;  %v11081_v38 = vadd.f32 %v13506_v18, %v18107_v47  ;;  %v10808_v56 = vpop.f32.mrb[47].mxu0  ;;  %v11072_v7 = vpop.f32.mrb[43].mxu1 }
 0x726   : > { %10896 = vst [vmem:[%s18112_s12 + $0xc0] sm:$0xff] %v10806_v52  ;;  %12136 = vst [vmem:[%s18112_s12 + $0xd0] sm:$0xff] %v11070_v6  ;;  %v10809_v2 = vadd.f32 %v18107_v47, %v10808_v56  ;;  %v11073_v51 = vadd.f32 %v18107_v47, %v11072_v7 }
 0x727   : > { %10899 = vst [vmem:[%s18112_s12 + $0xe8] sm:$0xff] %v10817_v3  ;;  %12139 = vst [vmem:[%s18112_s12 + $0xf8] sm:$0xff] %v11081_v38 }
 0x728   : > { %10897 = vst [vmem:[%s18112_s12 + $0xc8] sm:$0xff] %v10809_v2  ;;  %12137 = vst [vmem:[%s18112_s12 + $0xd8] sm:$0xff] %v11073_v51 }
 0x72a   : > { %v13461_v35 = vpop.f32.mrb[48].mxu0  ;;  %v13509_v50 = vpop.f32.mrb[44].mxu1 }
 0x72b   : > { %v10830_v54 = vadd.f32 %v13461_v35, %v18107_v47  ;;  %v11094_v29 = vadd.f32 %v13509_v50, %v18107_v47  ;;  %v10821_v57 = vpop.f32.mrb[49].mxu0  ;;  %v11085_v36 = vpop.f32.mrb[45].mxu1 }
 0x72c   : > { %v10822_v33 = vadd.f32 %v18107_v47, %v10821_v57  ;;  %v11086_v19 = vadd.f32 %v18107_v47, %v11085_v36  ;;  %v13462_v10 = vpop.f32.mrb[50].mxu0  ;;  %v13510_v15 = vpop.f32.mrb[46].mxu1 }
 0x72d   : > { %10902 = vst [vmem:[%s18112_s12 + $0x120] sm:$0xff] %v10830_v54  ;;  %12142 = vst [vmem:[%s18112_s12 + $0x130] sm:$0xff] %v11094_v29  ;;  %v10833_v28 = vadd.f32 %v13462_v10, %v18107_v47  ;;  %v11097_v26 = vadd.f32 %v13510_v15, %v18107_v47  ;;  %v10824_v30 = vpop.f32.mrb[51].mxu0  ;;  %v11088_v39 = vpop.f32.mrb[47].mxu1 }
 0x72e   : > { %10900 = vst [vmem:[%s18112_s12 + $0x100] sm:$0xff] %v10822_v33  ;;  %12140 = vst [vmem:[%s18112_s12 + $0x110] sm:$0xff] %v11086_v19  ;;  %v10825_v60 = vadd.f32 %v18107_v47, %v10824_v30  ;;  %v11089_v61 = vadd.f32 %v18107_v47, %v11088_v39 }
 0x72f   : > { %10903 = vst [vmem:[%s18112_s12 + $0x128] sm:$0xff] %v10833_v28  ;;  %12143 = vst [vmem:[%s18112_s12 + $0x138] sm:$0xff] %v11097_v26 }
 0x730   : > { %10901 = vst [vmem:[%s18112_s12 + $0x108] sm:$0xff] %v10825_v60  ;;  %12141 = vst [vmem:[%s18112_s12 + $0x118] sm:$0xff] %v11089_v61 }
 0x732   : > { %v13465_v23 = vpop.f32.mrb[52].mxu0  ;;  %v13513_v48 = vpop.f32.mrb[48].mxu1 }
 0x733   : > { %v10846_v45 = vadd.f32 %v13465_v23, %v18107_v47  ;;  %v11110_v53 = vadd.f32 %v13513_v48, %v18107_v47  ;;  %v10837_v31 = vpop.f32.mrb[53].mxu0  ;;  %v11101_v9 = vpop.f32.mrb[49].mxu1 }
 0x734   : > { %v10838_v58 = vadd.f32 %v18107_v47, %v10837_v31  ;;  %v11102_v21 = vadd.f32 %v18107_v47, %v11101_v9  ;;  %v13466_v43 = vpop.f32.mrb[54].mxu0  ;;  %v13514_v55 = vpop.f32.mrb[50].mxu1 }
 0x735   : > { %10906 = vst [vmem:[%s18112_s12 + $0x160] sm:$0xff] %v10846_v45  ;;  %12146 = vst [vmem:[%s18112_s12 + $0x170] sm:$0xff] %v11110_v53  ;;  %v10849_v63 = vadd.f32 %v13466_v43, %v18107_v47  ;;  %v11113_v4 = vadd.f32 %v13514_v55, %v18107_v47  ;;  %v10840_v12 = vpop.f32.mrb[55].mxu0  ;;  %v11104_v44 = vpop.f32.mrb[51].mxu1 }
 0x736   : > { %10904 = vst [vmem:[%s18112_s12 + $0x140] sm:$0xff] %v10838_v58  ;;  %12144 = vst [vmem:[%s18112_s12 + $0x150] sm:$0xff] %v11102_v21  ;;  %v10841_v11 = vadd.f32 %v18107_v47, %v10840_v12  ;;  %v11105_v14 = vadd.f32 %v18107_v47, %v11104_v44 }
 0x737   : > { %10907 = vst [vmem:[%s18112_s12 + $0x168] sm:$0xff] %v10849_v63  ;;  %12147 = vst [vmem:[%s18112_s12 + $0x178] sm:$0xff] %v11113_v4 }
 0x738   : > { %10905 = vst [vmem:[%s18112_s12 + $0x148] sm:$0xff] %v10841_v11  ;;  %12145 = vst [vmem:[%s18112_s12 + $0x158] sm:$0xff] %v11105_v14 }
 0x73a   : > { %v13469_v1 = vpop.f32.mrb[56].mxu0  ;;  %v13517_v13 = vpop.f32.mrb[52].mxu1 }
 0x73b   : > { %v10862_v27 = vadd.f32 %v13469_v1, %v18107_v47  ;;  %v11126_v16 = vadd.f32 %v13517_v13, %v18107_v47  ;;  %v10853_v0 = vpop.f32.mrb[57].mxu0  ;;  %v11117_v49 = vpop.f32.mrb[53].mxu1 }
 0x73c   : > { %v10854_v24 = vadd.f32 %v18107_v47, %v10853_v0  ;;  %v11118_v20 = vadd.f32 %v18107_v47, %v11117_v49  ;;  %v13470_v5 = vpop.f32.mrb[58].mxu0  ;;  %v13518_v40 = vpop.f32.mrb[54].mxu1 }
 0x73d   : > { %10910 = vst [vmem:[%s18112_s12 + $0x1a0] sm:$0xff] %v10862_v27  ;;  %12150 = vst [vmem:[%s18112_s12 + $0x1b0] sm:$0xff] %v11126_v16  ;;  %v10865_v62 = vadd.f32 %v13470_v5, %v18107_v47  ;;  %v11129_v17 = vadd.f32 %v13518_v40, %v18107_v47  ;;  %v10856_v46 = vpop.f32.mrb[59].mxu0  ;;  %v11120_v37 = vpop.f32.mrb[55].mxu1 }
 0x73e   : > { %10908 = vst [vmem:[%s18112_s12 + $0x180] sm:$0xff] %v10854_v24  ;;  %12148 = vst [vmem:[%s18112_s12 + $0x190] sm:$0xff] %v11118_v20  ;;  %v10857_v8 = vadd.f32 %v18107_v47, %v10856_v46  ;;  %v11121_v59 = vadd.f32 %v18107_v47, %v11120_v37 }
 0x73f   : > { %10911 = vst [vmem:[%s18112_s12 + $0x1a8] sm:$0xff] %v10865_v62  ;;  %12151 = vst [vmem:[%s18112_s12 + $0x1b8] sm:$0xff] %v11129_v17 }
 0x740   : > { %10909 = vst [vmem:[%s18112_s12 + $0x188] sm:$0xff] %v10857_v8  ;;  %12149 = vst [vmem:[%s18112_s12 + $0x198] sm:$0xff] %v11121_v59 }
 0x742   : > { %v13473_v34 = vpop.f32.mrb[60].mxu0  ;;  %v13521_v25 = vpop.f32.mrb[56].mxu1 }
 0x743   : > { %v10878_v41 = vadd.f32 %v13473_v34, %v18107_v47  ;;  %v11142_v42 = vadd.f32 %v13521_v25, %v18107_v47  ;;  %v10869_v32 = vpop.f32.mrb[61].mxu0  ;;  %v11133_v52 = vpop.f32.mrb[57].mxu1 }
 0x744   : > { %v10870_v6 = vadd.f32 %v18107_v47, %v10869_v32  ;;  %v11134_v22 = vadd.f32 %v18107_v47, %v11133_v52  ;;  %v13474_v18 = vpop.f32.mrb[62].mxu0  ;;  %v13522_v3 = vpop.f32.mrb[58].mxu1 }
 0x745   : > { %10914 = vst [vmem:[%s18112_s12 + $0x1e0] sm:$0xff] %v10878_v41  ;;  %12154 = vst [vmem:[%s18112_s12 + $0x1f0] sm:$0xff] %v11142_v42  ;;  %v10881_v38 = vadd.f32 %v13474_v18, %v18107_v47  ;;  %v11145_v56 = vadd.f32 %v13522_v3, %v18107_v47  ;;  %v10872_v7 = vpop.f32.mrb[63].mxu0  ;;  %v11136_v2 = vpop.f32.mrb[59].mxu1 }
 0x746   : > { %10912 = vst [vmem:[%s18112_s12 + $0x1c0] sm:$0xff] %v10870_v6  ;;  %12152 = vst [vmem:[%s18112_s12 + $0x1d0] sm:$0xff] %v11134_v22  ;;  %v10873_v51 = vadd.f32 %v18107_v47, %v10872_v7  ;;  %v11137_v35 = vadd.f32 %v18107_v47, %v11136_v2 }
 0x747   : > { %10915 = vst [vmem:[%s18112_s12 + $0x1e8] sm:$0xff] %v10881_v38  ;;  %12155 = vst [vmem:[%s18112_s12 + $0x1f8] sm:$0xff] %v11145_v56 }
 0x748   : > { %10913 = vst [vmem:[%s18112_s12 + $0x1c8] sm:$0xff] %v10873_v51  ;;  %12153 = vst [vmem:[%s18112_s12 + $0x1d8] sm:$0xff] %v11137_v35 }
 0x74a   : > { %v13493_v50 = vpop.f32.mrb[64].mxu0 }
 0x74b   : > { %v11030_v54 = vadd.f32 %v13493_v50, %v18107_v47  ;;  %v11021_v29 = vpop.f32.mrb[65].mxu0 }
 0x74c   : > { %v11022_v57 = vadd.f32 %v18107_v47, %v11021_v29  ;;  %v13494_v36 = vpop.f32.mrb[66].mxu0 }
 0x74d   : > { %12126 = vst [vmem:[%s18112_s12 + $0x30] sm:$0xff] %v11030_v54  ;;  %v11033_v33 = vadd.f32 %v13494_v36, %v18107_v47  ;;  %v11024_v19 = vpop.f32.mrb[67].mxu0 }
 0x74e   : > { %12124 = vst [vmem:[%s18112_s12 + $0x10] sm:$0xff] %v11022_v57  ;;  %v11025_v10 = vadd.f32 %v18107_v47, %v11024_v19 }
 0x74f   : > { %12127 = vst [vmem:[%s18112_s12 + $0x38] sm:$0xff] %v11033_v33 }
 0x750   : > { %12125 = vst [vmem:[%s18112_s12 + $0x18] sm:$0xff] %v11025_v10 }
 0x751 PF: > { %s18_s27 = sadd.s32 1, %s14337_s27  }
 0x752   : > { %p15_p4 = scmp.ge.s32.totalorder %s18_s27, 4  }
 0x754   :  { %17 = sbr.rel (!%p15_p4) target bundleno = 1 (0x1), region = 87 }

</bundles_post_ra>
